<compile_context>
chip_gen: v7x
topology: tpu7x:2x2x1
jax: 0.10.0
libtpu: 0.0.40
codegen_flags: <defaults>
</compile_context>

<pallas_src>
import numpy as np
import jax
import jax.numpy as jnp
from jax import lax
from jax.experimental import pallas as pl
from jax.experimental.pallas import tpu as pltpu


# --------------------------------------------------------------- raw params --
def build_raw_params(key, S, H, L):
    """Synthetic parameters in natural (per-module) layouts.

    Linear weights are stored (in, out) -> plain x @ W.  LSTM weights are
    fused per layer: w_ih (in, 4H), w_hh (H, 4H), single bias (1, 4H)
    (= b_ih + b_hh), gate order (i, f, o, g).
    """
    keys = iter(jax.random.split(key, 128))

    def uni(shape, bound):
        return np.asarray(
            jax.random.uniform(next(keys), shape, jnp.float32, -bound, bound))

    def lin(i, o):
        b = float(i) ** -0.5
        return uni((i, o), b), uni((1, o), b)

    def lstm(i):
        b = float(H) ** -0.5
        return dict(w_ih=uni((i, 4 * H), b),
                    w_hh=uni((H, 4 * H), b),
                    b=uni((1, 4 * H), b) + uni((1, 4 * H), b))

    return dict(
        # strain_compressor: Lin(S,H) ReLU, Lin(H,H) ReLU, Lin(H,H) ReLU,
        # Dropout(identity), Lin(H,S) ReLU
        comp=[lin(S, H), lin(H, H), lin(H, H), lin(H, S)],
        enc=[lstm(S if l == 0 else H) for l in range(L)],
        dec_f=[lstm(S if l == 0 else H) for l in range(L)],
        dec_b=[lstm(S if l == 0 else H) for l in range(L)],
        # after_lstm_forward: 6x (Lin(H,H)+ReLU), final Lin(H,S)
        after_f=[lin(H, H) for _ in range(6)] + [lin(H, S)],
        # after_lstm_backward: 5x (Lin(H,H)+ReLU), final Lin(H,S)
        after_b=[lin(H, H) for _ in range(5)] + [lin(H, S)],
        mean=[lin(H, H), lin(H, H)],
        logvar=[lin(H, H), lin(H, H)],
    )


# ------------------------------------------------------------- slab packing --
_LANES = 256  # widest fused weight (decoder block-diagonal gates: 8H = 256)


class _SlabPacker:
    """Packs 2-D f32 blocks into one (R, 256) slab; 8-row-aligned starts."""

    def __init__(self, lanes=_LANES):
        self.lanes = lanes
        self.rows = 0
        self.blocks = []
        self.index = {}

    def add(self, name, arr):
        arr = np.asarray(arr, np.float32)
        if arr.ndim == 1:
            arr = arr[None, :]
        r, c = arr.shape
        assert c <= self.lanes, (name, arr.shape)
        row0 = self.rows
        self.index[name] = (row0, r, c)
        self.blocks.append((row0, arr))
        self.rows = row0 + ((r + 7) // 8) * 8  # keep every block 8-aligned

    def finalize(self):
        slab = np.zeros((max(self.rows, 8), self.lanes), np.float32)
        for row0, arr in self.blocks:
            slab[row0:row0 + arr.shape[0], :arr.shape[1]] = arr
        return jnp.asarray(slab), self.index


def _blockdiag(a, b):
    ra, ca = a.shape
    rb, cb = b.shape
    out = np.zeros((ra + rb, ca + cb), np.float32)
    out[:ra, :ca] = a
    out[ra:, ca:] = b
    return out


def pack_params(raw, S, H, L):
    """Fuse + pack every parameter into a single lane-dense (R, 256) slab."""
    pk = _SlabPacker()

    # strain_compressor (plain; used on the (T*B, S) encoder prologue batch)
    for i, (w, b) in enumerate(raw['comp']):
        pk.add(f'comp_w{i}', w)
        pk.add(f'comp_b{i}', b)

    # strain_compressor duplicated block-diagonally across the 2 decoder
    # streams (same weights in both blocks, as in the reference module).
    for i, (w, b) in enumerate(raw['comp']):
        pk.add(f'compbd_w{i}', _blockdiag(w, w))
        pk.add(f'compbd_b{i}', np.concatenate([b, b], axis=1))

    # encoder LSTM: layer 0 keeps ih/hh separate (input side is precomputed
    # for all time steps); layers >= 1 get the ih/hh row-concat fusion.
    e0 = raw['enc'][0]
    pk.add('enc0_wih', e0['w_ih'])
    pk.add('enc0_whh', e0['w_hh'])
    pk.add('enc0_b', e0['b'])
    for l in range(1, L):
        el = raw['enc'][l]
        pk.add(f'enc{l}_w', np.concatenate([el['w_ih'], el['w_hh']], axis=0))
        pk.add(f'enc{l}_b', el['b'])

    # decoder LSTMs: forward & backward streams fused into one 256-lane
    # block-diagonal weight per layer.
    #   rows:    [z_f (in) | z_b (in) | h_f (H) | h_b (H)]
    #   columns: gate-major, stream-minor -> [i_f i_b f_f f_b o_f o_b g_f g_b]
    for l in range(L):
        fin = S if l == 0 else H
        wf, wb = raw['dec_f'][l], raw['dec_b'][l]
        W = np.zeros((2 * fin + 2 * H, 8 * H), np.float32)
        bcat = np.zeros((1, 8 * H), np.float32)
        for gi in range(4):                 # raw gate order (i, f, o, g)
            for s, wd in enumerate((wf, wb)):
                col = (2 * gi + s) * H
                W[s * fin:(s + 1) * fin, col:col + H] = \
                    wd['w_ih'][:, gi * H:(gi + 1) * H]
                W[2 * fin + s * H:2 * fin + (s + 1) * H, col:col + H] = \
                    wd['w_hh'][:, gi * H:(gi + 1) * H]
                bcat[:, col:col + H] = wd['b'][:, gi * H:(gi + 1) * H]
        pk.add(f'dec{l}_w', W)
        pk.add(f'dec{l}_b', bcat)

    # mean / logvar heads fused (they share the same input h_cat).
    (mw1, mb1), (mw2, mb2) = raw['mean']
    (lw1, lb1), (lw2, lb2) = raw['logvar']
    pk.add('ml_w1', np.concatenate([mw1, lw1], axis=1))
    pk.add('ml_b1', np.concatenate([mb1, lb1], axis=1))
    pk.add('ml_w2', _blockdiag(mw2, lw2))
    pk.add('ml_b2', np.concatenate([mb2, lb2], axis=1))

    # output heads: fwd has 6 hidden layers, bwd has 5.  fwd's first hidden
    # layer runs alone; the remaining 5 hidden layers + the final projection
    # run block-diagonally on [fwd | bwd].
    af, ab = raw['after_f'], raw['after_b']
    pk.add('aff0_w', af[0][0])
    pk.add('aff0_b', af[0][1])
    for i in range(5):
        pk.add(f'aft{i}_w', _blockdiag(af[i + 1][0], ab[i][0]))
        pk.add(f'aft{i}_b', np.concatenate([af[i + 1][1], ab[i][1]], axis=1))
    pk.add('afp_w', _blockdiag(af[6][0], ab[5][0]))
    pk.add('afp_b', np.concatenate([af[6][1], ab[5][1]], axis=1))

    return pk.finalize()


# ------------------------------------------------------------------ wrapper --
def variational_encoder_decoder_forward(x, eps, slab, index, *, hidden_dim,
                                        num_lstms):
    T, B, S = x.shape
    H, L = hidden_dim, num_lstms

    x2 = x.reshape(T * B, S)          # host-side reshapes are free
    eps2 = eps.reshape(L * B, H)

    def kernel(x_ref, eps_ref, slab_ref, out_ref):
        def getp(name):
            # Lazy, static, 8-row-aligned slice into the parameter slab.
            r0, r, c = index[name]
            return slab_ref[r0:r0 + r, :c]

        def matmul(a, b):
            return lax.dot_general(a, b, (((1,), (0,)), ((), ())),
                                   preferred_element_type=jnp.float32)

        def comp(z, prefix):          # strain_compressor (Dropout = identity)
            for i in range(4):
                z = jnp.maximum(
                    matmul(z, getp(f'{prefix}_w{i}')) + getp(f'{prefix}_b{i}'),
                    0.0)
            return z

        def activate(gates, c, nh):
            # gate columns: [i (nh) | f (nh) | o (nh) | g (nh)]; for the fused
            # decoder nh = 2H and each block is [fwd | bwd] stream-minor, so
            # one sigmoid + one tanh + one elementwise update serve both.
            sg = jax.nn.sigmoid(gates[:, :3 * nh])
            gg = jnp.tanh(gates[:, 3 * nh:])
            i_, f_, o_ = sg[:, :nh], sg[:, nh:2 * nh], sg[:, 2 * nh:3 * nh]
            c_new = f_ * c + i_ * gg
            return o_ * jnp.tanh(c_new), c_new

        # ---- strain_compressor over the whole input sequence at once ------
        d = comp(x_ref[...], 'comp')                             # (T*B, S)

        # ---- encoder layer-0 input-side gate pre-activations, all steps ---
        xg0 = matmul(d, getp('enc0_wih')) + getp('enc0_b')       # (T*B, 4H)
        xg0 = xg0.reshape(T, B, 4 * H)       # per-step reads are tile-aligned
        d_last = d.reshape(T, B, S)[T - 1]                       # (B, S)

        # ---- encoder LSTM stack (fully unrolled: T static & small) --------
        hs = [jnp.zeros((B, H), jnp.float32) for _ in range(L)]
        cs = [jnp.zeros((B, H), jnp.float32) for _ in range(L)]
        for t in range(T):
            g0 = xg0[t] + matmul(hs[0], getp('enc0_whh'))
            hs[0], cs[0] = activate(g0, cs[0], H)
            for l in range(1, L):
                xcat = jnp.concatenate([hs[l - 1], hs[l]], axis=1)   # (B, 2H)
                gl = matmul(xcat, getp(f'enc{l}_w')) + getp(f'enc{l}_b')
                hs[l], cs[l] = activate(gl, cs[l], H)

        # ---- variational head (mean/logvar fused) over all L layers -------
        h_cat = jnp.concatenate(hs, axis=0)                      # (L*B, H)
        z1 = jnp.maximum(matmul(h_cat, getp('ml_w1')) + getp('ml_b1'), 0.0)
        z2 = jnp.maximum(matmul(z1, getp('ml_w2')) + getp('ml_b2'), 0.0)
        mu, logvar = z2[:, :H], z2[:, H:]
        r = eps_ref[...] * jnp.exp(0.5 * logvar) + mu            # (L*B, H)
        r = r.reshape(L, B, H)

        # ---- bidirectional decoders: both streams fused per layer ---------
        # state layout per layer: h = [h_fwd | h_bwd], c = [c_fwd | c_bwd]
        dh = [jnp.concatenate([r[l], r[l]], axis=1) for l in range(L)]
        dc = [jnp.concatenate([cs[l], cs[l]], axis=1) for l in range(L)]
        z = jnp.concatenate([d_last, d_last], axis=1)            # (B, 2S)

        preds = []
        for step in range(T):                      # fully unrolled decode loop
            for l in range(L):
                xcat = jnp.concatenate([z, dh[l]], axis=1)
                gl = matmul(xcat, getp(f'dec{l}_w')) + getp(f'dec{l}_b')
                dh[l], dc[l] = activate(gl, dc[l], 2 * H)
                z = dh[l]                                        # (B, 2H)
            # output heads: fwd-only extra hidden layer, 5 shared block-diag
            # hidden layers, block-diag final projection.
            zf = jnp.maximum(matmul(z[:, :H], getp('aff0_w')) + getp('aff0_b'),
                             0.0)
            za = jnp.concatenate([zf, z[:, H:]], axis=1)         # (B, 2H)
            for i in range(5):
                za = jnp.maximum(
                    matmul(za, getp(f'aft{i}_w')) + getp(f'aft{i}_b'), 0.0)
            pred = matmul(za, getp('afp_w')) + getp('afp_b')     # (B, 2S)
            preds.append(pred)
            if step + 1 < T:
                z = comp(pred, 'compbd')                         # (B, 2S)

        # one packed store / one output DMA for all T steps
        out_ref[...] = jnp.stack(preds, axis=0)                  # (T, B, 2S)

    vmem = pl.BlockSpec(memory_space=pltpu.MemorySpace.VMEM)
    out = pl.pallas_call(
        kernel,
        out_shape=jax.ShapeDtypeStruct((T, B, 2 * S), jnp.float32),
        in_specs=[vmem, vmem, vmem],
        out_specs=vmem,
    )(x2, eps2, slab)

    # forward_pred.transpose(1, 2).transpose(0, 2): (T, B, S) -> (B, S, T)
    fwd = jnp.transpose(out[:, :, :S], (1, 2, 0))
    bwd = jnp.transpose(out[:, :, S:], (1, 2, 0))
    return fwd, bwd


# --------------------------------------------------------------------- main --
if __name__ == "__main__":
    key = jax.random.PRNGKey(0)
    k_param, k_x, k_eps = jax.random.split(key, 3)

    T, B, S, H, L = 8, 2, 8, 32, 2   # seq, batch, num_strains, hidden, num_lstms

    raw = build_raw_params(k_param, S, H, L)
    slab, index = pack_params(raw, S, H, L)

    x = jax.random.normal(k_x, (T, B, S), jnp.float32)
    eps = jax.random.normal(k_eps, (L, B, H), jnp.float32)  # torch.randn equiv.

    fwd, bwd = variational_encoder_decoder_forward(
        x, eps, slab, index, hidden_dim=H, num_lstms=L)
    jax.block_until_ready((fwd, bwd))

    assert fwd.shape == (B, S, T) and bwd.shape == (B, S, T)
    assert fwd.dtype == jnp.float32 and bwd.dtype == jnp.float32
    assert bool(jnp.all(jnp.isfinite(fwd))) and bool(jnp.all(jnp.isfinite(bwd)))
    print("KERNEL_OK")
</pallas_src>

<mosaic_0001>
module attributes {stable_mosaic.version = 11 : i64} {
  func.func @kernel(%arg0: memref<16x8xf32, #tpu.memory_space<vmem>>, %arg1: memref<4x32xf32, #tpu.memory_space<vmem>>, %arg2: memref<1304x256xf32, #tpu.memory_space<vmem>>, %arg3: memref<8x2x16xf32, #tpu.memory_space<vmem>>) attributes {dimension_semantics = [], scalar_prefetch = 0 : i64, scratch_operands = 0 : i64, tpu.core_type = #tpu.core_type<tc>} {
    %c0 = arith.constant 0 : index
    %c0_0 = arith.constant 0 : index
    %0 = vector.load %arg0[%c0, %c0_0] : memref<16x8xf32, #tpu.memory_space<vmem>>, vector<16x8xf32>
    %c0_1 = arith.constant 0 : index
    %c0_2 = arith.constant 0 : index
    %1 = vector.load %arg2[%c0_1, %c0_2] : memref<1304x256xf32, #tpu.memory_space<vmem>>, vector<8x32xf32>
    %cst = arith.constant dense<0.000000e+00> : vector<16x32xf32>
    %2 = tpu.matmul %0, %1, %cst {dimension_numbers = #tpu.dot_dimension_numbers<[1], [0], [0], [1], [0, 0, 1, 1], [], []>} : vector<16x8xf32>, vector<8x32xf32>, vector<16x32xf32> -> vector<16x32xf32>
    %c8 = arith.constant 8 : index
    %c0_3 = arith.constant 0 : index
    %3 = vector.load %arg2[%c8, %c0_3] : memref<1304x256xf32, #tpu.memory_space<vmem>>, vector<1x32xf32>
    %4 = vector.broadcast %3 : vector<1x32xf32> to vector<16x32xf32>
    %5 = arith.addf %2, %4 : vector<16x32xf32>
    %cst_4 = arith.constant 0.000000e+00 : f32
    %6 = vector.broadcast %cst_4 : f32 to vector<16x32xf32>
    %7 = arith.maximumf %5, %6 : vector<16x32xf32>
    %c16 = arith.constant 16 : index
    %c0_5 = arith.constant 0 : index
    %8 = vector.load %arg2[%c16, %c0_5] : memref<1304x256xf32, #tpu.memory_space<vmem>>, vector<32x32xf32>
    %cst_6 = arith.constant dense<0.000000e+00> : vector<16x32xf32>
    %9 = tpu.matmul %7, %8, %cst_6 {dimension_numbers = #tpu.dot_dimension_numbers<[1], [0], [0], [1], [0, 0, 1, 1], [], []>} : vector<16x32xf32>, vector<32x32xf32>, vector<16x32xf32> -> vector<16x32xf32>
    %c48 = arith.constant 48 : index
    %c0_7 = arith.constant 0 : index
    %10 = vector.load %arg2[%c48, %c0_7] : memref<1304x256xf32, #tpu.memory_space<vmem>>, vector<1x32xf32>
    %11 = vector.broadcast %10 : vector<1x32xf32> to vector<16x32xf32>
    %12 = arith.addf %9, %11 : vector<16x32xf32>
    %cst_8 = arith.constant 0.000000e+00 : f32
    %13 = vector.broadcast %cst_8 : f32 to vector<16x32xf32>
    %14 = arith.maximumf %12, %13 : vector<16x32xf32>
    %c56 = arith.constant 56 : index
    %c0_9 = arith.constant 0 : index
    %15 = vector.load %arg2[%c56, %c0_9] : memref<1304x256xf32, #tpu.memory_space<vmem>>, vector<32x32xf32>
    %cst_10 = arith.constant dense<0.000000e+00> : vector<16x32xf32>
    %16 = tpu.matmul %14, %15, %cst_10 {dimension_numbers = #tpu.dot_dimension_numbers<[1], [0], [0], [1], [0, 0, 1, 1], [], []>} : vector<16x32xf32>, vector<32x32xf32>, vector<16x32xf32> -> vector<16x32xf32>
    %c88 = arith.constant 88 : index
    %c0_11 = arith.constant 0 : index
    %17 = vector.load %arg2[%c88, %c0_11] : memref<1304x256xf32, #tpu.memory_space<vmem>>, vector<1x32xf32>
    %18 = vector.broadcast %17 : vector<1x32xf32> to vector<16x32xf32>
    %19 = arith.addf %16, %18 : vector<16x32xf32>
    %cst_12 = arith.constant 0.000000e+00 : f32
    %20 = vector.broadcast %cst_12 : f32 to vector<16x32xf32>
    %21 = arith.maximumf %19, %20 : vector<16x32xf32>
    %c96 = arith.constant 96 : index
    %c0_13 = arith.constant 0 : index
    %22 = vector.load %arg2[%c96, %c0_13] : memref<1304x256xf32, #tpu.memory_space<vmem>>, vector<32x8xf32>
    %cst_14 = arith.constant dense<0.000000e+00> : vector<16x8xf32>
    %23 = tpu.matmul %21, %22, %cst_14 {dimension_numbers = #tpu.dot_dimension_numbers<[1], [0], [0], [1], [0, 0, 1, 1], [], []>} : vector<16x32xf32>, vector<32x8xf32>, vector<16x8xf32> -> vector<16x8xf32>
    %c128 = arith.constant 128 : index
    %c0_15 = arith.constant 0 : index
    %24 = vector.load %arg2[%c128, %c0_15] : memref<1304x256xf32, #tpu.memory_space<vmem>>, vector<1x8xf32>
    %25 = vector.broadcast %24 : vector<1x8xf32> to vector<16x8xf32>
    %26 = arith.addf %23, %25 : vector<16x8xf32>
    %cst_16 = arith.constant 0.000000e+00 : f32
    %27 = vector.broadcast %cst_16 : f32 to vector<16x8xf32>
    %28 = arith.maximumf %26, %27 : vector<16x8xf32>
    %c376 = arith.constant 376 : index
    %c0_17 = arith.constant 0 : index
    %29 = vector.load %arg2[%c376, %c0_17] : memref<1304x256xf32, #tpu.memory_space<vmem>>, vector<8x128xf32>
    %cst_18 = arith.constant dense<0.000000e+00> : vector<16x128xf32>
    %30 = tpu.matmul %28, %29, %cst_18 {dimension_numbers = #tpu.dot_dimension_numbers<[1], [0], [0], [1], [0, 0, 1, 1], [], []>} : vector<16x8xf32>, vector<8x128xf32>, vector<16x128xf32> -> vector<16x128xf32>
    %c416 = arith.constant 416 : index
    %c0_19 = arith.constant 0 : index
    %31 = vector.load %arg2[%c416, %c0_19] : memref<1304x256xf32, #tpu.memory_space<vmem>>, vector<1x128xf32>
    %32 = vector.broadcast %31 : vector<1x128xf32> to vector<16x128xf32>
    %33 = arith.addf %30, %32 : vector<16x128xf32>
    %34 = vector.shape_cast %33 : vector<16x128xf32> to vector<8x2x128xf32>
    %35 = vector.shape_cast %28 : vector<16x8xf32> to vector<8x2x8xf32>
    %36 = vector.extract_strided_slice %35 {offsets = [7, 0, 0], sizes = [1, 2, 8], strides = [1, 1, 1]} : vector<8x2x8xf32> to vector<1x2x8xf32>
    %37 = vector.shape_cast %36 : vector<1x2x8xf32> to vector<2x8xf32>
    %cst_20 = arith.constant 0.000000e+00 : f32
    %38 = vector.broadcast %cst_20 : f32 to vector<2x32xf32>
    %cst_21 = arith.constant 0.000000e+00 : f32
    %39 = vector.broadcast %cst_21 : f32 to vector<2x32xf32>
    %cst_22 = arith.constant 0.000000e+00 : f32
    %40 = vector.broadcast %cst_22 : f32 to vector<2x32xf32>
    %cst_23 = arith.constant 0.000000e+00 : f32
    %41 = vector.broadcast %cst_23 : f32 to vector<2x32xf32>
    %42 = vector.extract_strided_slice %34 {offsets = [0, 0, 0], sizes = [1, 2, 128], strides = [1, 1, 1]} : vector<8x2x128xf32> to vector<1x2x128xf32>
    %43 = vector.shape_cast %42 : vector<1x2x128xf32> to vector<2x128xf32>
    %c384 = arith.constant 384 : index
    %c0_24 = arith.constant 0 : index
    %44 = vector.load %arg2[%c384, %c0_24] : memref<1304x256xf32, #tpu.memory_space<vmem>>, vector<32x128xf32>
    %cst_25 = arith.constant dense<0.000000e+00> : vector<2x128xf32>
    %45 = tpu.matmul %38, %44, %cst_25 {dimension_numbers = #tpu.dot_dimension_numbers<[1], [0], [0], [1], [0, 0, 1, 1], [], []>} : vector<2x32xf32>, vector<32x128xf32>, vector<2x128xf32> -> vector<2x128xf32>
    %46 = arith.addf %43, %45 : vector<2x128xf32>
    %47 = vector.extract_strided_slice %46 {offsets = [0, 0], sizes = [2, 96], strides = [1, 1]} : vector<2x128xf32> to vector<2x96xf32>
    %48 = arith.negf %47 : vector<2x96xf32>
    %49 = math.exp %48 : vector<2x96xf32>
    %cst_26 = arith.constant 1.000000e+00 : f32
    %50 = vector.broadcast %cst_26 : f32 to vector<2x96xf32>
    %51 = arith.addf %50, %49 : vector<2x96xf32>
    %52 = arith.divf %50, %51 : vector<2x96xf32>
    %53 = vector.extract_strided_slice %46 {offsets = [0, 96], sizes = [2, 32], strides = [1, 1]} : vector<2x128xf32> to vector<2x32xf32>
    %54 = math.tanh %53 : vector<2x32xf32>
    %55 = vector.extract_strided_slice %52 {offsets = [0, 0], sizes = [2, 32], strides = [1, 1]} : vector<2x96xf32> to vector<2x32xf32>
    %56 = vector.extract_strided_slice %52 {offsets = [0, 32], sizes = [2, 32], strides = [1, 1]} : vector<2x96xf32> to vector<2x32xf32>
    %57 = vector.extract_strided_slice %52 {offsets = [0, 64], sizes = [2, 32], strides = [1, 1]} : vector<2x96xf32> to vector<2x32xf32>
    %58 = arith.mulf %56, %40 : vector<2x32xf32>
    %59 = arith.mulf %55, %54 : vector<2x32xf32>
    %60 = arith.addf %58, %59 : vector<2x32xf32>
    %61 = math.tanh %60 : vector<2x32xf32>
    %62 = arith.mulf %57, %61 : vector<2x32xf32>
    %63 = tpu.concatenate %62, %39 in 1 : vector<2x32xf32>, vector<2x32xf32> -> vector<2x64xf32>
    %c424 = arith.constant 424 : index
    %c0_27 = arith.constant 0 : index
    %64 = vector.load %arg2[%c424, %c0_27] : memref<1304x256xf32, #tpu.memory_space<vmem>>, vector<64x128xf32>
    %cst_28 = arith.constant dense<0.000000e+00> : vector<2x128xf32>
    %65 = tpu.matmul %63, %64, %cst_28 {dimension_numbers = #tpu.dot_dimension_numbers<[1], [0], [0], [1], [0, 0, 1, 1], [], []>} : vector<2x64xf32>, vector<64x128xf32>, vector<2x128xf32> -> vector<2x128xf32>
    %c488 = arith.constant 488 : index
    %c0_29 = arith.constant 0 : index
    %66 = vector.load %arg2[%c488, %c0_29] : memref<1304x256xf32, #tpu.memory_space<vmem>>, vector<1x128xf32>
    %67 = vector.broadcast %66 : vector<1x128xf32> to vector<2x128xf32>
    %68 = arith.addf %65, %67 : vector<2x128xf32>
    %69 = vector.extract_strided_slice %68 {offsets = [0, 0], sizes = [2, 96], strides = [1, 1]} : vector<2x128xf32> to vector<2x96xf32>
    %70 = arith.negf %69 : vector<2x96xf32>
    %71 = math.exp %70 : vector<2x96xf32>
    %cst_30 = arith.constant 1.000000e+00 : f32
    %72 = vector.broadcast %cst_30 : f32 to vector<2x96xf32>
    %73 = arith.addf %72, %71 : vector<2x96xf32>
    %74 = arith.divf %72, %73 : vector<2x96xf32>
    %75 = vector.extract_strided_slice %68 {offsets = [0, 96], sizes = [2, 32], strides = [1, 1]} : vector<2x128xf32> to vector<2x32xf32>
    %76 = math.tanh %75 : vector<2x32xf32>
    %77 = vector.extract_strided_slice %74 {offsets = [0, 0], sizes = [2, 32], strides = [1, 1]} : vector<2x96xf32> to vector<2x32xf32>
    %78 = vector.extract_strided_slice %74 {offsets = [0, 32], sizes = [2, 32], strides = [1, 1]} : vector<2x96xf32> to vector<2x32xf32>
    %79 = vector.extract_strided_slice %74 {offsets = [0, 64], sizes = [2, 32], strides = [1, 1]} : vector<2x96xf32> to vector<2x32xf32>
    %80 = arith.mulf %78, %41 : vector<2x32xf32>
    %81 = arith.mulf %77, %76 : vector<2x32xf32>
    %82 = arith.addf %80, %81 : vector<2x32xf32>
    %83 = math.tanh %82 : vector<2x32xf32>
    %84 = arith.mulf %79, %83 : vector<2x32xf32>
    %85 = vector.extract_strided_slice %34 {offsets = [1, 0, 0], sizes = [1, 2, 128], strides = [1, 1, 1]} : vector<8x2x128xf32> to vector<1x2x128xf32>
    %86 = vector.shape_cast %85 : vector<1x2x128xf32> to vector<2x128xf32>
    %c384_31 = arith.constant 384 : index
    %c0_32 = arith.constant 0 : index
    %87 = vector.load %arg2[%c384_31, %c0_32] : memref<1304x256xf32, #tpu.memory_space<vmem>>, vector<32x128xf32>
    %cst_33 = arith.constant dense<0.000000e+00> : vector<2x128xf32>
    %88 = tpu.matmul %62, %87, %cst_33 {dimension_numbers = #tpu.dot_dimension_numbers<[1], [0], [0], [1], [0, 0, 1, 1], [], []>} : vector<2x32xf32>, vector<32x128xf32>, vector<2x128xf32> -> vector<2x128xf32>
    %89 = arith.addf %86, %88 : vector<2x128xf32>
    %90 = vector.extract_strided_slice %89 {offsets = [0, 0], sizes = [2, 96], strides = [1, 1]} : vector<2x128xf32> to vector<2x96xf32>
    %91 = arith.negf %90 : vector<2x96xf32>
    %92 = math.exp %91 : vector<2x96xf32>
    %cst_34 = arith.constant 1.000000e+00 : f32
    %93 = vector.broadcast %cst_34 : f32 to vector<2x96xf32>
    %94 = arith.addf %93, %92 : vector<2x96xf32>
    %95 = arith.divf %93, %94 : vector<2x96xf32>
    %96 = vector.extract_strided_slice %89 {offsets = [0, 96], sizes = [2, 32], strides = [1, 1]} : vector<2x128xf32> to vector<2x32xf32>
    %97 = math.tanh %96 : vector<2x32xf32>
    %98 = vector.extract_strided_slice %95 {offsets = [0, 0], sizes = [2, 32], strides = [1, 1]} : vector<2x96xf32> to vector<2x32xf32>
    %99 = vector.extract_strided_slice %95 {offsets = [0, 32], sizes = [2, 32], strides = [1, 1]} : vector<2x96xf32> to vector<2x32xf32>
    %100 = vector.extract_strided_slice %95 {offsets = [0, 64], sizes = [2, 32], strides = [1, 1]} : vector<2x96xf32> to vector<2x32xf32>
    %101 = arith.mulf %99, %60 : vector<2x32xf32>
    %102 = arith.mulf %98, %97 : vector<2x32xf32>
    %103 = arith.addf %101, %102 : vector<2x32xf32>
    %104 = math.tanh %103 : vector<2x32xf32>
    %105 = arith.mulf %100, %104 : vector<2x32xf32>
    %106 = tpu.concatenate %105, %84 in 1 : vector<2x32xf32>, vector<2x32xf32> -> vector<2x64xf32>
    %c424_35 = arith.constant 424 : index
    %c0_36 = arith.constant 0 : index
    %107 = vector.load %arg2[%c424_35, %c0_36] : memref<1304x256xf32, #tpu.memory_space<vmem>>, vector<64x128xf32>
    %cst_37 = arith.constant dense<0.000000e+00> : vector<2x128xf32>
    %108 = tpu.matmul %106, %107, %cst_37 {dimension_numbers = #tpu.dot_dimension_numbers<[1], [0], [0], [1], [0, 0, 1, 1], [], []>} : vector<2x64xf32>, vector<64x128xf32>, vector<2x128xf32> -> vector<2x128xf32>
    %c488_38 = arith.constant 488 : index
    %c0_39 = arith.constant 0 : index
    %109 = vector.load %arg2[%c488_38, %c0_39] : memref<1304x256xf32, #tpu.memory_space<vmem>>, vector<1x128xf32>
    %110 = vector.broadcast %109 : vector<1x128xf32> to vector<2x128xf32>
    %111 = arith.addf %108, %110 : vector<2x128xf32>
    %112 = vector.extract_strided_slice %111 {offsets = [0, 0], sizes = [2, 96], strides = [1, 1]} : vector<2x128xf32> to vector<2x96xf32>
    %113 = arith.negf %112 : vector<2x96xf32>
    %114 = math.exp %113 : vector<2x96xf32>
    %cst_40 = arith.constant 1.000000e+00 : f32
    %115 = vector.broadcast %cst_40 : f32 to vector<2x96xf32>
    %116 = arith.addf %115, %114 : vector<2x96xf32>
    %117 = arith.divf %115, %116 : vector<2x96xf32>
    %118 = vector.extract_strided_slice %111 {offsets = [0, 96], sizes = [2, 32], strides = [1, 1]} : vector<2x128xf32> to vector<2x32xf32>
    %119 = math.tanh %118 : vector<2x32xf32>
    %120 = vector.extract_strided_slice %117 {offsets = [0, 0], sizes = [2, 32], strides = [1, 1]} : vector<2x96xf32> to vector<2x32xf32>
    %121 = vector.extract_strided_slice %117 {offsets = [0, 32], sizes = [2, 32], strides = [1, 1]} : vector<2x96xf32> to vector<2x32xf32>
    %122 = vector.extract_strided_slice %117 {offsets = [0, 64], sizes = [2, 32], strides = [1, 1]} : vector<2x96xf32> to vector<2x32xf32>
    %123 = arith.mulf %121, %82 : vector<2x32xf32>
    %124 = arith.mulf %120, %119 : vector<2x32xf32>
    %125 = arith.addf %123, %124 : vector<2x32xf32>
    %126 = math.tanh %125 : vector<2x32xf32>
    %127 = arith.mulf %122, %126 : vector<2x32xf32>
    %128 = vector.extract_strided_slice %34 {offsets = [2, 0, 0], sizes = [1, 2, 128], strides = [1, 1, 1]} : vector<8x2x128xf32> to vector<1x2x128xf32>
    %129 = vector.shape_cast %128 : vector<1x2x128xf32> to vector<2x128xf32>
    %c384_41 = arith.constant 384 : index
    %c0_42 = arith.constant 0 : index
    %130 = vector.load %arg2[%c384_41, %c0_42] : memref<1304x256xf32, #tpu.memory_space<vmem>>, vector<32x128xf32>
    %cst_43 = arith.constant dense<0.000000e+00> : vector<2x128xf32>
    %131 = tpu.matmul %105, %130, %cst_43 {dimension_numbers = #tpu.dot_dimension_numbers<[1], [0], [0], [1], [0, 0, 1, 1], [], []>} : vector<2x32xf32>, vector<32x128xf32>, vector<2x128xf32> -> vector<2x128xf32>
    %132 = arith.addf %129, %131 : vector<2x128xf32>
    %133 = vector.extract_strided_slice %132 {offsets = [0, 0], sizes = [2, 96], strides = [1, 1]} : vector<2x128xf32> to vector<2x96xf32>
    %134 = arith.negf %133 : vector<2x96xf32>
    %135 = math.exp %134 : vector<2x96xf32>
    %cst_44 = arith.constant 1.000000e+00 : f32
    %136 = vector.broadcast %cst_44 : f32 to vector<2x96xf32>
    %137 = arith.addf %136, %135 : vector<2x96xf32>
    %138 = arith.divf %136, %137 : vector<2x96xf32>
    %139 = vector.extract_strided_slice %132 {offsets = [0, 96], sizes = [2, 32], strides = [1, 1]} : vector<2x128xf32> to vector<2x32xf32>
    %140 = math.tanh %139 : vector<2x32xf32>
    %141 = vector.extract_strided_slice %138 {offsets = [0, 0], sizes = [2, 32], strides = [1, 1]} : vector<2x96xf32> to vector<2x32xf32>
    %142 = vector.extract_strided_slice %138 {offsets = [0, 32], sizes = [2, 32], strides = [1, 1]} : vector<2x96xf32> to vector<2x32xf32>
    %143 = vector.extract_strided_slice %138 {offsets = [0, 64], sizes = [2, 32], strides = [1, 1]} : vector<2x96xf32> to vector<2x32xf32>
    %144 = arith.mulf %142, %103 : vector<2x32xf32>
    %145 = arith.mulf %141, %140 : vector<2x32xf32>
    %146 = arith.addf %144, %145 : vector<2x32xf32>
    %147 = math.tanh %146 : vector<2x32xf32>
    %148 = arith.mulf %143, %147 : vector<2x32xf32>
    %149 = tpu.concatenate %148, %127 in 1 : vector<2x32xf32>, vector<2x32xf32> -> vector<2x64xf32>
    %c424_45 = arith.constant 424 : index
    %c0_46 = arith.constant 0 : index
    %150 = vector.load %arg2[%c424_45, %c0_46] : memref<1304x256xf32, #tpu.memory_space<vmem>>, vector<64x128xf32>
    %cst_47 = arith.constant dense<0.000000e+00> : vector<2x128xf32>
    %151 = tpu.matmul %149, %150, %cst_47 {dimension_numbers = #tpu.dot_dimension_numbers<[1], [0], [0], [1], [0, 0, 1, 1], [], []>} : vector<2x64xf32>, vector<64x128xf32>, vector<2x128xf32> -> vector<2x128xf32>
    %c488_48 = arith.constant 488 : index
    %c0_49 = arith.constant 0 : index
    %152 = vector.load %arg2[%c488_48, %c0_49] : memref<1304x256xf32, #tpu.memory_space<vmem>>, vector<1x128xf32>
    %153 = vector.broadcast %152 : vector<1x128xf32> to vector<2x128xf32>
    %154 = arith.addf %151, %153 : vector<2x128xf32>
    %155 = vector.extract_strided_slice %154 {offsets = [0, 0], sizes = [2, 96], strides = [1, 1]} : vector<2x128xf32> to vector<2x96xf32>
    %156 = arith.negf %155 : vector<2x96xf32>
    %157 = math.exp %156 : vector<2x96xf32>
    %cst_50 = arith.constant 1.000000e+00 : f32
    %158 = vector.broadcast %cst_50 : f32 to vector<2x96xf32>
    %159 = arith.addf %158, %157 : vector<2x96xf32>
    %160 = arith.divf %158, %159 : vector<2x96xf32>
    %161 = vector.extract_strided_slice %154 {offsets = [0, 96], sizes = [2, 32], strides = [1, 1]} : vector<2x128xf32> to vector<2x32xf32>
    %162 = math.tanh %161 : vector<2x32xf32>
    %163 = vector.extract_strided_slice %160 {offsets = [0, 0], sizes = [2, 32], strides = [1, 1]} : vector<2x96xf32> to vector<2x32xf32>
    %164 = vector.extract_strided_slice %160 {offsets = [0, 32], sizes = [2, 32], strides = [1, 1]} : vector<2x96xf32> to vector<2x32xf32>
    %165 = vector.extract_strided_slice %160 {offsets = [0, 64], sizes = [2, 32], strides = [1, 1]} : vector<2x96xf32> to vector<2x32xf32>
    %166 = arith.mulf %164, %125 : vector<2x32xf32>
    %167 = arith.mulf %163, %162 : vector<2x32xf32>
    %168 = arith.addf %166, %167 : vector<2x32xf32>
    %169 = math.tanh %168 : vector<2x32xf32>
    %170 = arith.mulf %165, %169 : vector<2x32xf32>
    %171 = vector.extract_strided_slice %34 {offsets = [3, 0, 0], sizes = [1, 2, 128], strides = [1, 1, 1]} : vector<8x2x128xf32> to vector<1x2x128xf32>
    %172 = vector.shape_cast %171 : vector<1x2x128xf32> to vector<2x128xf32>
    %c384_51 = arith.constant 384 : index
    %c0_52 = arith.constant 0 : index
    %173 = vector.load %arg2[%c384_51, %c0_52] : memref<1304x256xf32, #tpu.memory_space<vmem>>, vector<32x128xf32>
    %cst_53 = arith.constant dense<0.000000e+00> : vector<2x128xf32>
    %174 = tpu.matmul %148, %173, %cst_53 {dimension_numbers = #tpu.dot_dimension_numbers<[1], [0], [0], [1], [0, 0, 1, 1], [], []>} : vector<2x32xf32>, vector<32x128xf32>, vector<2x128xf32> -> vector<2x128xf32>
    %175 = arith.addf %172, %174 : vector<2x128xf32>
    %176 = vector.extract_strided_slice %175 {offsets = [0, 0], sizes = [2, 96], strides = [1, 1]} : vector<2x128xf32> to vector<2x96xf32>
    %177 = arith.negf %176 : vector<2x96xf32>
    %178 = math.exp %177 : vector<2x96xf32>
    %cst_54 = arith.constant 1.000000e+00 : f32
    %179 = vector.broadcast %cst_54 : f32 to vector<2x96xf32>
    %180 = arith.addf %179, %178 : vector<2x96xf32>
    %181 = arith.divf %179, %180 : vector<2x96xf32>
    %182 = vector.extract_strided_slice %175 {offsets = [0, 96], sizes = [2, 32], strides = [1, 1]} : vector<2x128xf32> to vector<2x32xf32>
    %183 = math.tanh %182 : vector<2x32xf32>
    %184 = vector.extract_strided_slice %181 {offsets = [0, 0], sizes = [2, 32], strides = [1, 1]} : vector<2x96xf32> to vector<2x32xf32>
    %185 = vector.extract_strided_slice %181 {offsets = [0, 32], sizes = [2, 32], strides = [1, 1]} : vector<2x96xf32> to vector<2x32xf32>
    %186 = vector.extract_strided_slice %181 {offsets = [0, 64], sizes = [2, 32], strides = [1, 1]} : vector<2x96xf32> to vector<2x32xf32>
    %187 = arith.mulf %185, %146 : vector<2x32xf32>
    %188 = arith.mulf %184, %183 : vector<2x32xf32>
    %189 = arith.addf %187, %188 : vector<2x32xf32>
    %190 = math.tanh %189 : vector<2x32xf32>
    %191 = arith.mulf %186, %190 : vector<2x32xf32>
    %192 = tpu.concatenate %191, %170 in 1 : vector<2x32xf32>, vector<2x32xf32> -> vector<2x64xf32>
    %c424_55 = arith.constant 424 : index
    %c0_56 = arith.constant 0 : index
    %193 = vector.load %arg2[%c424_55, %c0_56] : memref<1304x256xf32, #tpu.memory_space<vmem>>, vector<64x128xf32>
    %cst_57 = arith.constant dense<0.000000e+00> : vector<2x128xf32>
    %194 = tpu.matmul %192, %193, %cst_57 {dimension_numbers = #tpu.dot_dimension_numbers<[1], [0], [0], [1], [0, 0, 1, 1], [], []>} : vector<2x64xf32>, vector<64x128xf32>, vector<2x128xf32> -> vector<2x128xf32>
    %c488_58 = arith.constant 488 : index
    %c0_59 = arith.constant 0 : index
    %195 = vector.load %arg2[%c488_58, %c0_59] : memref<1304x256xf32, #tpu.memory_space<vmem>>, vector<1x128xf32>
    %196 = vector.broadcast %195 : vector<1x128xf32> to vector<2x128xf32>
    %197 = arith.addf %194, %196 : vector<2x128xf32>
    %198 = vector.extract_strided_slice %197 {offsets = [0, 0], sizes = [2, 96], strides = [1, 1]} : vector<2x128xf32> to vector<2x96xf32>
    %199 = arith.negf %198 : vector<2x96xf32>
    %200 = math.exp %199 : vector<2x96xf32>
    %cst_60 = arith.constant 1.000000e+00 : f32
    %201 = vector.broadcast %cst_60 : f32 to vector<2x96xf32>
    %202 = arith.addf %201, %200 : vector<2x96xf32>
    %203 = arith.divf %201, %202 : vector<2x96xf32>
    %204 = vector.extract_strided_slice %197 {offsets = [0, 96], sizes = [2, 32], strides = [1, 1]} : vector<2x128xf32> to vector<2x32xf32>
    %205 = math.tanh %204 : vector<2x32xf32>
    %206 = vector.extract_strided_slice %203 {offsets = [0, 0], sizes = [2, 32], strides = [1, 1]} : vector<2x96xf32> to vector<2x32xf32>
    %207 = vector.extract_strided_slice %203 {offsets = [0, 32], sizes = [2, 32], strides = [1, 1]} : vector<2x96xf32> to vector<2x32xf32>
    %208 = vector.extract_strided_slice %203 {offsets = [0, 64], sizes = [2, 32], strides = [1, 1]} : vector<2x96xf32> to vector<2x32xf32>
    %209 = arith.mulf %207, %168 : vector<2x32xf32>
    %210 = arith.mulf %206, %205 : vector<2x32xf32>
    %211 = arith.addf %209, %210 : vector<2x32xf32>
    %212 = math.tanh %211 : vector<2x32xf32>
    %213 = arith.mulf %208, %212 : vector<2x32xf32>
    %214 = vector.extract_strided_slice %34 {offsets = [4, 0, 0], sizes = [1, 2, 128], strides = [1, 1, 1]} : vector<8x2x128xf32> to vector<1x2x128xf32>
    %215 = vector.shape_cast %214 : vector<1x2x128xf32> to vector<2x128xf32>
    %c384_61 = arith.constant 384 : index
    %c0_62 = arith.constant 0 : index
    %216 = vector.load %arg2[%c384_61, %c0_62] : memref<1304x256xf32, #tpu.memory_space<vmem>>, vector<32x128xf32>
    %cst_63 = arith.constant dense<0.000000e+00> : vector<2x128xf32>
    %217 = tpu.matmul %191, %216, %cst_63 {dimension_numbers = #tpu.dot_dimension_numbers<[1], [0], [0], [1], [0, 0, 1, 1], [], []>} : vector<2x32xf32>, vector<32x128xf32>, vector<2x128xf32> -> vector<2x128xf32>
    %218 = arith.addf %215, %217 : vector<2x128xf32>
    %219 = vector.extract_strided_slice %218 {offsets = [0, 0], sizes = [2, 96], strides = [1, 1]} : vector<2x128xf32> to vector<2x96xf32>
    %220 = arith.negf %219 : vector<2x96xf32>
    %221 = math.exp %220 : vector<2x96xf32>
    %cst_64 = arith.constant 1.000000e+00 : f32
    %222 = vector.broadcast %cst_64 : f32 to vector<2x96xf32>
    %223 = arith.addf %222, %221 : vector<2x96xf32>
    %224 = arith.divf %222, %223 : vector<2x96xf32>
    %225 = vector.extract_strided_slice %218 {offsets = [0, 96], sizes = [2, 32], strides = [1, 1]} : vector<2x128xf32> to vector<2x32xf32>
    %226 = math.tanh %225 : vector<2x32xf32>
    %227 = vector.extract_strided_slice %224 {offsets = [0, 0], sizes = [2, 32], strides = [1, 1]} : vector<2x96xf32> to vector<2x32xf32>
    %228 = vector.extract_strided_slice %224 {offsets = [0, 32], sizes = [2, 32], strides = [1, 1]} : vector<2x96xf32> to vector<2x32xf32>
    %229 = vector.extract_strided_slice %224 {offsets = [0, 64], sizes = [2, 32], strides = [1, 1]} : vector<2x96xf32> to vector<2x32xf32>
    %230 = arith.mulf %228, %189 : vector<2x32xf32>
    %231 = arith.mulf %227, %226 : vector<2x32xf32>
    %232 = arith.addf %230, %231 : vector<2x32xf32>
    %233 = math.tanh %232 : vector<2x32xf32>
    %234 = arith.mulf %229, %233 : vector<2x32xf32>
    %235 = tpu.concatenate %234, %213 in 1 : vector<2x32xf32>, vector<2x32xf32> -> vector<2x64xf32>
    %c424_65 = arith.constant 424 : index
    %c0_66 = arith.constant 0 : index
    %236 = vector.load %arg2[%c424_65, %c0_66] : memref<1304x256xf32, #tpu.memory_space<vmem>>, vector<64x128xf32>
    %cst_67 = arith.constant dense<0.000000e+00> : vector<2x128xf32>
    %237 = tpu.matmul %235, %236, %cst_67 {dimension_numbers = #tpu.dot_dimension_numbers<[1], [0], [0], [1], [0, 0, 1, 1], [], []>} : vector<2x64xf32>, vector<64x128xf32>, vector<2x128xf32> -> vector<2x128xf32>
    %c488_68 = arith.constant 488 : index
    %c0_69 = arith.constant 0 : index
    %238 = vector.load %arg2[%c488_68, %c0_69] : memref<1304x256xf32, #tpu.memory_space<vmem>>, vector<1x128xf32>
    %239 = vector.broadcast %238 : vector<1x128xf32> to vector<2x128xf32>
    %240 = arith.addf %237, %239 : vector<2x128xf32>
    %241 = vector.extract_strided_slice %240 {offsets = [0, 0], sizes = [2, 96], strides = [1, 1]} : vector<2x128xf32> to vector<2x96xf32>
    %242 = arith.negf %241 : vector<2x96xf32>
    %243 = math.exp %242 : vector<2x96xf32>
    %cst_70 = arith.constant 1.000000e+00 : f32
    %244 = vector.broadcast %cst_70 : f32 to vector<2x96xf32>
    %245 = arith.addf %244, %243 : vector<2x96xf32>
    %246 = arith.divf %244, %245 : vector<2x96xf32>
    %247 = vector.extract_strided_slice %240 {offsets = [0, 96], sizes = [2, 32], strides = [1, 1]} : vector<2x128xf32> to vector<2x32xf32>
    %248 = math.tanh %247 : vector<2x32xf32>
    %249 = vector.extract_strided_slice %246 {offsets = [0, 0], sizes = [2, 32], strides = [1, 1]} : vector<2x96xf32> to vector<2x32xf32>
    %250 = vector.extract_strided_slice %246 {offsets = [0, 32], sizes = [2, 32], strides = [1, 1]} : vector<2x96xf32> to vector<2x32xf32>
    %251 = vector.extract_strided_slice %246 {offsets = [0, 64], sizes = [2, 32], strides = [1, 1]} : vector<2x96xf32> to vector<2x32xf32>
    %252 = arith.mulf %250, %211 : vector<2x32xf32>
    %253 = arith.mulf %249, %248 : vector<2x32xf32>
    %254 = arith.addf %252, %253 : vector<2x32xf32>
    %255 = math.tanh %254 : vector<2x32xf32>
    %256 = arith.mulf %251, %255 : vector<2x32xf32>
    %257 = vector.extract_strided_slice %34 {offsets = [5, 0, 0], sizes = [1, 2, 128], strides = [1, 1, 1]} : vector<8x2x128xf32> to vector<1x2x128xf32>
    %258 = vector.shape_cast %257 : vector<1x2x128xf32> to vector<2x128xf32>
    %c384_71 = arith.constant 384 : index
    %c0_72 = arith.constant 0 : index
    %259 = vector.load %arg2[%c384_71, %c0_72] : memref<1304x256xf32, #tpu.memory_space<vmem>>, vector<32x128xf32>
    %cst_73 = arith.constant dense<0.000000e+00> : vector<2x128xf32>
    %260 = tpu.matmul %234, %259, %cst_73 {dimension_numbers = #tpu.dot_dimension_numbers<[1], [0], [0], [1], [0, 0, 1, 1], [], []>} : vector<2x32xf32>, vector<32x128xf32>, vector<2x128xf32> -> vector<2x128xf32>
    %261 = arith.addf %258, %260 : vector<2x128xf32>
    %262 = vector.extract_strided_slice %261 {offsets = [0, 0], sizes = [2, 96], strides = [1, 1]} : vector<2x128xf32> to vector<2x96xf32>
    %263 = arith.negf %262 : vector<2x96xf32>
    %264 = math.exp %263 : vector<2x96xf32>
    %cst_74 = arith.constant 1.000000e+00 : f32
    %265 = vector.broadcast %cst_74 : f32 to vector<2x96xf32>
    %266 = arith.addf %265, %264 : vector<2x96xf32>
    %267 = arith.divf %265, %266 : vector<2x96xf32>
    %268 = vector.extract_strided_slice %261 {offsets = [0, 96], sizes = [2, 32], strides = [1, 1]} : vector<2x128xf32> to vector<2x32xf32>
    %269 = math.tanh %268 : vector<2x32xf32>
    %270 = vector.extract_strided_slice %267 {offsets = [0, 0], sizes = [2, 32], strides = [1, 1]} : vector<2x96xf32> to vector<2x32xf32>
    %271 = vector.extract_strided_slice %267 {offsets = [0, 32], sizes = [2, 32], strides = [1, 1]} : vector<2x96xf32> to vector<2x32xf32>
    %272 = vector.extract_strided_slice %267 {offsets = [0, 64], sizes = [2, 32], strides = [1, 1]} : vector<2x96xf32> to vector<2x32xf32>
    %273 = arith.mulf %271, %232 : vector<2x32xf32>
    %274 = arith.mulf %270, %269 : vector<2x32xf32>
    %275 = arith.addf %273, %274 : vector<2x32xf32>
    %276 = math.tanh %275 : vector<2x32xf32>
    %277 = arith.mulf %272, %276 : vector<2x32xf32>
    %278 = tpu.concatenate %277, %256 in 1 : vector<2x32xf32>, vector<2x32xf32> -> vector<2x64xf32>
    %c424_75 = arith.constant 424 : index
    %c0_76 = arith.constant 0 : index
    %279 = vector.load %arg2[%c424_75, %c0_76] : memref<1304x256xf32, #tpu.memory_space<vmem>>, vector<64x128xf32>
    %cst_77 = arith.constant dense<0.000000e+00> : vector<2x128xf32>
    %280 = tpu.matmul %278, %279, %cst_77 {dimension_numbers = #tpu.dot_dimension_numbers<[1], [0], [0], [1], [0, 0, 1, 1], [], []>} : vector<2x64xf32>, vector<64x128xf32>, vector<2x128xf32> -> vector<2x128xf32>
    %c488_78 = arith.constant 488 : index
    %c0_79 = arith.constant 0 : index
    %281 = vector.load %arg2[%c488_78, %c0_79] : memref<1304x256xf32, #tpu.memory_space<vmem>>, vector<1x128xf32>
    %282 = vector.broadcast %281 : vector<1x128xf32> to vector<2x128xf32>
    %283 = arith.addf %280, %282 : vector<2x128xf32>
    %284 = vector.extract_strided_slice %283 {offsets = [0, 0], sizes = [2, 96], strides = [1, 1]} : vector<2x128xf32> to vector<2x96xf32>
    %285 = arith.negf %284 : vector<2x96xf32>
    %286 = math.exp %285 : vector<2x96xf32>
    %cst_80 = arith.constant 1.000000e+00 : f32
    %287 = vector.broadcast %cst_80 : f32 to vector<2x96xf32>
    %288 = arith.addf %287, %286 : vector<2x96xf32>
    %289 = arith.divf %287, %288 : vector<2x96xf32>
    %290 = vector.extract_strided_slice %283 {offsets = [0, 96], sizes = [2, 32], strides = [1, 1]} : vector<2x128xf32> to vector<2x32xf32>
    %291 = math.tanh %290 : vector<2x32xf32>
    %292 = vector.extract_strided_slice %289 {offsets = [0, 0], sizes = [2, 32], strides = [1, 1]} : vector<2x96xf32> to vector<2x32xf32>
    %293 = vector.extract_strided_slice %289 {offsets = [0, 32], sizes = [2, 32], strides = [1, 1]} : vector<2x96xf32> to vector<2x32xf32>
    %294 = vector.extract_strided_slice %289 {offsets = [0, 64], sizes = [2, 32], strides = [1, 1]} : vector<2x96xf32> to vector<2x32xf32>
    %295 = arith.mulf %293, %254 : vector<2x32xf32>
    %296 = arith.mulf %292, %291 : vector<2x32xf32>
    %297 = arith.addf %295, %296 : vector<2x32xf32>
    %298 = math.tanh %297 : vector<2x32xf32>
    %299 = arith.mulf %294, %298 : vector<2x32xf32>
    %300 = vector.extract_strided_slice %34 {offsets = [6, 0, 0], sizes = [1, 2, 128], strides = [1, 1, 1]} : vector<8x2x128xf32> to vector<1x2x128xf32>
    %301 = vector.shape_cast %300 : vector<1x2x128xf32> to vector<2x128xf32>
    %c384_81 = arith.constant 384 : index
    %c0_82 = arith.constant 0 : index
    %302 = vector.load %arg2[%c384_81, %c0_82] : memref<1304x256xf32, #tpu.memory_space<vmem>>, vector<32x128xf32>
    %cst_83 = arith.constant dense<0.000000e+00> : vector<2x128xf32>
    %303 = tpu.matmul %277, %302, %cst_83 {dimension_numbers = #tpu.dot_dimension_numbers<[1], [0], [0], [1], [0, 0, 1, 1], [], []>} : vector<2x32xf32>, vector<32x128xf32>, vector<2x128xf32> -> vector<2x128xf32>
    %304 = arith.addf %301, %303 : vector<2x128xf32>
    %305 = vector.extract_strided_slice %304 {offsets = [0, 0], sizes = [2, 96], strides = [1, 1]} : vector<2x128xf32> to vector<2x96xf32>
    %306 = arith.negf %305 : vector<2x96xf32>
    %307 = math.exp %306 : vector<2x96xf32>
    %cst_84 = arith.constant 1.000000e+00 : f32
    %308 = vector.broadcast %cst_84 : f32 to vector<2x96xf32>
    %309 = arith.addf %308, %307 : vector<2x96xf32>
    %310 = arith.divf %308, %309 : vector<2x96xf32>
    %311 = vector.extract_strided_slice %304 {offsets = [0, 96], sizes = [2, 32], strides = [1, 1]} : vector<2x128xf32> to vector<2x32xf32>
    %312 = math.tanh %311 : vector<2x32xf32>
    %313 = vector.extract_strided_slice %310 {offsets = [0, 0], sizes = [2, 32], strides = [1, 1]} : vector<2x96xf32> to vector<2x32xf32>
    %314 = vector.extract_strided_slice %310 {offsets = [0, 32], sizes = [2, 32], strides = [1, 1]} : vector<2x96xf32> to vector<2x32xf32>
    %315 = vector.extract_strided_slice %310 {offsets = [0, 64], sizes = [2, 32], strides = [1, 1]} : vector<2x96xf32> to vector<2x32xf32>
    %316 = arith.mulf %314, %275 : vector<2x32xf32>
    %317 = arith.mulf %313, %312 : vector<2x32xf32>
    %318 = arith.addf %316, %317 : vector<2x32xf32>
    %319 = math.tanh %318 : vector<2x32xf32>
    %320 = arith.mulf %315, %319 : vector<2x32xf32>
    %321 = tpu.concatenate %320, %299 in 1 : vector<2x32xf32>, vector<2x32xf32> -> vector<2x64xf32>
    %c424_85 = arith.constant 424 : index
    %c0_86 = arith.constant 0 : index
    %322 = vector.load %arg2[%c424_85, %c0_86] : memref<1304x256xf32, #tpu.memory_space<vmem>>, vector<64x128xf32>
    %cst_87 = arith.constant dense<0.000000e+00> : vector<2x128xf32>
    %323 = tpu.matmul %321, %322, %cst_87 {dimension_numbers = #tpu.dot_dimension_numbers<[1], [0], [0], [1], [0, 0, 1, 1], [], []>} : vector<2x64xf32>, vector<64x128xf32>, vector<2x128xf32> -> vector<2x128xf32>
    %c488_88 = arith.constant 488 : index
    %c0_89 = arith.constant 0 : index
    %324 = vector.load %arg2[%c488_88, %c0_89] : memref<1304x256xf32, #tpu.memory_space<vmem>>, vector<1x128xf32>
    %325 = vector.broadcast %324 : vector<1x128xf32> to vector<2x128xf32>
    %326 = arith.addf %323, %325 : vector<2x128xf32>
    %327 = vector.extract_strided_slice %326 {offsets = [0, 0], sizes = [2, 96], strides = [1, 1]} : vector<2x128xf32> to vector<2x96xf32>
    %328 = arith.negf %327 : vector<2x96xf32>
    %329 = math.exp %328 : vector<2x96xf32>
    %cst_90 = arith.constant 1.000000e+00 : f32
    %330 = vector.broadcast %cst_90 : f32 to vector<2x96xf32>
    %331 = arith.addf %330, %329 : vector<2x96xf32>
    %332 = arith.divf %330, %331 : vector<2x96xf32>
    %333 = vector.extract_strided_slice %326 {offsets = [0, 96], sizes = [2, 32], strides = [1, 1]} : vector<2x128xf32> to vector<2x32xf32>
    %334 = math.tanh %333 : vector<2x32xf32>
    %335 = vector.extract_strided_slice %332 {offsets = [0, 0], sizes = [2, 32], strides = [1, 1]} : vector<2x96xf32> to vector<2x32xf32>
    %336 = vector.extract_strided_slice %332 {offsets = [0, 32], sizes = [2, 32], strides = [1, 1]} : vector<2x96xf32> to vector<2x32xf32>
    %337 = vector.extract_strided_slice %332 {offsets = [0, 64], sizes = [2, 32], strides = [1, 1]} : vector<2x96xf32> to vector<2x32xf32>
    %338 = arith.mulf %336, %297 : vector<2x32xf32>
    %339 = arith.mulf %335, %334 : vector<2x32xf32>
    %340 = arith.addf %338, %339 : vector<2x32xf32>
    %341 = math.tanh %340 : vector<2x32xf32>
    %342 = arith.mulf %337, %341 : vector<2x32xf32>
    %343 = vector.extract_strided_slice %34 {offsets = [7, 0, 0], sizes = [1, 2, 128], strides = [1, 1, 1]} : vector<8x2x128xf32> to vector<1x2x128xf32>
    %344 = vector.shape_cast %343 : vector<1x2x128xf32> to vector<2x128xf32>
    %c384_91 = arith.constant 384 : index
    %c0_92 = arith.constant 0 : index
    %345 = vector.load %arg2[%c384_91, %c0_92] : memref<1304x256xf32, #tpu.memory_space<vmem>>, vector<32x128xf32>
    %cst_93 = arith.constant dense<0.000000e+00> : vector<2x128xf32>
    %346 = tpu.matmul %320, %345, %cst_93 {dimension_numbers = #tpu.dot_dimension_numbers<[1], [0], [0], [1], [0, 0, 1, 1], [], []>} : vector<2x32xf32>, vector<32x128xf32>, vector<2x128xf32> -> vector<2x128xf32>
    %347 = arith.addf %344, %346 : vector<2x128xf32>
    %348 = vector.extract_strided_slice %347 {offsets = [0, 0], sizes = [2, 96], strides = [1, 1]} : vector<2x128xf32> to vector<2x96xf32>
    %349 = arith.negf %348 : vector<2x96xf32>
    %350 = math.exp %349 : vector<2x96xf32>
    %cst_94 = arith.constant 1.000000e+00 : f32
    %351 = vector.broadcast %cst_94 : f32 to vector<2x96xf32>
    %352 = arith.addf %351, %350 : vector<2x96xf32>
    %353 = arith.divf %351, %352 : vector<2x96xf32>
    %354 = vector.extract_strided_slice %347 {offsets = [0, 96], sizes = [2, 32], strides = [1, 1]} : vector<2x128xf32> to vector<2x32xf32>
    %355 = math.tanh %354 : vector<2x32xf32>
    %356 = vector.extract_strided_slice %353 {offsets = [0, 0], sizes = [2, 32], strides = [1, 1]} : vector<2x96xf32> to vector<2x32xf32>
    %357 = vector.extract_strided_slice %353 {offsets = [0, 32], sizes = [2, 32], strides = [1, 1]} : vector<2x96xf32> to vector<2x32xf32>
    %358 = vector.extract_strided_slice %353 {offsets = [0, 64], sizes = [2, 32], strides = [1, 1]} : vector<2x96xf32> to vector<2x32xf32>
    %359 = arith.mulf %357, %318 : vector<2x32xf32>
    %360 = arith.mulf %356, %355 : vector<2x32xf32>
    %361 = arith.addf %359, %360 : vector<2x32xf32>
    %362 = math.tanh %361 : vector<2x32xf32>
    %363 = arith.mulf %358, %362 : vector<2x32xf32>
    %364 = tpu.concatenate %363, %342 in 1 : vector<2x32xf32>, vector<2x32xf32> -> vector<2x64xf32>
    %c424_95 = arith.constant 424 : index
    %c0_96 = arith.constant 0 : index
    %365 = vector.load %arg2[%c424_95, %c0_96] : memref<1304x256xf32, #tpu.memory_space<vmem>>, vector<64x128xf32>
    %cst_97 = arith.constant dense<0.000000e+00> : vector<2x128xf32>
    %366 = tpu.matmul %364, %365, %cst_97 {dimension_numbers = #tpu.dot_dimension_numbers<[1], [0], [0], [1], [0, 0, 1, 1], [], []>} : vector<2x64xf32>, vector<64x128xf32>, vector<2x128xf32> -> vector<2x128xf32>
    %c488_98 = arith.constant 488 : index
    %c0_99 = arith.constant 0 : index
    %367 = vector.load %arg2[%c488_98, %c0_99] : memref<1304x256xf32, #tpu.memory_space<vmem>>, vector<1x128xf32>
    %368 = vector.broadcast %367 : vector<1x128xf32> to vector<2x128xf32>
    %369 = arith.addf %366, %368 : vector<2x128xf32>
    %370 = vector.extract_strided_slice %369 {offsets = [0, 0], sizes = [2, 96], strides = [1, 1]} : vector<2x128xf32> to vector<2x96xf32>
    %371 = arith.negf %370 : vector<2x96xf32>
    %372 = math.exp %371 : vector<2x96xf32>
    %cst_100 = arith.constant 1.000000e+00 : f32
    %373 = vector.broadcast %cst_100 : f32 to vector<2x96xf32>
    %374 = arith.addf %373, %372 : vector<2x96xf32>
    %375 = arith.divf %373, %374 : vector<2x96xf32>
    %376 = vector.extract_strided_slice %369 {offsets = [0, 96], sizes = [2, 32], strides = [1, 1]} : vector<2x128xf32> to vector<2x32xf32>
    %377 = math.tanh %376 : vector<2x32xf32>
    %378 = vector.extract_strided_slice %375 {offsets = [0, 0], sizes = [2, 32], strides = [1, 1]} : vector<2x96xf32> to vector<2x32xf32>
    %379 = vector.extract_strided_slice %375 {offsets = [0, 32], sizes = [2, 32], strides = [1, 1]} : vector<2x96xf32> to vector<2x32xf32>
    %380 = vector.extract_strided_slice %375 {offsets = [0, 64], sizes = [2, 32], strides = [1, 1]} : vector<2x96xf32> to vector<2x32xf32>
    %381 = arith.mulf %379, %340 : vector<2x32xf32>
    %382 = arith.mulf %378, %377 : vector<2x32xf32>
    %383 = arith.addf %381, %382 : vector<2x32xf32>
    %384 = math.tanh %383 : vector<2x32xf32>
    %385 = arith.mulf %380, %384 : vector<2x32xf32>
    %386 = tpu.concatenate %363, %385 in 0 : vector<2x32xf32>, vector<2x32xf32> -> vector<4x32xf32>
    %c720 = arith.constant 720 : index
    %c0_101 = arith.constant 0 : index
    %387 = vector.load %arg2[%c720, %c0_101] : memref<1304x256xf32, #tpu.memory_space<vmem>>, vector<32x64xf32>
    %cst_102 = arith.constant dense<0.000000e+00> : vector<4x64xf32>
    %388 = tpu.matmul %386, %387, %cst_102 {dimension_numbers = #tpu.dot_dimension_numbers<[1], [0], [0], [1], [0, 0, 1, 1], [], []>} : vector<4x32xf32>, vector<32x64xf32>, vector<4x64xf32> -> vector<4x64xf32>
    %c752 = arith.constant 752 : index
    %c0_103 = arith.constant 0 : index
    %389 = vector.load %arg2[%c752, %c0_103] : memref<1304x256xf32, #tpu.memory_space<vmem>>, vector<1x64xf32>
    %390 = vector.broadcast %389 : vector<1x64xf32> to vector<4x64xf32>
    %391 = arith.addf %388, %390 : vector<4x64xf32>
    %cst_104 = arith.constant 0.000000e+00 : f32
    %392 = vector.broadcast %cst_104 : f32 to vector<4x64xf32>
    %393 = arith.maximumf %391, %392 : vector<4x64xf32>
    %c760 = arith.constant 760 : index
    %c0_105 = arith.constant 0 : index
    %394 = vector.load %arg2[%c760, %c0_105] : memref<1304x256xf32, #tpu.memory_space<vmem>>, vector<64x64xf32>
    %cst_106 = arith.constant dense<0.000000e+00> : vector<4x64xf32>
    %395 = tpu.matmul %393, %394, %cst_106 {dimension_numbers = #tpu.dot_dimension_numbers<[1], [0], [0], [1], [0, 0, 1, 1], [], []>} : vector<4x64xf32>, vector<64x64xf32>, vector<4x64xf32> -> vector<4x64xf32>
    %c824 = arith.constant 824 : index
    %c0_107 = arith.constant 0 : index
    %396 = vector.load %arg2[%c824, %c0_107] : memref<1304x256xf32, #tpu.memory_space<vmem>>, vector<1x64xf32>
    %397 = vector.broadcast %396 : vector<1x64xf32> to vector<4x64xf32>
    %398 = arith.addf %395, %397 : vector<4x64xf32>
    %cst_108 = arith.constant 0.000000e+00 : f32
    %399 = vector.broadcast %cst_108 : f32 to vector<4x64xf32>
    %400 = arith.maximumf %398, %399 : vector<4x64xf32>
    %401 = vector.extract_strided_slice %400 {offsets = [0, 0], sizes = [4, 32], strides = [1, 1]} : vector<4x64xf32> to vector<4x32xf32>
    %402 = vector.extract_strided_slice %400 {offsets = [0, 32], sizes = [4, 32], strides = [1, 1]} : vector<4x64xf32> to vector<4x32xf32>
    %c0_109 = arith.constant 0 : index
    %c0_110 = arith.constant 0 : index
    %403 = vector.load %arg1[%c0_109, %c0_110] : memref<4x32xf32, #tpu.memory_space<vmem>>, vector<4x32xf32>
    %cst_111 = arith.constant 5.000000e-01 : f32
    %404 = vector.broadcast %cst_111 : f32 to vector<4x32xf32>
    %405 = arith.mulf %404, %402 : vector<4x32xf32>
    %406 = math.exp %405 : vector<4x32xf32>
    %407 = arith.mulf %403, %406 : vector<4x32xf32>
    %408 = arith.addf %407, %401 : vector<4x32xf32>
    %409 = vector.shape_cast %408 : vector<4x32xf32> to vector<2x2x32xf32>
    %410 = vector.extract_strided_slice %409 {offsets = [0, 0, 0], sizes = [1, 2, 32], strides = [1, 1, 1]} : vector<2x2x32xf32> to vector<1x2x32xf32>
    %411 = vector.shape_cast %410 : vector<1x2x32xf32> to vector<2x32xf32>
    %412 = vector.extract_strided_slice %409 {offsets = [0, 0, 0], sizes = [1, 2, 32], strides = [1, 1, 1]} : vector<2x2x32xf32> to vector<1x2x32xf32>
    %413 = vector.shape_cast %412 : vector<1x2x32xf32> to vector<2x32xf32>
    %414 = tpu.concatenate %411, %413 in 1 : vector<2x32xf32>, vector<2x32xf32> -> vector<2x64xf32>
    %415 = vector.extract_strided_slice %409 {offsets = [1, 0, 0], sizes = [1, 2, 32], strides = [1, 1, 1]} : vector<2x2x32xf32> to vector<1x2x32xf32>
    %416 = vector.shape_cast %415 : vector<1x2x32xf32> to vector<2x32xf32>
    %417 = vector.extract_strided_slice %409 {offsets = [1, 0, 0], sizes = [1, 2, 32], strides = [1, 1, 1]} : vector<2x2x32xf32> to vector<1x2x32xf32>
    %418 = vector.shape_cast %417 : vector<1x2x32xf32> to vector<2x32xf32>
    %419 = tpu.concatenate %416, %418 in 1 : vector<2x32xf32>, vector<2x32xf32> -> vector<2x64xf32>
    %420 = tpu.concatenate %361, %361 in 1 : vector<2x32xf32>, vector<2x32xf32> -> vector<2x64xf32>
    %421 = tpu.concatenate %383, %383 in 1 : vector<2x32xf32>, vector<2x32xf32> -> vector<2x64xf32>
    %422 = tpu.concatenate %37, %37 in 1 : vector<2x8xf32>, vector<2x8xf32> -> vector<2x16xf32>
    %423 = tpu.concatenate %422, %414 in 1 : vector<2x16xf32>, vector<2x64xf32> -> vector<2x80xf32>
    %c496 = arith.constant 496 : index
    %c0_112 = arith.constant 0 : index
    %424 = vector.load %arg2[%c496, %c0_112] : memref<1304x256xf32, #tpu.memory_space<vmem>>, vector<80x256xf32>
    %cst_113 = arith.constant dense<0.000000e+00> : vector<2x256xf32>
    %425 = tpu.matmul %423, %424, %cst_113 {dimension_numbers = #tpu.dot_dimension_numbers<[1], [0], [0], [1], [0, 0, 1, 1], [], []>} : vector<2x80xf32>, vector<80x256xf32>, vector<2x256xf32> -> vector<2x256xf32>
    %c576 = arith.constant 576 : index
    %c0_114 = arith.constant 0 : index
    %426 = vector.load %arg2[%c576, %c0_114] : memref<1304x256xf32, #tpu.memory_space<vmem>>, vector<1x256xf32>
    %427 = vector.broadcast %426 : vector<1x256xf32> to vector<2x256xf32>
    %428 = arith.addf %425, %427 : vector<2x256xf32>
    %429 = vector.extract_strided_slice %428 {offsets = [0, 0], sizes = [2, 192], strides = [1, 1]} : vector<2x256xf32> to vector<2x192xf32>
    %430 = arith.negf %429 : vector<2x192xf32>
    %431 = math.exp %430 : vector<2x192xf32>
    %cst_115 = arith.constant 1.000000e+00 : f32
    %432 = vector.broadcast %cst_115 : f32 to vector<2x192xf32>
    %433 = arith.addf %432, %431 : vector<2x192xf32>
    %434 = arith.divf %432, %433 : vector<2x192xf32>
    %435 = vector.extract_strided_slice %428 {offsets = [0, 192], sizes = [2, 64], strides = [1, 1]} : vector<2x256xf32> to vector<2x64xf32>
    %436 = math.tanh %435 : vector<2x64xf32>
    %437 = vector.extract_strided_slice %434 {offsets = [0, 0], sizes = [2, 64], strides = [1, 1]} : vector<2x192xf32> to vector<2x64xf32>
    %438 = vector.extract_strided_slice %434 {offsets = [0, 64], sizes = [2, 64], strides = [1, 1]} : vector<2x192xf32> to vector<2x64xf32>
    %439 = vector.extract_strided_slice %434 {offsets = [0, 128], sizes = [2, 64], strides = [1, 1]} : vector<2x192xf32> to vector<2x64xf32>
    %440 = arith.mulf %438, %420 : vector<2x64xf32>
    %441 = arith.mulf %437, %436 : vector<2x64xf32>
    %442 = arith.addf %440, %441 : vector<2x64xf32>
    %443 = math.tanh %442 : vector<2x64xf32>
    %444 = arith.mulf %439, %443 : vector<2x64xf32>
    %445 = tpu.concatenate %444, %419 in 1 : vector<2x64xf32>, vector<2x64xf32> -> vector<2x128xf32>
    %c584 = arith.constant 584 : index
    %c0_116 = arith.constant 0 : index
    %446 = vector.load %arg2[%c584, %c0_116] : memref<1304x256xf32, #tpu.memory_space<vmem>>, vector<128x256xf32>
    %cst_117 = arith.constant dense<0.000000e+00> : vector<2x256xf32>
    %447 = tpu.matmul %445, %446, %cst_117 {dimension_numbers = #tpu.dot_dimension_numbers<[1], [0], [0], [1], [0, 0, 1, 1], [], []>} : vector<2x128xf32>, vector<128x256xf32>, vector<2x256xf32> -> vector<2x256xf32>
    %c712 = arith.constant 712 : index
    %c0_118 = arith.constant 0 : index
    %448 = vector.load %arg2[%c712, %c0_118] : memref<1304x256xf32, #tpu.memory_space<vmem>>, vector<1x256xf32>
    %449 = vector.broadcast %448 : vector<1x256xf32> to vector<2x256xf32>
    %450 = arith.addf %447, %449 : vector<2x256xf32>
    %451 = vector.extract_strided_slice %450 {offsets = [0, 0], sizes = [2, 192], strides = [1, 1]} : vector<2x256xf32> to vector<2x192xf32>
    %452 = arith.negf %451 : vector<2x192xf32>
    %453 = math.exp %452 : vector<2x192xf32>
    %cst_119 = arith.constant 1.000000e+00 : f32
    %454 = vector.broadcast %cst_119 : f32 to vector<2x192xf32>
    %455 = arith.addf %454, %453 : vector<2x192xf32>
    %456 = arith.divf %454, %455 : vector<2x192xf32>
    %457 = vector.extract_strided_slice %450 {offsets = [0, 192], sizes = [2, 64], strides = [1, 1]} : vector<2x256xf32> to vector<2x64xf32>
    %458 = math.tanh %457 : vector<2x64xf32>
    %459 = vector.extract_strided_slice %456 {offsets = [0, 0], sizes = [2, 64], strides = [1, 1]} : vector<2x192xf32> to vector<2x64xf32>
    %460 = vector.extract_strided_slice %456 {offsets = [0, 64], sizes = [2, 64], strides = [1, 1]} : vector<2x192xf32> to vector<2x64xf32>
    %461 = vector.extract_strided_slice %456 {offsets = [0, 128], sizes = [2, 64], strides = [1, 1]} : vector<2x192xf32> to vector<2x64xf32>
    %462 = arith.mulf %460, %421 : vector<2x64xf32>
    %463 = arith.mulf %459, %458 : vector<2x64xf32>
    %464 = arith.addf %462, %463 : vector<2x64xf32>
    %465 = math.tanh %464 : vector<2x64xf32>
    %466 = arith.mulf %461, %465 : vector<2x64xf32>
    %467 = vector.extract_strided_slice %466 {offsets = [0, 0], sizes = [2, 32], strides = [1, 1]} : vector<2x64xf32> to vector<2x32xf32>
    %c832 = arith.constant 832 : index
    %c0_120 = arith.constant 0 : index
    %468 = vector.load %arg2[%c832, %c0_120] : memref<1304x256xf32, #tpu.memory_space<vmem>>, vector<32x32xf32>
    %cst_121 = arith.constant dense<0.000000e+00> : vector<2x32xf32>
    %469 = tpu.matmul %467, %468, %cst_121 {dimension_numbers = #tpu.dot_dimension_numbers<[1], [0], [0], [1], [0, 0, 1, 1], [], []>} : vector<2x32xf32>, vector<32x32xf32>, vector<2x32xf32> -> vector<2x32xf32>
    %c864 = arith.constant 864 : index
    %c0_122 = arith.constant 0 : index
    %470 = vector.load %arg2[%c864, %c0_122] : memref<1304x256xf32, #tpu.memory_space<vmem>>, vector<1x32xf32>
    %471 = vector.broadcast %470 : vector<1x32xf32> to vector<2x32xf32>
    %472 = arith.addf %469, %471 : vector<2x32xf32>
    %cst_123 = arith.constant 0.000000e+00 : f32
    %473 = vector.broadcast %cst_123 : f32 to vector<2x32xf32>
    %474 = arith.maximumf %472, %473 : vector<2x32xf32>
    %475 = vector.extract_strided_slice %466 {offsets = [0, 32], sizes = [2, 32], strides = [1, 1]} : vector<2x64xf32> to vector<2x32xf32>
    %476 = tpu.concatenate %474, %475 in 1 : vector<2x32xf32>, vector<2x32xf32> -> vector<2x64xf32>
    %c872 = arith.constant 872 : index
    %c0_124 = arith.constant 0 : index
    %477 = vector.load %arg2[%c872, %c0_124] : memref<1304x256xf32, #tpu.memory_space<vmem>>, vector<64x64xf32>
    %cst_125 = arith.constant dense<0.000000e+00> : vector<2x64xf32>
    %478 = tpu.matmul %476, %477, %cst_125 {dimension_numbers = #tpu.dot_dimension_numbers<[1], [0], [0], [1], [0, 0, 1, 1], [], []>} : vector<2x64xf32>, vector<64x64xf32>, vector<2x64xf32> -> vector<2x64xf32>
    %c936 = arith.constant 936 : index
    %c0_126 = arith.constant 0 : index
    %479 = vector.load %arg2[%c936, %c0_126] : memref<1304x256xf32, #tpu.memory_space<vmem>>, vector<1x64xf32>
    %480 = vector.broadcast %479 : vector<1x64xf32> to vector<2x64xf32>
    %481 = arith.addf %478, %480 : vector<2x64xf32>
    %cst_127 = arith.constant 0.000000e+00 : f32
    %482 = vector.broadcast %cst_127 : f32 to vector<2x64xf32>
    %483 = arith.maximumf %481, %482 : vector<2x64xf32>
    %c944 = arith.constant 944 : index
    %c0_128 = arith.constant 0 : index
    %484 = vector.load %arg2[%c944, %c0_128] : memref<1304x256xf32, #tpu.memory_space<vmem>>, vector<64x64xf32>
    %cst_129 = arith.constant dense<0.000000e+00> : vector<2x64xf32>
    %485 = tpu.matmul %483, %484, %cst_129 {dimension_numbers = #tpu.dot_dimension_numbers<[1], [0], [0], [1], [0, 0, 1, 1], [], []>} : vector<2x64xf32>, vector<64x64xf32>, vector<2x64xf32> -> vector<2x64xf32>
    %c1008 = arith.constant 1008 : index
    %c0_130 = arith.constant 0 : index
    %486 = vector.load %arg2[%c1008, %c0_130] : memref<1304x256xf32, #tpu.memory_space<vmem>>, vector<1x64xf32>
    %487 = vector.broadcast %486 : vector<1x64xf32> to vector<2x64xf32>
    %488 = arith.addf %485, %487 : vector<2x64xf32>
    %cst_131 = arith.constant 0.000000e+00 : f32
    %489 = vector.broadcast %cst_131 : f32 to vector<2x64xf32>
    %490 = arith.maximumf %488, %489 : vector<2x64xf32>
    %c1016 = arith.constant 1016 : index
    %c0_132 = arith.constant 0 : index
    %491 = vector.load %arg2[%c1016, %c0_132] : memref<1304x256xf32, #tpu.memory_space<vmem>>, vector<64x64xf32>
    %cst_133 = arith.constant dense<0.000000e+00> : vector<2x64xf32>
    %492 = tpu.matmul %490, %491, %cst_133 {dimension_numbers = #tpu.dot_dimension_numbers<[1], [0], [0], [1], [0, 0, 1, 1], [], []>} : vector<2x64xf32>, vector<64x64xf32>, vector<2x64xf32> -> vector<2x64xf32>
    %c1080 = arith.constant 1080 : index
    %c0_134 = arith.constant 0 : index
    %493 = vector.load %arg2[%c1080, %c0_134] : memref<1304x256xf32, #tpu.memory_space<vmem>>, vector<1x64xf32>
    %494 = vector.broadcast %493 : vector<1x64xf32> to vector<2x64xf32>
    %495 = arith.addf %492, %494 : vector<2x64xf32>
    %cst_135 = arith.constant 0.000000e+00 : f32
    %496 = vector.broadcast %cst_135 : f32 to vector<2x64xf32>
    %497 = arith.maximumf %495, %496 : vector<2x64xf32>
    %c1088 = arith.constant 1088 : index
    %c0_136 = arith.constant 0 : index
    %498 = vector.load %arg2[%c1088, %c0_136] : memref<1304x256xf32, #tpu.memory_space<vmem>>, vector<64x64xf32>
    %cst_137 = arith.constant dense<0.000000e+00> : vector<2x64xf32>
    %499 = tpu.matmul %497, %498, %cst_137 {dimension_numbers = #tpu.dot_dimension_numbers<[1], [0], [0], [1], [0, 0, 1, 1], [], []>} : vector<2x64xf32>, vector<64x64xf32>, vector<2x64xf32> -> vector<2x64xf32>
    %c1152 = arith.constant 1152 : index
    %c0_138 = arith.constant 0 : index
    %500 = vector.load %arg2[%c1152, %c0_138] : memref<1304x256xf32, #tpu.memory_space<vmem>>, vector<1x64xf32>
    %501 = vector.broadcast %500 : vector<1x64xf32> to vector<2x64xf32>
    %502 = arith.addf %499, %501 : vector<2x64xf32>
    %cst_139 = arith.constant 0.000000e+00 : f32
    %503 = vector.broadcast %cst_139 : f32 to vector<2x64xf32>
    %504 = arith.maximumf %502, %503 : vector<2x64xf32>
    %c1160 = arith.constant 1160 : index
    %c0_140 = arith.constant 0 : index
    %505 = vector.load %arg2[%c1160, %c0_140] : memref<1304x256xf32, #tpu.memory_space<vmem>>, vector<64x64xf32>
    %cst_141 = arith.constant dense<0.000000e+00> : vector<2x64xf32>
    %506 = tpu.matmul %504, %505, %cst_141 {dimension_numbers = #tpu.dot_dimension_numbers<[1], [0], [0], [1], [0, 0, 1, 1], [], []>} : vector<2x64xf32>, vector<64x64xf32>, vector<2x64xf32> -> vector<2x64xf32>
    %c1224 = arith.constant 1224 : index
    %c0_142 = arith.constant 0 : index
    %507 = vector.load %arg2[%c1224, %c0_142] : memref<1304x256xf32, #tpu.memory_space<vmem>>, vector<1x64xf32>
    %508 = vector.broadcast %507 : vector<1x64xf32> to vector<2x64xf32>
    %509 = arith.addf %506, %508 : vector<2x64xf32>
    %cst_143 = arith.constant 0.000000e+00 : f32
    %510 = vector.broadcast %cst_143 : f32 to vector<2x64xf32>
    %511 = arith.maximumf %509, %510 : vector<2x64xf32>
    %c1232 = arith.constant 1232 : index
    %c0_144 = arith.constant 0 : index
    %512 = vector.load %arg2[%c1232, %c0_144] : memref<1304x256xf32, #tpu.memory_space<vmem>>, vector<64x16xf32>
    %cst_145 = arith.constant dense<0.000000e+00> : vector<2x16xf32>
    %513 = tpu.matmul %511, %512, %cst_145 {dimension_numbers = #tpu.dot_dimension_numbers<[1], [0], [0], [1], [0, 0, 1, 1], [], []>} : vector<2x64xf32>, vector<64x16xf32>, vector<2x16xf32> -> vector<2x16xf32>
    %c1296 = arith.constant 1296 : index
    %c0_146 = arith.constant 0 : index
    %514 = vector.load %arg2[%c1296, %c0_146] : memref<1304x256xf32, #tpu.memory_space<vmem>>, vector<1x16xf32>
    %515 = vector.broadcast %514 : vector<1x16xf32> to vector<2x16xf32>
    %516 = arith.addf %513, %515 : vector<2x16xf32>
    %c136 = arith.constant 136 : index
    %c0_147 = arith.constant 0 : index
    %517 = vector.load %arg2[%c136, %c0_147] : memref<1304x256xf32, #tpu.memory_space<vmem>>, vector<16x64xf32>
    %cst_148 = arith.constant dense<0.000000e+00> : vector<2x64xf32>
    %518 = tpu.matmul %516, %517, %cst_148 {dimension_numbers = #tpu.dot_dimension_numbers<[1], [0], [0], [1], [0, 0, 1, 1], [], []>} : vector<2x16xf32>, vector<16x64xf32>, vector<2x64xf32> -> vector<2x64xf32>
    %c152 = arith.constant 152 : index
    %c0_149 = arith.constant 0 : index
    %519 = vector.load %arg2[%c152, %c0_149] : memref<1304x256xf32, #tpu.memory_space<vmem>>, vector<1x64xf32>
    %520 = vector.broadcast %519 : vector<1x64xf32> to vector<2x64xf32>
    %521 = arith.addf %518, %520 : vector<2x64xf32>
    %cst_150 = arith.constant 0.000000e+00 : f32
    %522 = vector.broadcast %cst_150 : f32 to vector<2x64xf32>
    %523 = arith.maximumf %521, %522 : vector<2x64xf32>
    %c160 = arith.constant 160 : index
    %c0_151 = arith.constant 0 : index
    %524 = vector.load %arg2[%c160, %c0_151] : memref<1304x256xf32, #tpu.memory_space<vmem>>, vector<64x64xf32>
    %cst_152 = arith.constant dense<0.000000e+00> : vector<2x64xf32>
    %525 = tpu.matmul %523, %524, %cst_152 {dimension_numbers = #tpu.dot_dimension_numbers<[1], [0], [0], [1], [0, 0, 1, 1], [], []>} : vector<2x64xf32>, vector<64x64xf32>, vector<2x64xf32> -> vector<2x64xf32>
    %c224 = arith.constant 224 : index
    %c0_153 = arith.constant 0 : index
    %526 = vector.load %arg2[%c224, %c0_153] : memref<1304x256xf32, #tpu.memory_space<vmem>>, vector<1x64xf32>
    %527 = vector.broadcast %526 : vector<1x64xf32> to vector<2x64xf32>
    %528 = arith.addf %525, %527 : vector<2x64xf32>
    %cst_154 = arith.constant 0.000000e+00 : f32
    %529 = vector.broadcast %cst_154 : f32 to vector<2x64xf32>
    %530 = arith.maximumf %528, %529 : vector<2x64xf32>
    %c232 = arith.constant 232 : index
    %c0_155 = arith.constant 0 : index
    %531 = vector.load %arg2[%c232, %c0_155] : memref<1304x256xf32, #tpu.memory_space<vmem>>, vector<64x64xf32>
    %cst_156 = arith.constant dense<0.000000e+00> : vector<2x64xf32>
    %532 = tpu.matmul %530, %531, %cst_156 {dimension_numbers = #tpu.dot_dimension_numbers<[1], [0], [0], [1], [0, 0, 1, 1], [], []>} : vector<2x64xf32>, vector<64x64xf32>, vector<2x64xf32> -> vector<2x64xf32>
    %c296 = arith.constant 296 : index
    %c0_157 = arith.constant 0 : index
    %533 = vector.load %arg2[%c296, %c0_157] : memref<1304x256xf32, #tpu.memory_space<vmem>>, vector<1x64xf32>
    %534 = vector.broadcast %533 : vector<1x64xf32> to vector<2x64xf32>
    %535 = arith.addf %532, %534 : vector<2x64xf32>
    %cst_158 = arith.constant 0.000000e+00 : f32
    %536 = vector.broadcast %cst_158 : f32 to vector<2x64xf32>
    %537 = arith.maximumf %535, %536 : vector<2x64xf32>
    %c304 = arith.constant 304 : index
    %c0_159 = arith.constant 0 : index
    %538 = vector.load %arg2[%c304, %c0_159] : memref<1304x256xf32, #tpu.memory_space<vmem>>, vector<64x16xf32>
    %cst_160 = arith.constant dense<0.000000e+00> : vector<2x16xf32>
    %539 = tpu.matmul %537, %538, %cst_160 {dimension_numbers = #tpu.dot_dimension_numbers<[1], [0], [0], [1], [0, 0, 1, 1], [], []>} : vector<2x64xf32>, vector<64x16xf32>, vector<2x16xf32> -> vector<2x16xf32>
    %c368 = arith.constant 368 : index
    %c0_161 = arith.constant 0 : index
    %540 = vector.load %arg2[%c368, %c0_161] : memref<1304x256xf32, #tpu.memory_space<vmem>>, vector<1x16xf32>
    %541 = vector.broadcast %540 : vector<1x16xf32> to vector<2x16xf32>
    %542 = arith.addf %539, %541 : vector<2x16xf32>
    %cst_162 = arith.constant 0.000000e+00 : f32
    %543 = vector.broadcast %cst_162 : f32 to vector<2x16xf32>
    %544 = arith.maximumf %542, %543 : vector<2x16xf32>
    %545 = tpu.concatenate %544, %444 in 1 : vector<2x16xf32>, vector<2x64xf32> -> vector<2x80xf32>
    %c496_163 = arith.constant 496 : index
    %c0_164 = arith.constant 0 : index
    %546 = vector.load %arg2[%c496_163, %c0_164] : memref<1304x256xf32, #tpu.memory_space<vmem>>, vector<80x256xf32>
    %cst_165 = arith.constant dense<0.000000e+00> : vector<2x256xf32>
    %547 = tpu.matmul %545, %546, %cst_165 {dimension_numbers = #tpu.dot_dimension_numbers<[1], [0], [0], [1], [0, 0, 1, 1], [], []>} : vector<2x80xf32>, vector<80x256xf32>, vector<2x256xf32> -> vector<2x256xf32>
    %c576_166 = arith.constant 576 : index
    %c0_167 = arith.constant 0 : index
    %548 = vector.load %arg2[%c576_166, %c0_167] : memref<1304x256xf32, #tpu.memory_space<vmem>>, vector<1x256xf32>
    %549 = vector.broadcast %548 : vector<1x256xf32> to vector<2x256xf32>
    %550 = arith.addf %547, %549 : vector<2x256xf32>
    %551 = vector.extract_strided_slice %550 {offsets = [0, 0], sizes = [2, 192], strides = [1, 1]} : vector<2x256xf32> to vector<2x192xf32>
    %552 = arith.negf %551 : vector<2x192xf32>
    %553 = math.exp %552 : vector<2x192xf32>
    %cst_168 = arith.constant 1.000000e+00 : f32
    %554 = vector.broadcast %cst_168 : f32 to vector<2x192xf32>
    %555 = arith.addf %554, %553 : vector<2x192xf32>
    %556 = arith.divf %554, %555 : vector<2x192xf32>
    %557 = vector.extract_strided_slice %550 {offsets = [0, 192], sizes = [2, 64], strides = [1, 1]} : vector<2x256xf32> to vector<2x64xf32>
    %558 = math.tanh %557 : vector<2x64xf32>
    %559 = vector.extract_strided_slice %556 {offsets = [0, 0], sizes = [2, 64], strides = [1, 1]} : vector<2x192xf32> to vector<2x64xf32>
    %560 = vector.extract_strided_slice %556 {offsets = [0, 64], sizes = [2, 64], strides = [1, 1]} : vector<2x192xf32> to vector<2x64xf32>
    %561 = vector.extract_strided_slice %556 {offsets = [0, 128], sizes = [2, 64], strides = [1, 1]} : vector<2x192xf32> to vector<2x64xf32>
    %562 = arith.mulf %560, %442 : vector<2x64xf32>
    %563 = arith.mulf %559, %558 : vector<2x64xf32>
    %564 = arith.addf %562, %563 : vector<2x64xf32>
    %565 = math.tanh %564 : vector<2x64xf32>
    %566 = arith.mulf %561, %565 : vector<2x64xf32>
    %567 = tpu.concatenate %566, %466 in 1 : vector<2x64xf32>, vector<2x64xf32> -> vector<2x128xf32>
    %c584_169 = arith.constant 584 : index
    %c0_170 = arith.constant 0 : index
    %568 = vector.load %arg2[%c584_169, %c0_170] : memref<1304x256xf32, #tpu.memory_space<vmem>>, vector<128x256xf32>
    %cst_171 = arith.constant dense<0.000000e+00> : vector<2x256xf32>
    %569 = tpu.matmul %567, %568, %cst_171 {dimension_numbers = #tpu.dot_dimension_numbers<[1], [0], [0], [1], [0, 0, 1, 1], [], []>} : vector<2x128xf32>, vector<128x256xf32>, vector<2x256xf32> -> vector<2x256xf32>
    %c712_172 = arith.constant 712 : index
    %c0_173 = arith.constant 0 : index
    %570 = vector.load %arg2[%c712_172, %c0_173] : memref<1304x256xf32, #tpu.memory_space<vmem>>, vector<1x256xf32>
    %571 = vector.broadcast %570 : vector<1x256xf32> to vector<2x256xf32>
    %572 = arith.addf %569, %571 : vector<2x256xf32>
    %573 = vector.extract_strided_slice %572 {offsets = [0, 0], sizes = [2, 192], strides = [1, 1]} : vector<2x256xf32> to vector<2x192xf32>
    %574 = arith.negf %573 : vector<2x192xf32>
    %575 = math.exp %574 : vector<2x192xf32>
    %cst_174 = arith.constant 1.000000e+00 : f32
    %576 = vector.broadcast %cst_174 : f32 to vector<2x192xf32>
    %577 = arith.addf %576, %575 : vector<2x192xf32>
    %578 = arith.divf %576, %577 : vector<2x192xf32>
    %579 = vector.extract_strided_slice %572 {offsets = [0, 192], sizes = [2, 64], strides = [1, 1]} : vector<2x256xf32> to vector<2x64xf32>
    %580 = math.tanh %579 : vector<2x64xf32>
    %581 = vector.extract_strided_slice %578 {offsets = [0, 0], sizes = [2, 64], strides = [1, 1]} : vector<2x192xf32> to vector<2x64xf32>
    %582 = vector.extract_strided_slice %578 {offsets = [0, 64], sizes = [2, 64], strides = [1, 1]} : vector<2x192xf32> to vector<2x64xf32>
    %583 = vector.extract_strided_slice %578 {offsets = [0, 128], sizes = [2, 64], strides = [1, 1]} : vector<2x192xf32> to vector<2x64xf32>
    %584 = arith.mulf %582, %464 : vector<2x64xf32>
    %585 = arith.mulf %581, %580 : vector<2x64xf32>
    %586 = arith.addf %584, %585 : vector<2x64xf32>
    %587 = math.tanh %586 : vector<2x64xf32>
    %588 = arith.mulf %583, %587 : vector<2x64xf32>
    %589 = vector.extract_strided_slice %588 {offsets = [0, 0], sizes = [2, 32], strides = [1, 1]} : vector<2x64xf32> to vector<2x32xf32>
    %c832_175 = arith.constant 832 : index
    %c0_176 = arith.constant 0 : index
    %590 = vector.load %arg2[%c832_175, %c0_176] : memref<1304x256xf32, #tpu.memory_space<vmem>>, vector<32x32xf32>
    %cst_177 = arith.constant dense<0.000000e+00> : vector<2x32xf32>
    %591 = tpu.matmul %589, %590, %cst_177 {dimension_numbers = #tpu.dot_dimension_numbers<[1], [0], [0], [1], [0, 0, 1, 1], [], []>} : vector<2x32xf32>, vector<32x32xf32>, vector<2x32xf32> -> vector<2x32xf32>
    %c864_178 = arith.constant 864 : index
    %c0_179 = arith.constant 0 : index
    %592 = vector.load %arg2[%c864_178, %c0_179] : memref<1304x256xf32, #tpu.memory_space<vmem>>, vector<1x32xf32>
    %593 = vector.broadcast %592 : vector<1x32xf32> to vector<2x32xf32>
    %594 = arith.addf %591, %593 : vector<2x32xf32>
    %cst_180 = arith.constant 0.000000e+00 : f32
    %595 = vector.broadcast %cst_180 : f32 to vector<2x32xf32>
    %596 = arith.maximumf %594, %595 : vector<2x32xf32>
    %597 = vector.extract_strided_slice %588 {offsets = [0, 32], sizes = [2, 32], strides = [1, 1]} : vector<2x64xf32> to vector<2x32xf32>
    %598 = tpu.concatenate %596, %597 in 1 : vector<2x32xf32>, vector<2x32xf32> -> vector<2x64xf32>
    %c872_181 = arith.constant 872 : index
    %c0_182 = arith.constant 0 : index
    %599 = vector.load %arg2[%c872_181, %c0_182] : memref<1304x256xf32, #tpu.memory_space<vmem>>, vector<64x64xf32>
    %cst_183 = arith.constant dense<0.000000e+00> : vector<2x64xf32>
    %600 = tpu.matmul %598, %599, %cst_183 {dimension_numbers = #tpu.dot_dimension_numbers<[1], [0], [0], [1], [0, 0, 1, 1], [], []>} : vector<2x64xf32>, vector<64x64xf32>, vector<2x64xf32> -> vector<2x64xf32>
    %c936_184 = arith.constant 936 : index
    %c0_185 = arith.constant 0 : index
    %601 = vector.load %arg2[%c936_184, %c0_185] : memref<1304x256xf32, #tpu.memory_space<vmem>>, vector<1x64xf32>
    %602 = vector.broadcast %601 : vector<1x64xf32> to vector<2x64xf32>
    %603 = arith.addf %600, %602 : vector<2x64xf32>
    %cst_186 = arith.constant 0.000000e+00 : f32
    %604 = vector.broadcast %cst_186 : f32 to vector<2x64xf32>
    %605 = arith.maximumf %603, %604 : vector<2x64xf32>
    %c944_187 = arith.constant 944 : index
    %c0_188 = arith.constant 0 : index
    %606 = vector.load %arg2[%c944_187, %c0_188] : memref<1304x256xf32, #tpu.memory_space<vmem>>, vector<64x64xf32>
    %cst_189 = arith.constant dense<0.000000e+00> : vector<2x64xf32>
    %607 = tpu.matmul %605, %606, %cst_189 {dimension_numbers = #tpu.dot_dimension_numbers<[1], [0], [0], [1], [0, 0, 1, 1], [], []>} : vector<2x64xf32>, vector<64x64xf32>, vector<2x64xf32> -> vector<2x64xf32>
    %c1008_190 = arith.constant 1008 : index
    %c0_191 = arith.constant 0 : index
    %608 = vector.load %arg2[%c1008_190, %c0_191] : memref<1304x256xf32, #tpu.memory_space<vmem>>, vector<1x64xf32>
    %609 = vector.broadcast %608 : vector<1x64xf32> to vector<2x64xf32>
    %610 = arith.addf %607, %609 : vector<2x64xf32>
    %cst_192 = arith.constant 0.000000e+00 : f32
    %611 = vector.broadcast %cst_192 : f32 to vector<2x64xf32>
    %612 = arith.maximumf %610, %611 : vector<2x64xf32>
    %c1016_193 = arith.constant 1016 : index
    %c0_194 = arith.constant 0 : index
    %613 = vector.load %arg2[%c1016_193, %c0_194] : memref<1304x256xf32, #tpu.memory_space<vmem>>, vector<64x64xf32>
    %cst_195 = arith.constant dense<0.000000e+00> : vector<2x64xf32>
    %614 = tpu.matmul %612, %613, %cst_195 {dimension_numbers = #tpu.dot_dimension_numbers<[1], [0], [0], [1], [0, 0, 1, 1], [], []>} : vector<2x64xf32>, vector<64x64xf32>, vector<2x64xf32> -> vector<2x64xf32>
    %c1080_196 = arith.constant 1080 : index
    %c0_197 = arith.constant 0 : index
    %615 = vector.load %arg2[%c1080_196, %c0_197] : memref<1304x256xf32, #tpu.memory_space<vmem>>, vector<1x64xf32>
    %616 = vector.broadcast %615 : vector<1x64xf32> to vector<2x64xf32>
    %617 = arith.addf %614, %616 : vector<2x64xf32>
    %cst_198 = arith.constant 0.000000e+00 : f32
    %618 = vector.broadcast %cst_198 : f32 to vector<2x64xf32>
    %619 = arith.maximumf %617, %618 : vector<2x64xf32>
    %c1088_199 = arith.constant 1088 : index
    %c0_200 = arith.constant 0 : index
    %620 = vector.load %arg2[%c1088_199, %c0_200] : memref<1304x256xf32, #tpu.memory_space<vmem>>, vector<64x64xf32>
    %cst_201 = arith.constant dense<0.000000e+00> : vector<2x64xf32>
    %621 = tpu.matmul %619, %620, %cst_201 {dimension_numbers = #tpu.dot_dimension_numbers<[1], [0], [0], [1], [0, 0, 1, 1], [], []>} : vector<2x64xf32>, vector<64x64xf32>, vector<2x64xf32> -> vector<2x64xf32>
    %c1152_202 = arith.constant 1152 : index
    %c0_203 = arith.constant 0 : index
    %622 = vector.load %arg2[%c1152_202, %c0_203] : memref<1304x256xf32, #tpu.memory_space<vmem>>, vector<1x64xf32>
    %623 = vector.broadcast %622 : vector<1x64xf32> to vector<2x64xf32>
    %624 = arith.addf %621, %623 : vector<2x64xf32>
    %cst_204 = arith.constant 0.000000e+00 : f32
    %625 = vector.broadcast %cst_204 : f32 to vector<2x64xf32>
    %626 = arith.maximumf %624, %625 : vector<2x64xf32>
    %c1160_205 = arith.constant 1160 : index
    %c0_206 = arith.constant 0 : index
    %627 = vector.load %arg2[%c1160_205, %c0_206] : memref<1304x256xf32, #tpu.memory_space<vmem>>, vector<64x64xf32>
    %cst_207 = arith.constant dense<0.000000e+00> : vector<2x64xf32>
    %628 = tpu.matmul %626, %627, %cst_207 {dimension_numbers = #tpu.dot_dimension_numbers<[1], [0], [0], [1], [0, 0, 1, 1], [], []>} : vector<2x64xf32>, vector<64x64xf32>, vector<2x64xf32> -> vector<2x64xf32>
    %c1224_208 = arith.constant 1224 : index
    %c0_209 = arith.constant 0 : index
    %629 = vector.load %arg2[%c1224_208, %c0_209] : memref<1304x256xf32, #tpu.memory_space<vmem>>, vector<1x64xf32>
    %630 = vector.broadcast %629 : vector<1x64xf32> to vector<2x64xf32>
    %631 = arith.addf %628, %630 : vector<2x64xf32>
    %cst_210 = arith.constant 0.000000e+00 : f32
    %632 = vector.broadcast %cst_210 : f32 to vector<2x64xf32>
    %633 = arith.maximumf %631, %632 : vector<2x64xf32>
    %c1232_211 = arith.constant 1232 : index
    %c0_212 = arith.constant 0 : index
    %634 = vector.load %arg2[%c1232_211, %c0_212] : memref<1304x256xf32, #tpu.memory_space<vmem>>, vector<64x16xf32>
    %cst_213 = arith.constant dense<0.000000e+00> : vector<2x16xf32>
    %635 = tpu.matmul %633, %634, %cst_213 {dimension_numbers = #tpu.dot_dimension_numbers<[1], [0], [0], [1], [0, 0, 1, 1], [], []>} : vector<2x64xf32>, vector<64x16xf32>, vector<2x16xf32> -> vector<2x16xf32>
    %c1296_214 = arith.constant 1296 : index
    %c0_215 = arith.constant 0 : index
    %636 = vector.load %arg2[%c1296_214, %c0_215] : memref<1304x256xf32, #tpu.memory_space<vmem>>, vector<1x16xf32>
    %637 = vector.broadcast %636 : vector<1x16xf32> to vector<2x16xf32>
    %638 = arith.addf %635, %637 : vector<2x16xf32>
    %c136_216 = arith.constant 136 : index
    %c0_217 = arith.constant 0 : index
    %639 = vector.load %arg2[%c136_216, %c0_217] : memref<1304x256xf32, #tpu.memory_space<vmem>>, vector<16x64xf32>
    %cst_218 = arith.constant dense<0.000000e+00> : vector<2x64xf32>
    %640 = tpu.matmul %638, %639, %cst_218 {dimension_numbers = #tpu.dot_dimension_numbers<[1], [0], [0], [1], [0, 0, 1, 1], [], []>} : vector<2x16xf32>, vector<16x64xf32>, vector<2x64xf32> -> vector<2x64xf32>
    %c152_219 = arith.constant 152 : index
    %c0_220 = arith.constant 0 : index
    %641 = vector.load %arg2[%c152_219, %c0_220] : memref<1304x256xf32, #tpu.memory_space<vmem>>, vector<1x64xf32>
    %642 = vector.broadcast %641 : vector<1x64xf32> to vector<2x64xf32>
    %643 = arith.addf %640, %642 : vector<2x64xf32>
    %cst_221 = arith.constant 0.000000e+00 : f32
    %644 = vector.broadcast %cst_221 : f32 to vector<2x64xf32>
    %645 = arith.maximumf %643, %644 : vector<2x64xf32>
    %c160_222 = arith.constant 160 : index
    %c0_223 = arith.constant 0 : index
    %646 = vector.load %arg2[%c160_222, %c0_223] : memref<1304x256xf32, #tpu.memory_space<vmem>>, vector<64x64xf32>
    %cst_224 = arith.constant dense<0.000000e+00> : vector<2x64xf32>
    %647 = tpu.matmul %645, %646, %cst_224 {dimension_numbers = #tpu.dot_dimension_numbers<[1], [0], [0], [1], [0, 0, 1, 1], [], []>} : vector<2x64xf32>, vector<64x64xf32>, vector<2x64xf32> -> vector<2x64xf32>
    %c224_225 = arith.constant 224 : index
    %c0_226 = arith.constant 0 : index
    %648 = vector.load %arg2[%c224_225, %c0_226] : memref<1304x256xf32, #tpu.memory_space<vmem>>, vector<1x64xf32>
    %649 = vector.broadcast %648 : vector<1x64xf32> to vector<2x64xf32>
    %650 = arith.addf %647, %649 : vector<2x64xf32>
    %cst_227 = arith.constant 0.000000e+00 : f32
    %651 = vector.broadcast %cst_227 : f32 to vector<2x64xf32>
    %652 = arith.maximumf %650, %651 : vector<2x64xf32>
    %c232_228 = arith.constant 232 : index
    %c0_229 = arith.constant 0 : index
    %653 = vector.load %arg2[%c232_228, %c0_229] : memref<1304x256xf32, #tpu.memory_space<vmem>>, vector<64x64xf32>
    %cst_230 = arith.constant dense<0.000000e+00> : vector<2x64xf32>
    %654 = tpu.matmul %652, %653, %cst_230 {dimension_numbers = #tpu.dot_dimension_numbers<[1], [0], [0], [1], [0, 0, 1, 1], [], []>} : vector<2x64xf32>, vector<64x64xf32>, vector<2x64xf32> -> vector<2x64xf32>
    %c296_231 = arith.constant 296 : index
    %c0_232 = arith.constant 0 : index
    %655 = vector.load %arg2[%c296_231, %c0_232] : memref<1304x256xf32, #tpu.memory_space<vmem>>, vector<1x64xf32>
    %656 = vector.broadcast %655 : vector<1x64xf32> to vector<2x64xf32>
    %657 = arith.addf %654, %656 : vector<2x64xf32>
    %cst_233 = arith.constant 0.000000e+00 : f32
    %658 = vector.broadcast %cst_233 : f32 to vector<2x64xf32>
    %659 = arith.maximumf %657, %658 : vector<2x64xf32>
    %c304_234 = arith.constant 304 : index
    %c0_235 = arith.constant 0 : index
    %660 = vector.load %arg2[%c304_234, %c0_235] : memref<1304x256xf32, #tpu.memory_space<vmem>>, vector<64x16xf32>
    %cst_236 = arith.constant dense<0.000000e+00> : vector<2x16xf32>
    %661 = tpu.matmul %659, %660, %cst_236 {dimension_numbers = #tpu.dot_dimension_numbers<[1], [0], [0], [1], [0, 0, 1, 1], [], []>} : vector<2x64xf32>, vector<64x16xf32>, vector<2x16xf32> -> vector<2x16xf32>
    %c368_237 = arith.constant 368 : index
    %c0_238 = arith.constant 0 : index
    %662 = vector.load %arg2[%c368_237, %c0_238] : memref<1304x256xf32, #tpu.memory_space<vmem>>, vector<1x16xf32>
    %663 = vector.broadcast %662 : vector<1x16xf32> to vector<2x16xf32>
    %664 = arith.addf %661, %663 : vector<2x16xf32>
    %cst_239 = arith.constant 0.000000e+00 : f32
    %665 = vector.broadcast %cst_239 : f32 to vector<2x16xf32>
    %666 = arith.maximumf %664, %665 : vector<2x16xf32>
    %667 = tpu.concatenate %666, %566 in 1 : vector<2x16xf32>, vector<2x64xf32> -> vector<2x80xf32>
    %c496_240 = arith.constant 496 : index
    %c0_241 = arith.constant 0 : index
    %668 = vector.load %arg2[%c496_240, %c0_241] : memref<1304x256xf32, #tpu.memory_space<vmem>>, vector<80x256xf32>
    %cst_242 = arith.constant dense<0.000000e+00> : vector<2x256xf32>
    %669 = tpu.matmul %667, %668, %cst_242 {dimension_numbers = #tpu.dot_dimension_numbers<[1], [0], [0], [1], [0, 0, 1, 1], [], []>} : vector<2x80xf32>, vector<80x256xf32>, vector<2x256xf32> -> vector<2x256xf32>
    %c576_243 = arith.constant 576 : index
    %c0_244 = arith.constant 0 : index
    %670 = vector.load %arg2[%c576_243, %c0_244] : memref<1304x256xf32, #tpu.memory_space<vmem>>, vector<1x256xf32>
    %671 = vector.broadcast %670 : vector<1x256xf32> to vector<2x256xf32>
    %672 = arith.addf %669, %671 : vector<2x256xf32>
    %673 = vector.extract_strided_slice %672 {offsets = [0, 0], sizes = [2, 192], strides = [1, 1]} : vector<2x256xf32> to vector<2x192xf32>
    %674 = arith.negf %673 : vector<2x192xf32>
    %675 = math.exp %674 : vector<2x192xf32>
    %cst_245 = arith.constant 1.000000e+00 : f32
    %676 = vector.broadcast %cst_245 : f32 to vector<2x192xf32>
    %677 = arith.addf %676, %675 : vector<2x192xf32>
    %678 = arith.divf %676, %677 : vector<2x192xf32>
    %679 = vector.extract_strided_slice %672 {offsets = [0, 192], sizes = [2, 64], strides = [1, 1]} : vector<2x256xf32> to vector<2x64xf32>
    %680 = math.tanh %679 : vector<2x64xf32>
    %681 = vector.extract_strided_slice %678 {offsets = [0, 0], sizes = [2, 64], strides = [1, 1]} : vector<2x192xf32> to vector<2x64xf32>
    %682 = vector.extract_strided_slice %678 {offsets = [0, 64], sizes = [2, 64], strides = [1, 1]} : vector<2x192xf32> to vector<2x64xf32>
    %683 = vector.extract_strided_slice %678 {offsets = [0, 128], sizes = [2, 64], strides = [1, 1]} : vector<2x192xf32> to vector<2x64xf32>
    %684 = arith.mulf %682, %564 : vector<2x64xf32>
    %685 = arith.mulf %681, %680 : vector<2x64xf32>
    %686 = arith.addf %684, %685 : vector<2x64xf32>
    %687 = math.tanh %686 : vector<2x64xf32>
    %688 = arith.mulf %683, %687 : vector<2x64xf32>
    %689 = tpu.concatenate %688, %588 in 1 : vector<2x64xf32>, vector<2x64xf32> -> vector<2x128xf32>
    %c584_246 = arith.constant 584 : index
    %c0_247 = arith.constant 0 : index
    %690 = vector.load %arg2[%c584_246, %c0_247] : memref<1304x256xf32, #tpu.memory_space<vmem>>, vector<128x256xf32>
    %cst_248 = arith.constant dense<0.000000e+00> : vector<2x256xf32>
    %691 = tpu.matmul %689, %690, %cst_248 {dimension_numbers = #tpu.dot_dimension_numbers<[1], [0], [0], [1], [0, 0, 1, 1], [], []>} : vector<2x128xf32>, vector<128x256xf32>, vector<2x256xf32> -> vector<2x256xf32>
    %c712_249 = arith.constant 712 : index
    %c0_250 = arith.constant 0 : index
    %692 = vector.load %arg2[%c712_249, %c0_250] : memref<1304x256xf32, #tpu.memory_space<vmem>>, vector<1x256xf32>
    %693 = vector.broadcast %692 : vector<1x256xf32> to vector<2x256xf32>
    %694 = arith.addf %691, %693 : vector<2x256xf32>
    %695 = vector.extract_strided_slice %694 {offsets = [0, 0], sizes = [2, 192], strides = [1, 1]} : vector<2x256xf32> to vector<2x192xf32>
    %696 = arith.negf %695 : vector<2x192xf32>
    %697 = math.exp %696 : vector<2x192xf32>
    %cst_251 = arith.constant 1.000000e+00 : f32
    %698 = vector.broadcast %cst_251 : f32 to vector<2x192xf32>
    %699 = arith.addf %698, %697 : vector<2x192xf32>
    %700 = arith.divf %698, %699 : vector<2x192xf32>
    %701 = vector.extract_strided_slice %694 {offsets = [0, 192], sizes = [2, 64], strides = [1, 1]} : vector<2x256xf32> to vector<2x64xf32>
    %702 = math.tanh %701 : vector<2x64xf32>
    %703 = vector.extract_strided_slice %700 {offsets = [0, 0], sizes = [2, 64], strides = [1, 1]} : vector<2x192xf32> to vector<2x64xf32>
    %704 = vector.extract_strided_slice %700 {offsets = [0, 64], sizes = [2, 64], strides = [1, 1]} : vector<2x192xf32> to vector<2x64xf32>
    %705 = vector.extract_strided_slice %700 {offsets = [0, 128], sizes = [2, 64], strides = [1, 1]} : vector<2x192xf32> to vector<2x64xf32>
    %706 = arith.mulf %704, %586 : vector<2x64xf32>
    %707 = arith.mulf %703, %702 : vector<2x64xf32>
    %708 = arith.addf %706, %707 : vector<2x64xf32>
    %709 = math.tanh %708 : vector<2x64xf32>
    %710 = arith.mulf %705, %709 : vector<2x64xf32>
    %711 = vector.extract_strided_slice %710 {offsets = [0, 0], sizes = [2, 32], strides = [1, 1]} : vector<2x64xf32> to vector<2x32xf32>
    %c832_252 = arith.constant 832 : index
    %c0_253 = arith.constant 0 : index
    %712 = vector.load %arg2[%c832_252, %c0_253] : memref<1304x256xf32, #tpu.memory_space<vmem>>, vector<32x32xf32>
    %cst_254 = arith.constant dense<0.000000e+00> : vector<2x32xf32>
    %713 = tpu.matmul %711, %712, %cst_254 {dimension_numbers = #tpu.dot_dimension_numbers<[1], [0], [0], [1], [0, 0, 1, 1], [], []>} : vector<2x32xf32>, vector<32x32xf32>, vector<2x32xf32> -> vector<2x32xf32>
    %c864_255 = arith.constant 864 : index
    %c0_256 = arith.constant 0 : index
    %714 = vector.load %arg2[%c864_255, %c0_256] : memref<1304x256xf32, #tpu.memory_space<vmem>>, vector<1x32xf32>
    %715 = vector.broadcast %714 : vector<1x32xf32> to vector<2x32xf32>
    %716 = arith.addf %713, %715 : vector<2x32xf32>
    %cst_257 = arith.constant 0.000000e+00 : f32
    %717 = vector.broadcast %cst_257 : f32 to vector<2x32xf32>
    %718 = arith.maximumf %716, %717 : vector<2x32xf32>
    %719 = vector.extract_strided_slice %710 {offsets = [0, 32], sizes = [2, 32], strides = [1, 1]} : vector<2x64xf32> to vector<2x32xf32>
    %720 = tpu.concatenate %718, %719 in 1 : vector<2x32xf32>, vector<2x32xf32> -> vector<2x64xf32>
    %c872_258 = arith.constant 872 : index
    %c0_259 = arith.constant 0 : index
    %721 = vector.load %arg2[%c872_258, %c0_259] : memref<1304x256xf32, #tpu.memory_space<vmem>>, vector<64x64xf32>
    %cst_260 = arith.constant dense<0.000000e+00> : vector<2x64xf32>
    %722 = tpu.matmul %720, %721, %cst_260 {dimension_numbers = #tpu.dot_dimension_numbers<[1], [0], [0], [1], [0, 0, 1, 1], [], []>} : vector<2x64xf32>, vector<64x64xf32>, vector<2x64xf32> -> vector<2x64xf32>
    %c936_261 = arith.constant 936 : index
    %c0_262 = arith.constant 0 : index
    %723 = vector.load %arg2[%c936_261, %c0_262] : memref<1304x256xf32, #tpu.memory_space<vmem>>, vector<1x64xf32>
    %724 = vector.broadcast %723 : vector<1x64xf32> to vector<2x64xf32>
    %725 = arith.addf %722, %724 : vector<2x64xf32>
    %cst_263 = arith.constant 0.000000e+00 : f32
    %726 = vector.broadcast %cst_263 : f32 to vector<2x64xf32>
    %727 = arith.maximumf %725, %726 : vector<2x64xf32>
    %c944_264 = arith.constant 944 : index
    %c0_265 = arith.constant 0 : index
    %728 = vector.load %arg2[%c944_264, %c0_265] : memref<1304x256xf32, #tpu.memory_space<vmem>>, vector<64x64xf32>
    %cst_266 = arith.constant dense<0.000000e+00> : vector<2x64xf32>
    %729 = tpu.matmul %727, %728, %cst_266 {dimension_numbers = #tpu.dot_dimension_numbers<[1], [0], [0], [1], [0, 0, 1, 1], [], []>} : vector<2x64xf32>, vector<64x64xf32>, vector<2x64xf32> -> vector<2x64xf32>
    %c1008_267 = arith.constant 1008 : index
    %c0_268 = arith.constant 0 : index
    %730 = vector.load %arg2[%c1008_267, %c0_268] : memref<1304x256xf32, #tpu.memory_space<vmem>>, vector<1x64xf32>
    %731 = vector.broadcast %730 : vector<1x64xf32> to vector<2x64xf32>
    %732 = arith.addf %729, %731 : vector<2x64xf32>
    %cst_269 = arith.constant 0.000000e+00 : f32
    %733 = vector.broadcast %cst_269 : f32 to vector<2x64xf32>
    %734 = arith.maximumf %732, %733 : vector<2x64xf32>
    %c1016_270 = arith.constant 1016 : index
    %c0_271 = arith.constant 0 : index
    %735 = vector.load %arg2[%c1016_270, %c0_271] : memref<1304x256xf32, #tpu.memory_space<vmem>>, vector<64x64xf32>
    %cst_272 = arith.constant dense<0.000000e+00> : vector<2x64xf32>
    %736 = tpu.matmul %734, %735, %cst_272 {dimension_numbers = #tpu.dot_dimension_numbers<[1], [0], [0], [1], [0, 0, 1, 1], [], []>} : vector<2x64xf32>, vector<64x64xf32>, vector<2x64xf32> -> vector<2x64xf32>
    %c1080_273 = arith.constant 1080 : index
    %c0_274 = arith.constant 0 : index
    %737 = vector.load %arg2[%c1080_273, %c0_274] : memref<1304x256xf32, #tpu.memory_space<vmem>>, vector<1x64xf32>
    %738 = vector.broadcast %737 : vector<1x64xf32> to vector<2x64xf32>
    %739 = arith.addf %736, %738 : vector<2x64xf32>
    %cst_275 = arith.constant 0.000000e+00 : f32
    %740 = vector.broadcast %cst_275 : f32 to vector<2x64xf32>
    %741 = arith.maximumf %739, %740 : vector<2x64xf32>
    %c1088_276 = arith.constant 1088 : index
    %c0_277 = arith.constant 0 : index
    %742 = vector.load %arg2[%c1088_276, %c0_277] : memref<1304x256xf32, #tpu.memory_space<vmem>>, vector<64x64xf32>
    %cst_278 = arith.constant dense<0.000000e+00> : vector<2x64xf32>
    %743 = tpu.matmul %741, %742, %cst_278 {dimension_numbers = #tpu.dot_dimension_numbers<[1], [0], [0], [1], [0, 0, 1, 1], [], []>} : vector<2x64xf32>, vector<64x64xf32>, vector<2x64xf32> -> vector<2x64xf32>
    %c1152_279 = arith.constant 1152 : index
    %c0_280 = arith.constant 0 : index
    %744 = vector.load %arg2[%c1152_279, %c0_280] : memref<1304x256xf32, #tpu.memory_space<vmem>>, vector<1x64xf32>
    %745 = vector.broadcast %744 : vector<1x64xf32> to vector<2x64xf32>
    %746 = arith.addf %743, %745 : vector<2x64xf32>
    %cst_281 = arith.constant 0.000000e+00 : f32
    %747 = vector.broadcast %cst_281 : f32 to vector<2x64xf32>
    %748 = arith.maximumf %746, %747 : vector<2x64xf32>
    %c1160_282 = arith.constant 1160 : index
    %c0_283 = arith.constant 0 : index
    %749 = vector.load %arg2[%c1160_282, %c0_283] : memref<1304x256xf32, #tpu.memory_space<vmem>>, vector<64x64xf32>
    %cst_284 = arith.constant dense<0.000000e+00> : vector<2x64xf32>
    %750 = tpu.matmul %748, %749, %cst_284 {dimension_numbers = #tpu.dot_dimension_numbers<[1], [0], [0], [1], [0, 0, 1, 1], [], []>} : vector<2x64xf32>, vector<64x64xf32>, vector<2x64xf32> -> vector<2x64xf32>
    %c1224_285 = arith.constant 1224 : index
    %c0_286 = arith.constant 0 : index
    %751 = vector.load %arg2[%c1224_285, %c0_286] : memref<1304x256xf32, #tpu.memory_space<vmem>>, vector<1x64xf32>
    %752 = vector.broadcast %751 : vector<1x64xf32> to vector<2x64xf32>
    %753 = arith.addf %750, %752 : vector<2x64xf32>
    %cst_287 = arith.constant 0.000000e+00 : f32
    %754 = vector.broadcast %cst_287 : f32 to vector<2x64xf32>
    %755 = arith.maximumf %753, %754 : vector<2x64xf32>
    %c1232_288 = arith.constant 1232 : index
    %c0_289 = arith.constant 0 : index
    %756 = vector.load %arg2[%c1232_288, %c0_289] : memref<1304x256xf32, #tpu.memory_space<vmem>>, vector<64x16xf32>
    %cst_290 = arith.constant dense<0.000000e+00> : vector<2x16xf32>
    %757 = tpu.matmul %755, %756, %cst_290 {dimension_numbers = #tpu.dot_dimension_numbers<[1], [0], [0], [1], [0, 0, 1, 1], [], []>} : vector<2x64xf32>, vector<64x16xf32>, vector<2x16xf32> -> vector<2x16xf32>
    %c1296_291 = arith.constant 1296 : index
    %c0_292 = arith.constant 0 : index
    %758 = vector.load %arg2[%c1296_291, %c0_292] : memref<1304x256xf32, #tpu.memory_space<vmem>>, vector<1x16xf32>
    %759 = vector.broadcast %758 : vector<1x16xf32> to vector<2x16xf32>
    %760 = arith.addf %757, %759 : vector<2x16xf32>
    %c136_293 = arith.constant 136 : index
    %c0_294 = arith.constant 0 : index
    %761 = vector.load %arg2[%c136_293, %c0_294] : memref<1304x256xf32, #tpu.memory_space<vmem>>, vector<16x64xf32>
    %cst_295 = arith.constant dense<0.000000e+00> : vector<2x64xf32>
    %762 = tpu.matmul %760, %761, %cst_295 {dimension_numbers = #tpu.dot_dimension_numbers<[1], [0], [0], [1], [0, 0, 1, 1], [], []>} : vector<2x16xf32>, vector<16x64xf32>, vector<2x64xf32> -> vector<2x64xf32>
    %c152_296 = arith.constant 152 : index
    %c0_297 = arith.constant 0 : index
    %763 = vector.load %arg2[%c152_296, %c0_297] : memref<1304x256xf32, #tpu.memory_space<vmem>>, vector<1x64xf32>
    %764 = vector.broadcast %763 : vector<1x64xf32> to vector<2x64xf32>
    %765 = arith.addf %762, %764 : vector<2x64xf32>
    %cst_298 = arith.constant 0.000000e+00 : f32
    %766 = vector.broadcast %cst_298 : f32 to vector<2x64xf32>
    %767 = arith.maximumf %765, %766 : vector<2x64xf32>
    %c160_299 = arith.constant 160 : index
    %c0_300 = arith.constant 0 : index
    %768 = vector.load %arg2[%c160_299, %c0_300] : memref<1304x256xf32, #tpu.memory_space<vmem>>, vector<64x64xf32>
    %cst_301 = arith.constant dense<0.000000e+00> : vector<2x64xf32>
    %769 = tpu.matmul %767, %768, %cst_301 {dimension_numbers = #tpu.dot_dimension_numbers<[1], [0], [0], [1], [0, 0, 1, 1], [], []>} : vector<2x64xf32>, vector<64x64xf32>, vector<2x64xf32> -> vector<2x64xf32>
    %c224_302 = arith.constant 224 : index
    %c0_303 = arith.constant 0 : index
    %770 = vector.load %arg2[%c224_302, %c0_303] : memref<1304x256xf32, #tpu.memory_space<vmem>>, vector<1x64xf32>
    %771 = vector.broadcast %770 : vector<1x64xf32> to vector<2x64xf32>
    %772 = arith.addf %769, %771 : vector<2x64xf32>
    %cst_304 = arith.constant 0.000000e+00 : f32
    %773 = vector.broadcast %cst_304 : f32 to vector<2x64xf32>
    %774 = arith.maximumf %772, %773 : vector<2x64xf32>
    %c232_305 = arith.constant 232 : index
    %c0_306 = arith.constant 0 : index
    %775 = vector.load %arg2[%c232_305, %c0_306] : memref<1304x256xf32, #tpu.memory_space<vmem>>, vector<64x64xf32>
    %cst_307 = arith.constant dense<0.000000e+00> : vector<2x64xf32>
    %776 = tpu.matmul %774, %775, %cst_307 {dimension_numbers = #tpu.dot_dimension_numbers<[1], [0], [0], [1], [0, 0, 1, 1], [], []>} : vector<2x64xf32>, vector<64x64xf32>, vector<2x64xf32> -> vector<2x64xf32>
    %c296_308 = arith.constant 296 : index
    %c0_309 = arith.constant 0 : index
    %777 = vector.load %arg2[%c296_308, %c0_309] : memref<1304x256xf32, #tpu.memory_space<vmem>>, vector<1x64xf32>
    %778 = vector.broadcast %777 : vector<1x64xf32> to vector<2x64xf32>
    %779 = arith.addf %776, %778 : vector<2x64xf32>
    %cst_310 = arith.constant 0.000000e+00 : f32
    %780 = vector.broadcast %cst_310 : f32 to vector<2x64xf32>
    %781 = arith.maximumf %779, %780 : vector<2x64xf32>
    %c304_311 = arith.constant 304 : index
    %c0_312 = arith.constant 0 : index
    %782 = vector.load %arg2[%c304_311, %c0_312] : memref<1304x256xf32, #tpu.memory_space<vmem>>, vector<64x16xf32>
    %cst_313 = arith.constant dense<0.000000e+00> : vector<2x16xf32>
    %783 = tpu.matmul %781, %782, %cst_313 {dimension_numbers = #tpu.dot_dimension_numbers<[1], [0], [0], [1], [0, 0, 1, 1], [], []>} : vector<2x64xf32>, vector<64x16xf32>, vector<2x16xf32> -> vector<2x16xf32>
    %c368_314 = arith.constant 368 : index
    %c0_315 = arith.constant 0 : index
    %784 = vector.load %arg2[%c368_314, %c0_315] : memref<1304x256xf32, #tpu.memory_space<vmem>>, vector<1x16xf32>
    %785 = vector.broadcast %784 : vector<1x16xf32> to vector<2x16xf32>
    %786 = arith.addf %783, %785 : vector<2x16xf32>
    %cst_316 = arith.constant 0.000000e+00 : f32
    %787 = vector.broadcast %cst_316 : f32 to vector<2x16xf32>
    %788 = arith.maximumf %786, %787 : vector<2x16xf32>
    %789 = tpu.concatenate %788, %688 in 1 : vector<2x16xf32>, vector<2x64xf32> -> vector<2x80xf32>
    %c496_317 = arith.constant 496 : index
    %c0_318 = arith.constant 0 : index
    %790 = vector.load %arg2[%c496_317, %c0_318] : memref<1304x256xf32, #tpu.memory_space<vmem>>, vector<80x256xf32>
    %cst_319 = arith.constant dense<0.000000e+00> : vector<2x256xf32>
    %791 = tpu.matmul %789, %790, %cst_319 {dimension_numbers = #tpu.dot_dimension_numbers<[1], [0], [0], [1], [0, 0, 1, 1], [], []>} : vector<2x80xf32>, vector<80x256xf32>, vector<2x256xf32> -> vector<2x256xf32>
    %c576_320 = arith.constant 576 : index
    %c0_321 = arith.constant 0 : index
    %792 = vector.load %arg2[%c576_320, %c0_321] : memref<1304x256xf32, #tpu.memory_space<vmem>>, vector<1x256xf32>
    %793 = vector.broadcast %792 : vector<1x256xf32> to vector<2x256xf32>
    %794 = arith.addf %791, %793 : vector<2x256xf32>
    %795 = vector.extract_strided_slice %794 {offsets = [0, 0], sizes = [2, 192], strides = [1, 1]} : vector<2x256xf32> to vector<2x192xf32>
    %796 = arith.negf %795 : vector<2x192xf32>
    %797 = math.exp %796 : vector<2x192xf32>
    %cst_322 = arith.constant 1.000000e+00 : f32
    %798 = vector.broadcast %cst_322 : f32 to vector<2x192xf32>
    %799 = arith.addf %798, %797 : vector<2x192xf32>
    %800 = arith.divf %798, %799 : vector<2x192xf32>
    %801 = vector.extract_strided_slice %794 {offsets = [0, 192], sizes = [2, 64], strides = [1, 1]} : vector<2x256xf32> to vector<2x64xf32>
    %802 = math.tanh %801 : vector<2x64xf32>
    %803 = vector.extract_strided_slice %800 {offsets = [0, 0], sizes = [2, 64], strides = [1, 1]} : vector<2x192xf32> to vector<2x64xf32>
    %804 = vector.extract_strided_slice %800 {offsets = [0, 64], sizes = [2, 64], strides = [1, 1]} : vector<2x192xf32> to vector<2x64xf32>
    %805 = vector.extract_strided_slice %800 {offsets = [0, 128], sizes = [2, 64], strides = [1, 1]} : vector<2x192xf32> to vector<2x64xf32>
    %806 = arith.mulf %804, %686 : vector<2x64xf32>
    %807 = arith.mulf %803, %802 : vector<2x64xf32>
    %808 = arith.addf %806, %807 : vector<2x64xf32>
    %809 = math.tanh %808 : vector<2x64xf32>
    %810 = arith.mulf %805, %809 : vector<2x64xf32>
    %811 = tpu.concatenate %810, %710 in 1 : vector<2x64xf32>, vector<2x64xf32> -> vector<2x128xf32>
    %c584_323 = arith.constant 584 : index
    %c0_324 = arith.constant 0 : index
    %812 = vector.load %arg2[%c584_323, %c0_324] : memref<1304x256xf32, #tpu.memory_space<vmem>>, vector<128x256xf32>
    %cst_325 = arith.constant dense<0.000000e+00> : vector<2x256xf32>
    %813 = tpu.matmul %811, %812, %cst_325 {dimension_numbers = #tpu.dot_dimension_numbers<[1], [0], [0], [1], [0, 0, 1, 1], [], []>} : vector<2x128xf32>, vector<128x256xf32>, vector<2x256xf32> -> vector<2x256xf32>
    %c712_326 = arith.constant 712 : index
    %c0_327 = arith.constant 0 : index
    %814 = vector.load %arg2[%c712_326, %c0_327] : memref<1304x256xf32, #tpu.memory_space<vmem>>, vector<1x256xf32>
    %815 = vector.broadcast %814 : vector<1x256xf32> to vector<2x256xf32>
    %816 = arith.addf %813, %815 : vector<2x256xf32>
    %817 = vector.extract_strided_slice %816 {offsets = [0, 0], sizes = [2, 192], strides = [1, 1]} : vector<2x256xf32> to vector<2x192xf32>
    %818 = arith.negf %817 : vector<2x192xf32>
    %819 = math.exp %818 : vector<2x192xf32>
    %cst_328 = arith.constant 1.000000e+00 : f32
    %820 = vector.broadcast %cst_328 : f32 to vector<2x192xf32>
    %821 = arith.addf %820, %819 : vector<2x192xf32>
    %822 = arith.divf %820, %821 : vector<2x192xf32>
    %823 = vector.extract_strided_slice %816 {offsets = [0, 192], sizes = [2, 64], strides = [1, 1]} : vector<2x256xf32> to vector<2x64xf32>
    %824 = math.tanh %823 : vector<2x64xf32>
    %825 = vector.extract_strided_slice %822 {offsets = [0, 0], sizes = [2, 64], strides = [1, 1]} : vector<2x192xf32> to vector<2x64xf32>
    %826 = vector.extract_strided_slice %822 {offsets = [0, 64], sizes = [2, 64], strides = [1, 1]} : vector<2x192xf32> to vector<2x64xf32>
    %827 = vector.extract_strided_slice %822 {offsets = [0, 128], sizes = [2, 64], strides = [1, 1]} : vector<2x192xf32> to vector<2x64xf32>
    %828 = arith.mulf %826, %708 : vector<2x64xf32>
    %829 = arith.mulf %825, %824 : vector<2x64xf32>
    %830 = arith.addf %828, %829 : vector<2x64xf32>
    %831 = math.tanh %830 : vector<2x64xf32>
    %832 = arith.mulf %827, %831 : vector<2x64xf32>
    %833 = vector.extract_strided_slice %832 {offsets = [0, 0], sizes = [2, 32], strides = [1, 1]} : vector<2x64xf32> to vector<2x32xf32>
    %c832_329 = arith.constant 832 : index
    %c0_330 = arith.constant 0 : index
    %834 = vector.load %arg2[%c832_329, %c0_330] : memref<1304x256xf32, #tpu.memory_space<vmem>>, vector<32x32xf32>
    %cst_331 = arith.constant dense<0.000000e+00> : vector<2x32xf32>
    %835 = tpu.matmul %833, %834, %cst_331 {dimension_numbers = #tpu.dot_dimension_numbers<[1], [0], [0], [1], [0, 0, 1, 1], [], []>} : vector<2x32xf32>, vector<32x32xf32>, vector<2x32xf32> -> vector<2x32xf32>
    %c864_332 = arith.constant 864 : index
    %c0_333 = arith.constant 0 : index
    %836 = vector.load %arg2[%c864_332, %c0_333] : memref<1304x256xf32, #tpu.memory_space<vmem>>, vector<1x32xf32>
    %837 = vector.broadcast %836 : vector<1x32xf32> to vector<2x32xf32>
    %838 = arith.addf %835, %837 : vector<2x32xf32>
    %cst_334 = arith.constant 0.000000e+00 : f32
    %839 = vector.broadcast %cst_334 : f32 to vector<2x32xf32>
    %840 = arith.maximumf %838, %839 : vector<2x32xf32>
    %841 = vector.extract_strided_slice %832 {offsets = [0, 32], sizes = [2, 32], strides = [1, 1]} : vector<2x64xf32> to vector<2x32xf32>
    %842 = tpu.concatenate %840, %841 in 1 : vector<2x32xf32>, vector<2x32xf32> -> vector<2x64xf32>
    %c872_335 = arith.constant 872 : index
    %c0_336 = arith.constant 0 : index
    %843 = vector.load %arg2[%c872_335, %c0_336] : memref<1304x256xf32, #tpu.memory_space<vmem>>, vector<64x64xf32>
    %cst_337 = arith.constant dense<0.000000e+00> : vector<2x64xf32>
    %844 = tpu.matmul %842, %843, %cst_337 {dimension_numbers = #tpu.dot_dimension_numbers<[1], [0], [0], [1], [0, 0, 1, 1], [], []>} : vector<2x64xf32>, vector<64x64xf32>, vector<2x64xf32> -> vector<2x64xf32>
    %c936_338 = arith.constant 936 : index
    %c0_339 = arith.constant 0 : index
    %845 = vector.load %arg2[%c936_338, %c0_339] : memref<1304x256xf32, #tpu.memory_space<vmem>>, vector<1x64xf32>
    %846 = vector.broadcast %845 : vector<1x64xf32> to vector<2x64xf32>
    %847 = arith.addf %844, %846 : vector<2x64xf32>
    %cst_340 = arith.constant 0.000000e+00 : f32
    %848 = vector.broadcast %cst_340 : f32 to vector<2x64xf32>
    %849 = arith.maximumf %847, %848 : vector<2x64xf32>
    %c944_341 = arith.constant 944 : index
    %c0_342 = arith.constant 0 : index
    %850 = vector.load %arg2[%c944_341, %c0_342] : memref<1304x256xf32, #tpu.memory_space<vmem>>, vector<64x64xf32>
    %cst_343 = arith.constant dense<0.000000e+00> : vector<2x64xf32>
    %851 = tpu.matmul %849, %850, %cst_343 {dimension_numbers = #tpu.dot_dimension_numbers<[1], [0], [0], [1], [0, 0, 1, 1], [], []>} : vector<2x64xf32>, vector<64x64xf32>, vector<2x64xf32> -> vector<2x64xf32>
    %c1008_344 = arith.constant 1008 : index
    %c0_345 = arith.constant 0 : index
    %852 = vector.load %arg2[%c1008_344, %c0_345] : memref<1304x256xf32, #tpu.memory_space<vmem>>, vector<1x64xf32>
    %853 = vector.broadcast %852 : vector<1x64xf32> to vector<2x64xf32>
    %854 = arith.addf %851, %853 : vector<2x64xf32>
    %cst_346 = arith.constant 0.000000e+00 : f32
    %855 = vector.broadcast %cst_346 : f32 to vector<2x64xf32>
    %856 = arith.maximumf %854, %855 : vector<2x64xf32>
    %c1016_347 = arith.constant 1016 : index
    %c0_348 = arith.constant 0 : index
    %857 = vector.load %arg2[%c1016_347, %c0_348] : memref<1304x256xf32, #tpu.memory_space<vmem>>, vector<64x64xf32>
    %cst_349 = arith.constant dense<0.000000e+00> : vector<2x64xf32>
    %858 = tpu.matmul %856, %857, %cst_349 {dimension_numbers = #tpu.dot_dimension_numbers<[1], [0], [0], [1], [0, 0, 1, 1], [], []>} : vector<2x64xf32>, vector<64x64xf32>, vector<2x64xf32> -> vector<2x64xf32>
    %c1080_350 = arith.constant 1080 : index
    %c0_351 = arith.constant 0 : index
    %859 = vector.load %arg2[%c1080_350, %c0_351] : memref<1304x256xf32, #tpu.memory_space<vmem>>, vector<1x64xf32>
    %860 = vector.broadcast %859 : vector<1x64xf32> to vector<2x64xf32>
    %861 = arith.addf %858, %860 : vector<2x64xf32>
    %cst_352 = arith.constant 0.000000e+00 : f32
    %862 = vector.broadcast %cst_352 : f32 to vector<2x64xf32>
    %863 = arith.maximumf %861, %862 : vector<2x64xf32>
    %c1088_353 = arith.constant 1088 : index
    %c0_354 = arith.constant 0 : index
    %864 = vector.load %arg2[%c1088_353, %c0_354] : memref<1304x256xf32, #tpu.memory_space<vmem>>, vector<64x64xf32>
    %cst_355 = arith.constant dense<0.000000e+00> : vector<2x64xf32>
    %865 = tpu.matmul %863, %864, %cst_355 {dimension_numbers = #tpu.dot_dimension_numbers<[1], [0], [0], [1], [0, 0, 1, 1], [], []>} : vector<2x64xf32>, vector<64x64xf32>, vector<2x64xf32> -> vector<2x64xf32>
    %c1152_356 = arith.constant 1152 : index
    %c0_357 = arith.constant 0 : index
    %866 = vector.load %arg2[%c1152_356, %c0_357] : memref<1304x256xf32, #tpu.memory_space<vmem>>, vector<1x64xf32>
    %867 = vector.broadcast %866 : vector<1x64xf32> to vector<2x64xf32>
    %868 = arith.addf %865, %867 : vector<2x64xf32>
    %cst_358 = arith.constant 0.000000e+00 : f32
    %869 = vector.broadcast %cst_358 : f32 to vector<2x64xf32>
    %870 = arith.maximumf %868, %869 : vector<2x64xf32>
    %c1160_359 = arith.constant 1160 : index
    %c0_360 = arith.constant 0 : index
    %871 = vector.load %arg2[%c1160_359, %c0_360] : memref<1304x256xf32, #tpu.memory_space<vmem>>, vector<64x64xf32>
    %cst_361 = arith.constant dense<0.000000e+00> : vector<2x64xf32>
    %872 = tpu.matmul %870, %871, %cst_361 {dimension_numbers = #tpu.dot_dimension_numbers<[1], [0], [0], [1], [0, 0, 1, 1], [], []>} : vector<2x64xf32>, vector<64x64xf32>, vector<2x64xf32> -> vector<2x64xf32>
    %c1224_362 = arith.constant 1224 : index
    %c0_363 = arith.constant 0 : index
    %873 = vector.load %arg2[%c1224_362, %c0_363] : memref<1304x256xf32, #tpu.memory_space<vmem>>, vector<1x64xf32>
    %874 = vector.broadcast %873 : vector<1x64xf32> to vector<2x64xf32>
    %875 = arith.addf %872, %874 : vector<2x64xf32>
    %cst_364 = arith.constant 0.000000e+00 : f32
    %876 = vector.broadcast %cst_364 : f32 to vector<2x64xf32>
    %877 = arith.maximumf %875, %876 : vector<2x64xf32>
    %c1232_365 = arith.constant 1232 : index
    %c0_366 = arith.constant 0 : index
    %878 = vector.load %arg2[%c1232_365, %c0_366] : memref<1304x256xf32, #tpu.memory_space<vmem>>, vector<64x16xf32>
    %cst_367 = arith.constant dense<0.000000e+00> : vector<2x16xf32>
    %879 = tpu.matmul %877, %878, %cst_367 {dimension_numbers = #tpu.dot_dimension_numbers<[1], [0], [0], [1], [0, 0, 1, 1], [], []>} : vector<2x64xf32>, vector<64x16xf32>, vector<2x16xf32> -> vector<2x16xf32>
    %c1296_368 = arith.constant 1296 : index
    %c0_369 = arith.constant 0 : index
    %880 = vector.load %arg2[%c1296_368, %c0_369] : memref<1304x256xf32, #tpu.memory_space<vmem>>, vector<1x16xf32>
    %881 = vector.broadcast %880 : vector<1x16xf32> to vector<2x16xf32>
    %882 = arith.addf %879, %881 : vector<2x16xf32>
    %c136_370 = arith.constant 136 : index
    %c0_371 = arith.constant 0 : index
    %883 = vector.load %arg2[%c136_370, %c0_371] : memref<1304x256xf32, #tpu.memory_space<vmem>>, vector<16x64xf32>
    %cst_372 = arith.constant dense<0.000000e+00> : vector<2x64xf32>
    %884 = tpu.matmul %882, %883, %cst_372 {dimension_numbers = #tpu.dot_dimension_numbers<[1], [0], [0], [1], [0, 0, 1, 1], [], []>} : vector<2x16xf32>, vector<16x64xf32>, vector<2x64xf32> -> vector<2x64xf32>
    %c152_373 = arith.constant 152 : index
    %c0_374 = arith.constant 0 : index
    %885 = vector.load %arg2[%c152_373, %c0_374] : memref<1304x256xf32, #tpu.memory_space<vmem>>, vector<1x64xf32>
    %886 = vector.broadcast %885 : vector<1x64xf32> to vector<2x64xf32>
    %887 = arith.addf %884, %886 : vector<2x64xf32>
    %cst_375 = arith.constant 0.000000e+00 : f32
    %888 = vector.broadcast %cst_375 : f32 to vector<2x64xf32>
    %889 = arith.maximumf %887, %888 : vector<2x64xf32>
    %c160_376 = arith.constant 160 : index
    %c0_377 = arith.constant 0 : index
    %890 = vector.load %arg2[%c160_376, %c0_377] : memref<1304x256xf32, #tpu.memory_space<vmem>>, vector<64x64xf32>
    %cst_378 = arith.constant dense<0.000000e+00> : vector<2x64xf32>
    %891 = tpu.matmul %889, %890, %cst_378 {dimension_numbers = #tpu.dot_dimension_numbers<[1], [0], [0], [1], [0, 0, 1, 1], [], []>} : vector<2x64xf32>, vector<64x64xf32>, vector<2x64xf32> -> vector<2x64xf32>
    %c224_379 = arith.constant 224 : index
    %c0_380 = arith.constant 0 : index
    %892 = vector.load %arg2[%c224_379, %c0_380] : memref<1304x256xf32, #tpu.memory_space<vmem>>, vector<1x64xf32>
    %893 = vector.broadcast %892 : vector<1x64xf32> to vector<2x64xf32>
    %894 = arith.addf %891, %893 : vector<2x64xf32>
    %cst_381 = arith.constant 0.000000e+00 : f32
    %895 = vector.broadcast %cst_381 : f32 to vector<2x64xf32>
    %896 = arith.maximumf %894, %895 : vector<2x64xf32>
    %c232_382 = arith.constant 232 : index
    %c0_383 = arith.constant 0 : index
    %897 = vector.load %arg2[%c232_382, %c0_383] : memref<1304x256xf32, #tpu.memory_space<vmem>>, vector<64x64xf32>
    %cst_384 = arith.constant dense<0.000000e+00> : vector<2x64xf32>
    %898 = tpu.matmul %896, %897, %cst_384 {dimension_numbers = #tpu.dot_dimension_numbers<[1], [0], [0], [1], [0, 0, 1, 1], [], []>} : vector<2x64xf32>, vector<64x64xf32>, vector<2x64xf32> -> vector<2x64xf32>
    %c296_385 = arith.constant 296 : index
    %c0_386 = arith.constant 0 : index
    %899 = vector.load %arg2[%c296_385, %c0_386] : memref<1304x256xf32, #tpu.memory_space<vmem>>, vector<1x64xf32>
    %900 = vector.broadcast %899 : vector<1x64xf32> to vector<2x64xf32>
    %901 = arith.addf %898, %900 : vector<2x64xf32>
    %cst_387 = arith.constant 0.000000e+00 : f32
    %902 = vector.broadcast %cst_387 : f32 to vector<2x64xf32>
    %903 = arith.maximumf %901, %902 : vector<2x64xf32>
    %c304_388 = arith.constant 304 : index
    %c0_389 = arith.constant 0 : index
    %904 = vector.load %arg2[%c304_388, %c0_389] : memref<1304x256xf32, #tpu.memory_space<vmem>>, vector<64x16xf32>
    %cst_390 = arith.constant dense<0.000000e+00> : vector<2x16xf32>
    %905 = tpu.matmul %903, %904, %cst_390 {dimension_numbers = #tpu.dot_dimension_numbers<[1], [0], [0], [1], [0, 0, 1, 1], [], []>} : vector<2x64xf32>, vector<64x16xf32>, vector<2x16xf32> -> vector<2x16xf32>
    %c368_391 = arith.constant 368 : index
    %c0_392 = arith.constant 0 : index
    %906 = vector.load %arg2[%c368_391, %c0_392] : memref<1304x256xf32, #tpu.memory_space<vmem>>, vector<1x16xf32>
    %907 = vector.broadcast %906 : vector<1x16xf32> to vector<2x16xf32>
    %908 = arith.addf %905, %907 : vector<2x16xf32>
    %cst_393 = arith.constant 0.000000e+00 : f32
    %909 = vector.broadcast %cst_393 : f32 to vector<2x16xf32>
    %910 = arith.maximumf %908, %909 : vector<2x16xf32>
    %911 = tpu.concatenate %910, %810 in 1 : vector<2x16xf32>, vector<2x64xf32> -> vector<2x80xf32>
    %c496_394 = arith.constant 496 : index
    %c0_395 = arith.constant 0 : index
    %912 = vector.load %arg2[%c496_394, %c0_395] : memref<1304x256xf32, #tpu.memory_space<vmem>>, vector<80x256xf32>
    %cst_396 = arith.constant dense<0.000000e+00> : vector<2x256xf32>
    %913 = tpu.matmul %911, %912, %cst_396 {dimension_numbers = #tpu.dot_dimension_numbers<[1], [0], [0], [1], [0, 0, 1, 1], [], []>} : vector<2x80xf32>, vector<80x256xf32>, vector<2x256xf32> -> vector<2x256xf32>
    %c576_397 = arith.constant 576 : index
    %c0_398 = arith.constant 0 : index
    %914 = vector.load %arg2[%c576_397, %c0_398] : memref<1304x256xf32, #tpu.memory_space<vmem>>, vector<1x256xf32>
    %915 = vector.broadcast %914 : vector<1x256xf32> to vector<2x256xf32>
    %916 = arith.addf %913, %915 : vector<2x256xf32>
    %917 = vector.extract_strided_slice %916 {offsets = [0, 0], sizes = [2, 192], strides = [1, 1]} : vector<2x256xf32> to vector<2x192xf32>
    %918 = arith.negf %917 : vector<2x192xf32>
    %919 = math.exp %918 : vector<2x192xf32>
    %cst_399 = arith.constant 1.000000e+00 : f32
    %920 = vector.broadcast %cst_399 : f32 to vector<2x192xf32>
    %921 = arith.addf %920, %919 : vector<2x192xf32>
    %922 = arith.divf %920, %921 : vector<2x192xf32>
    %923 = vector.extract_strided_slice %916 {offsets = [0, 192], sizes = [2, 64], strides = [1, 1]} : vector<2x256xf32> to vector<2x64xf32>
    %924 = math.tanh %923 : vector<2x64xf32>
    %925 = vector.extract_strided_slice %922 {offsets = [0, 0], sizes = [2, 64], strides = [1, 1]} : vector<2x192xf32> to vector<2x64xf32>
    %926 = vector.extract_strided_slice %922 {offsets = [0, 64], sizes = [2, 64], strides = [1, 1]} : vector<2x192xf32> to vector<2x64xf32>
    %927 = vector.extract_strided_slice %922 {offsets = [0, 128], sizes = [2, 64], strides = [1, 1]} : vector<2x192xf32> to vector<2x64xf32>
    %928 = arith.mulf %926, %808 : vector<2x64xf32>
    %929 = arith.mulf %925, %924 : vector<2x64xf32>
    %930 = arith.addf %928, %929 : vector<2x64xf32>
    %931 = math.tanh %930 : vector<2x64xf32>
    %932 = arith.mulf %927, %931 : vector<2x64xf32>
    %933 = tpu.concatenate %932, %832 in 1 : vector<2x64xf32>, vector<2x64xf32> -> vector<2x128xf32>
    %c584_400 = arith.constant 584 : index
    %c0_401 = arith.constant 0 : index
    %934 = vector.load %arg2[%c584_400, %c0_401] : memref<1304x256xf32, #tpu.memory_space<vmem>>, vector<128x256xf32>
    %cst_402 = arith.constant dense<0.000000e+00> : vector<2x256xf32>
    %935 = tpu.matmul %933, %934, %cst_402 {dimension_numbers = #tpu.dot_dimension_numbers<[1], [0], [0], [1], [0, 0, 1, 1], [], []>} : vector<2x128xf32>, vector<128x256xf32>, vector<2x256xf32> -> vector<2x256xf32>
    %c712_403 = arith.constant 712 : index
    %c0_404 = arith.constant 0 : index
    %936 = vector.load %arg2[%c712_403, %c0_404] : memref<1304x256xf32, #tpu.memory_space<vmem>>, vector<1x256xf32>
    %937 = vector.broadcast %936 : vector<1x256xf32> to vector<2x256xf32>
    %938 = arith.addf %935, %937 : vector<2x256xf32>
    %939 = vector.extract_strided_slice %938 {offsets = [0, 0], sizes = [2, 192], strides = [1, 1]} : vector<2x256xf32> to vector<2x192xf32>
    %940 = arith.negf %939 : vector<2x192xf32>
    %941 = math.exp %940 : vector<2x192xf32>
    %cst_405 = arith.constant 1.000000e+00 : f32
    %942 = vector.broadcast %cst_405 : f32 to vector<2x192xf32>
    %943 = arith.addf %942, %941 : vector<2x192xf32>
    %944 = arith.divf %942, %943 : vector<2x192xf32>
    %945 = vector.extract_strided_slice %938 {offsets = [0, 192], sizes = [2, 64], strides = [1, 1]} : vector<2x256xf32> to vector<2x64xf32>
    %946 = math.tanh %945 : vector<2x64xf32>
    %947 = vector.extract_strided_slice %944 {offsets = [0, 0], sizes = [2, 64], strides = [1, 1]} : vector<2x192xf32> to vector<2x64xf32>
    %948 = vector.extract_strided_slice %944 {offsets = [0, 64], sizes = [2, 64], strides = [1, 1]} : vector<2x192xf32> to vector<2x64xf32>
    %949 = vector.extract_strided_slice %944 {offsets = [0, 128], sizes = [2, 64], strides = [1, 1]} : vector<2x192xf32> to vector<2x64xf32>
    %950 = arith.mulf %948, %830 : vector<2x64xf32>
    %951 = arith.mulf %947, %946 : vector<2x64xf32>
    %952 = arith.addf %950, %951 : vector<2x64xf32>
    %953 = math.tanh %952 : vector<2x64xf32>
    %954 = arith.mulf %949, %953 : vector<2x64xf32>
    %955 = vector.extract_strided_slice %954 {offsets = [0, 0], sizes = [2, 32], strides = [1, 1]} : vector<2x64xf32> to vector<2x32xf32>
    %c832_406 = arith.constant 832 : index
    %c0_407 = arith.constant 0 : index
    %956 = vector.load %arg2[%c832_406, %c0_407] : memref<1304x256xf32, #tpu.memory_space<vmem>>, vector<32x32xf32>
    %cst_408 = arith.constant dense<0.000000e+00> : vector<2x32xf32>
    %957 = tpu.matmul %955, %956, %cst_408 {dimension_numbers = #tpu.dot_dimension_numbers<[1], [0], [0], [1], [0, 0, 1, 1], [], []>} : vector<2x32xf32>, vector<32x32xf32>, vector<2x32xf32> -> vector<2x32xf32>
    %c864_409 = arith.constant 864 : index
    %c0_410 = arith.constant 0 : index
    %958 = vector.load %arg2[%c864_409, %c0_410] : memref<1304x256xf32, #tpu.memory_space<vmem>>, vector<1x32xf32>
    %959 = vector.broadcast %958 : vector<1x32xf32> to vector<2x32xf32>
    %960 = arith.addf %957, %959 : vector<2x32xf32>
    %cst_411 = arith.constant 0.000000e+00 : f32
    %961 = vector.broadcast %cst_411 : f32 to vector<2x32xf32>
    %962 = arith.maximumf %960, %961 : vector<2x32xf32>
    %963 = vector.extract_strided_slice %954 {offsets = [0, 32], sizes = [2, 32], strides = [1, 1]} : vector<2x64xf32> to vector<2x32xf32>
    %964 = tpu.concatenate %962, %963 in 1 : vector<2x32xf32>, vector<2x32xf32> -> vector<2x64xf32>
    %c872_412 = arith.constant 872 : index
    %c0_413 = arith.constant 0 : index
    %965 = vector.load %arg2[%c872_412, %c0_413] : memref<1304x256xf32, #tpu.memory_space<vmem>>, vector<64x64xf32>
    %cst_414 = arith.constant dense<0.000000e+00> : vector<2x64xf32>
    %966 = tpu.matmul %964, %965, %cst_414 {dimension_numbers = #tpu.dot_dimension_numbers<[1], [0], [0], [1], [0, 0, 1, 1], [], []>} : vector<2x64xf32>, vector<64x64xf32>, vector<2x64xf32> -> vector<2x64xf32>
    %c936_415 = arith.constant 936 : index
    %c0_416 = arith.constant 0 : index
    %967 = vector.load %arg2[%c936_415, %c0_416] : memref<1304x256xf32, #tpu.memory_space<vmem>>, vector<1x64xf32>
    %968 = vector.broadcast %967 : vector<1x64xf32> to vector<2x64xf32>
    %969 = arith.addf %966, %968 : vector<2x64xf32>
    %cst_417 = arith.constant 0.000000e+00 : f32
    %970 = vector.broadcast %cst_417 : f32 to vector<2x64xf32>
    %971 = arith.maximumf %969, %970 : vector<2x64xf32>
    %c944_418 = arith.constant 944 : index
    %c0_419 = arith.constant 0 : index
    %972 = vector.load %arg2[%c944_418, %c0_419] : memref<1304x256xf32, #tpu.memory_space<vmem>>, vector<64x64xf32>
    %cst_420 = arith.constant dense<0.000000e+00> : vector<2x64xf32>
    %973 = tpu.matmul %971, %972, %cst_420 {dimension_numbers = #tpu.dot_dimension_numbers<[1], [0], [0], [1], [0, 0, 1, 1], [], []>} : vector<2x64xf32>, vector<64x64xf32>, vector<2x64xf32> -> vector<2x64xf32>
    %c1008_421 = arith.constant 1008 : index
    %c0_422 = arith.constant 0 : index
    %974 = vector.load %arg2[%c1008_421, %c0_422] : memref<1304x256xf32, #tpu.memory_space<vmem>>, vector<1x64xf32>
    %975 = vector.broadcast %974 : vector<1x64xf32> to vector<2x64xf32>
    %976 = arith.addf %973, %975 : vector<2x64xf32>
    %cst_423 = arith.constant 0.000000e+00 : f32
    %977 = vector.broadcast %cst_423 : f32 to vector<2x64xf32>
    %978 = arith.maximumf %976, %977 : vector<2x64xf32>
    %c1016_424 = arith.constant 1016 : index
    %c0_425 = arith.constant 0 : index
    %979 = vector.load %arg2[%c1016_424, %c0_425] : memref<1304x256xf32, #tpu.memory_space<vmem>>, vector<64x64xf32>
    %cst_426 = arith.constant dense<0.000000e+00> : vector<2x64xf32>
    %980 = tpu.matmul %978, %979, %cst_426 {dimension_numbers = #tpu.dot_dimension_numbers<[1], [0], [0], [1], [0, 0, 1, 1], [], []>} : vector<2x64xf32>, vector<64x64xf32>, vector<2x64xf32> -> vector<2x64xf32>
    %c1080_427 = arith.constant 1080 : index
    %c0_428 = arith.constant 0 : index
    %981 = vector.load %arg2[%c1080_427, %c0_428] : memref<1304x256xf32, #tpu.memory_space<vmem>>, vector<1x64xf32>
    %982 = vector.broadcast %981 : vector<1x64xf32> to vector<2x64xf32>
    %983 = arith.addf %980, %982 : vector<2x64xf32>
    %cst_429 = arith.constant 0.000000e+00 : f32
    %984 = vector.broadcast %cst_429 : f32 to vector<2x64xf32>
    %985 = arith.maximumf %983, %984 : vector<2x64xf32>
    %c1088_430 = arith.constant 1088 : index
    %c0_431 = arith.constant 0 : index
    %986 = vector.load %arg2[%c1088_430, %c0_431] : memref<1304x256xf32, #tpu.memory_space<vmem>>, vector<64x64xf32>
    %cst_432 = arith.constant dense<0.000000e+00> : vector<2x64xf32>
    %987 = tpu.matmul %985, %986, %cst_432 {dimension_numbers = #tpu.dot_dimension_numbers<[1], [0], [0], [1], [0, 0, 1, 1], [], []>} : vector<2x64xf32>, vector<64x64xf32>, vector<2x64xf32> -> vector<2x64xf32>
    %c1152_433 = arith.constant 1152 : index
    %c0_434 = arith.constant 0 : index
    %988 = vector.load %arg2[%c1152_433, %c0_434] : memref<1304x256xf32, #tpu.memory_space<vmem>>, vector<1x64xf32>
    %989 = vector.broadcast %988 : vector<1x64xf32> to vector<2x64xf32>
    %990 = arith.addf %987, %989 : vector<2x64xf32>
    %cst_435 = arith.constant 0.000000e+00 : f32
    %991 = vector.broadcast %cst_435 : f32 to vector<2x64xf32>
    %992 = arith.maximumf %990, %991 : vector<2x64xf32>
    %c1160_436 = arith.constant 1160 : index
    %c0_437 = arith.constant 0 : index
    %993 = vector.load %arg2[%c1160_436, %c0_437] : memref<1304x256xf32, #tpu.memory_space<vmem>>, vector<64x64xf32>
    %cst_438 = arith.constant dense<0.000000e+00> : vector<2x64xf32>
    %994 = tpu.matmul %992, %993, %cst_438 {dimension_numbers = #tpu.dot_dimension_numbers<[1], [0], [0], [1], [0, 0, 1, 1], [], []>} : vector<2x64xf32>, vector<64x64xf32>, vector<2x64xf32> -> vector<2x64xf32>
    %c1224_439 = arith.constant 1224 : index
    %c0_440 = arith.constant 0 : index
    %995 = vector.load %arg2[%c1224_439, %c0_440] : memref<1304x256xf32, #tpu.memory_space<vmem>>, vector<1x64xf32>
    %996 = vector.broadcast %995 : vector<1x64xf32> to vector<2x64xf32>
    %997 = arith.addf %994, %996 : vector<2x64xf32>
    %cst_441 = arith.constant 0.000000e+00 : f32
    %998 = vector.broadcast %cst_441 : f32 to vector<2x64xf32>
    %999 = arith.maximumf %997, %998 : vector<2x64xf32>
    %c1232_442 = arith.constant 1232 : index
    %c0_443 = arith.constant 0 : index
    %1000 = vector.load %arg2[%c1232_442, %c0_443] : memref<1304x256xf32, #tpu.memory_space<vmem>>, vector<64x16xf32>
    %cst_444 = arith.constant dense<0.000000e+00> : vector<2x16xf32>
    %1001 = tpu.matmul %999, %1000, %cst_444 {dimension_numbers = #tpu.dot_dimension_numbers<[1], [0], [0], [1], [0, 0, 1, 1], [], []>} : vector<2x64xf32>, vector<64x16xf32>, vector<2x16xf32> -> vector<2x16xf32>
    %c1296_445 = arith.constant 1296 : index
    %c0_446 = arith.constant 0 : index
    %1002 = vector.load %arg2[%c1296_445, %c0_446] : memref<1304x256xf32, #tpu.memory_space<vmem>>, vector<1x16xf32>
    %1003 = vector.broadcast %1002 : vector<1x16xf32> to vector<2x16xf32>
    %1004 = arith.addf %1001, %1003 : vector<2x16xf32>
    %c136_447 = arith.constant 136 : index
    %c0_448 = arith.constant 0 : index
    %1005 = vector.load %arg2[%c136_447, %c0_448] : memref<1304x256xf32, #tpu.memory_space<vmem>>, vector<16x64xf32>
    %cst_449 = arith.constant dense<0.000000e+00> : vector<2x64xf32>
    %1006 = tpu.matmul %1004, %1005, %cst_449 {dimension_numbers = #tpu.dot_dimension_numbers<[1], [0], [0], [1], [0, 0, 1, 1], [], []>} : vector<2x16xf32>, vector<16x64xf32>, vector<2x64xf32> -> vector<2x64xf32>
    %c152_450 = arith.constant 152 : index
    %c0_451 = arith.constant 0 : index
    %1007 = vector.load %arg2[%c152_450, %c0_451] : memref<1304x256xf32, #tpu.memory_space<vmem>>, vector<1x64xf32>
    %1008 = vector.broadcast %1007 : vector<1x64xf32> to vector<2x64xf32>
    %1009 = arith.addf %1006, %1008 : vector<2x64xf32>
    %cst_452 = arith.constant 0.000000e+00 : f32
    %1010 = vector.broadcast %cst_452 : f32 to vector<2x64xf32>
    %1011 = arith.maximumf %1009, %1010 : vector<2x64xf32>
    %c160_453 = arith.constant 160 : index
    %c0_454 = arith.constant 0 : index
    %1012 = vector.load %arg2[%c160_453, %c0_454] : memref<1304x256xf32, #tpu.memory_space<vmem>>, vector<64x64xf32>
    %cst_455 = arith.constant dense<0.000000e+00> : vector<2x64xf32>
    %1013 = tpu.matmul %1011, %1012, %cst_455 {dimension_numbers = #tpu.dot_dimension_numbers<[1], [0], [0], [1], [0, 0, 1, 1], [], []>} : vector<2x64xf32>, vector<64x64xf32>, vector<2x64xf32> -> vector<2x64xf32>
    %c224_456 = arith.constant 224 : index
    %c0_457 = arith.constant 0 : index
    %1014 = vector.load %arg2[%c224_456, %c0_457] : memref<1304x256xf32, #tpu.memory_space<vmem>>, vector<1x64xf32>
    %1015 = vector.broadcast %1014 : vector<1x64xf32> to vector<2x64xf32>
    %1016 = arith.addf %1013, %1015 : vector<2x64xf32>
    %cst_458 = arith.constant 0.000000e+00 : f32
    %1017 = vector.broadcast %cst_458 : f32 to vector<2x64xf32>
    %1018 = arith.maximumf %1016, %1017 : vector<2x64xf32>
    %c232_459 = arith.constant 232 : index
    %c0_460 = arith.constant 0 : index
    %1019 = vector.load %arg2[%c232_459, %c0_460] : memref<1304x256xf32, #tpu.memory_space<vmem>>, vector<64x64xf32>
    %cst_461 = arith.constant dense<0.000000e+00> : vector<2x64xf32>
    %1020 = tpu.matmul %1018, %1019, %cst_461 {dimension_numbers = #tpu.dot_dimension_numbers<[1], [0], [0], [1], [0, 0, 1, 1], [], []>} : vector<2x64xf32>, vector<64x64xf32>, vector<2x64xf32> -> vector<2x64xf32>
    %c296_462 = arith.constant 296 : index
    %c0_463 = arith.constant 0 : index
    %1021 = vector.load %arg2[%c296_462, %c0_463] : memref<1304x256xf32, #tpu.memory_space<vmem>>, vector<1x64xf32>
    %1022 = vector.broadcast %1021 : vector<1x64xf32> to vector<2x64xf32>
    %1023 = arith.addf %1020, %1022 : vector<2x64xf32>
    %cst_464 = arith.constant 0.000000e+00 : f32
    %1024 = vector.broadcast %cst_464 : f32 to vector<2x64xf32>
    %1025 = arith.maximumf %1023, %1024 : vector<2x64xf32>
    %c304_465 = arith.constant 304 : index
    %c0_466 = arith.constant 0 : index
    %1026 = vector.load %arg2[%c304_465, %c0_466] : memref<1304x256xf32, #tpu.memory_space<vmem>>, vector<64x16xf32>
    %cst_467 = arith.constant dense<0.000000e+00> : vector<2x16xf32>
    %1027 = tpu.matmul %1025, %1026, %cst_467 {dimension_numbers = #tpu.dot_dimension_numbers<[1], [0], [0], [1], [0, 0, 1, 1], [], []>} : vector<2x64xf32>, vector<64x16xf32>, vector<2x16xf32> -> vector<2x16xf32>
    %c368_468 = arith.constant 368 : index
    %c0_469 = arith.constant 0 : index
    %1028 = vector.load %arg2[%c368_468, %c0_469] : memref<1304x256xf32, #tpu.memory_space<vmem>>, vector<1x16xf32>
    %1029 = vector.broadcast %1028 : vector<1x16xf32> to vector<2x16xf32>
    %1030 = arith.addf %1027, %1029 : vector<2x16xf32>
    %cst_470 = arith.constant 0.000000e+00 : f32
    %1031 = vector.broadcast %cst_470 : f32 to vector<2x16xf32>
    %1032 = arith.maximumf %1030, %1031 : vector<2x16xf32>
    %1033 = tpu.concatenate %1032, %932 in 1 : vector<2x16xf32>, vector<2x64xf32> -> vector<2x80xf32>
    %c496_471 = arith.constant 496 : index
    %c0_472 = arith.constant 0 : index
    %1034 = vector.load %arg2[%c496_471, %c0_472] : memref<1304x256xf32, #tpu.memory_space<vmem>>, vector<80x256xf32>
    %cst_473 = arith.constant dense<0.000000e+00> : vector<2x256xf32>
    %1035 = tpu.matmul %1033, %1034, %cst_473 {dimension_numbers = #tpu.dot_dimension_numbers<[1], [0], [0], [1], [0, 0, 1, 1], [], []>} : vector<2x80xf32>, vector<80x256xf32>, vector<2x256xf32> -> vector<2x256xf32>
    %c576_474 = arith.constant 576 : index
    %c0_475 = arith.constant 0 : index
    %1036 = vector.load %arg2[%c576_474, %c0_475] : memref<1304x256xf32, #tpu.memory_space<vmem>>, vector<1x256xf32>
    %1037 = vector.broadcast %1036 : vector<1x256xf32> to vector<2x256xf32>
    %1038 = arith.addf %1035, %1037 : vector<2x256xf32>
    %1039 = vector.extract_strided_slice %1038 {offsets = [0, 0], sizes = [2, 192], strides = [1, 1]} : vector<2x256xf32> to vector<2x192xf32>
    %1040 = arith.negf %1039 : vector<2x192xf32>
    %1041 = math.exp %1040 : vector<2x192xf32>
    %cst_476 = arith.constant 1.000000e+00 : f32
    %1042 = vector.broadcast %cst_476 : f32 to vector<2x192xf32>
    %1043 = arith.addf %1042, %1041 : vector<2x192xf32>
    %1044 = arith.divf %1042, %1043 : vector<2x192xf32>
    %1045 = vector.extract_strided_slice %1038 {offsets = [0, 192], sizes = [2, 64], strides = [1, 1]} : vector<2x256xf32> to vector<2x64xf32>
    %1046 = math.tanh %1045 : vector<2x64xf32>
    %1047 = vector.extract_strided_slice %1044 {offsets = [0, 0], sizes = [2, 64], strides = [1, 1]} : vector<2x192xf32> to vector<2x64xf32>
    %1048 = vector.extract_strided_slice %1044 {offsets = [0, 64], sizes = [2, 64], strides = [1, 1]} : vector<2x192xf32> to vector<2x64xf32>
    %1049 = vector.extract_strided_slice %1044 {offsets = [0, 128], sizes = [2, 64], strides = [1, 1]} : vector<2x192xf32> to vector<2x64xf32>
    %1050 = arith.mulf %1048, %930 : vector<2x64xf32>
    %1051 = arith.mulf %1047, %1046 : vector<2x64xf32>
    %1052 = arith.addf %1050, %1051 : vector<2x64xf32>
    %1053 = math.tanh %1052 : vector<2x64xf32>
    %1054 = arith.mulf %1049, %1053 : vector<2x64xf32>
    %1055 = tpu.concatenate %1054, %954 in 1 : vector<2x64xf32>, vector<2x64xf32> -> vector<2x128xf32>
    %c584_477 = arith.constant 584 : index
    %c0_478 = arith.constant 0 : index
    %1056 = vector.load %arg2[%c584_477, %c0_478] : memref<1304x256xf32, #tpu.memory_space<vmem>>, vector<128x256xf32>
    %cst_479 = arith.constant dense<0.000000e+00> : vector<2x256xf32>
    %1057 = tpu.matmul %1055, %1056, %cst_479 {dimension_numbers = #tpu.dot_dimension_numbers<[1], [0], [0], [1], [0, 0, 1, 1], [], []>} : vector<2x128xf32>, vector<128x256xf32>, vector<2x256xf32> -> vector<2x256xf32>
    %c712_480 = arith.constant 712 : index
    %c0_481 = arith.constant 0 : index
    %1058 = vector.load %arg2[%c712_480, %c0_481] : memref<1304x256xf32, #tpu.memory_space<vmem>>, vector<1x256xf32>
    %1059 = vector.broadcast %1058 : vector<1x256xf32> to vector<2x256xf32>
    %1060 = arith.addf %1057, %1059 : vector<2x256xf32>
    %1061 = vector.extract_strided_slice %1060 {offsets = [0, 0], sizes = [2, 192], strides = [1, 1]} : vector<2x256xf32> to vector<2x192xf32>
    %1062 = arith.negf %1061 : vector<2x192xf32>
    %1063 = math.exp %1062 : vector<2x192xf32>
    %cst_482 = arith.constant 1.000000e+00 : f32
    %1064 = vector.broadcast %cst_482 : f32 to vector<2x192xf32>
    %1065 = arith.addf %1064, %1063 : vector<2x192xf32>
    %1066 = arith.divf %1064, %1065 : vector<2x192xf32>
    %1067 = vector.extract_strided_slice %1060 {offsets = [0, 192], sizes = [2, 64], strides = [1, 1]} : vector<2x256xf32> to vector<2x64xf32>
    %1068 = math.tanh %1067 : vector<2x64xf32>
    %1069 = vector.extract_strided_slice %1066 {offsets = [0, 0], sizes = [2, 64], strides = [1, 1]} : vector<2x192xf32> to vector<2x64xf32>
    %1070 = vector.extract_strided_slice %1066 {offsets = [0, 64], sizes = [2, 64], strides = [1, 1]} : vector<2x192xf32> to vector<2x64xf32>
    %1071 = vector.extract_strided_slice %1066 {offsets = [0, 128], sizes = [2, 64], strides = [1, 1]} : vector<2x192xf32> to vector<2x64xf32>
    %1072 = arith.mulf %1070, %952 : vector<2x64xf32>
    %1073 = arith.mulf %1069, %1068 : vector<2x64xf32>
    %1074 = arith.addf %1072, %1073 : vector<2x64xf32>
    %1075 = math.tanh %1074 : vector<2x64xf32>
    %1076 = arith.mulf %1071, %1075 : vector<2x64xf32>
    %1077 = vector.extract_strided_slice %1076 {offsets = [0, 0], sizes = [2, 32], strides = [1, 1]} : vector<2x64xf32> to vector<2x32xf32>
    %c832_483 = arith.constant 832 : index
    %c0_484 = arith.constant 0 : index
    %1078 = vector.load %arg2[%c832_483, %c0_484] : memref<1304x256xf32, #tpu.memory_space<vmem>>, vector<32x32xf32>
    %cst_485 = arith.constant dense<0.000000e+00> : vector<2x32xf32>
    %1079 = tpu.matmul %1077, %1078, %cst_485 {dimension_numbers = #tpu.dot_dimension_numbers<[1], [0], [0], [1], [0, 0, 1, 1], [], []>} : vector<2x32xf32>, vector<32x32xf32>, vector<2x32xf32> -> vector<2x32xf32>
    %c864_486 = arith.constant 864 : index
    %c0_487 = arith.constant 0 : index
    %1080 = vector.load %arg2[%c864_486, %c0_487] : memref<1304x256xf32, #tpu.memory_space<vmem>>, vector<1x32xf32>
    %1081 = vector.broadcast %1080 : vector<1x32xf32> to vector<2x32xf32>
    %1082 = arith.addf %1079, %1081 : vector<2x32xf32>
    %cst_488 = arith.constant 0.000000e+00 : f32
    %1083 = vector.broadcast %cst_488 : f32 to vector<2x32xf32>
    %1084 = arith.maximumf %1082, %1083 : vector<2x32xf32>
    %1085 = vector.extract_strided_slice %1076 {offsets = [0, 32], sizes = [2, 32], strides = [1, 1]} : vector<2x64xf32> to vector<2x32xf32>
    %1086 = tpu.concatenate %1084, %1085 in 1 : vector<2x32xf32>, vector<2x32xf32> -> vector<2x64xf32>
    %c872_489 = arith.constant 872 : index
    %c0_490 = arith.constant 0 : index
    %1087 = vector.load %arg2[%c872_489, %c0_490] : memref<1304x256xf32, #tpu.memory_space<vmem>>, vector<64x64xf32>
    %cst_491 = arith.constant dense<0.000000e+00> : vector<2x64xf32>
    %1088 = tpu.matmul %1086, %1087, %cst_491 {dimension_numbers = #tpu.dot_dimension_numbers<[1], [0], [0], [1], [0, 0, 1, 1], [], []>} : vector<2x64xf32>, vector<64x64xf32>, vector<2x64xf32> -> vector<2x64xf32>
    %c936_492 = arith.constant 936 : index
    %c0_493 = arith.constant 0 : index
    %1089 = vector.load %arg2[%c936_492, %c0_493] : memref<1304x256xf32, #tpu.memory_space<vmem>>, vector<1x64xf32>
    %1090 = vector.broadcast %1089 : vector<1x64xf32> to vector<2x64xf32>
    %1091 = arith.addf %1088, %1090 : vector<2x64xf32>
    %cst_494 = arith.constant 0.000000e+00 : f32
    %1092 = vector.broadcast %cst_494 : f32 to vector<2x64xf32>
    %1093 = arith.maximumf %1091, %1092 : vector<2x64xf32>
    %c944_495 = arith.constant 944 : index
    %c0_496 = arith.constant 0 : index
    %1094 = vector.load %arg2[%c944_495, %c0_496] : memref<1304x256xf32, #tpu.memory_space<vmem>>, vector<64x64xf32>
    %cst_497 = arith.constant dense<0.000000e+00> : vector<2x64xf32>
    %1095 = tpu.matmul %1093, %1094, %cst_497 {dimension_numbers = #tpu.dot_dimension_numbers<[1], [0], [0], [1], [0, 0, 1, 1], [], []>} : vector<2x64xf32>, vector<64x64xf32>, vector<2x64xf32> -> vector<2x64xf32>
    %c1008_498 = arith.constant 1008 : index
    %c0_499 = arith.constant 0 : index
    %1096 = vector.load %arg2[%c1008_498, %c0_499] : memref<1304x256xf32, #tpu.memory_space<vmem>>, vector<1x64xf32>
    %1097 = vector.broadcast %1096 : vector<1x64xf32> to vector<2x64xf32>
    %1098 = arith.addf %1095, %1097 : vector<2x64xf32>
    %cst_500 = arith.constant 0.000000e+00 : f32
    %1099 = vector.broadcast %cst_500 : f32 to vector<2x64xf32>
    %1100 = arith.maximumf %1098, %1099 : vector<2x64xf32>
    %c1016_501 = arith.constant 1016 : index
    %c0_502 = arith.constant 0 : index
    %1101 = vector.load %arg2[%c1016_501, %c0_502] : memref<1304x256xf32, #tpu.memory_space<vmem>>, vector<64x64xf32>
    %cst_503 = arith.constant dense<0.000000e+00> : vector<2x64xf32>
    %1102 = tpu.matmul %1100, %1101, %cst_503 {dimension_numbers = #tpu.dot_dimension_numbers<[1], [0], [0], [1], [0, 0, 1, 1], [], []>} : vector<2x64xf32>, vector<64x64xf32>, vector<2x64xf32> -> vector<2x64xf32>
    %c1080_504 = arith.constant 1080 : index
    %c0_505 = arith.constant 0 : index
    %1103 = vector.load %arg2[%c1080_504, %c0_505] : memref<1304x256xf32, #tpu.memory_space<vmem>>, vector<1x64xf32>
    %1104 = vector.broadcast %1103 : vector<1x64xf32> to vector<2x64xf32>
    %1105 = arith.addf %1102, %1104 : vector<2x64xf32>
    %cst_506 = arith.constant 0.000000e+00 : f32
    %1106 = vector.broadcast %cst_506 : f32 to vector<2x64xf32>
    %1107 = arith.maximumf %1105, %1106 : vector<2x64xf32>
    %c1088_507 = arith.constant 1088 : index
    %c0_508 = arith.constant 0 : index
    %1108 = vector.load %arg2[%c1088_507, %c0_508] : memref<1304x256xf32, #tpu.memory_space<vmem>>, vector<64x64xf32>
    %cst_509 = arith.constant dense<0.000000e+00> : vector<2x64xf32>
    %1109 = tpu.matmul %1107, %1108, %cst_509 {dimension_numbers = #tpu.dot_dimension_numbers<[1], [0], [0], [1], [0, 0, 1, 1], [], []>} : vector<2x64xf32>, vector<64x64xf32>, vector<2x64xf32> -> vector<2x64xf32>
    %c1152_510 = arith.constant 1152 : index
    %c0_511 = arith.constant 0 : index
    %1110 = vector.load %arg2[%c1152_510, %c0_511] : memref<1304x256xf32, #tpu.memory_space<vmem>>, vector<1x64xf32>
    %1111 = vector.broadcast %1110 : vector<1x64xf32> to vector<2x64xf32>
    %1112 = arith.addf %1109, %1111 : vector<2x64xf32>
    %cst_512 = arith.constant 0.000000e+00 : f32
    %1113 = vector.broadcast %cst_512 : f32 to vector<2x64xf32>
    %1114 = arith.maximumf %1112, %1113 : vector<2x64xf32>
    %c1160_513 = arith.constant 1160 : index
    %c0_514 = arith.constant 0 : index
    %1115 = vector.load %arg2[%c1160_513, %c0_514] : memref<1304x256xf32, #tpu.memory_space<vmem>>, vector<64x64xf32>
    %cst_515 = arith.constant dense<0.000000e+00> : vector<2x64xf32>
    %1116 = tpu.matmul %1114, %1115, %cst_515 {dimension_numbers = #tpu.dot_dimension_numbers<[1], [0], [0], [1], [0, 0, 1, 1], [], []>} : vector<2x64xf32>, vector<64x64xf32>, vector<2x64xf32> -> vector<2x64xf32>
    %c1224_516 = arith.constant 1224 : index
    %c0_517 = arith.constant 0 : index
    %1117 = vector.load %arg2[%c1224_516, %c0_517] : memref<1304x256xf32, #tpu.memory_space<vmem>>, vector<1x64xf32>
    %1118 = vector.broadcast %1117 : vector<1x64xf32> to vector<2x64xf32>
    %1119 = arith.addf %1116, %1118 : vector<2x64xf32>
    %cst_518 = arith.constant 0.000000e+00 : f32
    %1120 = vector.broadcast %cst_518 : f32 to vector<2x64xf32>
    %1121 = arith.maximumf %1119, %1120 : vector<2x64xf32>
    %c1232_519 = arith.constant 1232 : index
    %c0_520 = arith.constant 0 : index
    %1122 = vector.load %arg2[%c1232_519, %c0_520] : memref<1304x256xf32, #tpu.memory_space<vmem>>, vector<64x16xf32>
    %cst_521 = arith.constant dense<0.000000e+00> : vector<2x16xf32>
    %1123 = tpu.matmul %1121, %1122, %cst_521 {dimension_numbers = #tpu.dot_dimension_numbers<[1], [0], [0], [1], [0, 0, 1, 1], [], []>} : vector<2x64xf32>, vector<64x16xf32>, vector<2x16xf32> -> vector<2x16xf32>
    %c1296_522 = arith.constant 1296 : index
    %c0_523 = arith.constant 0 : index
    %1124 = vector.load %arg2[%c1296_522, %c0_523] : memref<1304x256xf32, #tpu.memory_space<vmem>>, vector<1x16xf32>
    %1125 = vector.broadcast %1124 : vector<1x16xf32> to vector<2x16xf32>
    %1126 = arith.addf %1123, %1125 : vector<2x16xf32>
    %c136_524 = arith.constant 136 : index
    %c0_525 = arith.constant 0 : index
    %1127 = vector.load %arg2[%c136_524, %c0_525] : memref<1304x256xf32, #tpu.memory_space<vmem>>, vector<16x64xf32>
    %cst_526 = arith.constant dense<0.000000e+00> : vector<2x64xf32>
    %1128 = tpu.matmul %1126, %1127, %cst_526 {dimension_numbers = #tpu.dot_dimension_numbers<[1], [0], [0], [1], [0, 0, 1, 1], [], []>} : vector<2x16xf32>, vector<16x64xf32>, vector<2x64xf32> -> vector<2x64xf32>
    %c152_527 = arith.constant 152 : index
    %c0_528 = arith.constant 0 : index
    %1129 = vector.load %arg2[%c152_527, %c0_528] : memref<1304x256xf32, #tpu.memory_space<vmem>>, vector<1x64xf32>
    %1130 = vector.broadcast %1129 : vector<1x64xf32> to vector<2x64xf32>
    %1131 = arith.addf %1128, %1130 : vector<2x64xf32>
    %cst_529 = arith.constant 0.000000e+00 : f32
    %1132 = vector.broadcast %cst_529 : f32 to vector<2x64xf32>
    %1133 = arith.maximumf %1131, %1132 : vector<2x64xf32>
    %c160_530 = arith.constant 160 : index
    %c0_531 = arith.constant 0 : index
    %1134 = vector.load %arg2[%c160_530, %c0_531] : memref<1304x256xf32, #tpu.memory_space<vmem>>, vector<64x64xf32>
    %cst_532 = arith.constant dense<0.000000e+00> : vector<2x64xf32>
    %1135 = tpu.matmul %1133, %1134, %cst_532 {dimension_numbers = #tpu.dot_dimension_numbers<[1], [0], [0], [1], [0, 0, 1, 1], [], []>} : vector<2x64xf32>, vector<64x64xf32>, vector<2x64xf32> -> vector<2x64xf32>
    %c224_533 = arith.constant 224 : index
    %c0_534 = arith.constant 0 : index
    %1136 = vector.load %arg2[%c224_533, %c0_534] : memref<1304x256xf32, #tpu.memory_space<vmem>>, vector<1x64xf32>
    %1137 = vector.broadcast %1136 : vector<1x64xf32> to vector<2x64xf32>
    %1138 = arith.addf %1135, %1137 : vector<2x64xf32>
    %cst_535 = arith.constant 0.000000e+00 : f32
    %1139 = vector.broadcast %cst_535 : f32 to vector<2x64xf32>
    %1140 = arith.maximumf %1138, %1139 : vector<2x64xf32>
    %c232_536 = arith.constant 232 : index
    %c0_537 = arith.constant 0 : index
    %1141 = vector.load %arg2[%c232_536, %c0_537] : memref<1304x256xf32, #tpu.memory_space<vmem>>, vector<64x64xf32>
    %cst_538 = arith.constant dense<0.000000e+00> : vector<2x64xf32>
    %1142 = tpu.matmul %1140, %1141, %cst_538 {dimension_numbers = #tpu.dot_dimension_numbers<[1], [0], [0], [1], [0, 0, 1, 1], [], []>} : vector<2x64xf32>, vector<64x64xf32>, vector<2x64xf32> -> vector<2x64xf32>
    %c296_539 = arith.constant 296 : index
    %c0_540 = arith.constant 0 : index
    %1143 = vector.load %arg2[%c296_539, %c0_540] : memref<1304x256xf32, #tpu.memory_space<vmem>>, vector<1x64xf32>
    %1144 = vector.broadcast %1143 : vector<1x64xf32> to vector<2x64xf32>
    %1145 = arith.addf %1142, %1144 : vector<2x64xf32>
    %cst_541 = arith.constant 0.000000e+00 : f32
    %1146 = vector.broadcast %cst_541 : f32 to vector<2x64xf32>
    %1147 = arith.maximumf %1145, %1146 : vector<2x64xf32>
    %c304_542 = arith.constant 304 : index
    %c0_543 = arith.constant 0 : index
    %1148 = vector.load %arg2[%c304_542, %c0_543] : memref<1304x256xf32, #tpu.memory_space<vmem>>, vector<64x16xf32>
    %cst_544 = arith.constant dense<0.000000e+00> : vector<2x16xf32>
    %1149 = tpu.matmul %1147, %1148, %cst_544 {dimension_numbers = #tpu.dot_dimension_numbers<[1], [0], [0], [1], [0, 0, 1, 1], [], []>} : vector<2x64xf32>, vector<64x16xf32>, vector<2x16xf32> -> vector<2x16xf32>
    %c368_545 = arith.constant 368 : index
    %c0_546 = arith.constant 0 : index
    %1150 = vector.load %arg2[%c368_545, %c0_546] : memref<1304x256xf32, #tpu.memory_space<vmem>>, vector<1x16xf32>
    %1151 = vector.broadcast %1150 : vector<1x16xf32> to vector<2x16xf32>
    %1152 = arith.addf %1149, %1151 : vector<2x16xf32>
    %cst_547 = arith.constant 0.000000e+00 : f32
    %1153 = vector.broadcast %cst_547 : f32 to vector<2x16xf32>
    %1154 = arith.maximumf %1152, %1153 : vector<2x16xf32>
    %1155 = tpu.concatenate %1154, %1054 in 1 : vector<2x16xf32>, vector<2x64xf32> -> vector<2x80xf32>
    %c496_548 = arith.constant 496 : index
    %c0_549 = arith.constant 0 : index
    %1156 = vector.load %arg2[%c496_548, %c0_549] : memref<1304x256xf32, #tpu.memory_space<vmem>>, vector<80x256xf32>
    %cst_550 = arith.constant dense<0.000000e+00> : vector<2x256xf32>
    %1157 = tpu.matmul %1155, %1156, %cst_550 {dimension_numbers = #tpu.dot_dimension_numbers<[1], [0], [0], [1], [0, 0, 1, 1], [], []>} : vector<2x80xf32>, vector<80x256xf32>, vector<2x256xf32> -> vector<2x256xf32>
    %c576_551 = arith.constant 576 : index
    %c0_552 = arith.constant 0 : index
    %1158 = vector.load %arg2[%c576_551, %c0_552] : memref<1304x256xf32, #tpu.memory_space<vmem>>, vector<1x256xf32>
    %1159 = vector.broadcast %1158 : vector<1x256xf32> to vector<2x256xf32>
    %1160 = arith.addf %1157, %1159 : vector<2x256xf32>
    %1161 = vector.extract_strided_slice %1160 {offsets = [0, 0], sizes = [2, 192], strides = [1, 1]} : vector<2x256xf32> to vector<2x192xf32>
    %1162 = arith.negf %1161 : vector<2x192xf32>
    %1163 = math.exp %1162 : vector<2x192xf32>
    %cst_553 = arith.constant 1.000000e+00 : f32
    %1164 = vector.broadcast %cst_553 : f32 to vector<2x192xf32>
    %1165 = arith.addf %1164, %1163 : vector<2x192xf32>
    %1166 = arith.divf %1164, %1165 : vector<2x192xf32>
    %1167 = vector.extract_strided_slice %1160 {offsets = [0, 192], sizes = [2, 64], strides = [1, 1]} : vector<2x256xf32> to vector<2x64xf32>
    %1168 = math.tanh %1167 : vector<2x64xf32>
    %1169 = vector.extract_strided_slice %1166 {offsets = [0, 0], sizes = [2, 64], strides = [1, 1]} : vector<2x192xf32> to vector<2x64xf32>
    %1170 = vector.extract_strided_slice %1166 {offsets = [0, 64], sizes = [2, 64], strides = [1, 1]} : vector<2x192xf32> to vector<2x64xf32>
    %1171 = vector.extract_strided_slice %1166 {offsets = [0, 128], sizes = [2, 64], strides = [1, 1]} : vector<2x192xf32> to vector<2x64xf32>
    %1172 = arith.mulf %1170, %1052 : vector<2x64xf32>
    %1173 = arith.mulf %1169, %1168 : vector<2x64xf32>
    %1174 = arith.addf %1172, %1173 : vector<2x64xf32>
    %1175 = math.tanh %1174 : vector<2x64xf32>
    %1176 = arith.mulf %1171, %1175 : vector<2x64xf32>
    %1177 = tpu.concatenate %1176, %1076 in 1 : vector<2x64xf32>, vector<2x64xf32> -> vector<2x128xf32>
    %c584_554 = arith.constant 584 : index
    %c0_555 = arith.constant 0 : index
    %1178 = vector.load %arg2[%c584_554, %c0_555] : memref<1304x256xf32, #tpu.memory_space<vmem>>, vector<128x256xf32>
    %cst_556 = arith.constant dense<0.000000e+00> : vector<2x256xf32>
    %1179 = tpu.matmul %1177, %1178, %cst_556 {dimension_numbers = #tpu.dot_dimension_numbers<[1], [0], [0], [1], [0, 0, 1, 1], [], []>} : vector<2x128xf32>, vector<128x256xf32>, vector<2x256xf32> -> vector<2x256xf32>
    %c712_557 = arith.constant 712 : index
    %c0_558 = arith.constant 0 : index
    %1180 = vector.load %arg2[%c712_557, %c0_558] : memref<1304x256xf32, #tpu.memory_space<vmem>>, vector<1x256xf32>
    %1181 = vector.broadcast %1180 : vector<1x256xf32> to vector<2x256xf32>
    %1182 = arith.addf %1179, %1181 : vector<2x256xf32>
    %1183 = vector.extract_strided_slice %1182 {offsets = [0, 0], sizes = [2, 192], strides = [1, 1]} : vector<2x256xf32> to vector<2x192xf32>
    %1184 = arith.negf %1183 : vector<2x192xf32>
    %1185 = math.exp %1184 : vector<2x192xf32>
    %cst_559 = arith.constant 1.000000e+00 : f32
    %1186 = vector.broadcast %cst_559 : f32 to vector<2x192xf32>
    %1187 = arith.addf %1186, %1185 : vector<2x192xf32>
    %1188 = arith.divf %1186, %1187 : vector<2x192xf32>
    %1189 = vector.extract_strided_slice %1182 {offsets = [0, 192], sizes = [2, 64], strides = [1, 1]} : vector<2x256xf32> to vector<2x64xf32>
    %1190 = math.tanh %1189 : vector<2x64xf32>
    %1191 = vector.extract_strided_slice %1188 {offsets = [0, 0], sizes = [2, 64], strides = [1, 1]} : vector<2x192xf32> to vector<2x64xf32>
    %1192 = vector.extract_strided_slice %1188 {offsets = [0, 64], sizes = [2, 64], strides = [1, 1]} : vector<2x192xf32> to vector<2x64xf32>
    %1193 = vector.extract_strided_slice %1188 {offsets = [0, 128], sizes = [2, 64], strides = [1, 1]} : vector<2x192xf32> to vector<2x64xf32>
    %1194 = arith.mulf %1192, %1074 : vector<2x64xf32>
    %1195 = arith.mulf %1191, %1190 : vector<2x64xf32>
    %1196 = arith.addf %1194, %1195 : vector<2x64xf32>
    %1197 = math.tanh %1196 : vector<2x64xf32>
    %1198 = arith.mulf %1193, %1197 : vector<2x64xf32>
    %1199 = vector.extract_strided_slice %1198 {offsets = [0, 0], sizes = [2, 32], strides = [1, 1]} : vector<2x64xf32> to vector<2x32xf32>
    %c832_560 = arith.constant 832 : index
    %c0_561 = arith.constant 0 : index
    %1200 = vector.load %arg2[%c832_560, %c0_561] : memref<1304x256xf32, #tpu.memory_space<vmem>>, vector<32x32xf32>
    %cst_562 = arith.constant dense<0.000000e+00> : vector<2x32xf32>
    %1201 = tpu.matmul %1199, %1200, %cst_562 {dimension_numbers = #tpu.dot_dimension_numbers<[1], [0], [0], [1], [0, 0, 1, 1], [], []>} : vector<2x32xf32>, vector<32x32xf32>, vector<2x32xf32> -> vector<2x32xf32>
    %c864_563 = arith.constant 864 : index
    %c0_564 = arith.constant 0 : index
    %1202 = vector.load %arg2[%c864_563, %c0_564] : memref<1304x256xf32, #tpu.memory_space<vmem>>, vector<1x32xf32>
    %1203 = vector.broadcast %1202 : vector<1x32xf32> to vector<2x32xf32>
    %1204 = arith.addf %1201, %1203 : vector<2x32xf32>
    %cst_565 = arith.constant 0.000000e+00 : f32
    %1205 = vector.broadcast %cst_565 : f32 to vector<2x32xf32>
    %1206 = arith.maximumf %1204, %1205 : vector<2x32xf32>
    %1207 = vector.extract_strided_slice %1198 {offsets = [0, 32], sizes = [2, 32], strides = [1, 1]} : vector<2x64xf32> to vector<2x32xf32>
    %1208 = tpu.concatenate %1206, %1207 in 1 : vector<2x32xf32>, vector<2x32xf32> -> vector<2x64xf32>
    %c872_566 = arith.constant 872 : index
    %c0_567 = arith.constant 0 : index
    %1209 = vector.load %arg2[%c872_566, %c0_567] : memref<1304x256xf32, #tpu.memory_space<vmem>>, vector<64x64xf32>
    %cst_568 = arith.constant dense<0.000000e+00> : vector<2x64xf32>
    %1210 = tpu.matmul %1208, %1209, %cst_568 {dimension_numbers = #tpu.dot_dimension_numbers<[1], [0], [0], [1], [0, 0, 1, 1], [], []>} : vector<2x64xf32>, vector<64x64xf32>, vector<2x64xf32> -> vector<2x64xf32>
    %c936_569 = arith.constant 936 : index
    %c0_570 = arith.constant 0 : index
    %1211 = vector.load %arg2[%c936_569, %c0_570] : memref<1304x256xf32, #tpu.memory_space<vmem>>, vector<1x64xf32>
    %1212 = vector.broadcast %1211 : vector<1x64xf32> to vector<2x64xf32>
    %1213 = arith.addf %1210, %1212 : vector<2x64xf32>
    %cst_571 = arith.constant 0.000000e+00 : f32
    %1214 = vector.broadcast %cst_571 : f32 to vector<2x64xf32>
    %1215 = arith.maximumf %1213, %1214 : vector<2x64xf32>
    %c944_572 = arith.constant 944 : index
    %c0_573 = arith.constant 0 : index
    %1216 = vector.load %arg2[%c944_572, %c0_573] : memref<1304x256xf32, #tpu.memory_space<vmem>>, vector<64x64xf32>
    %cst_574 = arith.constant dense<0.000000e+00> : vector<2x64xf32>
    %1217 = tpu.matmul %1215, %1216, %cst_574 {dimension_numbers = #tpu.dot_dimension_numbers<[1], [0], [0], [1], [0, 0, 1, 1], [], []>} : vector<2x64xf32>, vector<64x64xf32>, vector<2x64xf32> -> vector<2x64xf32>
    %c1008_575 = arith.constant 1008 : index
    %c0_576 = arith.constant 0 : index
    %1218 = vector.load %arg2[%c1008_575, %c0_576] : memref<1304x256xf32, #tpu.memory_space<vmem>>, vector<1x64xf32>
    %1219 = vector.broadcast %1218 : vector<1x64xf32> to vector<2x64xf32>
    %1220 = arith.addf %1217, %1219 : vector<2x64xf32>
    %cst_577 = arith.constant 0.000000e+00 : f32
    %1221 = vector.broadcast %cst_577 : f32 to vector<2x64xf32>
    %1222 = arith.maximumf %1220, %1221 : vector<2x64xf32>
    %c1016_578 = arith.constant 1016 : index
    %c0_579 = arith.constant 0 : index
    %1223 = vector.load %arg2[%c1016_578, %c0_579] : memref<1304x256xf32, #tpu.memory_space<vmem>>, vector<64x64xf32>
    %cst_580 = arith.constant dense<0.000000e+00> : vector<2x64xf32>
    %1224 = tpu.matmul %1222, %1223, %cst_580 {dimension_numbers = #tpu.dot_dimension_numbers<[1], [0], [0], [1], [0, 0, 1, 1], [], []>} : vector<2x64xf32>, vector<64x64xf32>, vector<2x64xf32> -> vector<2x64xf32>
    %c1080_581 = arith.constant 1080 : index
    %c0_582 = arith.constant 0 : index
    %1225 = vector.load %arg2[%c1080_581, %c0_582] : memref<1304x256xf32, #tpu.memory_space<vmem>>, vector<1x64xf32>
    %1226 = vector.broadcast %1225 : vector<1x64xf32> to vector<2x64xf32>
    %1227 = arith.addf %1224, %1226 : vector<2x64xf32>
    %cst_583 = arith.constant 0.000000e+00 : f32
    %1228 = vector.broadcast %cst_583 : f32 to vector<2x64xf32>
    %1229 = arith.maximumf %1227, %1228 : vector<2x64xf32>
    %c1088_584 = arith.constant 1088 : index
    %c0_585 = arith.constant 0 : index
    %1230 = vector.load %arg2[%c1088_584, %c0_585] : memref<1304x256xf32, #tpu.memory_space<vmem>>, vector<64x64xf32>
    %cst_586 = arith.constant dense<0.000000e+00> : vector<2x64xf32>
    %1231 = tpu.matmul %1229, %1230, %cst_586 {dimension_numbers = #tpu.dot_dimension_numbers<[1], [0], [0], [1], [0, 0, 1, 1], [], []>} : vector<2x64xf32>, vector<64x64xf32>, vector<2x64xf32> -> vector<2x64xf32>
    %c1152_587 = arith.constant 1152 : index
    %c0_588 = arith.constant 0 : index
    %1232 = vector.load %arg2[%c1152_587, %c0_588] : memref<1304x256xf32, #tpu.memory_space<vmem>>, vector<1x64xf32>
    %1233 = vector.broadcast %1232 : vector<1x64xf32> to vector<2x64xf32>
    %1234 = arith.addf %1231, %1233 : vector<2x64xf32>
    %cst_589 = arith.constant 0.000000e+00 : f32
    %1235 = vector.broadcast %cst_589 : f32 to vector<2x64xf32>
    %1236 = arith.maximumf %1234, %1235 : vector<2x64xf32>
    %c1160_590 = arith.constant 1160 : index
    %c0_591 = arith.constant 0 : index
    %1237 = vector.load %arg2[%c1160_590, %c0_591] : memref<1304x256xf32, #tpu.memory_space<vmem>>, vector<64x64xf32>
    %cst_592 = arith.constant dense<0.000000e+00> : vector<2x64xf32>
    %1238 = tpu.matmul %1236, %1237, %cst_592 {dimension_numbers = #tpu.dot_dimension_numbers<[1], [0], [0], [1], [0, 0, 1, 1], [], []>} : vector<2x64xf32>, vector<64x64xf32>, vector<2x64xf32> -> vector<2x64xf32>
    %c1224_593 = arith.constant 1224 : index
    %c0_594 = arith.constant 0 : index
    %1239 = vector.load %arg2[%c1224_593, %c0_594] : memref<1304x256xf32, #tpu.memory_space<vmem>>, vector<1x64xf32>
    %1240 = vector.broadcast %1239 : vector<1x64xf32> to vector<2x64xf32>
    %1241 = arith.addf %1238, %1240 : vector<2x64xf32>
    %cst_595 = arith.constant 0.000000e+00 : f32
    %1242 = vector.broadcast %cst_595 : f32 to vector<2x64xf32>
    %1243 = arith.maximumf %1241, %1242 : vector<2x64xf32>
    %c1232_596 = arith.constant 1232 : index
    %c0_597 = arith.constant 0 : index
    %1244 = vector.load %arg2[%c1232_596, %c0_597] : memref<1304x256xf32, #tpu.memory_space<vmem>>, vector<64x16xf32>
    %cst_598 = arith.constant dense<0.000000e+00> : vector<2x16xf32>
    %1245 = tpu.matmul %1243, %1244, %cst_598 {dimension_numbers = #tpu.dot_dimension_numbers<[1], [0], [0], [1], [0, 0, 1, 1], [], []>} : vector<2x64xf32>, vector<64x16xf32>, vector<2x16xf32> -> vector<2x16xf32>
    %c1296_599 = arith.constant 1296 : index
    %c0_600 = arith.constant 0 : index
    %1246 = vector.load %arg2[%c1296_599, %c0_600] : memref<1304x256xf32, #tpu.memory_space<vmem>>, vector<1x16xf32>
    %1247 = vector.broadcast %1246 : vector<1x16xf32> to vector<2x16xf32>
    %1248 = arith.addf %1245, %1247 : vector<2x16xf32>
    %c136_601 = arith.constant 136 : index
    %c0_602 = arith.constant 0 : index
    %1249 = vector.load %arg2[%c136_601, %c0_602] : memref<1304x256xf32, #tpu.memory_space<vmem>>, vector<16x64xf32>
    %cst_603 = arith.constant dense<0.000000e+00> : vector<2x64xf32>
    %1250 = tpu.matmul %1248, %1249, %cst_603 {dimension_numbers = #tpu.dot_dimension_numbers<[1], [0], [0], [1], [0, 0, 1, 1], [], []>} : vector<2x16xf32>, vector<16x64xf32>, vector<2x64xf32> -> vector<2x64xf32>
    %c152_604 = arith.constant 152 : index
    %c0_605 = arith.constant 0 : index
    %1251 = vector.load %arg2[%c152_604, %c0_605] : memref<1304x256xf32, #tpu.memory_space<vmem>>, vector<1x64xf32>
    %1252 = vector.broadcast %1251 : vector<1x64xf32> to vector<2x64xf32>
    %1253 = arith.addf %1250, %1252 : vector<2x64xf32>
    %cst_606 = arith.constant 0.000000e+00 : f32
    %1254 = vector.broadcast %cst_606 : f32 to vector<2x64xf32>
    %1255 = arith.maximumf %1253, %1254 : vector<2x64xf32>
    %c160_607 = arith.constant 160 : index
    %c0_608 = arith.constant 0 : index
    %1256 = vector.load %arg2[%c160_607, %c0_608] : memref<1304x256xf32, #tpu.memory_space<vmem>>, vector<64x64xf32>
    %cst_609 = arith.constant dense<0.000000e+00> : vector<2x64xf32>
    %1257 = tpu.matmul %1255, %1256, %cst_609 {dimension_numbers = #tpu.dot_dimension_numbers<[1], [0], [0], [1], [0, 0, 1, 1], [], []>} : vector<2x64xf32>, vector<64x64xf32>, vector<2x64xf32> -> vector<2x64xf32>
    %c224_610 = arith.constant 224 : index
    %c0_611 = arith.constant 0 : index
    %1258 = vector.load %arg2[%c224_610, %c0_611] : memref<1304x256xf32, #tpu.memory_space<vmem>>, vector<1x64xf32>
    %1259 = vector.broadcast %1258 : vector<1x64xf32> to vector<2x64xf32>
    %1260 = arith.addf %1257, %1259 : vector<2x64xf32>
    %cst_612 = arith.constant 0.000000e+00 : f32
    %1261 = vector.broadcast %cst_612 : f32 to vector<2x64xf32>
    %1262 = arith.maximumf %1260, %1261 : vector<2x64xf32>
    %c232_613 = arith.constant 232 : index
    %c0_614 = arith.constant 0 : index
    %1263 = vector.load %arg2[%c232_613, %c0_614] : memref<1304x256xf32, #tpu.memory_space<vmem>>, vector<64x64xf32>
    %cst_615 = arith.constant dense<0.000000e+00> : vector<2x64xf32>
    %1264 = tpu.matmul %1262, %1263, %cst_615 {dimension_numbers = #tpu.dot_dimension_numbers<[1], [0], [0], [1], [0, 0, 1, 1], [], []>} : vector<2x64xf32>, vector<64x64xf32>, vector<2x64xf32> -> vector<2x64xf32>
    %c296_616 = arith.constant 296 : index
    %c0_617 = arith.constant 0 : index
    %1265 = vector.load %arg2[%c296_616, %c0_617] : memref<1304x256xf32, #tpu.memory_space<vmem>>, vector<1x64xf32>
    %1266 = vector.broadcast %1265 : vector<1x64xf32> to vector<2x64xf32>
    %1267 = arith.addf %1264, %1266 : vector<2x64xf32>
    %cst_618 = arith.constant 0.000000e+00 : f32
    %1268 = vector.broadcast %cst_618 : f32 to vector<2x64xf32>
    %1269 = arith.maximumf %1267, %1268 : vector<2x64xf32>
    %c304_619 = arith.constant 304 : index
    %c0_620 = arith.constant 0 : index
    %1270 = vector.load %arg2[%c304_619, %c0_620] : memref<1304x256xf32, #tpu.memory_space<vmem>>, vector<64x16xf32>
    %cst_621 = arith.constant dense<0.000000e+00> : vector<2x16xf32>
    %1271 = tpu.matmul %1269, %1270, %cst_621 {dimension_numbers = #tpu.dot_dimension_numbers<[1], [0], [0], [1], [0, 0, 1, 1], [], []>} : vector<2x64xf32>, vector<64x16xf32>, vector<2x16xf32> -> vector<2x16xf32>
    %c368_622 = arith.constant 368 : index
    %c0_623 = arith.constant 0 : index
    %1272 = vector.load %arg2[%c368_622, %c0_623] : memref<1304x256xf32, #tpu.memory_space<vmem>>, vector<1x16xf32>
    %1273 = vector.broadcast %1272 : vector<1x16xf32> to vector<2x16xf32>
    %1274 = arith.addf %1271, %1273 : vector<2x16xf32>
    %cst_624 = arith.constant 0.000000e+00 : f32
    %1275 = vector.broadcast %cst_624 : f32 to vector<2x16xf32>
    %1276 = arith.maximumf %1274, %1275 : vector<2x16xf32>
    %1277 = tpu.concatenate %1276, %1176 in 1 : vector<2x16xf32>, vector<2x64xf32> -> vector<2x80xf32>
    %c496_625 = arith.constant 496 : index
    %c0_626 = arith.constant 0 : index
    %1278 = vector.load %arg2[%c496_625, %c0_626] : memref<1304x256xf32, #tpu.memory_space<vmem>>, vector<80x256xf32>
    %cst_627 = arith.constant dense<0.000000e+00> : vector<2x256xf32>
    %1279 = tpu.matmul %1277, %1278, %cst_627 {dimension_numbers = #tpu.dot_dimension_numbers<[1], [0], [0], [1], [0, 0, 1, 1], [], []>} : vector<2x80xf32>, vector<80x256xf32>, vector<2x256xf32> -> vector<2x256xf32>
    %c576_628 = arith.constant 576 : index
    %c0_629 = arith.constant 0 : index
    %1280 = vector.load %arg2[%c576_628, %c0_629] : memref<1304x256xf32, #tpu.memory_space<vmem>>, vector<1x256xf32>
    %1281 = vector.broadcast %1280 : vector<1x256xf32> to vector<2x256xf32>
    %1282 = arith.addf %1279, %1281 : vector<2x256xf32>
    %1283 = vector.extract_strided_slice %1282 {offsets = [0, 0], sizes = [2, 192], strides = [1, 1]} : vector<2x256xf32> to vector<2x192xf32>
    %1284 = arith.negf %1283 : vector<2x192xf32>
    %1285 = math.exp %1284 : vector<2x192xf32>
    %cst_630 = arith.constant 1.000000e+00 : f32
    %1286 = vector.broadcast %cst_630 : f32 to vector<2x192xf32>
    %1287 = arith.addf %1286, %1285 : vector<2x192xf32>
    %1288 = arith.divf %1286, %1287 : vector<2x192xf32>
    %1289 = vector.extract_strided_slice %1282 {offsets = [0, 192], sizes = [2, 64], strides = [1, 1]} : vector<2x256xf32> to vector<2x64xf32>
    %1290 = math.tanh %1289 : vector<2x64xf32>
    %1291 = vector.extract_strided_slice %1288 {offsets = [0, 0], sizes = [2, 64], strides = [1, 1]} : vector<2x192xf32> to vector<2x64xf32>
    %1292 = vector.extract_strided_slice %1288 {offsets = [0, 64], sizes = [2, 64], strides = [1, 1]} : vector<2x192xf32> to vector<2x64xf32>
    %1293 = vector.extract_strided_slice %1288 {offsets = [0, 128], sizes = [2, 64], strides = [1, 1]} : vector<2x192xf32> to vector<2x64xf32>
    %1294 = arith.mulf %1292, %1174 : vector<2x64xf32>
    %1295 = arith.mulf %1291, %1290 : vector<2x64xf32>
    %1296 = arith.addf %1294, %1295 : vector<2x64xf32>
    %1297 = math.tanh %1296 : vector<2x64xf32>
    %1298 = arith.mulf %1293, %1297 : vector<2x64xf32>
    %1299 = tpu.concatenate %1298, %1198 in 1 : vector<2x64xf32>, vector<2x64xf32> -> vector<2x128xf32>
    %c584_631 = arith.constant 584 : index
    %c0_632 = arith.constant 0 : index
    %1300 = vector.load %arg2[%c584_631, %c0_632] : memref<1304x256xf32, #tpu.memory_space<vmem>>, vector<128x256xf32>
    %cst_633 = arith.constant dense<0.000000e+00> : vector<2x256xf32>
    %1301 = tpu.matmul %1299, %1300, %cst_633 {dimension_numbers = #tpu.dot_dimension_numbers<[1], [0], [0], [1], [0, 0, 1, 1], [], []>} : vector<2x128xf32>, vector<128x256xf32>, vector<2x256xf32> -> vector<2x256xf32>
    %c712_634 = arith.constant 712 : index
    %c0_635 = arith.constant 0 : index
    %1302 = vector.load %arg2[%c712_634, %c0_635] : memref<1304x256xf32, #tpu.memory_space<vmem>>, vector<1x256xf32>
    %1303 = vector.broadcast %1302 : vector<1x256xf32> to vector<2x256xf32>
    %1304 = arith.addf %1301, %1303 : vector<2x256xf32>
    %1305 = vector.extract_strided_slice %1304 {offsets = [0, 0], sizes = [2, 192], strides = [1, 1]} : vector<2x256xf32> to vector<2x192xf32>
    %1306 = arith.negf %1305 : vector<2x192xf32>
    %1307 = math.exp %1306 : vector<2x192xf32>
    %cst_636 = arith.constant 1.000000e+00 : f32
    %1308 = vector.broadcast %cst_636 : f32 to vector<2x192xf32>
    %1309 = arith.addf %1308, %1307 : vector<2x192xf32>
    %1310 = arith.divf %1308, %1309 : vector<2x192xf32>
    %1311 = vector.extract_strided_slice %1304 {offsets = [0, 192], sizes = [2, 64], strides = [1, 1]} : vector<2x256xf32> to vector<2x64xf32>
    %1312 = math.tanh %1311 : vector<2x64xf32>
    %1313 = vector.extract_strided_slice %1310 {offsets = [0, 0], sizes = [2, 64], strides = [1, 1]} : vector<2x192xf32> to vector<2x64xf32>
    %1314 = vector.extract_strided_slice %1310 {offsets = [0, 64], sizes = [2, 64], strides = [1, 1]} : vector<2x192xf32> to vector<2x64xf32>
    %1315 = vector.extract_strided_slice %1310 {offsets = [0, 128], sizes = [2, 64], strides = [1, 1]} : vector<2x192xf32> to vector<2x64xf32>
    %1316 = arith.mulf %1314, %1196 : vector<2x64xf32>
    %1317 = arith.mulf %1313, %1312 : vector<2x64xf32>
    %1318 = arith.addf %1316, %1317 : vector<2x64xf32>
    %1319 = math.tanh %1318 : vector<2x64xf32>
    %1320 = arith.mulf %1315, %1319 : vector<2x64xf32>
    %1321 = vector.extract_strided_slice %1320 {offsets = [0, 0], sizes = [2, 32], strides = [1, 1]} : vector<2x64xf32> to vector<2x32xf32>
    %c832_637 = arith.constant 832 : index
    %c0_638 = arith.constant 0 : index
    %1322 = vector.load %arg2[%c832_637, %c0_638] : memref<1304x256xf32, #tpu.memory_space<vmem>>, vector<32x32xf32>
    %cst_639 = arith.constant dense<0.000000e+00> : vector<2x32xf32>
    %1323 = tpu.matmul %1321, %1322, %cst_639 {dimension_numbers = #tpu.dot_dimension_numbers<[1], [0], [0], [1], [0, 0, 1, 1], [], []>} : vector<2x32xf32>, vector<32x32xf32>, vector<2x32xf32> -> vector<2x32xf32>
    %c864_640 = arith.constant 864 : index
    %c0_641 = arith.constant 0 : index
    %1324 = vector.load %arg2[%c864_640, %c0_641] : memref<1304x256xf32, #tpu.memory_space<vmem>>, vector<1x32xf32>
    %1325 = vector.broadcast %1324 : vector<1x32xf32> to vector<2x32xf32>
    %1326 = arith.addf %1323, %1325 : vector<2x32xf32>
    %cst_642 = arith.constant 0.000000e+00 : f32
    %1327 = vector.broadcast %cst_642 : f32 to vector<2x32xf32>
    %1328 = arith.maximumf %1326, %1327 : vector<2x32xf32>
    %1329 = vector.extract_strided_slice %1320 {offsets = [0, 32], sizes = [2, 32], strides = [1, 1]} : vector<2x64xf32> to vector<2x32xf32>
    %1330 = tpu.concatenate %1328, %1329 in 1 : vector<2x32xf32>, vector<2x32xf32> -> vector<2x64xf32>
    %c872_643 = arith.constant 872 : index
    %c0_644 = arith.constant 0 : index
    %1331 = vector.load %arg2[%c872_643, %c0_644] : memref<1304x256xf32, #tpu.memory_space<vmem>>, vector<64x64xf32>
    %cst_645 = arith.constant dense<0.000000e+00> : vector<2x64xf32>
    %1332 = tpu.matmul %1330, %1331, %cst_645 {dimension_numbers = #tpu.dot_dimension_numbers<[1], [0], [0], [1], [0, 0, 1, 1], [], []>} : vector<2x64xf32>, vector<64x64xf32>, vector<2x64xf32> -> vector<2x64xf32>
    %c936_646 = arith.constant 936 : index
    %c0_647 = arith.constant 0 : index
    %1333 = vector.load %arg2[%c936_646, %c0_647] : memref<1304x256xf32, #tpu.memory_space<vmem>>, vector<1x64xf32>
    %1334 = vector.broadcast %1333 : vector<1x64xf32> to vector<2x64xf32>
    %1335 = arith.addf %1332, %1334 : vector<2x64xf32>
    %cst_648 = arith.constant 0.000000e+00 : f32
    %1336 = vector.broadcast %cst_648 : f32 to vector<2x64xf32>
    %1337 = arith.maximumf %1335, %1336 : vector<2x64xf32>
    %c944_649 = arith.constant 944 : index
    %c0_650 = arith.constant 0 : index
    %1338 = vector.load %arg2[%c944_649, %c0_650] : memref<1304x256xf32, #tpu.memory_space<vmem>>, vector<64x64xf32>
    %cst_651 = arith.constant dense<0.000000e+00> : vector<2x64xf32>
    %1339 = tpu.matmul %1337, %1338, %cst_651 {dimension_numbers = #tpu.dot_dimension_numbers<[1], [0], [0], [1], [0, 0, 1, 1], [], []>} : vector<2x64xf32>, vector<64x64xf32>, vector<2x64xf32> -> vector<2x64xf32>
    %c1008_652 = arith.constant 1008 : index
    %c0_653 = arith.constant 0 : index
    %1340 = vector.load %arg2[%c1008_652, %c0_653] : memref<1304x256xf32, #tpu.memory_space<vmem>>, vector<1x64xf32>
    %1341 = vector.broadcast %1340 : vector<1x64xf32> to vector<2x64xf32>
    %1342 = arith.addf %1339, %1341 : vector<2x64xf32>
    %cst_654 = arith.constant 0.000000e+00 : f32
    %1343 = vector.broadcast %cst_654 : f32 to vector<2x64xf32>
    %1344 = arith.maximumf %1342, %1343 : vector<2x64xf32>
    %c1016_655 = arith.constant 1016 : index
    %c0_656 = arith.constant 0 : index
    %1345 = vector.load %arg2[%c1016_655, %c0_656] : memref<1304x256xf32, #tpu.memory_space<vmem>>, vector<64x64xf32>
    %cst_657 = arith.constant dense<0.000000e+00> : vector<2x64xf32>
    %1346 = tpu.matmul %1344, %1345, %cst_657 {dimension_numbers = #tpu.dot_dimension_numbers<[1], [0], [0], [1], [0, 0, 1, 1], [], []>} : vector<2x64xf32>, vector<64x64xf32>, vector<2x64xf32> -> vector<2x64xf32>
    %c1080_658 = arith.constant 1080 : index
    %c0_659 = arith.constant 0 : index
    %1347 = vector.load %arg2[%c1080_658, %c0_659] : memref<1304x256xf32, #tpu.memory_space<vmem>>, vector<1x64xf32>
    %1348 = vector.broadcast %1347 : vector<1x64xf32> to vector<2x64xf32>
    %1349 = arith.addf %1346, %1348 : vector<2x64xf32>
    %cst_660 = arith.constant 0.000000e+00 : f32
    %1350 = vector.broadcast %cst_660 : f32 to vector<2x64xf32>
    %1351 = arith.maximumf %1349, %1350 : vector<2x64xf32>
    %c1088_661 = arith.constant 1088 : index
    %c0_662 = arith.constant 0 : index
    %1352 = vector.load %arg2[%c1088_661, %c0_662] : memref<1304x256xf32, #tpu.memory_space<vmem>>, vector<64x64xf32>
    %cst_663 = arith.constant dense<0.000000e+00> : vector<2x64xf32>
    %1353 = tpu.matmul %1351, %1352, %cst_663 {dimension_numbers = #tpu.dot_dimension_numbers<[1], [0], [0], [1], [0, 0, 1, 1], [], []>} : vector<2x64xf32>, vector<64x64xf32>, vector<2x64xf32> -> vector<2x64xf32>
    %c1152_664 = arith.constant 1152 : index
    %c0_665 = arith.constant 0 : index
    %1354 = vector.load %arg2[%c1152_664, %c0_665] : memref<1304x256xf32, #tpu.memory_space<vmem>>, vector<1x64xf32>
    %1355 = vector.broadcast %1354 : vector<1x64xf32> to vector<2x64xf32>
    %1356 = arith.addf %1353, %1355 : vector<2x64xf32>
    %cst_666 = arith.constant 0.000000e+00 : f32
    %1357 = vector.broadcast %cst_666 : f32 to vector<2x64xf32>
    %1358 = arith.maximumf %1356, %1357 : vector<2x64xf32>
    %c1160_667 = arith.constant 1160 : index
    %c0_668 = arith.constant 0 : index
    %1359 = vector.load %arg2[%c1160_667, %c0_668] : memref<1304x256xf32, #tpu.memory_space<vmem>>, vector<64x64xf32>
    %cst_669 = arith.constant dense<0.000000e+00> : vector<2x64xf32>
    %1360 = tpu.matmul %1358, %1359, %cst_669 {dimension_numbers = #tpu.dot_dimension_numbers<[1], [0], [0], [1], [0, 0, 1, 1], [], []>} : vector<2x64xf32>, vector<64x64xf32>, vector<2x64xf32> -> vector<2x64xf32>
    %c1224_670 = arith.constant 1224 : index
    %c0_671 = arith.constant 0 : index
    %1361 = vector.load %arg2[%c1224_670, %c0_671] : memref<1304x256xf32, #tpu.memory_space<vmem>>, vector<1x64xf32>
    %1362 = vector.broadcast %1361 : vector<1x64xf32> to vector<2x64xf32>
    %1363 = arith.addf %1360, %1362 : vector<2x64xf32>
    %cst_672 = arith.constant 0.000000e+00 : f32
    %1364 = vector.broadcast %cst_672 : f32 to vector<2x64xf32>
    %1365 = arith.maximumf %1363, %1364 : vector<2x64xf32>
    %c1232_673 = arith.constant 1232 : index
    %c0_674 = arith.constant 0 : index
    %1366 = vector.load %arg2[%c1232_673, %c0_674] : memref<1304x256xf32, #tpu.memory_space<vmem>>, vector<64x16xf32>
    %cst_675 = arith.constant dense<0.000000e+00> : vector<2x16xf32>
    %1367 = tpu.matmul %1365, %1366, %cst_675 {dimension_numbers = #tpu.dot_dimension_numbers<[1], [0], [0], [1], [0, 0, 1, 1], [], []>} : vector<2x64xf32>, vector<64x16xf32>, vector<2x16xf32> -> vector<2x16xf32>
    %c1296_676 = arith.constant 1296 : index
    %c0_677 = arith.constant 0 : index
    %1368 = vector.load %arg2[%c1296_676, %c0_677] : memref<1304x256xf32, #tpu.memory_space<vmem>>, vector<1x16xf32>
    %1369 = vector.broadcast %1368 : vector<1x16xf32> to vector<2x16xf32>
    %1370 = arith.addf %1367, %1369 : vector<2x16xf32>
    %1371 = vector.shape_cast %516 : vector<2x16xf32> to vector<1x2x16xf32>
    %1372 = vector.shape_cast %638 : vector<2x16xf32> to vector<1x2x16xf32>
    %1373 = vector.shape_cast %760 : vector<2x16xf32> to vector<1x2x16xf32>
    %1374 = vector.shape_cast %882 : vector<2x16xf32> to vector<1x2x16xf32>
    %1375 = vector.shape_cast %1004 : vector<2x16xf32> to vector<1x2x16xf32>
    %1376 = vector.shape_cast %1126 : vector<2x16xf32> to vector<1x2x16xf32>
    %1377 = vector.shape_cast %1248 : vector<2x16xf32> to vector<1x2x16xf32>
    %1378 = vector.shape_cast %1370 : vector<2x16xf32> to vector<1x2x16xf32>
    %1379 = tpu.concatenate %1371, %1372, %1373, %1374, %1375, %1376, %1377, %1378 in 0 : vector<1x2x16xf32>, vector<1x2x16xf32>, vector<1x2x16xf32>, vector<1x2x16xf32>, vector<1x2x16xf32>, vector<1x2x16xf32>, vector<1x2x16xf32>, vector<1x2x16xf32> -> vector<8x2x16xf32>
    %c0_678 = arith.constant 0 : index
    %c0_679 = arith.constant 0 : index
    %c0_680 = arith.constant 0 : index
    %1380 = vector.load %arg3[%c0_678, %c0_679, %c0_680] : memref<8x2x16xf32, #tpu.memory_space<vmem>>, vector<8x2x16xf32>
    tpu.vector_store %arg3[%c0_678, %c0_679, %c0_680], %1379 {strides = array<i32>} : memref<8x2x16xf32, #tpu.memory_space<vmem>>, vector<8x2x16xf32>,
    return
  }
}

</mosaic_0001>

<bundles_post_ra>
// kernel: tpu_custom_call.1
= control target key start
LH: loop header
LB: loop body
LE: loop exit
PB: predicated region body
PF: predicated region fallthrough
CT: control target
= control target key end

     0   :  { %8 = vsyncpa [#allocation3], 0  ;;  %s17356_s0 = inlined_call_operand.vmem [shape: f32[16,8], index: 0, kind: input, shape index: {}]   ;;  %s17357_s1 = inlined_call_operand.hbm [shape: f32[4,32], index: 1, kind: input, shape index: {}]   ;;  %s17358_s2 = inlined_call_operand.hbm [shape: f32[1304,256], index: 2, kind: input, shape index: {}]   ;;  %s17359_s3 = inlined_call_operand.hbm [shape: f32[8,2,16], index: 3, kind: output, shape index: {}]  }
   0x1   :  { %9 = vsyncpa [#allocation6], 0 }
   0x2   :  { %10 = vsyncpa [#allocation4], 0  ;;  %s15284_s12 = smov [#allocation2]   ;;  %s15285_s14 = smov [#allocation5]  }
   0x3   :  { %s19_s13 = sshll.u32 %s15284_s12, 4  ;;  %s28_s15 = sshll.u32 %s15285_s14, 4  ;;  %s20_s13 = int_to_ptr.vmem [resolvable:$true] %s19_s13  ;;  %s15318_s15 = int_to_ptr.vmem [resolvable:$true] %s28_s15 }
   0x4   :  { %s15212_s18 = scalar_lea.hbm %s17357_s1, 64 }
   0x5   :  { %p15213_p0 = scmp.ne.s32.totalorder %s17357_s1, %s15212_s18  ;;  %p15216_p1 = scmp.lt.u32.totalorder %s15212_s18, %s17357_s1 }
   0x7   :  { %p15218_p2 = pnand %p15216_p1, %p15213_p0 }
   0x9   :  { %15221 = shalt.err (!%p15218_p2)
}
   0xa   :  { %s15222_s23 = scalar_lea.vmem %s20_s13, 64  ;;  %p15227_p4 = scmp.lt.s32.totalorder %s20_s13, %s20_s13 }
   0xb   :  { %p15223_p3 = scmp.ne.s32.totalorder %s20_s13, %s15222_s23  ;;  %p15228_p5 = scmp.lt.s32.totalorder %s15222_s23, %s15222_s23 }
   0xd   :  { %p15229_p6 = por %p15228_p5, %p15227_p4 }
   0xf   :  { %p15230_p7 = pnand %p15229_p6, %p15223_p3 }
  0x11   :  { %15233 = shalt.err (!%p15230_p7)
}
  0x12   :  { %22 = dma.hbm_to_vmem [thread:$0]  %s17357_s1, 64, %s20_s13, [#allocation3]  }
  0x13   :  { %s15234_s28 = scalar_lea.hbm %s17358_s2, 41728 }
  0x14   :  { %p15235_p8 = scmp.ne.s32.totalorder %s17358_s2, %s15234_s28  ;;  %p15238_p9 = scmp.lt.u32.totalorder %s15234_s28, %s17358_s2 }
  0x16   :  { %p15240_p10 = pnand %p15238_p9, %p15235_p8 }
  0x18   :  { %15243 = shalt.err (!%p15240_p10)
}
  0x19   :  { %s15244_s6 = scalar_lea.vmem %s15318_s15, 41728  ;;  %p15249_p12 = scmp.lt.s32.totalorder %s15318_s15, %s15318_s15 }
  0x1a   :  { %p15245_p11 = scmp.ne.s32.totalorder %s15318_s15, %s15244_s6  ;;  %p15250_p13 = scmp.lt.s32.totalorder %s15244_s6, %s15244_s6 }
  0x1c   :  { %p15251_p0 = por %p15250_p13, %p15249_p12 }
  0x1e   :  { %p15252_p1 = pnand %p15251_p0, %p15245_p11 }
  0x20   :  { %15255 = shalt.err (!%p15252_p1)
}
  0x21   :  { %s15286_s1 = smov 256   ;;  %s15287_s7 = smov 16  }
  0x22   :  { %34 = dma.hbm_to_vmem [thread:$0]  %s17358_s2, 41728, %s15318_s15, [#allocation6], %s15286_s1, %s15286_s1, %s15287_s7  }
  0x23   :  { %15278 = dma.done.wait [#allocation3], 64  }
  0x24   :  { %15279 = vsyncadd [#allocation3], 4294967232 }
  0x25   :  { %15280 = dma.done.wait [#allocation6], 41728  }
  0x26   :  { %15281 = vsyncadd [#allocation6], 4294925568  ;;  %vm45_vm0 = vcmask 64512   ;;  %v43_v0 = vld [vmem:[#allocation5] sm:$0xff]  ;;  %v41_v1 = vld [vmem:[%s17356_s0] sm:$0xff]  ;;  %vm134_vm1 = vcmask 261120   ;;  %v483_v62 = vlaneseq }
  0x27   :  { %v42_v2 = vld [vmem:[%s17356_s0 + $0x8] sm:$0xff]  ;;  %11594 = vmatprep.subr.mxu0 %v43_v0  ;;  %11596 = vmatprep.mubr.msk.f32.mxu0 %vm45_vm0, %v41_v1  ;;  %v129_v3 = vld [vmem:[#allocation5 + $0x20] sm:$0xff]  ;;  %v44_v12 = vld [vmem:[#allocation5 + $0x10] ss:$0 sm:$0xff]  ;;  %v17383_v45 = vmov 0.0|0.0   ;;  %vm15289_vm2 = vmmov 0  }
  0x28   :  { %v130_v4 = vld [vmem:[#allocation5 + $0x30] sm:$0xff]  ;;  %11595 = vmatpush3.msra.mxu0 %v43_v0  ;;  %v131_v6 = vld [vmem:[#allocation5 + $0x40] sm:$0xff]  ;;  %v17389_v50 = vmov 0.0   ;;  %v15291_v60 = vmov 1983009808   ;;  %v15390_v0 = vshrl.u32 %v483_v62, 7 }
  0x29   :  { %v13355_v5 = vpack.c.bf16 %v130_v4, %v129_v3  ;;  %11597 = vmatmul.mubr.msk.f32.vlgmr.msra.gmra.mrb[0].mxu0 %vm45_vm0, %v42_v2  ;;  %v132_v7 = vld [vmem:[#allocation5 + $0x50] sm:$0xff]  ;;  %v219_v10 = vld [vmem:[#allocation5 + $0x80] sm:$0xff]  ;;  %v481_v61 = vunpack.c.l.s4 %v15291_v60  ;;  %s15292_s0 = smov 32   ;;  %s15293_s2 = smov 64   ;;  %vm654_vm3 = vcmask 523264   ;;  %vm2225_vm4 = vcmask 1041408  }
  0x2a   :  { %v13359_v8 = vpack.c.bf16 %v132_v7, %v131_v6  ;;  %v218_v9 = vld [vmem:[#allocation5 + $0x70] sm:$0xff]  ;;  %v221_v20 = vld [vmem:[#allocation5 + $0xa0] sm:$0xff]  ;;  %s15294_s14 = smov 96   ;;  %s15295_s15 = smov 8   ;;  %vm2466_vm5 = vcmask 130048   ;;  %vm2501_vm6 = vcmask 654336  }
  0x2b   :  { %13356 = vmatprep.subr.bf16.mxu1 %v13355_v5  ;;  %v13363_v11 = vpack.c.bf16 %v219_v10, %v218_v9  ;;  %v220_v19 = vld [vmem:[#allocation5 + $0x90] sm:$0xff]  ;;  %v306_v22 = vld [vmem:[#allocation5 + $0xc0] sm:$0xff]  ;;  %v482_v63 = vunpack.c.0.s8 %v481_v61  ;;  %vm10568_vm7 = vcmask 123904   ;;  %s15296_s16 = smov [#allocation7]  }
  0x2c   :  { %13358 = vmatpush3.bf16.msra.mxu1 %v13355_v5  ;;  %v13367_v21 = vpack.c.bf16 %v221_v20, %v220_v19  ;;  %v307_v23 = vld [vmem:[#allocation5 + $0xd0] sm:$0xff]  ;;  %v133_v25 = vld [vmem:[#allocation5 + $0x60] ss:$0 sm:$0xff]  ;;  %s10582_s17 = sshll.u32 %s15296_s16, 4  ;;  %s10583_s17 = int_to_ptr.vmem [resolvable:$true] %s10582_s17 }
  0x2d   :  { %13360 = vmatprep.subr.bf16.mxu1 %v13359_v8  ;;  %13364 = vmatprep.subr.bf16.mxu0 %v13363_v11  ;;  %v13371_v24 = vpack.c.bf16 %v307_v23, %v306_v22  ;;  %v308_v32 = vld [vmem:[#allocation5 + $0xe0] sm:$0xff]  ;;  %v309_v33 = vld [vmem:[#allocation5 + $0xf0] sm:$0xff]  ;;  %v15395_v5 = vsub.s32 %v482_v63, %v15390_v0  ;;  %s15256_s18 = scalar_lea.vmem %s10583_s17, 256  ;;  %p15261_p3 = scmp.lt.s32.totalorder %s10583_s17, %s10583_s17 }
  0x2e   :  { %13366 = vmatpush3.bf16.msra.mxu0 %v13363_v11  ;;  %v13375_v34 = vpack.c.bf16 %v309_v33, %v308_v32  ;;  %v222_v35 = vld [vmem:[#allocation5 + $0xb0] ss:$0 sm:$0xff]  ;;  %v531_v42 = vld [vmem:[#allocation5 + $0x300] sm:$0xff]  ;;  %p15257_p2 = scmp.ne.s32.totalorder %s10583_s17, %s15256_s18  ;;  %p15262_p4 = scmp.lt.s32.totalorder %s15256_s18, %s15256_s18 }
  0x2f   :  { %13368 = vmatprep.subr.bf16.mxu0 %v13367_v21  ;;  %v532_v43 = vld [vmem:[#allocation5 + $0x310] sm:$0xff]  ;;  %v533_v47 = vld [vmem:[#allocation5 + $0x320] sm:$0xff] }
  0x30   :  { %13362 = vmatpush3.bf16.msra.mxu1 %v13359_v8  ;;  %v15364_v44 = vpack.c.bf16 %v532_v43, %v531_v42  ;;  %v394_v46 = vld [vmem:[#allocation5 + $0x2f0] sm:$0xff]  ;;  %v310_v51 = vld [vmem:[#allocation5 + $0x100] ss:$0 sm:$0xff]  ;;  %p15263_p5 = por %p15262_p4, %p15261_p3 }
  0x31   :  { %13372 = vmatprep.subr.bf16.mxu1 %v13371_v24  ;;  %v534_v48 = vld [vmem:[#allocation5 + $0x330] sm:$0xff]  ;;  %v395_v1 = vld [vmem:[#allocation5 + $0x340] ss:$0 sm:$0xff] }
  0x32   :  { %13370 = vmatpush3.bf16.msra.mxu0 %v13367_v21  ;;  %v15369_v49 = vpack.c.bf16 %v534_v48, %v533_v47  ;;  %v645_v19 = vld [vmem:[#allocation5 + $0x350] sm:$0xff]  ;;  %v646_v20 = vld [vmem:[#allocation5 + $0x360] sm:$0xff]  ;;  %p15264_p6 = pnand %p15263_p5, %p15257_p2 }
  0x33   :  { %13379 = vmatprep.subr.bf16.mxu0 %v17383_v45  ;;  %v647_v21 = vld [vmem:[#allocation5 + $0x370] sm:$0xff]  ;;  %v15409_v22 = vpack.c.bf16 %v646_v20, %v645_v19  ;;  %v648_v23 = vld [vmem:[#allocation5 + $0x380] sm:$0xff] }
  0xfc   :  { %v11598_v13 = vpop.f32.mrb[0].mxu0 }
  0xfd   :  { %v124_v14 = vadd.f32 %v11598_v13, %v44_v12  ;;  %v118_v15 = vpop.f32.mrb[1].mxu0 }
  0xfe   :  { %v119_v16 = vadd.f32 %v118_v15, %v44_v12 }
  0xff   :  { %v128_v18 = vmax.f32 %v124_v14, 0.0 }
 0x100   :  { %v127_v17 = vmax.f32 %v119_v16, 0.0 }
 0x102   :  { %11607 = vmatprep.mubr.msk.f32.mxu1 %vm134_vm1, %v127_v17 }
 0x103   :  { %11608 = vmatmul.mubr.msk.f32.vlgmr.msra.gmra.mrb[0].mxu1 %vm134_vm1, %v128_v18 }
 0x104   :  { %13374 = vmatpush3.bf16.msra.mxu1 %v13371_v24  ;;  %v15412_v24 = vpack.c.bf16 %v648_v23, %v647_v21 }
 0x105   :  { %13376 = vmatprep.subr.bf16.mxu1 %v13375_v34 }
 0x108   :  { %13378 = vmatpush3.bf16.msra.mxu1 %v13375_v34 }
 0x109   :  { %11632 = vmatprep.subr.mxu1 %v394_v46 }
 0x1d6   :  { %v11609_v26 = vpop.f32.mrb[0].mxu1 }
 0x1d7   :  { %v213_v27 = vadd.f32 %v11609_v26, %v133_v25  ;;  %v207_v28 = vpop.f32.mrb[1].mxu1  ;;  %v650_v26 = vld [vmem:[#allocation5 + $0x3a0] sm:$0xff] }
 0x1d8   :  { %v208_v29 = vadd.f32 %v207_v28, %v133_v25  ;;  %v649_v25 = vld [vmem:[#allocation5 + $0x390] sm:$0xff] }
 0x1d9   :  { %v217_v31 = vmax.f32 %v213_v27, 0.0  ;;  %v15416_v27 = vpack.c.bf16 %v650_v26, %v649_v25 }
 0x1da   :  { %v216_v30 = vmax.f32 %v208_v29, 0.0  ;;  %v651_v29 = vld [vmem:[#allocation5 + $0x3b0] sm:$0xff] }
 0x1dc   :  { %11618 = vmatprep.mubr.msk.f32.mxu0 %vm134_vm1, %v216_v30  ;;  %v652_v30 = vld [vmem:[#allocation5 + $0x3c0] sm:$0xff] }
 0x1dd   :  { %11619 = vmatmul.mubr.msk.f32.vlgmr.msra.gmra.mrb[2].mxu0 %vm134_vm1, %v217_v31  ;;  %v15421_v31 = vpack.c.bf16 %v652_v30, %v651_v29 }
 0x1de   :  { %13381 = vmatpush3.bf16.msra.mxu0 %v15364_v44  ;;  %11645 = vmatprep.mubr.msk.f32.mxu0 %vm15289_vm2, %v17389_v50 }
 0x1df   :  { %13382 = vmatprep.subr.bf16.mxu0 %v17383_v45 }
 0x1e2   :  { %13384 = vmatpush3.bf16.msra.mxu0 %v15369_v49 }
 0x1e3   :  { %13397 = vmatprep.subr.bf16.mxu0 %v17383_v45 }
 0x1e5   :  { %11646 = vmatmul.mubr.f32.vlgmr.msra.gmra.mrb[4].mxu0 %v17389_v50 }
 0x1e6   :  { %13399 = vmatpush3.bf16.msra.mxu0 %v15364_v44  ;;  %11675 = vmatprep.mubr.msk.f32.mxu0 %vm15289_vm2, %v17389_v50 }
 0x1e7   :  { %13400 = vmatprep.subr.bf16.mxu0 %v17383_v45 }
 0x1ea   :  { %13402 = vmatpush3.bf16.msra.mxu0 %v15369_v49 }
 0x1eb   :  { %13403 = vmatprep.subr.bf16.mxu0 %v17383_v45 }
 0x2b0   :  { %v11620_v36 = vpop.f32.mrb[2].mxu0 }
 0x2b1   :  { %v301_v37 = vadd.f32 %v11620_v36, %v222_v35  ;;  %v295_v38 = vpop.f32.mrb[3].mxu0 }
 0x2b2   :  { %v296_v39 = vadd.f32 %v295_v38, %v222_v35  ;;  %v15449_v38 = vld [vmem:[#allocation5 + $0x3d0] ss:$0 sm:$0xff] }
 0x2b3   :  { %v305_v41 = vmax.f32 %v301_v37, 0.0 }
 0x2b4   :  { %v304_v40 = vmax.f32 %v296_v39, 0.0 }
 0x2b6   :  { %11629 = vmatprep.mubr.msk.f32.mxu1 %vm134_vm1, %v304_v40 }
 0x2b7   :  { %11630 = vmatmul.mubr.msk.f32.vlgmr.msra.gmra.mrb[2].mxu1 %vm134_vm1, %v305_v41 }
 0x2b8   :  { %11633 = vmatpush3.msra.mxu1 %v394_v46  ;;  %v604_v58 = vpop.f32.mrb[4].mxu0 }
 0x2b9   :  { %13385 = vmatprep.subr.bf16.mxu1 %v17383_v45  ;;  %v11647_v59 = vpop.f32.mrb[5].mxu0 }
 0x38a   :  { %v11631_v52 = vpop.f32.mrb[2].mxu1 }
 0x38b   :  { %v389_v53 = vadd.f32 %v11631_v52, %v310_v51  ;;  %v383_v54 = vpop.f32.mrb[3].mxu1 }
 0x38c   :  { %v384_v55 = vadd.f32 %v383_v54, %v310_v51 }
 0x38d   :  { %v15383_v57 = vmax.f32 %v389_v53, 0.0 }
 0x38e   :  { %v392_v56 = vmax.f32 %v384_v55, 0.0 }
 0x390   :  { %11634 = vmatprep.mubr.msk.f32.mxu1 %vm45_vm0, %v392_v56 }
 0x391   :  { %11635 = vmatmul.mubr.msk.f32.vlgmr.msra.gmra.mrb[4].mxu1 %vm45_vm0, %v15383_v57 }
 0x392   :  { %11664 = vmatprep.mubr.msk.f32.mxu1 %vm15289_vm2, %v17389_v50  ;;  %13387 = vmatpush3.bf16.msra.mxu1 %v15409_v22 }
 0x393   :  { %13388 = vmatprep.subr.bf16.mxu1 %v17383_v45 }
 0x396   :  { %13390 = vmatpush3.bf16.msra.mxu1 %v15412_v24 }
 0x397   :  { %13391 = vmatprep.subr.bf16.mxu1 %v17383_v45 }
 0x39a   :  { %13393 = vmatpush3.bf16.msra.mxu1 %v15416_v27 }
 0x39b   :  { %13394 = vmatprep.subr.bf16.mxu1 %v17383_v45 }
 0x39e   :  { %13396 = vmatpush3.bf16.msra.mxu1 %v15421_v31 }
 0x39f   :  { %13415 = vmatprep.subr.bf16.mxu1 %v17383_v45 }
 0x464   :  { %v11636_v2 = vpop.f32.mrb[4].mxu1 }
 0x465   :  { %v15392_v3 = vadd.f32 %v11636_v2, %v395_v1  ;;  %v468_v4 = vpop.f32.mrb[5].mxu1 }
 0x466   :  { %v15397_v6 = vadd.f32 %v468_v4, %v395_v1 }
 0x468   :  { %v15401_v7 = vrot.slane %v15397_v6, %v15395_v5  ;;  %v479_v20 = vcombine.high %v15397_v6, %v15397_v6 }
 0x46a   :  { %v608_v8 = vadd.f32 %v604_v58, %v15401_v7  ;;  %v494_v37 = vcombine.high %v15401_v7, %v15401_v7  ;;  %v15490_v21 = vrot.slane %v479_v20, %v15395_v5 }
 0x46c   :  { %14868 = vtanh.f32 %v608_v8  ;;  %v10605_v10 = vmul.f32 -1.442695, %v608_v8 }
 0x46e   :  { %14870 = vpow2.f32 %v10605_v10 }
 0x476   :  { %v14869_v9 = vpop.eup %14868 }
 0x477   :  { %618 = vrot.lane.b32.xlu0 %v14869_v9, %s15292_s0 }
 0x478   :  { %v14871_v11 = vpop.eup %14870 }
 0x479   :  { %v612_v12 = vadd.f32 1.0, %v14871_v11 }
 0x47b   :  { %14872 = vrcp.f32 %v612_v12 }
 0x485   :  { %v14873_v13 = vpop.eup %14872 }
 0x486   :  { %v616_v16 = vmul.f32 0.0, %v14873_v13 }
 0x4e9   :  { %v619_v14 = vpop.permute.xlu0 %618 }
 0x4ea   :  { %v621_v15 = vmul.f32 %v14873_v13, %v619_v14 }
 0x4ec   :  { %623 = vrot.lane.b32.xlu0 %v621_v15, %s15292_s0 }
 0x55e   :  { %v624_v17 = vpop.permute.xlu0 %623 }
 0x55f   :  { %v15406_v18 = vadd.f32 %v624_v17, %v616_v16 }
 0x561   :  { %14874 = vtanh.f32 %v15406_v18 }
 0x56b   :  { %v14875_v28 = vpop.eup %14874 }
 0x56c   :  { %629 = vrot.lane.b32.xlu1 %v14875_v28, %s15292_s0 }
 0x5de   :  { %v630_v32 = vpop.permute.xlu1 %629 }
 0x5df   :  { %v632_v33 = vmul.f32 %v14873_v13, %v630_v32 }
 0x5e1   :  { %v640_v34 = vrot.slane %v632_v33, %v15395_v5 }
 0x5e3   :  { %641 = vrot.lane.b32.xlu1 %v640_v34, %s15293_s2 }
 0x655   :  { %v642_v35 = vpop.permute.xlu1 %641 }
 0x656   :  { %v644_v36 = vsel %vm134_vm1, %v642_v35, 0.0  ;;  %11676 = vmatmul.mubr.msk.f32.vlgmr.msra.gmra.mrb[6].mxu0 %vm134_vm1, %v642_v35 }
 0x657   :  { %11665 = vmatmul.mubr.msk.f32.vlgmr.msra.gmra.mrb[6].mxu1 %vm654_vm3, %v644_v36  ;;  %13405 = vmatpush3.bf16.msra.mxu0 %v15409_v22 }
 0x658   :  { %13406 = vmatprep.subr.bf16.mxu0 %v17383_v45  ;;  %13417 = vmatpush3.bf16.msra.mxu1 %v15364_v44 }
 0x659   :  { %13418 = vmatprep.subr.bf16.mxu1 %v17383_v45  ;;  %11705 = vmatprep.mubr.msk.f32.mxu1 %vm15289_vm2, %v17389_v50 }
 0x65a   :  { %11694 = vmatprep.mubr.msk.f32.mxu0 %vm15289_vm2, %v17389_v50 }
 0x65b   :  { %13408 = vmatpush3.bf16.msra.mxu0 %v15412_v24 }
 0x65c   :  { %13409 = vmatprep.subr.bf16.mxu0 %v17383_v45  ;;  %13420 = vmatpush3.bf16.msra.mxu1 %v15369_v49 }
 0x65d   :  { %13421 = vmatprep.subr.bf16.mxu1 %v17383_v45 }
 0x65f   :  { %13411 = vmatpush3.bf16.msra.mxu0 %v15416_v27 }
 0x660   :  { %13412 = vmatprep.subr.bf16.mxu0 %v17383_v45 }
 0x663   :  { %13414 = vmatpush3.bf16.msra.mxu0 %v15421_v31 }
 0x664   :  { %13433 = vmatprep.subr.bf16.mxu0 %v17383_v45 }
 0x729   :  { %v820_v39 = vpop.f32.mrb[6].mxu0 }
 0x72a   :  { %v824_v40 = vadd.f32 %v820_v39, %v494_v37  ;;  %v724_v41 = vpop.f32.mrb[6].mxu1  ;;  %v11677_v42 = vpop.f32.mrb[7].mxu0 }
 0x72b   :  { %v725_v43 = vadd.f32 %v724_v41, %v15449_v38  ;;  %v11666_v46 = vpop.f32.mrb[7].mxu1 }
 0x72c   :  { %14876 = vtanh.f32 %v824_v40  ;;  %v10609_v51 = vmul.f32 -1.442695, %v824_v40 }
 0x72d   :  { %14878 = vtanh.f32 %v725_v43  ;;  %v10607_v52 = vmul.f32 -1.442695, %v725_v43 }
 0x72e   :  { %14880 = vpow2.f32 %v10609_v51 }
 0x72f   :  { %14882 = vpow2.f32 %v10607_v52 }
 0x736   :  { %v14877_v47 = vpop.eup %14876 }
 0x737   :  { %v14879_v48 = vpop.eup %14878  ;;  %834 = vrot.lane.b32.xlu0 %v14877_v47, %s15292_s0 }
 0x738   :  { %737 = vrot.lane.b32.xlu1 %v14879_v48, %s15292_s0  ;;  %v14881_v53 = vpop.eup %14880 }
 0x739   :  { %v14883_v54 = vpop.eup %14882  ;;  %v828_v55 = vadd.f32 1.0, %v14881_v53 }
 0x73a   :  { %v731_v56 = vadd.f32 1.0, %v14883_v54 }
 0x73b   :  { %14884 = vrcp.f32 %v828_v55 }
 0x73c   :  { %14886 = vrcp.f32 %v731_v56 }
 0x745   :  { %v14885_v58 = vpop.eup %14884 }
 0x746   :  { %v14887_v60 = vpop.eup %14886  ;;  %v832_v1 = vmul.f32 %v14885_v58, %v15406_v18 }
 0x747   :  { %v735_v4 = vmul.f32 0.0, %v14887_v60 }
 0x7a9   :  { %v835_v59 = vpop.permute.xlu0 %834 }
 0x7aa   :  { %v837_v61 = vmul.f32 %v14885_v58, %v835_v59  ;;  %v738_v62 = vpop.permute.xlu1 %737 }
 0x7ab   :  { %v740_v63 = vmul.f32 %v14887_v60, %v738_v62 }
 0x7ac   :  { %839 = vrot.lane.b32.xlu0 %v837_v61, %s15292_s0 }
 0x7ad   :  { %742 = vrot.lane.b32.xlu1 %v740_v63, %s15292_s0 }
 0x81e   :  { %v840_v2 = vpop.permute.xlu0 %839 }
 0x81f   :  { %v15457_v7 = vadd.f32 %v840_v2, %v832_v1  ;;  %v743_v8 = vpop.permute.xlu1 %742 }
 0x820   :  { %v15459_v9 = vadd.f32 %v743_v8, %v735_v4 }
 0x821   :  { %14888 = vtanh.f32 %v15457_v7 }
 0x822   :  { %14890 = vtanh.f32 %v15459_v9 }
 0x82b   :  { %v14889_v10 = vpop.eup %14888 }
 0x82c   :  { %v14891_v11 = vpop.eup %14890  ;;  %845 = vrot.lane.b32.xlu0 %v14889_v10, %s15292_s0 }
 0x82d   :  { %748 = vrot.lane.b32.xlu1 %v14891_v11, %s15292_s0 }
 0x89e   :  { %v846_v12 = vpop.permute.xlu0 %845 }
 0x89f   :  { %v848_v13 = vmul.f32 %v14885_v58, %v846_v12  ;;  %v749_v14 = vpop.permute.xlu1 %748 }
 0x8a0   :  { %v751_v15 = vmul.f32 %v14887_v60, %v749_v14 }
 0x8a1   :  { %v856_v16 = vrot.slane %v848_v13, %v15395_v5 }
 0x8a2   :  { %861 = vrot.lane.b32.xlu1 %v751_v15, %s15294_s14 }
 0x8a3   :  { %857 = vrot.lane.b32.xlu0 %v856_v16, %s15293_s2 }
 0x914   :  { %v862_v17 = vpop.permute.xlu1 %861 }
 0x915   :  { %v858_v18 = vpop.permute.xlu0 %857 }
 0x916   :  { %v864_v19 = vsel %vm134_vm1, %v858_v18, %v862_v17  ;;  %11706 = vmatmul.mubr.msk.f32.vlgmr.msra.gmra.mrb[8].mxu1 %vm134_vm1, %v858_v18 }
 0x917   :  { %11695 = vmatmul.mubr.msk.f32.vlgmr.msra.gmra.mrb[8].mxu0 %vm654_vm3, %v864_v19  ;;  %13423 = vmatpush3.bf16.msra.mxu1 %v15409_v22 }
 0x918   :  { %13424 = vmatprep.subr.bf16.mxu1 %v17383_v45  ;;  %13435 = vmatpush3.bf16.msra.mxu0 %v15364_v44 }
 0x919   :  { %13436 = vmatprep.subr.bf16.mxu0 %v17383_v45  ;;  %11735 = vmatprep.mubr.msk.f32.mxu0 %vm15289_vm2, %v17389_v50 }
 0x91a   :  { %11724 = vmatprep.mubr.msk.f32.mxu1 %vm15289_vm2, %v17389_v50 }
 0x91b   :  { %13426 = vmatpush3.bf16.msra.mxu1 %v15412_v24 }
 0x91c   :  { %13427 = vmatprep.subr.bf16.mxu1 %v17383_v45  ;;  %13438 = vmatpush3.bf16.msra.mxu0 %v15369_v49 }
 0x91d   :  { %13439 = vmatprep.subr.bf16.mxu0 %v17383_v45 }
 0x91f   :  { %13429 = vmatpush3.bf16.msra.mxu1 %v15416_v27 }
 0x920   :  { %13430 = vmatprep.subr.bf16.mxu1 %v17383_v45 }
 0x923   :  { %13432 = vmatpush3.bf16.msra.mxu1 %v15421_v31 }
 0x924   :  { %13451 = vmatprep.subr.bf16.mxu1 %v17383_v45 }
 0x9e9   :  { %v1030_v23 = vpop.f32.mrb[8].mxu1 }
 0x9ea   :  { %v1034_v25 = vadd.f32 %v1030_v23, %v15490_v21  ;;  %v934_v26 = vpop.f32.mrb[8].mxu0  ;;  %v11707_v28 = vpop.f32.mrb[9].mxu1 }
 0x9eb   :  { %v935_v29 = vadd.f32 %v934_v26, %v15449_v38  ;;  %v11696_v30 = vpop.f32.mrb[9].mxu0 }
 0x9ec   :  { %14892 = vtanh.f32 %v1034_v25  ;;  %v10613_v6 = vmul.f32 -1.442695, %v1034_v25 }
 0x9ed   :  { %14894 = vtanh.f32 %v935_v29  ;;  %v10611_v34 = vmul.f32 -1.442695, %v935_v29 }
 0x9ee   :  { %14896 = vpow2.f32 %v10613_v6 }
 0x9ef   :  { %14898 = vpow2.f32 %v10611_v34 }
 0x9f6   :  { %v14893_v32 = vpop.eup %14892 }
 0x9f7   :  { %v14895_v33 = vpop.eup %14894  ;;  %1044 = vrot.lane.b32.xlu0 %v14893_v32, %s15292_s0 }
 0x9f8   :  { %947 = vrot.lane.b32.xlu1 %v14895_v33, %s15292_s0  ;;  %v14897_v35 = vpop.eup %14896 }
 0x9f9   :  { %v14899_v36 = vpop.eup %14898  ;;  %v1038_v37 = vadd.f32 1.0, %v14897_v35 }
 0x9fa   :  { %v941_v39 = vadd.f32 1.0, %v14899_v36 }
 0x9fb   :  { %14900 = vrcp.f32 %v1038_v37 }
 0x9fc   :  { %14902 = vrcp.f32 %v941_v39 }
 0xa05   :  { %v14901_v40 = vpop.eup %14900 }
 0xa06   :  { %v14903_v42 = vpop.eup %14902  ;;  %v1042_v48 = vmul.f32 %v14901_v40, %v15457_v7  ;;  %v495_v7 = vcombine.high %v15490_v21, %v15490_v21 }
 0xa07   :  { %v945_v52 = vmul.f32 %v14903_v42, %v15459_v9 }
 0xa69   :  { %v1045_v41 = vpop.permute.xlu0 %1044 }
 0xa6a   :  { %v1047_v43 = vmul.f32 %v14901_v40, %v1045_v41  ;;  %v948_v46 = vpop.permute.xlu1 %947 }
 0xa6b   :  { %v950_v47 = vmul.f32 %v14903_v42, %v948_v46 }
 0xa6c   :  { %1049 = vrot.lane.b32.xlu0 %v1047_v43, %s15292_s0 }
 0xa6d   :  { %952 = vrot.lane.b32.xlu1 %v950_v47, %s15292_s0 }
 0xade   :  { %v1050_v51 = vpop.permute.xlu0 %1049 }
 0xadf   :  { %v15500_v53 = vadd.f32 %v1050_v51, %v1042_v48  ;;  %v953_v54 = vpop.permute.xlu1 %952 }
 0xae0   :  { %v15502_v55 = vadd.f32 %v953_v54, %v945_v52  ;;  %v15571_v52 = vrot.slane %v15392_v3, %v15395_v5 }
 0xae1   :  { %14904 = vtanh.f32 %v15500_v53 }
 0xae2   :  { %14906 = vtanh.f32 %v15502_v55 }
 0xaeb   :  { %v14905_v56 = vpop.eup %14904 }
 0xaec   :  { %v14907_v58 = vpop.eup %14906  ;;  %1055 = vrot.lane.b32.xlu0 %v14905_v56, %s15292_s0 }
 0xaed   :  { %958 = vrot.lane.b32.xlu1 %v14907_v58, %s15292_s0 }
 0xb5e   :  { %v1056_v59 = vpop.permute.xlu0 %1055 }
 0xb5f   :  { %v1058_v60 = vmul.f32 %v14901_v40, %v1056_v59  ;;  %v959_v61 = vpop.permute.xlu1 %958 }
 0xb60   :  { %v961_v62 = vmul.f32 %v14903_v42, %v959_v61 }
 0xb61   :  { %v1066_v63 = vrot.slane %v1058_v60, %v15395_v5 }
 0xb62   :  { %1071 = vrot.lane.b32.xlu1 %v961_v62, %s15294_s14 }
 0xb63   :  { %1067 = vrot.lane.b32.xlu0 %v1066_v63, %s15293_s2 }
 0xbd4   :  { %v1072_v1 = vpop.permute.xlu1 %1071 }
 0xbd5   :  { %v1068_v2 = vpop.permute.xlu0 %1067 }
 0xbd6   :  { %v1074_v4 = vsel %vm134_vm1, %v1068_v2, %v1072_v1  ;;  %11736 = vmatmul.mubr.msk.f32.vlgmr.msra.gmra.mrb[10].mxu0 %vm134_vm1, %v1068_v2 }
 0xbd7   :  { %11725 = vmatmul.mubr.msk.f32.vlgmr.msra.gmra.mrb[10].mxu1 %vm654_vm3, %v1074_v4  ;;  %13441 = vmatpush3.bf16.msra.mxu0 %v15409_v22 }
 0xbd8   :  { %13442 = vmatprep.subr.bf16.mxu0 %v17383_v45  ;;  %13453 = vmatpush3.bf16.msra.mxu1 %v15364_v44 }
 0xbd9   :  { %13454 = vmatprep.subr.bf16.mxu1 %v17383_v45  ;;  %11765 = vmatprep.mubr.msk.f32.mxu1 %vm15289_vm2, %v17389_v50 }
 0xbda   :  { %11754 = vmatprep.mubr.msk.f32.mxu0 %vm15289_vm2, %v17389_v50 }
 0xbdb   :  { %13444 = vmatpush3.bf16.msra.mxu0 %v15412_v24 }
 0xbdc   :  { %13445 = vmatprep.subr.bf16.mxu0 %v17383_v45  ;;  %13456 = vmatpush3.bf16.msra.mxu1 %v15369_v49 }
 0xbdd   :  { %13457 = vmatprep.subr.bf16.mxu1 %v17383_v45 }
 0xbdf   :  { %13447 = vmatpush3.bf16.msra.mxu0 %v15416_v27 }
 0xbe0   :  { %13448 = vmatprep.subr.bf16.mxu0 %v17383_v45 }
 0xbe3   :  { %13450 = vmatpush3.bf16.msra.mxu0 %v15421_v31 }
 0xbe4   :  { %13469 = vmatprep.subr.bf16.mxu0 %v17383_v45 }
 0xca9   :  { %v1240_v8 = vpop.f32.mrb[10].mxu0 }
 0xcaa   :  { %v1244_v9 = vadd.f32 %v1240_v8, %v495_v7  ;;  %v1144_v10 = vpop.f32.mrb[10].mxu1  ;;  %v11737_v11 = vpop.f32.mrb[11].mxu0 }
 0xcab   :  { %v1145_v12 = vadd.f32 %v1144_v10, %v15449_v38  ;;  %v11726_v13 = vpop.f32.mrb[11].mxu1 }
 0xcac   :  { %14908 = vtanh.f32 %v1244_v9  ;;  %v10617_v16 = vmul.f32 -1.442695, %v1244_v9 }
 0xcad   :  { %14910 = vtanh.f32 %v1145_v12  ;;  %v10615_v17 = vmul.f32 -1.442695, %v1145_v12 }
 0xcae   :  { %14912 = vpow2.f32 %v10617_v16 }
 0xcaf   :  { %14914 = vpow2.f32 %v10615_v17 }
 0xcb6   :  { %v14909_v14 = vpop.eup %14908 }
 0xcb7   :  { %v14911_v15 = vpop.eup %14910  ;;  %1254 = vrot.lane.b32.xlu0 %v14909_v14, %s15292_s0 }
 0xcb8   :  { %1157 = vrot.lane.b32.xlu1 %v14911_v15, %s15292_s0  ;;  %v14913_v18 = vpop.eup %14912 }
 0xcb9   :  { %v14915_v19 = vpop.eup %14914  ;;  %v1248_v20 = vadd.f32 1.0, %v14913_v18 }
 0xcba   :  { %v1151_v21 = vadd.f32 1.0, %v14915_v19 }
 0xcbb   :  { %14916 = vrcp.f32 %v1248_v20 }
 0xcbc   :  { %14918 = vrcp.f32 %v1151_v21 }
 0xcc5   :  { %v14917_v23 = vpop.eup %14916 }
 0xcc6   :  { %v14919_v26 = vpop.eup %14918  ;;  %v1252_v32 = vmul.f32 %v14917_v23, %v15500_v53 }
 0xcc7   :  { %v1155_v6 = vmul.f32 %v14919_v26, %v15502_v55 }
 0xd29   :  { %v1255_v25 = vpop.permute.xlu0 %1254 }
 0xd2a   :  { %v1257_v28 = vmul.f32 %v14917_v23, %v1255_v25  ;;  %v1158_v29 = vpop.permute.xlu1 %1157 }
 0xd2b   :  { %v1160_v30 = vmul.f32 %v14919_v26, %v1158_v29 }
 0xd2c   :  { %1259 = vrot.lane.b32.xlu0 %v1257_v28, %s15292_s0 }
 0xd2d   :  { %1162 = vrot.lane.b32.xlu1 %v1160_v30, %s15292_s0 }
 0xd9e   :  { %v1260_v33 = vpop.permute.xlu0 %1259 }
 0xd9f   :  { %v15539_v34 = vadd.f32 %v1260_v33, %v1252_v32  ;;  %v1163_v35 = vpop.permute.xlu1 %1162 }
 0xda0   :  { %v15541_v36 = vadd.f32 %v1163_v35, %v1155_v6  ;;  %v511_v6 = vcombine.high %v15571_v52, %v15571_v52 }
 0xda1   :  { %14920 = vtanh.f32 %v15539_v34 }
 0xda2   :  { %14922 = vtanh.f32 %v15541_v36 }
 0xdab   :  { %v14921_v37 = vpop.eup %14920 }
 0xdac   :  { %v14923_v39 = vpop.eup %14922  ;;  %1265 = vrot.lane.b32.xlu0 %v14921_v37, %s15292_s0 }
 0xdad   :  { %1168 = vrot.lane.b32.xlu1 %v14923_v39, %s15292_s0 }
 0xe1e   :  { %v1266_v40 = vpop.permute.xlu0 %1265 }
 0xe1f   :  { %v1268_v41 = vmul.f32 %v14917_v23, %v1266_v40  ;;  %v1169_v42 = vpop.permute.xlu1 %1168 }
 0xe20   :  { %v1171_v43 = vmul.f32 %v14919_v26, %v1169_v42 }
 0xe21   :  { %v1276_v46 = vrot.slane %v1268_v41, %v15395_v5 }
 0xe22   :  { %1281 = vrot.lane.b32.xlu1 %v1171_v43, %s15294_s14 }
 0xe23   :  { %1277 = vrot.lane.b32.xlu0 %v1276_v46, %s15293_s2 }
 0xe94   :  { %v1282_v47 = vpop.permute.xlu1 %1281 }
 0xe95   :  { %v1278_v48 = vpop.permute.xlu0 %1277 }
 0xe96   :  { %v1284_v51 = vsel %vm134_vm1, %v1278_v48, %v1282_v47  ;;  %11766 = vmatmul.mubr.msk.f32.vlgmr.msra.gmra.mrb[12].mxu1 %vm134_vm1, %v1278_v48 }
 0xe97   :  { %11755 = vmatmul.mubr.msk.f32.vlgmr.msra.gmra.mrb[12].mxu0 %vm654_vm3, %v1284_v51  ;;  %13459 = vmatpush3.bf16.msra.mxu1 %v15409_v22 }
 0xe98   :  { %13460 = vmatprep.subr.bf16.mxu1 %v17383_v45  ;;  %13471 = vmatpush3.bf16.msra.mxu0 %v15364_v44 }
 0xe99   :  { %13472 = vmatprep.subr.bf16.mxu0 %v17383_v45  ;;  %11795 = vmatprep.mubr.msk.f32.mxu0 %vm15289_vm2, %v17389_v50 }
 0xe9a   :  { %11784 = vmatprep.mubr.msk.f32.mxu1 %vm15289_vm2, %v17389_v50 }
 0xe9b   :  { %13462 = vmatpush3.bf16.msra.mxu1 %v15412_v24 }
 0xe9c   :  { %13463 = vmatprep.subr.bf16.mxu1 %v17383_v45  ;;  %13474 = vmatpush3.bf16.msra.mxu0 %v15369_v49 }
 0xe9d   :  { %13475 = vmatprep.subr.bf16.mxu0 %v17383_v45 }
 0xe9f   :  { %13465 = vmatpush3.bf16.msra.mxu1 %v15416_v27 }
 0xea0   :  { %13466 = vmatprep.subr.bf16.mxu1 %v17383_v45 }
 0xea3   :  { %13468 = vmatpush3.bf16.msra.mxu1 %v15421_v31 }
 0xea4   :  { %13487 = vmatprep.subr.bf16.mxu1 %v17383_v45 }
 0xf69   :  { %v1450_v53 = vpop.f32.mrb[12].mxu1 }
 0xf6a   :  { %v1454_v54 = vadd.f32 %v1450_v53, %v15571_v52  ;;  %v1354_v55 = vpop.f32.mrb[12].mxu0  ;;  %v11767_v56 = vpop.f32.mrb[13].mxu1 }
 0xf6b   :  { %v1355_v58 = vadd.f32 %v1354_v55, %v15449_v38  ;;  %v11756_v59 = vpop.f32.mrb[13].mxu0 }
 0xf6c   :  { %14924 = vtanh.f32 %v1454_v54  ;;  %v10621_v62 = vmul.f32 -1.442695, %v1454_v54 }
 0xf6d   :  { %14926 = vtanh.f32 %v1355_v58  ;;  %v10619_v63 = vmul.f32 -1.442695, %v1355_v58 }
 0xf6e   :  { %14928 = vpow2.f32 %v10621_v62 }
 0xf6f   :  { %14930 = vpow2.f32 %v10619_v63 }
 0xf76   :  { %v14925_v60 = vpop.eup %14924 }
 0xf77   :  { %v14927_v61 = vpop.eup %14926  ;;  %1464 = vrot.lane.b32.xlu0 %v14925_v60, %s15292_s0 }
 0xf78   :  { %1367 = vrot.lane.b32.xlu1 %v14927_v61, %s15292_s0  ;;  %v14929_v1 = vpop.eup %14928 }
 0xf79   :  { %v14931_v2 = vpop.eup %14930  ;;  %v1458_v4 = vadd.f32 1.0, %v14929_v1 }
 0xf7a   :  { %v1361_v7 = vadd.f32 1.0, %v14931_v2 }
 0xf7b   :  { %14932 = vrcp.f32 %v1458_v4 }
 0xf7c   :  { %14934 = vrcp.f32 %v1361_v7 }
 0xf85   :  { %v14933_v8 = vpop.eup %14932 }
 0xf86   :  { %v14935_v10 = vpop.eup %14934  ;;  %v1462_v14 = vmul.f32 %v14933_v8, %v15539_v34 }
 0xf87   :  { %v1365_v16 = vmul.f32 %v14935_v10, %v15541_v36 }
 0xfe9   :  { %v1465_v9 = vpop.permute.xlu0 %1464 }
 0xfea   :  { %v1467_v11 = vmul.f32 %v14933_v8, %v1465_v9  ;;  %v1368_v12 = vpop.permute.xlu1 %1367 }
 0xfeb   :  { %v1370_v13 = vmul.f32 %v14935_v10, %v1368_v12 }
 0xfec   :  { %1469 = vrot.lane.b32.xlu0 %v1467_v11, %s15292_s0 }
 0xfed   :  { %1372 = vrot.lane.b32.xlu1 %v1370_v13, %s15292_s0 }
0x105e   :  { %v1470_v15 = vpop.permute.xlu0 %1469 }
0x105f   :  { %v15581_v17 = vadd.f32 %v1470_v15, %v1462_v14  ;;  %v1373_v18 = vpop.permute.xlu1 %1372 }
0x1060   :  { %v15583_v19 = vadd.f32 %v1373_v18, %v1365_v16 }
0x1061   :  { %14936 = vtanh.f32 %v15581_v17 }
0x1062   :  { %14938 = vtanh.f32 %v15583_v19 }
0x106b   :  { %v14937_v20 = vpop.eup %14936 }
0x106c   :  { %v14939_v21 = vpop.eup %14938  ;;  %1475 = vrot.lane.b32.xlu0 %v14937_v20, %s15292_s0 }
0x106d   :  { %1378 = vrot.lane.b32.xlu1 %v14939_v21, %s15292_s0 }
0x10de   :  { %v1476_v23 = vpop.permute.xlu0 %1475 }
0x10df   :  { %v1478_v25 = vmul.f32 %v14933_v8, %v1476_v23  ;;  %v1379_v26 = vpop.permute.xlu1 %1378 }
0x10e0   :  { %v1381_v28 = vmul.f32 %v14935_v10, %v1379_v26 }
0x10e1   :  { %v1486_v29 = vrot.slane %v1478_v25, %v15395_v5 }
0x10e2   :  { %1491 = vrot.lane.b32.xlu1 %v1381_v28, %s15294_s14 }
0x10e3   :  { %1487 = vrot.lane.b32.xlu0 %v1486_v29, %s15293_s2 }
0x1154   :  { %v1492_v30 = vpop.permute.xlu1 %1491 }
0x1155   :  { %v1488_v32 = vpop.permute.xlu0 %1487 }
0x1156   :  { %v1494_v33 = vsel %vm134_vm1, %v1488_v32, %v1492_v30  ;;  %11796 = vmatmul.mubr.msk.f32.vlgmr.msra.gmra.mrb[14].mxu0 %vm134_vm1, %v1488_v32 }
0x1157   :  { %11785 = vmatmul.mubr.msk.f32.vlgmr.msra.gmra.mrb[14].mxu1 %vm654_vm3, %v1494_v33  ;;  %13477 = vmatpush3.bf16.msra.mxu0 %v15409_v22 }
0x1158   :  { %13478 = vmatprep.subr.bf16.mxu0 %v17383_v45  ;;  %13489 = vmatpush3.bf16.msra.mxu1 %v15364_v44 }
0x1159   :  { %13490 = vmatprep.subr.bf16.mxu1 %v17383_v45  ;;  %11825 = vmatprep.mubr.msk.f32.mxu1 %vm15289_vm2, %v17389_v50 }
0x115a   :  { %11814 = vmatprep.mubr.msk.f32.mxu0 %vm15289_vm2, %v17389_v50 }
0x115b   :  { %13480 = vmatpush3.bf16.msra.mxu0 %v15412_v24 }
0x115c   :  { %13481 = vmatprep.subr.bf16.mxu0 %v17383_v45  ;;  %13492 = vmatpush3.bf16.msra.mxu1 %v15369_v49 }
0x115d   :  { %13493 = vmatprep.subr.bf16.mxu1 %v17383_v45 }
0x115f   :  { %13483 = vmatpush3.bf16.msra.mxu0 %v15416_v27 }
0x1160   :  { %13484 = vmatprep.subr.bf16.mxu0 %v17383_v45 }
0x1163   :  { %13486 = vmatpush3.bf16.msra.mxu0 %v15421_v31 }
0x1164   :  { %13505 = vmatprep.subr.bf16.mxu0 %v17383_v45 }
0x1229   :  { %v1660_v34 = vpop.f32.mrb[14].mxu0 }
0x122a   :  { %v1664_v35 = vadd.f32 %v1660_v34, %v511_v6  ;;  %v1564_v36 = vpop.f32.mrb[14].mxu1  ;;  %v11797_v37 = vpop.f32.mrb[15].mxu0 }
0x122b   :  { %v1565_v39 = vadd.f32 %v1564_v36, %v15449_v38  ;;  %v11786_v40 = vpop.f32.mrb[15].mxu1 }
0x122c   :  { %14940 = vtanh.f32 %v1664_v35  ;;  %v10625_v43 = vmul.f32 -1.442695, %v1664_v35 }
0x122d   :  { %14942 = vtanh.f32 %v1565_v39  ;;  %v10623_v46 = vmul.f32 -1.442695, %v1565_v39 }
0x122e   :  { %14944 = vpow2.f32 %v10625_v43 }
0x122f   :  { %14946 = vpow2.f32 %v10623_v46 }
0x1236   :  { %v14941_v41 = vpop.eup %14940 }
0x1237   :  { %v14943_v42 = vpop.eup %14942  ;;  %1674 = vrot.lane.b32.xlu0 %v14941_v41, %s15292_s0 }
0x1238   :  { %1577 = vrot.lane.b32.xlu1 %v14943_v42, %s15292_s0  ;;  %v14945_v47 = vpop.eup %14944 }
0x1239   :  { %v14947_v48 = vpop.eup %14946  ;;  %v1668_v51 = vadd.f32 1.0, %v14945_v47 }
0x123a   :  { %v1571_v52 = vadd.f32 1.0, %v14947_v48 }
0x123b   :  { %14948 = vrcp.f32 %v1668_v51 }
0x123c   :  { %14950 = vrcp.f32 %v1571_v52 }
0x1245   :  { %v14949_v53 = vpop.eup %14948 }
0x1246   :  { %v14951_v55 = vpop.eup %14950  ;;  %v1672_v60 = vmul.f32 %v14949_v53, %v15581_v17 }
0x1247   :  { %v1575_v62 = vmul.f32 %v14951_v55, %v15583_v19 }
0x12a9   :  { %v1675_v54 = vpop.permute.xlu0 %1674 }
0x12aa   :  { %v1677_v56 = vmul.f32 %v14949_v53, %v1675_v54  ;;  %v1578_v58 = vpop.permute.xlu1 %1577 }
0x12ab   :  { %v1580_v59 = vmul.f32 %v14951_v55, %v1578_v58 }
0x12ac   :  { %1679 = vrot.lane.b32.xlu0 %v1677_v56, %s15292_s0 }
0x12ad   :  { %1582 = vrot.lane.b32.xlu1 %v1580_v59, %s15292_s0 }
0x131e   :  { %v1680_v61 = vpop.permute.xlu0 %1679 }
0x131f   :  { %v15620_v63 = vadd.f32 %v1680_v61, %v1672_v60  ;;  %v1583_v1 = vpop.permute.xlu1 %1582 }
0x1320   :  { %v15622_v2 = vadd.f32 %v1583_v1, %v1575_v62 }
0x1321   :  { %14952 = vtanh.f32 %v15620_v63 }
0x1322   :  { %14954 = vtanh.f32 %v15622_v2 }
0x132b   :  { %v14953_v4 = vpop.eup %14952 }
0x132c   :  { %v14955_v7 = vpop.eup %14954  ;;  %1685 = vrot.lane.b32.xlu0 %v14953_v4, %s15292_s0 }
0x132d   :  { %1588 = vrot.lane.b32.xlu1 %v14955_v7, %s15292_s0 }
0x139e   :  { %v1686_v8 = vpop.permute.xlu0 %1685 }
0x139f   :  { %v1688_v9 = vmul.f32 %v14949_v53, %v1686_v8  ;;  %v1589_v10 = vpop.permute.xlu1 %1588 }
0x13a0   :  { %v1591_v11 = vmul.f32 %v14951_v55, %v1589_v10 }
0x13a1   :  { %v1696_v12 = vrot.slane %v1688_v9, %v15395_v5 }
0x13a2   :  { %1701 = vrot.lane.b32.xlu1 %v1591_v11, %s15294_s14 }
0x13a3   :  { %1697 = vrot.lane.b32.xlu0 %v1696_v12, %s15293_s2 }
0x1414   :  { %v1702_v13 = vpop.permute.xlu1 %1701 }
0x1415   :  { %v1698_v14 = vpop.permute.xlu0 %1697 }
0x1416   :  { %v1704_v15 = vsel %vm134_vm1, %v1698_v14, %v1702_v13  ;;  %11826 = vmatmul.mubr.msk.f32.vlgmr.msra.gmra.mrb[16].mxu1 %vm134_vm1, %v1698_v14 }
0x1417   :  { %11815 = vmatmul.mubr.msk.f32.vlgmr.msra.gmra.mrb[16].mxu0 %vm654_vm3, %v1704_v15  ;;  %13495 = vmatpush3.bf16.msra.mxu1 %v15409_v22 }
0x1418   :  { %13496 = vmatprep.subr.bf16.mxu1 %v17383_v45  ;;  %13507 = vmatpush3.bf16.msra.mxu0 %v15364_v44  ;;  %v496_v44 = vcombine.high %v15392_v3, %v15392_v3 }
0x1419   :  { %13508 = vmatprep.subr.bf16.mxu0 %v17383_v45  ;;  %11855 = vmatprep.mubr.msk.f32.mxu0 %vm15289_vm2, %v17389_v50 }
0x141a   :  { %11844 = vmatprep.mubr.msk.f32.mxu1 %vm15289_vm2, %v17389_v50  ;;  %v15653_v16 = vrot.slane %v496_v44, %v15395_v5 }
0x141b   :  { %13498 = vmatpush3.bf16.msra.mxu1 %v15412_v24 }
0x141c   :  { %13499 = vmatprep.subr.bf16.mxu1 %v17383_v45  ;;  %13510 = vmatpush3.bf16.msra.mxu0 %v15369_v49 }
0x141d   :  { %13511 = vmatprep.subr.bf16.mxu0 %v17383_v45 }
0x141f   :  { %13501 = vmatpush3.bf16.msra.mxu1 %v15416_v27 }
0x1420   :  { %13502 = vmatprep.subr.bf16.mxu1 %v17383_v45 }
0x1423   :  { %13504 = vmatpush3.bf16.msra.mxu1 %v15421_v31 }
0x1424   :  { %13523 = vmatprep.subr.bf16.mxu1 %v17383_v45 }
0x14e9   :  { %v1870_v17 = vpop.f32.mrb[16].mxu1 }
0x14ea   :  { %v1874_v18 = vadd.f32 %v1870_v17, %v15653_v16  ;;  %v1774_v49 = vpop.f32.mrb[16].mxu0  ;;  %v11827_v19 = vpop.f32.mrb[17].mxu1 }
0x14eb   :  { %v1775_v20 = vadd.f32 %v1774_v49, %v15449_v38  ;;  %v11816_v21 = vpop.f32.mrb[17].mxu0 }
0x14ec   :  { %14956 = vtanh.f32 %v1874_v18  ;;  %v10629_v3 = vmul.f32 -1.442695, %v1874_v18 }
0x14ed   :  { %14958 = vtanh.f32 %v1775_v20  ;;  %v10627_v26 = vmul.f32 -1.442695, %v1775_v20 }
0x14ee   :  { %14960 = vpow2.f32 %v10629_v3 }
0x14ef   :  { %14962 = vpow2.f32 %v10627_v26 }
0x14f6   :  { %v14957_v23 = vpop.eup %14956 }
0x14f7   :  { %v14959_v25 = vpop.eup %14958  ;;  %1884 = vrot.lane.b32.xlu0 %v14957_v23, %s15292_s0 }
0x14f8   :  { %1787 = vrot.lane.b32.xlu1 %v14959_v25, %s15292_s0  ;;  %v14961_v28 = vpop.eup %14960 }
0x14f9   :  { %v14963_v29 = vpop.eup %14962  ;;  %v1878_v30 = vadd.f32 1.0, %v14961_v28 }
0x14fa   :  { %v1781_v32 = vadd.f32 1.0, %v14963_v29 }
0x14fb   :  { %14964 = vrcp.f32 %v1878_v30 }
0x14fc   :  { %14966 = vrcp.f32 %v1781_v32 }
0x1505   :  { %v14965_v33 = vpop.eup %14964 }
0x1506   :  { %v14967_v34 = vpop.eup %14966  ;;  %v1882_v39 = vmul.f32 %v14965_v33, %v15620_v63 }
0x1507   :  { %v1785_v41 = vmul.f32 %v14967_v34, %v15622_v2 }
0x1569   :  { %v1885_v6 = vpop.permute.xlu0 %1884 }
0x156a   :  { %v1887_v35 = vmul.f32 %v14965_v33, %v1885_v6  ;;  %v1788_v36 = vpop.permute.xlu1 %1787 }
0x156b   :  { %v1790_v37 = vmul.f32 %v14967_v34, %v1788_v36 }
0x156c   :  { %1889 = vrot.lane.b32.xlu0 %v1887_v35, %s15292_s0 }
0x156d   :  { %1792 = vrot.lane.b32.xlu1 %v1790_v37, %s15292_s0 }
0x15de   :  { %v1890_v40 = vpop.permute.xlu0 %1889 }
0x15df   :  { %v1892_v42 = vadd.f32 %v1890_v40, %v1882_v39  ;;  %v1793_v43 = vpop.permute.xlu1 %1792 }
0x15e0   :  { %v1795_v46 = vadd.f32 %v1793_v43, %v1785_v41 }
0x15e1   :  { %14968 = vtanh.f32 %v1892_v42 }
0x15e2   :  { %14970 = vtanh.f32 %v1795_v46 }
0x15eb   :  { %v14969_v47 = vpop.eup %14968 }
0x15ec   :  { %v14971_v48 = vpop.eup %14970  ;;  %1895 = vrot.lane.b32.xlu0 %v14969_v47, %s15292_s0 }
0x15ed   :  { %1798 = vrot.lane.b32.xlu1 %v14971_v48, %s15292_s0 }
0x165e   :  { %v1896_v51 = vpop.permute.xlu0 %1895 }
0x165f   :  { %v1898_v52 = vmul.f32 %v14965_v33, %v1896_v51  ;;  %v1799_v53 = vpop.permute.xlu1 %1798  ;;  %v2228_v51 = vld [vmem:[#allocation5 + $0x5b0] sm:$0xff] }
0x1660   :  { %v1801_v54 = vmul.f32 %v14967_v34, %v1799_v53 }
0x1661   :  { %v1906_v55 = vrot.slane %v1898_v52, %v15395_v5  ;;  %v2229_v52 = vld [vmem:[#allocation5 + $0x5c0] sm:$0xff] }
0x1662   :  { %1911 = vrot.lane.b32.xlu1 %v1801_v54, %s15294_s14  ;;  %v2230_v54 = vld [vmem:[#allocation5 + $0x5d0] sm:$0xff] }
0x1663   :  { %1907 = vrot.lane.b32.xlu0 %v1906_v55, %s15293_s2  ;;  %v13527_v55 = vpack.c.bf16 %v2230_v54, %v2229_v52  ;;  %v2479_v52 = vld [vmem:[#allocation5 + $0x438] sm:$0xff] }
0x16d4   :  { %v1912_v56 = vpop.permute.xlu1 %1911 }
0x16d5   :  { %v1908_v58 = vpop.permute.xlu0 %1907 }
0x16d6   :  { %v1914_v59 = vsel %vm134_vm1, %v1908_v58, %v1912_v56  ;;  %11856 = vmatmul.mubr.msk.f32.vlgmr.msra.gmra.mrb[18].mxu0 %vm134_vm1, %v1908_v58 }
0x16d7   :  { %11845 = vmatmul.mubr.msk.f32.vlgmr.msra.gmra.mrb[18].mxu1 %vm654_vm3, %v1914_v59  ;;  %13513 = vmatpush3.bf16.msra.mxu0 %v15409_v22  ;;  %v512_v22 = vcombine.high %v15653_v16, %v15653_v16 }
0x16d8   :  { %13514 = vmatprep.subr.bf16.mxu0 %v17383_v45  ;;  %11874 = vmatprep.mubr.msk.f32.mxu0 %vm15289_vm2, %v17389_v50 }
0x16d9   :  { %11885 = vmatprep.mubr.msk.f32.mxu1 %vm15289_vm2, %v17389_v50 }
0x16db   :  { %13516 = vmatpush3.bf16.msra.mxu0 %v15412_v24 }
0x16dc   :  { %13517 = vmatprep.subr.bf16.mxu0 %v17383_v45 }
0x16df   :  { %13519 = vmatpush3.bf16.msra.mxu0 %v15416_v27 }
0x16e0   :  { %13520 = vmatprep.subr.bf16.mxu0 %v17383_v45 }
0x16e3   :  { %13522 = vmatpush3.bf16.msra.mxu0 %v15421_v31 }
0x17a9   :  { %v2080_v60 = vpop.f32.mrb[18].mxu0 }
0x17aa   :  { %v2084_v61 = vadd.f32 %v2080_v60, %v512_v22  ;;  %v1984_v62 = vpop.f32.mrb[18].mxu1  ;;  %v11857_v63 = vpop.f32.mrb[19].mxu0 }
0x17ab   :  { %v1985_v1 = vadd.f32 %v1984_v62, %v15449_v38  ;;  %v11846_v2 = vpop.f32.mrb[19].mxu1  ;;  %v2309_v62 = vld [vmem:[#allocation5 + $0x600] sm:$0xff] }
0x17ac   :  { %14972 = vtanh.f32 %v2084_v61  ;;  %v10633_v27 = vmul.f32 -1.442695, %v2084_v61  ;;  %v2308_v61 = vld [vmem:[#allocation5 + $0x5f0] sm:$0xff]  ;;  %v2311_v2 = vld [vmem:[#allocation5 + $0x620] sm:$0xff] }
0x17ad   :  { %14974 = vtanh.f32 %v1985_v1  ;;  %v10631_v31 = vmul.f32 -1.442695, %v1985_v1  ;;  %v13530_v63 = vpack.c.bf16 %v2309_v62, %v2308_v61  ;;  %v2310_v1 = vld [vmem:[#allocation5 + $0x610] sm:$0xff]  ;;  %v2483_v61 = vld [vmem:[#allocation5 + $0x458] sm:$0xff] }
0x17ae   :  { %14976 = vpow2.f32 %v10633_v27  ;;  %v2312_v27 = vld [vmem:[#allocation5 + $0x630] sm:$0xff] }
0x17af   :  { %14978 = vpow2.f32 %v10631_v31  ;;  %v2313_v31 = vld [vmem:[#allocation5 + $0x640] sm:$0xff] }
0x17b6   :  { %v14973_v24 = vpop.eup %14972 }
0x17b7   :  { %v14975_v4 = vpop.eup %14974  ;;  %2094 = vrot.lane.b32.xlu0 %v14973_v24, %s15292_s0 }
0x17b8   :  { %1997 = vrot.lane.b32.xlu1 %v14975_v4, %s15292_s0  ;;  %v14977_v7 = vpop.eup %14976  ;;  %v13533_v4 = vpack.c.bf16 %v2311_v2, %v2310_v1  ;;  %v2480_v2 = vld [vmem:[#allocation5 + $0x440] sm:$0xff] }
0x17b9   :  { %v14979_v8 = vpop.eup %14978  ;;  %v2088_v9 = vadd.f32 1.0, %v14977_v7  ;;  %v13536_v7 = vpack.c.bf16 %v2313_v31, %v2312_v27  ;;  %v2485_v27 = vld [vmem:[#allocation5 + $0x468] sm:$0xff]  ;;  %v2487_v31 = vld [vmem:[#allocation5 + $0x478] sm:$0xff] }
0x17ba   :  { %v1991_v10 = vadd.f32 1.0, %v14979_v8  ;;  %v2314_v8 = vld [vmem:[#allocation5 + $0x650] sm:$0xff] }
0x17bb   :  { %14980 = vrcp.f32 %v2088_v9  ;;  %v2315_v9 = vld [vmem:[#allocation5 + $0x660] sm:$0xff] }
0x17bc   :  { %14982 = vrcp.f32 %v1991_v10  ;;  %v13539_v10 = vpack.c.bf16 %v2315_v9, %v2314_v8  ;;  %v2484_v8 = vld [vmem:[#allocation5 + $0x460] sm:$0xff]  ;;  %v2486_v9 = vld [vmem:[#allocation5 + $0x470] sm:$0xff] }
0x17c5   :  { %v14981_v11 = vpop.eup %14980 }
0x17c6   :  { %v14983_v13 = vpop.eup %14982  ;;  %v2092_v16 = vmul.f32 %v14981_v11, %v1892_v42 }
0x17c7   :  { %v1995_v18 = vmul.f32 %v14983_v13, %v1795_v46 }
0x1829   :  { %v2095_v12 = vpop.permute.xlu0 %2094 }
0x182a   :  { %v2097_v14 = vmul.f32 %v14981_v11, %v2095_v12  ;;  %v1998_v15 = vpop.permute.xlu1 %1997 }
0x182b   :  { %v2000_v44 = vmul.f32 %v14983_v13, %v1998_v15 }
0x182c   :  { %2099 = vrot.lane.b32.xlu0 %v2097_v14, %s15292_s0 }
0x182d   :  { %2002 = vrot.lane.b32.xlu1 %v2000_v44, %s15292_s0  ;;  %v2316_v44 = vld [vmem:[#allocation5 + $0x670] ss:$0 sm:$0xff] }
0x189e   :  { %v2100_v17 = vpop.permute.xlu0 %2099 }
0x189f   :  { %v15689_v49 = vadd.f32 %v2100_v17, %v2092_v16  ;;  %v2003_v19 = vpop.permute.xlu1 %2002 }
0x18a0   :  { %v2005_v20 = vadd.f32 %v2003_v19, %v1995_v18 }
0x18a1   :  { %14984 = vtanh.f32 %v15689_v49 }
0x18a2   :  { %14986 = vtanh.f32 %v2005_v20 }
0x18ab   :  { %v14985_v21 = vpop.eup %14984 }
0x18ac   :  { %v14987_v23 = vpop.eup %14986  ;;  %2105 = vrot.lane.b32.xlu0 %v14985_v21, %s15292_s0 }
0x18ad   :  { %2008 = vrot.lane.b32.xlu1 %v14987_v23, %s15292_s0  ;;  %v521_v23 = vcombine.high %v15383_v57, %v15383_v57 }
0x191e   :  { %v2106_v25 = vpop.permute.xlu0 %2105 }
0x191f   :  { %v2108_v3 = vmul.f32 %v14981_v11, %v2106_v25  ;;  %v2009_v26 = vpop.permute.xlu1 %2008  ;;  %v2231_v11 = vld [vmem:[#allocation5 + $0x5e0] ss:$0 sm:$0xff]  ;;  %v528_v25 = vrot.slane %v521_v23, %v15395_v5 }
0x1920   :  { %v2011_v28 = vmul.f32 %v14983_v13, %v2009_v26 }
0x1921   :  { %v2116_v29 = vrot.slane %v2108_v3, %v15395_v5 }
0x1922   :  { %2121 = vrot.lane.b32.xlu1 %v2011_v28, %s15294_s14 }
0x1923   :  { %2117 = vrot.lane.b32.xlu0 %v2116_v29, %s15293_s2  ;;  %v2441_v29 = vrot.slane %v15689_v49, %v15395_v5 }
0x1994   :  { %v2122_v30 = vpop.permute.xlu1 %2121 }
0x1995   :  { %v2118_v32 = vpop.permute.xlu0 %2117 }
0x1996   :  { %v2124_v33 = vsel %vm134_vm1, %v2118_v32, %v2122_v30  ;;  %v2391_v30 = vld [vmem:[#allocation2] sm:$0xf] }
0x1997   :  { %11875 = vmatmul.mubr.msk.f32.vlgmr.msra.gmra.mrb[20].mxu0 %vm654_vm3, %v2124_v33  ;;  %v2469_v33 = vld [vmem:[#allocation5 + $0x3e8] sm:$0xff] }
0x1998   :  { %2569 = vmatprep.mubr.f32.mxu0 %v17389_v50 }
0x1a6a   :  { %v2194_v6 = vpop.f32.mrb[20].mxu0 }
0x1a6b   :  { %v2195_v34 = vadd.f32 %v2194_v6, %v15449_v38  ;;  %v11876_v35 = vpop.f32.mrb[21].mxu0  ;;  %v2227_v38 = vld [vmem:[#allocation5 + $0x5a0] sm:$0xff]  ;;  %v2471_v6 = vld [vmem:[#allocation5 + $0x3f8] sm:$0xff] }
0x1a6c   :  { %v13524_v53 = vpack.c.bf16 %v2228_v51, %v2227_v38  ;;  %v2477_v38 = vld [vmem:[#allocation5 + $0x428] sm:$0xff] }
0x1a6d   :  { %14988 = vtanh.f32 %v2195_v34  ;;  %v10635_v37 = vmul.f32 -1.442695, %v2195_v34  ;;  %v2468_v34 = vld [vmem:[#allocation5 + $0x3e0] sm:$0xff] }
0x1a6e   :  { %13525 = vmatpush3.bf16.msra.mxu1 %v13524_v53 }
0x1a6f   :  { %14990 = vpow2.f32 %v10635_v37  ;;  %13526 = vmatprep.subr.bf16.mxu1 %v17383_v45  ;;  %v2470_v37 = vld [vmem:[#allocation5 + $0x3f0] sm:$0xff] }
0x1a72   :  { %13528 = vmatpush3.bf16.msra.mxu1 %v13527_v55  ;;  %v15742_v55 = vpack.c.bf16 %v2479_v52, %v2477_v38  ;;  %v2621_v52 = vld [vmem:[#allocation5 + $0x4c0] sm:$0xff] }
0x1a73   :  { %13529 = vmatprep.subr.bf16.mxu1 %v17383_v45 }
0x1a74   :  { %17485 = vst [vmem:[#allocation14_spill] sm:$0xff] %v15742_v55 }
0x1a77   :  { %v14989_v36 = vpop.eup %14988 }
0x1a78   :  { %2207 = vrot.lane.b32.xlu0 %v14989_v36, %s15292_s0  ;;  %v15729_v36 = vpack.c.bf16 %v2471_v6, %v2469_v33 }
0x1a79   :  { %v14991_v39 = vpop.eup %14990 }
0x1a7a   :  { %v2201_v40 = vadd.f32 1.0, %v14991_v39  ;;  %v2473_v39 = vld [vmem:[#allocation5 + $0x408] sm:$0xff]  ;;  %13542 = vmatprep.subr.bf16.mxu0 %v15729_v36 }
0x1a7c   :  { %14992 = vrcp.f32 %v2201_v40  ;;  %v2475_v40 = vld [vmem:[#allocation5 + $0x418] sm:$0xff] }
0x1a86   :  { %v14993_v41 = vpop.eup %14992 }
0x1a87   :  { %v2205_v46 = vmul.f32 %v14993_v41, %v2005_v20 }
0x1aea   :  { %v2208_v42 = vpop.permute.xlu0 %2207 }
0x1aeb   :  { %v2210_v43 = vmul.f32 %v14993_v41, %v2208_v42  ;;  %v15731_v42 = vpack.c.bf16 %v2470_v37, %v2468_v34  ;;  %v2616_v34 = vld [vmem:[#allocation5 + $0x498] sm:$0xff]  ;;  %v2615_v37 = vld [vmem:[#allocation5 + $0x490] sm:$0xff] }
0x1aed   :  { %2212 = vrot.lane.b32.xlu1 %v2210_v43, %s15292_s0  ;;  %17482 = vst [vmem:[#allocation11_spill] sm:$0xff] %v15731_v42  ;;  %v15733_v43 = vpack.c.bf16 %v2475_v40, %v2473_v39  ;;  %13544 = vmatpush1.bf16.msra.mxu0 %v15731_v42  ;;  %v2617_v40 = vld [vmem:[#allocation5 + $0x4a0] sm:$0xff] }
0x1aef   :  { %17483 = vst [vmem:[#allocation12_spill] sm:$0xff] %v15733_v43  ;;  %13546 = vmatprep.subr.bf16.mxu0 %v15733_v43 }
0x1b5f   :  { %v2213_v47 = vpop.permute.xlu1 %2212 }
0x1b60   :  { %v15703_v48 = vadd.f32 %v2213_v47, %v2205_v46  ;;  %v2472_v46 = vld [vmem:[#allocation5 + $0x400] sm:$0xff]  ;;  %v2474_v47 = vld [vmem:[#allocation5 + $0x410] sm:$0xff] }
0x1b61   :  { %v15738_v53 = vpack.c.bf16 %v2474_v47, %v2472_v46  ;;  %v2622_v46 = vld [vmem:[#allocation5 + $0x4c8] sm:$0xff]  ;;  %v15802_v47 = vpack.c.bf16 %v2617_v40, %v2615_v37  ;;  %v2643_v37 = vld [vmem:[#allocation5 + $0x570] sm:$0xff]  ;;  %v2645_v40 = vld [vmem:[#allocation5 + $0x580] sm:$0xff] }
0x1b62   :  { %14994 = vtanh.f32 %v15703_v48 }
0x1b63   :  { %17484 = vst [vmem:[#allocation13_spill] sm:$0xff] %v15738_v53  ;;  %13548 = vmatpush1.bf16.msra.mxu0 %v15738_v53  ;;  %17493 = vst [vmem:[#allocation22_spill] sm:$0xff] %v15802_v47 }
0x1b64   :  { %13550 = vmatprep.subr.bf16.mxu0 %v15742_v55 }
0x1b6c   :  { %v14995_v56 = vpop.eup %14994 }
0x1b6d   :  { %2218 = vrot.lane.b32.xlu0 %v14995_v56, %s15292_s0  ;;  %v2476_v56 = vld [vmem:[#allocation5 + $0x420] sm:$0xff] }
0x1bdf   :  { %v2219_v58 = vpop.permute.xlu0 %2218 }
0x1be0   :  { %v2221_v59 = vmul.f32 %v14993_v41, %v2219_v58  ;;  %v2478_v58 = vld [vmem:[#allocation5 + $0x430] sm:$0xff] }
0x1be2   :  { %v2223_v22 = vrot.slane %v2221_v59, 6 }
0x1be4   :  { %v2226_v60 = vsel %vm2225_vm4, %v2108_v3, %v2223_v22  ;;  %v15721_v3 = vcombine.high %v528_v25, %v528_v25 }
0x1be5   :  { %2233 = vrot.lane.b32.xlu1 %v2226_v60, %s15293_s2  ;;  %v2481_v60 = vld [vmem:[#allocation5 + $0x448] sm:$0xff] }
0x1be6   :  { %v2457_v28 = vrot.slane %v15721_v3, %v15395_v5  ;;  %v15752_v1 = vpack.c.bf16 %v2483_v61, %v2481_v60  ;;  %v2625_v60 = vld [vmem:[#allocation5 + $0x4e0] sm:$0xff]  ;;  %v2628_v61 = vld [vmem:[#allocation5 + $0x4f8] sm:$0xff] }
0x1be8   :  { %17487 = vst [vmem:[#allocation16_spill] sm:$0xff] %v15752_v1 }
0x1c57   :  { %v2234_v24 = vpop.permute.xlu1 %2233 }
0x1c58   :  { %11886 = vmatmul.mubr.msk.f32.vlgmr.msra.gmra.mrb[20].mxu1 %vm134_vm1, %v2234_v24  ;;  %v2482_v24 = vld [vmem:[#allocation5 + $0x450] sm:$0xff] }
0x1c59   :  { %13531 = vmatpush3.bf16.msra.mxu1 %v13530_v63  ;;  %11904 = vmatprep.mubr.msk.f32.mxu1 %vm15289_vm2, %v17389_v50  ;;  %v15749_v63 = vpack.c.bf16 %v2478_v58, %v2476_v56  ;;  %v2626_v56 = vld [vmem:[#allocation5 + $0x4e8] sm:$0xff] }
0x1c5a   :  { %13532 = vmatprep.subr.bf16.mxu1 %v17383_v45 }
0x1c5b   :  { %17486 = vst [vmem:[#allocation15_spill] sm:$0xff] %v15749_v63  ;;  %13552 = vmatpush1.bf16.msra.mxu0 %v15749_v63 }
0x1c5c   :  { %13554 = vmatprep.subr.bf16.mxu0 %v15752_v1 }
0x1c5d   :  { %13534 = vmatpush3.bf16.msra.mxu1 %v13533_v4 }
0x1c5e   :  { %13535 = vmatprep.subr.bf16.mxu1 %v17383_v45 }
0x1c61   :  { %13537 = vmatpush3.bf16.msra.mxu1 %v13536_v7  ;;  %v15760_v7 = vpack.c.bf16 %v2487_v31, %v2485_v27  ;;  %v2629_v27 = vld [vmem:[#allocation5 + $0x500] sm:$0xff]  ;;  %v2632_v31 = vld [vmem:[#allocation5 + $0x518] sm:$0xff] }
0x1c62   :  { %13538 = vmatprep.subr.bf16.mxu1 %v17383_v45 }
0x1c63   :  { %17489 = vst [vmem:[#allocation18_spill] sm:$0xff] %v15760_v7 }
0x1c65   :  { %13540 = vmatpush3.bf16.msra.mxu1 %v13539_v10  ;;  %v15763_v10 = vpack.c.bf16 %v2486_v9, %v2484_v8  ;;  %v2634_v8 = vld [vmem:[#allocation5 + $0x528] sm:$0xff] }
0x1c67   :  { %17490 = vst [vmem:[#allocation19_spill] sm:$0xff] %v15763_v10 }
0x1d2b   :  { %v2303_v12 = vpop.f32.mrb[20].mxu1 }
0x1d2c   :  { %v2304_v13 = vadd.f32 %v2303_v12, %v2231_v11  ;;  %v11887_v14 = vpop.f32.mrb[21].mxu1 }
0x1d2e   :  { %v2307_v15 = vmax.f32 %v2304_v13, 0.0 }
0x1d30   :  { %11905 = vmatmul.mubr.msk.f32.vlgmr.msra.gmra.mrb[22].mxu1 %vm654_vm3, %v2307_v15 }
0x1d31   :  { %2724 = vmatprep.mubr.f32.mxu1 %v17389_v50 }
0x1e03   :  { %v2386_v16 = vpop.f32.mrb[22].mxu1 }
0x1e04   :  { %v2387_v17 = vadd.f32 %v2386_v16, %v2316_v44  ;;  %v11906_v18 = vpop.f32.mrb[23].mxu1 }
0x1e05   :  { %v2489_v18 = vld [vmem:[#allocation5 + $0x480] ss:$8 sm:$0x3] }
0x1e06   :  { %v2390_v19 = vmax.f32 %v2387_v17, 0.0  ;;  %v2497_v17 = vsub.s32 1, %v15390_v0 }
0x1e08   :  { %v2392_v20 = vmul.f32 0.5, %v2390_v19 }
0x1e0a   :  { %v2393_v21 = vmul.f32 1.442695, %v2392_v20 }
0x1e0c   :  { %14996 = vpow2.f32 %v2393_v21 }
0x1e16   :  { %v14997_v26 = vpop.eup %14996 }
0x1e17   :  { %2396 = vrot.lane.b32.xlu0 %v14997_v26, %s15294_s14 }
0x1e1b   :  { %2458 = vrot.lane.b32.xlu0 %v2457_v28, %s15295_s15 }
0x1e1f   :  { %2442 = vrot.lane.b32.xlu0 %v2441_v29, %s15294_s14 }
0x1e89   :  { %v2397_v32 = vpop.permute.xlu0 %2396 }
0x1e8a   :  { %v2399_v57 = vmul.f32 %v2397_v32, %v2391_v30 }
0x1e8c   :  { %v2400_v35 = vadd.f32 %v2399_v57, %v2390_v19  ;;  %v15783_v19 = vrot.slane %v2489_v18, %v2497_v17 }
0x1e8d   :  { %v2459_v41 = vpop.permute.xlu0 %2458 }
0x1e8e   :  { %v2408_v51 = vrot.slane %v2400_v35, %v15395_v5  ;;  %v2461_v15 = vsel %vm45_vm0, %v15721_v3, %v2459_v41  ;;  %17491 = vst [vmem:[#allocation20_spill] sm:$0xff] %v15783_v19  ;;  %v2493_v3 = vsub.s32 0, %v15390_v0  ;;  %v2618_v35 = vld [vmem:[#allocation5 + $0x4a8] sm:$0xff]  ;;  %v2620_v41 = vld [vmem:[#allocation5 + $0x4b8] sm:$0xff]  ;;  %v2768_v0 = vld [vmem:[#allocation5 + $0x6b0] sm:$0xff] }
0x1e8f   :  { %v15800_v39 = vpack.c.bf16 %v2618_v35, %v2616_v34  ;;  %v15804_v38 = vpack.c.bf16 %v2622_v46, %v2620_v41  ;;  %v15847_v46 = vpack.c.bf16 %v2645_v40, %v2643_v37  ;;  %v2767_v37 = vld [vmem:[#allocation5 + $0x6a0] sm:$0xff] }
0x1e90   :  { %v2418_v54 = vrot.slane %v2408_v51, %v15395_v5  ;;  %v2409_v22 = vcombine.high %v2408_v51, %v2408_v51  ;;  %v15793_v26 = vrot.slane %v2489_v18, %v2493_v3  ;;  %v2635_v18 = vld [vmem:[#allocation5 + $0x530] sm:$0xff] }
0x1e91   :  { %v2443_v59 = vpop.permute.xlu0 %2442  ;;  %17492 = vst [vmem:[#allocation21_spill] sm:$0xff] %v15800_v39  ;;  %17494 = vst [vmem:[#allocation23_spill] sm:$0xff] %v15804_v38  ;;  %13562 = vmatprep.subr.bf16.mxu1 %v15800_v39 }
0x1e92   :  { %2419 = vrot.lane.b32.xlu1 %v2418_v54, %s15292_s0  ;;  %v2445_v62 = vsel %vm134_vm1, %v2443_v59, %v15689_v49  ;;  %v2429_v4 = vrot.slane %v2409_v22, %v15395_v5  ;;  %v15757_v49 = vpack.c.bf16 %v2482_v24, %v2480_v2  ;;  %v2624_v54 = vld [vmem:[#allocation5 + $0x4d8] sm:$0xff]  ;;  %13564 = vmatpush1.bf16.msra.mxu1 %v15802_v47 }
0x1e93   :  { %2590 = vrot.lane.b32.xlu0 %v2445_v62, %s15293_s2  ;;  %13566 = vmatprep.subr.bf16.mxu1 %v15804_v38  ;;  %v15811_v59 = vpack.c.bf16 %v2626_v56, %v2624_v54  ;;  %v2630_v62 = vld [vmem:[#allocation5 + $0x508] sm:$0xff]  ;;  %17507 = vst [vmem:[#allocation36_spill] sm:$0xff] %v15847_v46 }
0x1e94   :  { %17488 = vst [vmem:[#allocation17_spill] sm:$0xff] %v15757_v49  ;;  %13556 = vmatpush1.bf16.msra.mxu0 %v15757_v49  ;;  %v15817_v24 = vpack.c.bf16 %v2630_v62, %v2628_v61 }
0x1e95   :  { %13558 = vmatprep.subr.bf16.mxu0 %v15760_v7  ;;  %17496 = vst [vmem:[#allocation25_spill] sm:$0xff] %v15811_v59 }
0x1e96   :  { %17498 = vst [vmem:[#allocation27_spill] sm:$0xff] %v15817_v24 }
0x1e97   :  { %2430 = vrot.lane.b32.xlu0 %v2429_v4, %s15292_s0  ;;  %v2627_v4 = vld [vmem:[#allocation5 + $0x4f0] sm:$0xff] }
0x1e98   :  { %13560 = vmatpush1.bf16.msra.mxu0 %v15763_v10  ;;  %v15820_v9 = vpack.c.bf16 %v2629_v27, %v2627_v4 }
0x1e99   :  { %13593 = vmatprep.subr.bf16.mxu0 %v17383_v45 }
0x1e9a   :  { %17499 = vst [vmem:[#allocation28_spill] sm:$0xff] %v15820_v9 }
0x1f04   :  { %v2420_v5 = vpop.permute.xlu1 %2419 }
0x1f05   :  { %v15768_v11 = vpop.permute.xlu0 %2590  ;;  %v2422_v12 = vsel %vm134_vm1, %v2408_v51, %v2420_v5  ;;  %v2619_v51 = vld [vmem:[#allocation5 + $0x4b0] sm:$0xff]  ;;  %v15823_v5 = vpack.c.bf16 %v2634_v8, %v2632_v31 }
0x1f06   :  { %2463 = vrot.lane.b32.xlu1 %v2422_v12, %s15287_s7  ;;  %v15808_v58 = vpack.c.bf16 %v2621_v52, %v2619_v51  ;;  %v2631_v12 = vld [vmem:[#allocation5 + $0x510] sm:$0xff] }
0x1f07   :  { %17500 = vst [vmem:[#allocation29_spill] sm:$0xff] %v15823_v5 }
0x1f08   :  { %17495 = vst [vmem:[#allocation24_spill] sm:$0xff] %v15808_v58  ;;  %13568 = vmatpush1.bf16.msra.mxu1 %v15808_v58 }
0x1f09   :  { %v2431_v13 = vpop.permute.xlu0 %2430  ;;  %13570 = vmatprep.subr.bf16.mxu1 %v15811_v59 }
0x1f0a   :  { %v2433_v14 = vsel %vm134_vm1, %v2409_v22, %v2431_v13  ;;  %v2623_v22 = vld [vmem:[#allocation5 + $0x4d0] sm:$0xff]  ;;  %v2633_v13 = vld [vmem:[#allocation5 + $0x520] sm:$0xff] }
0x1f0b   :  { %2611 = vrot.lane.b32.xlu0 %v2433_v14, %s15293_s2  ;;  %v15814_v2 = vpack.c.bf16 %v2625_v60, %v2623_v22  ;;  %v2636_v14 = vld [vmem:[#allocation5 + $0x538] sm:$0xff] }
0x1f0d   :  { %17497 = vst [vmem:[#allocation26_spill] sm:$0xff] %v15814_v2  ;;  %13572 = vmatpush1.bf16.msra.mxu1 %v15814_v2 }
0x1f0e   :  { %13574 = vmatprep.subr.bf16.mxu1 %v15817_v24 }
0x1f11   :  { %13576 = vmatpush1.bf16.msra.mxu1 %v15820_v9 }
0x1f12   :  { %13578 = vmatprep.subr.bf16.mxu1 %v15823_v5 }
0x1f78   :  { %v2464_v44 = vpop.permute.xlu1 %2463 }
0x1f79   :  { %v2467_v16 = vsel %vm2466_vm5, %v2461_v15, %v2464_v44  ;;  %v2638_v15 = vld [vmem:[#allocation5 + $0x548] sm:$0xff]  ;;  %v15826_v44 = vpack.c.bf16 %v2633_v13, %v2631_v12 }
0x1f7a   :  { %10638 = vmatmul.mubr.msk.f32.vlgmr.msra.gmra.mrb[22].mxu0 %vm2501_vm6, %v2467_v16  ;;  %v15829_v16 = vpack.c.bf16 %v2638_v15, %v2636_v14 }
0x1f7b   :  { %11915 = vmatprep.mubr.msk.f32.mxu0 %vm15289_vm2, %v17389_v50  ;;  %17501 = vst [vmem:[#allocation30_spill] sm:$0xff] %v15826_v44  ;;  %13580 = vmatpush1.bf16.msra.mxu1 %v15826_v44 }
0x1f7c   :  { %17502 = vst [vmem:[#allocation31_spill] sm:$0xff] %v15829_v16  ;;  %13582 = vmatprep.subr.bf16.mxu1 %v15829_v16 }
0x1f7d   :  { %v2612_v62 = vpop.permute.xlu0 %2611 }
0x204d   :  { %v2571_v20 = vpop.f32.mrb[22].mxu0 }
0x204e   :  { %v2573_v21 = vpop.f32.mrb[23].mxu0  ;;  %v2572_v28 = vadd.f32 %v2571_v20, %v15793_v26  ;;  %v2637_v20 = vld [vmem:[#allocation5 + $0x540] sm:$0xff] }
0x204f   :  { %v15786_v23 = vadd.f32 %v2573_v21, %v15783_v19  ;;  %v2640_v21 = vld [vmem:[#allocation5 + $0x558] sm:$0xff] }
0x2050   :  { %v10639_v29 = vmul.f32 -1.442695, %v2572_v28  ;;  %v15832_v28 = vpack.c.bf16 %v2637_v20, %v2635_v18 }
0x2051   :  { %14998 = vtanh.f32 %v15786_v23  ;;  %v10640_v56 = vmul.f32 -1.442695, %v15786_v23  ;;  %v2648_v23 = vld [vmem:[#allocation5 + $0x590] ss:$8 sm:$0x3] }
0x2052   :  { %15000 = vpow2.f32 %v10639_v29  ;;  %17503 = vst [vmem:[#allocation32_spill] sm:$0xff] %v15832_v28  ;;  %13584 = vmatpush1.bf16.msra.mxu1 %v15832_v28  ;;  %v15866_v8 = vrot.slane %v2648_v23, %v2497_v17 }
0x205b   :  { %v14999_v25 = vpop.eup %14998 }
0x205c   :  { %2595 = vrot.lane.b32.xlu1 %v14999_v25, %s15293_s2  ;;  %v15001_v30 = vpop.eup %15000  ;;  %v2642_v25 = vld [vmem:[#allocation5 + $0x568] sm:$0xff] }
0x205d   :  { %v2582_v32 = vadd.f32 1.0, %v15001_v30  ;;  %v15835_v29 = vpack.c.bf16 %v2642_v25, %v2640_v21  ;;  %v2639_v30 = vld [vmem:[#allocation5 + $0x550] sm:$0xff] }
0x205f   :  { %15002 = vrcp.f32 %v2582_v32  ;;  %17504 = vst [vmem:[#allocation33_spill] sm:$0xff] %v15835_v29  ;;  %v2641_v32 = vld [vmem:[#allocation5 + $0x560] sm:$0xff]  ;;  %13586 = vmatprep.subr.bf16.mxu1 %v15835_v29 }
0x2060   :  { %v15838_v34 = vpack.c.bf16 %v2641_v32, %v2639_v30 }
0x2062   :  { %17505 = vst [vmem:[#allocation34_spill] sm:$0xff] %v15838_v34  ;;  %13588 = vmatpush1.bf16.msra.mxu1 %v15838_v34 }
0x2069   :  { %v15796_v57 = vpop.eup %15002 }
0x206a   :  { %v2593_v41 = vmul.f32 %v15796_v57, %v15768_v11 }
0x20ce   :  { %v2596_v33 = vpop.permute.xlu1 %2595 }
0x20cf   :  { %v2598_v6 = vmul.f32 %v15796_v57, %v2596_v33  ;;  %v2644_v33 = vld [vmem:[#allocation5 + $0x578] sm:$0xff] }
0x20d1   :  { %2600 = vrot.lane.b32.xlu1 %v2598_v6, %s15293_s2  ;;  %v2646_v6 = vld [vmem:[#allocation5 + $0x588] sm:$0xff] }
0x20d2   :  { %v15841_v35 = vpack.c.bf16 %v2646_v6, %v2644_v33  ;;  %v2765_v33 = vld [vmem:[#allocation5 + $0x680] sm:$0xff]  ;;  %v2766_v6 = vld [vmem:[#allocation5 + $0x690] sm:$0xff] }
0x20d3   :  { %v15876_v40 = vpack.c.bf16 %v2766_v6, %v2765_v33  ;;  %v2930_v33 = vld [vmem:[#allocation5 + $0x780] sm:$0xff] }
0x20d4   :  { %17506 = vst [vmem:[#allocation35_spill] sm:$0xff] %v15841_v35  ;;  %13590 = vmatprep.subr.bf16.mxu1 %v15841_v35 }
0x20d5   :  { %13592 = vmatpush1.bf16.msra.mxu1 %v15847_v46  ;;  %17508 = vst [vmem:[#allocation37_spill] sm:$0xff] %v15876_v40  ;;  %13595 = vmatpush3.bf16.msra.mxu0 %v15876_v40 }
0x20d6   :  { %13611 = vmatprep.subr.bf16.mxu1 %v17383_v45  ;;  %13596 = vmatprep.subr.bf16.mxu0 %v17383_v45 }
0x2143   :  { %v2601_v51 = vpop.permute.xlu1 %2600 }
0x2144   :  { %v15849_v52 = vadd.f32 %v2601_v51, %v2593_v41 }
0x2146   :  { %15004 = vtanh.f32 %v15849_v52 }
0x2147   :  { %15006 = vpow2.f32 %v10640_v56 }
0x2150   :  { %v15005_v54 = vpop.eup %15004 }
0x2151   :  { %2606 = vrot.lane.b32.xlu1 %v15005_v54, %s15293_s2  ;;  %v15007_v11 = vpop.eup %15006 }
0x2152   :  { %v2583_v57 = vadd.f32 1.0, %v15007_v11 }
0x2154   :  { %15008 = vrcp.f32 %v2583_v57 }
0x2155   :  { %2447 = vrot.lane.b32.xlu1 %v15703_v48, %s15294_s14 }
0x215e   :  { %v15009_v22 = vpop.eup %15008 }
0x21c3   :  { %v2607_v60 = vpop.permute.xlu1 %2606 }
0x21c4   :  { %v2609_v61 = vmul.f32 %v15009_v22, %v2607_v60 }
0x21c6   :  { %v2614_v4 = vsel %vm654_vm3, %v2609_v61, %v2612_v62  ;;  %v2846_v62 = vld [vmem:[#allocation5 + $0x6e0] sm:$0xff] }
0x21c7   :  { %2725 = vmatmul.mubr.f32.vlgmr.msra.gmra.mrb[24].mxu1 %v2614_v4  ;;  %v2448_v27 = vpop.permute.xlu1 %2447 }
0x21c8   :  { %v2450_v31 = vsel %vm134_vm1, %v2448_v27, %v15703_v48  ;;  %11953 = vmatprep.mubr.msk.f32.mxu1 %vm15289_vm2, %v17389_v50  ;;  %v15872_v48 = vrot.slane %v2648_v23, %v2493_v3  ;;  %v15879_v3 = vpack.c.bf16 %v2768_v0, %v2767_v37  ;;  %v2931_v37 = vld [vmem:[#allocation5 + $0x790] sm:$0xff] }
0x21c9   :  { %2745 = vrot.lane.b32.xlu1 %v2450_v31, %s15293_s2  ;;  %v15914_v0 = vpack.c.bf16 %v2931_v37, %v2930_v33  ;;  %v3016_v33 = vld [vmem:[#allocation5 + $0x840] sm:$0xff] }
0x21ca   :  { %17509 = vst [vmem:[#allocation38_spill] sm:$0xff] %v15879_v3  ;;  %13598 = vmatpush3.bf16.msra.mxu0 %v15879_v3 }
0x21cb   :  { %13599 = vmatprep.subr.bf16.mxu0 %v17383_v45 }
0x223b   :  { %v2746_v41 = vpop.permute.xlu1 %2745 }
0x229a   :  { %v2726_v12 = vpop.f32.mrb[24].mxu1 }
0x229b   :  { %v2728_v13 = vpop.f32.mrb[25].mxu1  ;;  %v2727_v18 = vadd.f32 %v2726_v12, %v15872_v48  ;;  %v2847_v12 = vld [vmem:[#allocation5 + $0x6f0] sm:$0xff] }
0x229c   :  { %v2729_v14 = vadd.f32 %v2728_v13, %v15866_v8  ;;  %v2848_v13 = vld [vmem:[#allocation5 + $0x700] sm:$0xff] }
0x229d   :  { %v10641_v20 = vmul.f32 -1.442695, %v2727_v18  ;;  %v2850_v18 = vld [vmem:[#allocation5 + $0x720] sm:$0xff] }
0x229e   :  { %15010 = vtanh.f32 %v2729_v14  ;;  %v10642_v57 = vmul.f32 -1.442695, %v2729_v14  ;;  %v15896_v14 = vpack.c.bf16 %v2848_v13, %v2847_v12  ;;  %v3011_v13 = vld [vmem:[#allocation5 + $0x7f0] sm:$0xff] }
0x229f   :  { %15012 = vpow2.f32 %v10641_v20 }
0x22a8   :  { %v15011_v15 = vpop.eup %15010 }
0x22a9   :  { %2750 = vrot.lane.b32.xlu0 %v15011_v15, %s15293_s2  ;;  %v15013_v21 = vpop.eup %15012  ;;  %v2849_v15 = vld [vmem:[#allocation5 + $0x710] sm:$0xff] }
0x22aa   :  { %v2737_v25 = vadd.f32 1.0, %v15013_v21  ;;  %v15902_v20 = vpack.c.bf16 %v2850_v18, %v2849_v15  ;;  %v2851_v21 = vld [vmem:[#allocation5 + $0x730] sm:$0xff]  ;;  %v3012_v15 = vld [vmem:[#allocation5 + $0x800] sm:$0xff] }
0x22ab   :  { %v3013_v18 = vld [vmem:[#allocation5 + $0x810] sm:$0xff] }
0x22ac   :  { %15014 = vrcp.f32 %v2737_v25  ;;  %v2852_v25 = vld [vmem:[#allocation5 + $0x740] sm:$0xff] }
0x22b6   :  { %v15015_v17 = vpop.eup %15014 }
0x22b7   :  { %v2748_v51 = vmul.f32 %v15015_v17, %v2746_v41  ;;  %v2932_v41 = vld [vmem:[#allocation5 + $0x7a0] sm:$0xff] }
0x231b   :  { %v2751_v30 = vpop.permute.xlu0 %2750 }
0x231c   :  { %v2753_v32 = vmul.f32 %v15015_v17, %v2751_v30  ;;  %v15907_v17 = vpack.c.bf16 %v2852_v25, %v2851_v21  ;;  %v2928_v30 = vld [vmem:[#allocation5 + $0x760] sm:$0xff]  ;;  %v15935_v21 = vpack.c.bf16 %v3012_v15, %v3011_v13  ;;  %v3095_v13 = vld [vmem:[#allocation5 + $0x890] sm:$0xff] }
0x231d   :  { %v3014_v25 = vld [vmem:[#allocation5 + $0x820] sm:$0xff] }
0x231e   :  { %2755 = vrot.lane.b32.xlu0 %v2753_v32, %s15293_s2  ;;  %v2929_v32 = vld [vmem:[#allocation5 + $0x770] sm:$0xff]  ;;  %v3096_v15 = vld [vmem:[#allocation5 + $0x8a0] sm:$0xff] }
0x231f   :  { %v15911_v6 = vpack.c.bf16 %v2929_v32, %v2928_v30  ;;  %v15938_v30 = vpack.c.bf16 %v3014_v25, %v3013_v18  ;;  %v3015_v32 = vld [vmem:[#allocation5 + $0x830] sm:$0xff] }
0x2320   :  { %v15942_v37 = vpack.c.bf16 %v3016_v33, %v3015_v32  ;;  %v3097_v25 = vld [vmem:[#allocation5 + $0x8b0] sm:$0xff]  ;;  %v3098_v33 = vld [vmem:[#allocation5 + $0x8c0] sm:$0xff] }
0x2321   :  { %13613 = vmatpush3.bf16.msra.mxu1 %v15911_v6  ;;  %v15960_v32 = vpack.c.bf16 %v3097_v25, %v3096_v15  ;;  %v3101_v15 = vld [vmem:[#allocation5 + $0x8f0] sm:$0xff] }
0x2322   :  { %3669 = vrot.lane.b32.xlu0 %v2609_v61, %s15287_s7  ;;  %v2845_v61 = vld [vmem:[#allocation5 + $0x6d0] sm:$0xff]  ;;  %13614 = vmatprep.subr.bf16.mxu1 %v17383_v45 }
0x2323   :  { %v15889_v31 = vpack.c.bf16 %v2846_v62, %v2845_v61  ;;  %17510 = vst [vmem:[#allocation39_spill] sm:$0xff] %v15960_v32 }
0x2325   :  { %13616 = vmatpush3.bf16.msra.mxu1 %v15914_v0 }
0x2326   :  { %13617 = vmatprep.subr.bf16.mxu1 %v17383_v45 }
0x2390   :  { %v2756_v54 = vpop.permute.xlu0 %2755 }
0x2391   :  { %v15885_v56 = vadd.f32 %v2756_v54, %v2748_v51  ;;  %v2933_v51 = vld [vmem:[#allocation5 + $0x7b0] sm:$0xff] }
0x2392   :  { %v15918_v54 = vpack.c.bf16 %v2933_v51, %v2932_v41  ;;  %v15947_v41 = vld [vmem:[#allocation5 + $0x750] ss:$0 sm:$0xff] }
0x2393   :  { %15016 = vtanh.f32 %v15885_v56 }
0x2394   :  { %15018 = vpow2.f32 %v10642_v57  ;;  %13619 = vmatpush3.bf16.msra.mxu1 %v15918_v54 }
0x2395   :  { %13620 = vmatprep.subr.bf16.mxu1 %v17383_v45 }
0x239d   :  { %v15017_v11 = vpop.eup %15016 }
0x239e   :  { %2761 = vrot.lane.b32.xlu1 %v15017_v11, %s15293_s2  ;;  %v15019_v22 = vpop.eup %15018  ;;  %v15923_v11 = vld [vmem:[#allocation5 + $0x6c0] ss:$0 sm:$0xff] }
0x239f   :  { %v2738_v60 = vadd.f32 1.0, %v15019_v22 }
0x23a1   :  { %15020 = vrcp.f32 %v2738_v60 }
0x23ab   :  { %v15021_v4 = vpop.eup %15020 }
0x2410   :  { %v2762_v27 = vpop.permute.xlu1 %2761 }
0x2411   :  { %v15891_v23 = vmul.f32 %v15021_v4, %v2762_v27  ;;  %v2934_v4 = vld [vmem:[#allocation5 + $0x7c0] sm:$0xff]  ;;  %v2935_v27 = vld [vmem:[#allocation5 + $0x7d0] sm:$0xff] }
0x2412   :  { %v15931_v12 = vpack.c.bf16 %v2935_v27, %v2934_v4  ;;  %v3094_v27 = vld [vmem:[#allocation5 + $0x880] sm:$0xff] }
0x2413   :  { %11916 = vmatmul.mubr.msk.f32.vlgmr.msra.gmra.mrb[24].mxu0 %vm134_vm1, %v15891_v23  ;;  %v15957_v18 = vpack.c.bf16 %v3095_v13, %v3094_v27  ;;  %v3100_v13 = vld [vmem:[#allocation5 + $0x8e0] sm:$0xff] }
0x2414   :  { %13601 = vmatpush3.bf16.msra.mxu0 %v15889_v31  ;;  %11934 = vmatprep.mubr.msk.f32.mxu0 %vm15289_vm2, %v17389_v50  ;;  %v15975_v25 = vpack.c.bf16 %v3101_v15, %v3100_v13  ;;  %v15991_v15 = vld [vmem:[#allocation5 + $0x870] ss:$0 sm:$0xff] }
0x2415   :  { %13602 = vmatprep.subr.bf16.mxu0 %v17383_v45  ;;  %13622 = vmatpush3.bf16.msra.mxu1 %v15931_v12  ;;  %17517 = vst [vmem:[#allocation46_spill] sm:$0xff] %v15991_v15 }
0x2416   :  { %13635 = vmatprep.subr.bf16.mxu1 %v17383_v45  ;;  %17513 = vst [vmem:[#allocation42_spill] sm:$0xff] %v15975_v25 }
0x2418   :  { %13604 = vmatpush3.bf16.msra.mxu0 %v15896_v14 }
0x2419   :  { %13605 = vmatprep.subr.bf16.mxu0 %v17383_v45 }
0x241c   :  { %13607 = vmatpush3.bf16.msra.mxu0 %v15902_v20 }
0x241d   :  { %13608 = vmatprep.subr.bf16.mxu0 %v17383_v45 }
0x2420   :  { %13610 = vmatpush3.bf16.msra.mxu0 %v15907_v17 }
0x2421   :  { %13623 = vmatprep.subr.bf16.mxu0 %v17383_v45 }
0x24e6   :  { %v2839_v57 = vpop.f32.mrb[24].mxu0 }
0x24e7   :  { %v2840_v22 = vadd.f32 %v2839_v57, %v15923_v11  ;;  %v11917_v60 = vpop.f32.mrb[25].mxu0 }
0x24e9   :  { %v2843_v61 = vmax.f32 %v2840_v22, 0.0 }
0x24eb   :  { %v2844_v62 = vsel %vm134_vm1, %v2843_v61, %v15891_v23  ;;  %v3017_v61 = vld [vmem:[#allocation5 + $0x850] sm:$0xff] }
0x24ec   :  { %11935 = vmatmul.mubr.msk.f32.vlgmr.msra.gmra.mrb[26].mxu0 %vm654_vm3, %v2844_v62  ;;  %v3018_v62 = vld [vmem:[#allocation5 + $0x860] sm:$0xff] }
0x24ed   :  { %11972 = vmatprep.mubr.msk.f32.mxu0 %vm15289_vm2, %v17389_v50  ;;  %13625 = vmatpush3.bf16.msra.mxu0 %v15935_v21  ;;  %v15953_v4 = vpack.c.bf16 %v3018_v62, %v3017_v61 }
0x24ee   :  { %13626 = vmatprep.subr.bf16.mxu0 %v17383_v45 }
0x24f1   :  { %13628 = vmatpush3.bf16.msra.mxu0 %v15938_v30 }
0x24f2   :  { %13629 = vmatprep.subr.bf16.mxu0 %v17383_v45 }
0x24f5   :  { %13631 = vmatpush3.bf16.msra.mxu0 %v15942_v37 }
0x24f6   :  { %13632 = vmatprep.subr.bf16.mxu0 %v17383_v45 }
0x24f9   :  { %13634 = vmatpush3.bf16.msra.mxu0 %v15953_v4 }
0x24fa   :  { %13647 = vmatprep.subr.bf16.mxu0 %v17383_v45 }
0x25bf   :  { %v2923_v51 = vpop.f32.mrb[26].mxu0 }
0x25c0   :  { %v2924_v57 = vadd.f32 %v2923_v51, %v15947_v41  ;;  %v11936_v22 = vpop.f32.mrb[27].mxu0  ;;  %v3099_v51 = vld [vmem:[#allocation5 + $0x8d0] sm:$0xff] }
0x25c1   :  { %v15969_v22 = vld [vmem:[#allocation5 + $0x7e0] ss:$0 sm:$0xff] }
0x25c2   :  { %v2927_v60 = vmax.f32 %v2924_v57, 0.0  ;;  %v15964_v57 = vpack.c.bf16 %v3099_v51, %v3098_v33  ;;  %17512 = vst [vmem:[#allocation41_spill] sm:$0xff] %v15969_v22  ;;  %v3177_v33 = vld [vmem:[#allocation5 + $0x910] sm:$0xff]  ;;  %v3178_v51 = vld [vmem:[#allocation5 + $0x920] sm:$0xff] }
0x25c4   :  { %11954 = vmatmul.mubr.msk.f32.vlgmr.msra.gmra.mrb[26].mxu1 %vm654_vm3, %v2927_v60  ;;  %17511 = vst [vmem:[#allocation40_spill] sm:$0xff] %v15964_v57 }
0x25c5   :  { %11991 = vmatprep.mubr.msk.f32.mxu1 %vm15289_vm2, %v17389_v50  ;;  %13637 = vmatpush3.bf16.msra.mxu1 %v15957_v18 }
0x25c6   :  { %13638 = vmatprep.subr.bf16.mxu1 %v17383_v45 }
0x25c9   :  { %13640 = vmatpush3.bf16.msra.mxu1 %v15960_v32  ;;  %v15979_v32 = vpack.c.bf16 %v3178_v51, %v3177_v33 }
0x25ca   :  { %13641 = vmatprep.subr.bf16.mxu1 %v17383_v45 }
0x25cb   :  { %17514 = vst [vmem:[#allocation43_spill] sm:$0xff] %v15979_v32 }
0x25cd   :  { %13643 = vmatpush3.bf16.msra.mxu1 %v15964_v57  ;;  %v3179_v57 = vld [vmem:[#allocation5 + $0x930] sm:$0xff] }
0x25ce   :  { %13644 = vmatprep.subr.bf16.mxu1 %v17383_v45 }
0x25d1   :  { %13646 = vmatpush3.bf16.msra.mxu1 %v15975_v25 }
0x25d2   :  { %13659 = vmatprep.subr.bf16.mxu1 %v17383_v45 }
0x2697   :  { %v3006_v60 = vpop.f32.mrb[26].mxu1 }
0x2698   :  { %v3007_v61 = vadd.f32 %v3006_v60, %v15969_v22  ;;  %v11955_v62 = vpop.f32.mrb[27].mxu1  ;;  %v3180_v60 = vld [vmem:[#allocation5 + $0x940] sm:$0xff] }
0x2699   :  { %v3181_v62 = vld [vmem:[#allocation5 + $0x950] sm:$0xff]  ;;  %v3262_v22 = vld [vmem:[#allocation5 + $0x9c0] sm:$0xff] }
0x269a   :  { %v3010_v27 = vmax.f32 %v3007_v61, 0.0  ;;  %v15982_v61 = vpack.c.bf16 %v3180_v60, %v3179_v57 }
0x269c   :  { %11973 = vmatmul.mubr.msk.f32.vlgmr.msra.gmra.mrb[28].mxu0 %vm654_vm3, %v3010_v27  ;;  %17515 = vst [vmem:[#allocation44_spill] sm:$0xff] %v15982_v61  ;;  %v3182_v27 = vld [vmem:[#allocation5 + $0x960] sm:$0xff] }
0x269d   :  { %12010 = vmatprep.mubr.msk.f32.mxu0 %vm15289_vm2, %v17389_v50  ;;  %13649 = vmatpush3.bf16.msra.mxu0 %v15979_v32  ;;  %v15986_v13 = vpack.c.bf16 %v3182_v27, %v3181_v62  ;;  %v3183_v62 = vld [vmem:[#allocation5 + $0x970] sm:$0xff]  ;;  %v3184_v27 = vld [vmem:[#allocation5 + $0x980] sm:$0xff] }
0x269e   :  { %13650 = vmatprep.subr.bf16.mxu0 %v17383_v45  ;;  %v3261_v32 = vld [vmem:[#allocation5 + $0x9b0] sm:$0xff] }
0x269f   :  { %17516 = vst [vmem:[#allocation45_spill] sm:$0xff] %v15986_v13 }
0x26a1   :  { %13652 = vmatpush3.bf16.msra.mxu0 %v15982_v61  ;;  %v15997_v61 = vpack.c.bf16 %v3184_v27, %v3183_v62 }
0x26a2   :  { %13653 = vmatprep.subr.bf16.mxu0 %v17383_v45 }
0x26a3   :  { %17518 = vst [vmem:[#allocation47_spill] sm:$0xff] %v15997_v61 }
0x26a5   :  { %13655 = vmatpush3.bf16.msra.mxu0 %v15986_v13  ;;  %v3260_v13 = vld [vmem:[#allocation5 + $0x9a0] sm:$0xff] }
0x26a6   :  { %13656 = vmatprep.subr.bf16.mxu0 %v17383_v45  ;;  %v16001_v25 = vpack.c.bf16 %v3261_v32, %v3260_v13  ;;  %v16013_v32 = vld [vmem:[#allocation5 + $0x900] ss:$0 sm:$0xff] }
0x26a7   :  { %17522 = vst [vmem:[#allocation51_spill] sm:$0xff] %v16013_v32 }
0x26a8   :  { %17519 = vst [vmem:[#allocation48_spill] sm:$0xff] %v16001_v25 }
0x26a9   :  { %13658 = vmatpush3.bf16.msra.mxu0 %v15997_v61  ;;  %v3421_v61 = vld [vmem:[#allocation5 + $0x160] sm:$0xff] }
0x26aa   :  { %13671 = vmatprep.subr.bf16.mxu0 %v17383_v45 }
0x276f   :  { %v3089_v33 = vpop.f32.mrb[28].mxu0 }
0x2770   :  { %v3090_v57 = vadd.f32 %v3089_v33, %v15991_v15  ;;  %v11974_v51 = vpop.f32.mrb[29].mxu0  ;;  %v3263_v33 = vld [vmem:[#allocation5 + $0x9d0] sm:$0xff] }
0x2771   :  { %v3264_v51 = vld [vmem:[#allocation5 + $0x9e0] sm:$0xff] }
0x2772   :  { %v3093_v60 = vmax.f32 %v3090_v57, 0.0  ;;  %v16004_v57 = vpack.c.bf16 %v3263_v33, %v3262_v22 }
0x2774   :  { %11992 = vmatmul.mubr.msk.f32.vlgmr.msra.gmra.mrb[28].mxu1 %vm654_vm3, %v3093_v60  ;;  %17520 = vst [vmem:[#allocation49_spill] sm:$0xff] %v16004_v57  ;;  %v3265_v60 = vld [vmem:[#allocation5 + $0x9f0] sm:$0xff] }
0x2775   :  { %12029 = vmatprep.mubr.msk.f32.mxu1 %vm15289_vm2, %v17389_v50  ;;  %13661 = vmatpush3.bf16.msra.mxu1 %v16001_v25  ;;  %v16008_v62 = vpack.c.bf16 %v3265_v60, %v3264_v51  ;;  %v3266_v51 = vld [vmem:[#allocation5 + $0xa00] sm:$0xff]  ;;  %v3267_v60 = vld [vmem:[#allocation5 + $0xa10] sm:$0xff] }
0x2776   :  { %13662 = vmatprep.subr.bf16.mxu1 %v17383_v45  ;;  %v3343_v25 = vld [vmem:[#allocation5 + $0x120] sm:$0xff] }
0x2777   :  { %17521 = vst [vmem:[#allocation50_spill] sm:$0xff] %v16008_v62 }
0x2779   :  { %13664 = vmatpush3.bf16.msra.mxu1 %v16004_v57  ;;  %v16019_v57 = vpack.c.bf16 %v3267_v60, %v3266_v51  ;;  %v3419_v60 = vld [vmem:[#allocation5 + $0x140] sm:$0xff] }
0x277a   :  { %13665 = vmatprep.subr.bf16.mxu1 %v17383_v45 }
0x277b   :  { %17523 = vst [vmem:[#allocation52_spill] sm:$0xff] %v16019_v57 }
0x277d   :  { %13667 = vmatpush3.bf16.msra.mxu1 %v16008_v62  ;;  %v3342_v62 = vld [vmem:[#allocation5 + $0x110] sm:$0xff] }
0x277e   :  { %13668 = vmatprep.subr.bf16.mxu1 %v17383_v45  ;;  %v16023_v15 = vpack.c.bf16 %v3343_v25, %v3342_v62  ;;  %v16033_v25 = vld [vmem:[#allocation5 + $0xa20] ss:$0 sm:$0xff] }
0x277f   :  { %17526 = vst [vmem:[#allocation55_spill] sm:$0xff] %v16033_v25 }
0x2780   :  { %17524 = vst [vmem:[#allocation53_spill] sm:$0xff] %v16023_v15 }
0x2781   :  { %13670 = vmatpush3.bf16.msra.mxu1 %v16019_v57 }
0x2782   :  { %13686 = vmatprep.subr.bf16.mxu1 %v17383_v45 }
0x2847   :  { %v3172_v13 = vpop.f32.mrb[28].mxu1 }
0x2848   :  { %v3173_v22 = vadd.f32 %v3172_v13, %v16013_v32  ;;  %v11993_v27 = vpop.f32.mrb[29].mxu1  ;;  %v16027_v13 = vld [vmem:[#allocation5 + $0x990] ss:$0 sm:$0xff] }
0x2849   :  { %17525 = vst [vmem:[#allocation54_spill] sm:$0xff] %v16027_v13  ;;  %v3420_v32 = vld [vmem:[#allocation5 + $0x150] sm:$0xff] }
0x284a   :  { %v3176_v33 = vmax.f32 %v3173_v22, 0.0 }
0x284c   :  { %12011 = vmatmul.mubr.msk.f32.vlgmr.msra.gmra.mrb[30].mxu0 %vm654_vm3, %v3176_v33 }
0x284d   :  { %12036 = vmatprep.mubr.msk.f32.mxu0 %vm15289_vm2, %v17389_v50  ;;  %13673 = vmatpush3.bf16.msra.mxu0 %v16023_v15  ;;  %v16035_v15 = vpack.c.bf16 %v3420_v32, %v3419_v60  ;;  %v3423_v32 = vld [vmem:[#allocation5 + $0x180] sm:$0xff] }
0x284e   :  { %13674 = vmatprep.subr.bf16.mxu0 %v17383_v45 }
0x284f   :  { %17527 = vst [vmem:[#allocation56_spill] sm:$0xff] %v16035_v15 }
0x291f   :  { %v3255_v22 = vpop.f32.mrb[30].mxu0 }
0x2920   :  { %v3256_v27 = vadd.f32 %v3255_v22, %v16027_v13  ;;  %v12012_v33 = vpop.f32.mrb[31].mxu0  ;;  %v3422_v22 = vld [vmem:[#allocation5 + $0x170] sm:$0xff] }
0x2921   :  { %v17529_v33 = vmov 0.0|0.0  }
0x2922   :  { %v3259_v51 = vmax.f32 %v3256_v27, 0.0  ;;  %v16041_v27 = vpack.c.bf16 %v3422_v22, %v3421_v61  ;;  %v3426_v61 = vld [vmem:[#allocation5 + $0x1b0] sm:$0xff]  ;;  %v3503_v22 = vld [vmem:[#allocation5 + $0x1e0] sm:$0xff] }
0x2924   :  { %12030 = vmatmul.mubr.msk.f32.vlgmr.msra.gmra.mrb[30].mxu1 %vm654_vm3, %v3259_v51  ;;  %17528 = vst [vmem:[#allocation57_spill] sm:$0xff] %v16041_v27  ;;  %v3424_v51 = vld [vmem:[#allocation5 + $0x190] sm:$0xff] }
0x2925   :  { %12074 = vmatprep.mubr.msk.f32.mxu1 %vm15289_vm2, %v17389_v50 }
0x29f7   :  { %v3338_v62 = vpop.f32.mrb[30].mxu1 }
0x29f8   :  { %v3339_v45 = vadd.f32 %v3338_v62, %v16033_v25  ;;  %v12031_v57 = vpop.f32.mrb[31].mxu1  ;;  %v3502_v62 = vld [vmem:[#allocation5 + $0x1d0] sm:$0xff] }
0x29f9   :  { %v16047_v57 = vpack.c.bf16 %v3424_v51, %v3423_v32  ;;  %v3505_v32 = vld [vmem:[#allocation5 + $0x200] sm:$0xff] }
0x29fa   :  { %10569 = vst.msk [vmem:[#allocation7] sm:$0x3] %vm10568_vm7, %v3339_v45  ;;  %12037 = vmatmul.mubr.msk.f32.vlgmr.msra.gmra.mrb[32].mxu0 %vm2466_vm5, %v3339_v45  ;;  %v3425_v45 = vld [vmem:[#allocation5 + $0x1a0] sm:$0xff] }
0x29fb   :  { %13676 = vmatpush3.bf16.msra.mxu0 %v16035_v15  ;;  %12055 = vmatprep.mubr.msk.f32.mxu0 %vm15289_vm2, %v17389_v50  ;;  %17530 = vst [vmem:[#allocation58_spill] sm:$0xff] %v16047_v57  ;;  %v16052_v60 = vpack.c.bf16 %v3426_v61, %v3425_v45  ;;  %v3504_v50 = vld [vmem:[#allocation5 + $0x1f0] sm:$0xff]  ;;  %v3507_v15 = vld [vmem:[#allocation5 + $0x220] sm:$0xff] }
0x29fc   :  { %13677 = vmatprep.subr.bf16.mxu0 %v17529_v33  ;;  %v16059_v51 = vpack.c.bf16 %v3505_v32, %v3504_v50  ;;  %v16068_v61 = vld [vmem:[#allocation5 + $0x130] ss:$0 sm:$0xff] }
0x29fd   :  { %17531 = vst [vmem:[#allocation59_spill] sm:$0xff] %v16052_v60 }
0x29fe   :  { %17533 = vst [vmem:[#allocation61_spill] sm:$0xff] %v16059_v51 }
0x29ff   :  { %13679 = vmatpush3.bf16.msra.mxu0 %v16041_v27  ;;  %v16056_v27 = vpack.c.bf16 %v3503_v22, %v3502_v62 }
0x2a00   :  { %13680 = vmatprep.subr.bf16.mxu0 %v17529_v33 }
0x2a01   :  { %17532 = vst [vmem:[#allocation60_spill] sm:$0xff] %v16056_v27  ;;  %13688 = vmatpush3.bf16.msra.mxu1 %v16056_v27  ;;  %v3587_v27 = vld [vmem:[#allocation5 + $0x280] sm:$0xff] }
0x2a02   :  { %13689 = vmatprep.subr.bf16.mxu1 %v17529_v33 }
0x2a03   :  { %13682 = vmatpush3.bf16.msra.mxu0 %v16047_v57  ;;  %v3506_v57 = vld [vmem:[#allocation5 + $0x210] sm:$0xff] }
0x2a04   :  { %13683 = vmatprep.subr.bf16.mxu0 %v17529_v33  ;;  %v16063_v45 = vpack.c.bf16 %v3507_v15, %v3506_v57  ;;  %v3508_v15 = vld [vmem:[#allocation5 + $0x230] sm:$0xff]  ;;  %v3509_v57 = vld [vmem:[#allocation5 + $0x240] sm:$0xff] }
0x2a05   :  { %13691 = vmatpush3.bf16.msra.mxu1 %v16059_v51  ;;  %v16074_v25 = vpack.c.bf16 %v3509_v57, %v3508_v15  ;;  %v3586_v51 = vld [vmem:[#allocation5 + $0x270] sm:$0xff] }
0x2a06   :  { %17534 = vst [vmem:[#allocation62_spill] sm:$0xff] %v16063_v45  ;;  %13692 = vmatprep.subr.bf16.mxu1 %v17529_v33 }
0x2a07   :  { %13685 = vmatpush3.bf16.msra.mxu0 %v16052_v60  ;;  %v17535_v60 = vmov 0.0  }
0x2a08   :  { %13698 = vmatprep.subr.bf16.mxu0 %v17529_v33 }
0x2a09   :  { %13694 = vmatpush3.bf16.msra.mxu1 %v16063_v45  ;;  %v3585_v45 = vld [vmem:[#allocation5 + $0x260] sm:$0xff] }
0x2a0a   :  { %13695 = vmatprep.subr.bf16.mxu1 %v17529_v33  ;;  %v16078_v13 = vpack.c.bf16 %v3586_v51, %v3585_v45  ;;  %v16090_v51 = vld [vmem:[#allocation5 + $0x1c0] ss:$0 sm:$0xff] }
0x2a0d   :  { %13697 = vmatpush3.bf16.msra.mxu1 %v16074_v25 }
0x2a0e   :  { %13711 = vmatprep.subr.bf16.mxu1 %v15729_v36 }
0x2acd   :  { %v3414_v62 = vpop.f32.mrb[32].mxu0 }
0x2ace   :  { %v3415_v50 = vadd.f32 %v3414_v62, %v16068_v61  ;;  %v12038_v22 = vpop.f32.mrb[33].mxu0  ;;  %v3588_v62 = vld [vmem:[#allocation5 + $0x290] sm:$0xff] }
0x2acf   :  { %v3589_v22 = vld [vmem:[#allocation5 + $0x2a0] sm:$0xff] }
0x2ad0   :  { %v3418_v32 = vmax.f32 %v3415_v50, 0.0  ;;  %v16081_v50 = vpack.c.bf16 %v3588_v62, %v3587_v27 }
0x2ad2   :  { %12056 = vmatmul.mubr.msk.f32.vlgmr.msra.gmra.mrb[34].mxu0 %vm654_vm3, %v3418_v32  ;;  %v3590_v32 = vld [vmem:[#allocation5 + $0x2b0] sm:$0xff] }
0x2ad3   :  { %12093 = vmatprep.mubr.msk.f32.mxu0 %vm15289_vm2, %v17535_v60  ;;  %13700 = vmatpush3.bf16.msra.mxu0 %v16078_v13  ;;  %v16085_v15 = vpack.c.bf16 %v3590_v32, %v3589_v22  ;;  %v3591_v22 = vld [vmem:[#allocation5 + $0x2c0] sm:$0xff]  ;;  %v3592_v32 = vld [vmem:[#allocation5 + $0x2d0] sm:$0xff] }
0x2ad4   :  { %13701 = vmatprep.subr.bf16.mxu0 %v17529_v33 }
0x2ad7   :  { %13703 = vmatpush3.bf16.msra.mxu0 %v16081_v50 }
0x2ad8   :  { %13704 = vmatprep.subr.bf16.mxu0 %v17529_v33 }
0x2adb   :  { %13706 = vmatpush3.bf16.msra.mxu0 %v16085_v15 }
0x2adc   :  { %13707 = vmatprep.subr.bf16.mxu0 %v17529_v33 }
0x2ba5   :  { %v3497_v45 = vpop.f32.mrb[34].mxu0 }
0x2ba6   :  { %v3498_v27 = vadd.f32 %v3497_v45, %v16090_v51  ;;  %v12057_v57 = vpop.f32.mrb[35].mxu0  ;;  %v16105_v45 = vpack.c.bf16 %v3592_v32, %v3591_v22 }
0x2ba8   :  { %v3501_v62 = vmax.f32 %v3498_v27, 0.0  ;;  %17536 = vst [vmem:[#allocation63_spill] sm:$0xff] %v16105_v45  ;;  %13709 = vmatpush3.bf16.msra.mxu0 %v16105_v45  ;;  %v16109_v27 = vld [vmem:[#allocation5 + $0x250] ss:$0 sm:$0xff] }
0x2ba9   :  { %13731 = vmatprep.subr.bf16.mxu0 %v15800_v39 }
0x2baa   :  { %12075 = vmatmul.mubr.msk.f32.vlgmr.msra.gmra.mrb[32].mxu1 %vm654_vm3, %v3501_v62 }
0x2bab   :  { %13713 = vmatpush1.bf16.msra.mxu1 %v15731_v42  ;;  %3740 = vmatprep.mubr.f32.mxu1 %v17535_v60 }
0x2bac   :  { %13715 = vmatprep.subr.bf16.mxu1 %v15733_v43 }
0x2baf   :  { %13717 = vmatpush1.bf16.msra.mxu1 %v15738_v53 }
0x2bb0   :  { %13719 = vmatprep.subr.bf16.mxu1 %v15742_v55 }
0x2bb3   :  { %13721 = vmatpush1.bf16.msra.mxu1 %v15749_v63 }
0x2bb4   :  { %13723 = vmatprep.subr.bf16.mxu1 %v15752_v1 }
0x2bb7   :  { %13725 = vmatpush1.bf16.msra.mxu1 %v15757_v49 }
0x2bb8   :  { %13727 = vmatprep.subr.bf16.mxu1 %v15760_v7 }
0x2bbb   :  { %13729 = vmatpush1.bf16.msra.mxu1 %v15763_v10 }
0x2bbc   :  { %13762 = vmatprep.subr.bf16.mxu1 %v17529_v33 }
0x2c7d   :  { %v3580_v57 = vpop.f32.mrb[32].mxu1 }
0x2c7e   :  { %v3581_v62 = vadd.f32 %v3580_v57, %v16109_v27  ;;  %v12076_v49 = vpop.f32.mrb[33].mxu1 }
0x2c80   :  { %v3584_v1 = vmax.f32 %v3581_v62, 0.0  ;;  %v3670_v62 = vpop.permute.xlu0 %3669 }
0x2c82   :  { %12094 = vmatmul.mubr.msk.f32.vlgmr.msra.gmra.mrb[36].mxu0 %vm654_vm3, %v3584_v1  ;;  %v16130_v1 = vld [vmem:[#allocation5 + $0x2e0] ss:$0 sm:$0xff] }
0x2c83   :  { %13733 = vmatpush1.bf16.msra.mxu0 %v15802_v47  ;;  %3845 = vmatprep.mubr.f32.mxu0 %v17535_v60  ;;  %17537 = vst [vmem:[#allocation64_spill] sm:$0xff] %v16130_v1 }
0x2c84   :  { %13735 = vmatprep.subr.bf16.mxu0 %v15804_v38 }
0x2c87   :  { %13737 = vmatpush1.bf16.msra.mxu0 %v15808_v58 }
0x2c88   :  { %13739 = vmatprep.subr.bf16.mxu0 %v15811_v59 }
0x2c8b   :  { %13741 = vmatpush1.bf16.msra.mxu0 %v15814_v2 }
0x2c8c   :  { %13743 = vmatprep.subr.bf16.mxu0 %v15817_v24 }
0x2c8f   :  { %13745 = vmatpush1.bf16.msra.mxu0 %v15820_v9 }
0x2c90   :  { %13747 = vmatprep.subr.bf16.mxu0 %v15823_v5 }
0x2c93   :  { %13749 = vmatpush1.bf16.msra.mxu0 %v15826_v44 }
0x2c94   :  { %13751 = vmatprep.subr.bf16.mxu0 %v15829_v16 }
0x2c97   :  { %13753 = vmatpush1.bf16.msra.mxu0 %v15832_v28 }
0x2c98   :  { %13755 = vmatprep.subr.bf16.mxu0 %v15835_v29 }
0x2c9b   :  { %13757 = vmatpush1.bf16.msra.mxu0 %v15838_v34 }
0x2c9c   :  { %13759 = vmatprep.subr.bf16.mxu0 %v15841_v35 }
0x2c9f   :  { %13761 = vmatpush1.bf16.msra.mxu0 %v15847_v46 }
0x2ca0   :  { %13780 = vmatprep.subr.bf16.mxu0 %v17529_v33 }
0x2d55   :  { %v3663_v49 = vpop.f32.mrb[36].mxu0 }
0x2d56   :  { %v3664_v22 = vadd.f32 %v3663_v49, %v16130_v1  ;;  %v12095_v32 = vpop.f32.mrb[37].mxu0 }
0x2d58   :  { %v3667_v57 = vmax.f32 %v3664_v22, 0.0 }
0x2d5a   :  { %v3672_v28 = vsel %vm2466_vm5, %v3667_v57, %v3670_v62 }
0x2d5b   :  { %10654 = vmatmul.mubr.msk.f32.vlgmr.msra.gmra.mrb[34].mxu1 %vm2501_vm6, %v3672_v28 }
0x2d5c   :  { %13764 = vmatpush3.bf16.msra.mxu1 %v15876_v40  ;;  %12104 = vmatprep.mubr.msk.f32.mxu1 %vm15289_vm2, %v17535_v60 }
0x2d5d   :  { %13765 = vmatprep.subr.bf16.mxu1 %v17529_v33 }
0x2d60   :  { %13767 = vmatpush3.bf16.msra.mxu1 %v15879_v3 }
0x2d61   :  { %13768 = vmatprep.subr.bf16.mxu1 %v17529_v33 }
0x2e2e   :  { %v3742_v46 = vpop.f32.mrb[34].mxu1 }
0x2e2f   :  { %v3744_v49 = vpop.f32.mrb[35].mxu1  ;;  %v3743_v28 = vadd.f32 %v3742_v46, %v15793_v26 }
0x2e30   :  { %v3745_v22 = vadd.f32 %v3744_v49, %v15783_v19 }
0x2e31   :  { %v10655_v57 = vmul.f32 -1.442695, %v3743_v28 }
0x2e32   :  { %15022 = vtanh.f32 %v3745_v22 }
0x2e33   :  { %15024 = vpow2.f32 %v10655_v57 }
0x2e3c   :  { %v15023_v32 = vpop.eup %15022 }
0x2e3d   :  { %3762 = vrot.lane.b32.xlu1 %v15023_v32, %s15293_s2  ;;  %v15025_v62 = vpop.eup %15024  ;;  %v10656_v32 = vmul.f32 -1.442695, %v3745_v22 }
0x2e3e   :  { %v3753_v40 = vadd.f32 1.0, %v15025_v62 }
0x2e40   :  { %15026 = vrcp.f32 %v3753_v40 }
0x2e4a   :  { %v15027_v1 = vpop.eup %15026 }
0x2e4b   :  { %v3760_v49 = vmul.f32 %v15027_v1, %v15849_v52 }
0x2eaf   :  { %v3763_v35 = vpop.permute.xlu1 %3762 }
0x2eb0   :  { %v3765_v3 = vmul.f32 %v15027_v1, %v3763_v35 }
0x2eb2   :  { %3767 = vrot.lane.b32.xlu0 %v3765_v3, %s15293_s2 }
0x2eb6   :  { %3777 = vrot.lane.b32.xlu0 %v15891_v23, %s15293_s2 }
0x2f24   :  { %v3768_v19 = vpop.permute.xlu0 %3767 }
0x2f25   :  { %v16148_v34 = vadd.f32 %v3768_v19, %v3760_v49 }
0x2f27   :  { %15028 = vtanh.f32 %v16148_v34 }
0x2f28   :  { %15030 = vpow2.f32 %v10656_v32  ;;  %v3778_v62 = vpop.permute.xlu0 %3777 }
0x2f31   :  { %v15029_v46 = vpop.eup %15028 }
0x2f32   :  { %3773 = vrot.lane.b32.xlu1 %v15029_v46, %s15293_s2  ;;  %v15031_v40 = vpop.eup %15030 }
0x2f33   :  { %v3754_v28 = vadd.f32 1.0, %v15031_v40 }
0x2f35   :  { %15032 = vrcp.f32 %v3754_v28 }
0x2f3f   :  { %v15033_v35 = vpop.eup %15032 }
0x2fa4   :  { %v3774_v3 = vpop.permute.xlu1 %3773 }
0x2fa5   :  { %v3776_v57 = vmul.f32 %v15033_v35, %v3774_v3 }
0x2fa7   :  { %v3780_v23 = vsel %vm654_vm3, %v3776_v57, %v3778_v62 }
0x2fa8   :  { %3846 = vmatmul.mubr.f32.vlgmr.msra.gmra.mrb[38].mxu0 %v3780_v23 }
0x2fa9   :  { %13782 = vmatpush3.bf16.msra.mxu0 %v15911_v6  ;;  %12142 = vmatprep.mubr.msk.f32.mxu0 %vm15289_vm2, %v17535_v60 }
0x2faa   :  { %13783 = vmatprep.subr.bf16.mxu0 %v17529_v33 }
0x2fad   :  { %13785 = vmatpush3.bf16.msra.mxu0 %v15914_v0 }
0x2fae   :  { %13786 = vmatprep.subr.bf16.mxu0 %v17529_v33 }
0x2fb1   :  { %13788 = vmatpush3.bf16.msra.mxu0 %v15918_v54 }
0x2fb2   :  { %13789 = vmatprep.subr.bf16.mxu0 %v17529_v33 }
0x2fb5   :  { %13791 = vmatpush3.bf16.msra.mxu0 %v15931_v12 }
0x2fb6   :  { %13804 = vmatprep.subr.bf16.mxu0 %v17529_v33 }
0x307b   :  { %v3847_v19 = vpop.f32.mrb[38].mxu0 }
0x307c   :  { %v3849_v52 = vpop.f32.mrb[39].mxu0  ;;  %v3848_v49 = vadd.f32 %v3847_v19, %v15872_v48 }
0x307d   :  { %v3850_v1 = vadd.f32 %v3849_v52, %v15866_v8 }
0x307e   :  { %v10657_v46 = vmul.f32 -1.442695, %v3848_v49 }
0x307f   :  { %15034 = vtanh.f32 %v3850_v1 }
0x3080   :  { %15036 = vpow2.f32 %v10657_v46 }
0x3089   :  { %v15035_v22 = vpop.eup %15034 }
0x308a   :  { %3867 = vrot.lane.b32.xlu1 %v15035_v22, %s15293_s2  ;;  %v15037_v32 = vpop.eup %15036  ;;  %v10658_v22 = vmul.f32 -1.442695, %v3850_v1 }
0x308b   :  { %v3858_v40 = vadd.f32 1.0, %v15037_v32 }
0x308d   :  { %15038 = vrcp.f32 %v3858_v40 }
0x3097   :  { %v15039_v28 = vpop.eup %15038 }
0x3098   :  { %v3865_v62 = vmul.f32 %v15039_v28, %v15885_v56 }
0x30fc   :  { %v3868_v35 = vpop.permute.xlu1 %3867 }
0x30fd   :  { %v3870_v3 = vmul.f32 %v15039_v28, %v3868_v35 }
0x30ff   :  { %3872 = vrot.lane.b32.xlu0 %v3870_v3, %s15293_s2 }
0x3103   :  { %4697 = vrot.lane.b32.xlu0 %v3776_v57, %s15287_s7 }
0x3171   :  { %v3873_v23 = vpop.permute.xlu0 %3872 }
0x3172   :  { %v16169_v52 = vadd.f32 %v3873_v23, %v3865_v62 }
0x3174   :  { %15040 = vtanh.f32 %v16169_v52 }
0x3175   :  { %15042 = vpow2.f32 %v10658_v22  ;;  %v17538_v22 = vld [vmem:[#allocation39_spill] sm:$0xff] }
0x317e   :  { %v15041_v19 = vpop.eup %15040 }
0x317f   :  { %3878 = vrot.lane.b32.xlu1 %v15041_v19, %s15293_s2  ;;  %v15043_v49 = vpop.eup %15042 }
0x3180   :  { %v3859_v46 = vadd.f32 1.0, %v15043_v49  ;;  %v17539_v49 = vld [vmem:[#allocation40_spill] sm:$0xff] }
0x3182   :  { %15044 = vrcp.f32 %v3859_v46 }
0x318c   :  { %v15045_v32 = vpop.eup %15044 }
0x31f1   :  { %v3879_v40 = vpop.permute.xlu1 %3878 }
0x31f2   :  { %v16173_v35 = vmul.f32 %v15045_v32, %v3879_v40  ;;  %v17541_v32 = vld [vmem:[#allocation41_spill] sm:$0xff] }
0x31f4   :  { %12105 = vmatmul.mubr.msk.f32.vlgmr.msra.gmra.mrb[36].mxu1 %vm134_vm1, %v16173_v35 }
0x31f5   :  { %13770 = vmatpush3.bf16.msra.mxu1 %v15889_v31  ;;  %12123 = vmatprep.mubr.msk.f32.mxu1 %vm15289_vm2, %v17535_v60 }
0x31f6   :  { %13771 = vmatprep.subr.bf16.mxu1 %v17529_v33 }
0x31f9   :  { %13773 = vmatpush3.bf16.msra.mxu1 %v15896_v14 }
0x31fa   :  { %13774 = vmatprep.subr.bf16.mxu1 %v17529_v33 }
0x31fd   :  { %13776 = vmatpush3.bf16.msra.mxu1 %v15902_v20 }
0x31fe   :  { %13777 = vmatprep.subr.bf16.mxu1 %v17529_v33 }
0x3201   :  { %13779 = vmatpush3.bf16.msra.mxu1 %v15907_v17 }
0x3202   :  { %13792 = vmatprep.subr.bf16.mxu1 %v17529_v33 }
0x32c7   :  { %v3951_v56 = vpop.f32.mrb[36].mxu1 }
0x32c8   :  { %v3952_v57 = vadd.f32 %v3951_v56, %v15923_v11  ;;  %v12106_v1 = vpop.f32.mrb[37].mxu1 }
0x32c9   :  { %v17542_v1 = vld [vmem:[#allocation43_spill] sm:$0xff] }
0x32ca   :  { %v3955_v28 = vmax.f32 %v3952_v57, 0.0 }
0x32cc   :  { %v3956_v3 = vsel %vm134_vm1, %v3955_v28, %v16173_v35  ;;  %v17543_v28 = vld [vmem:[#allocation44_spill] sm:$0xff] }
0x32cd   :  { %12124 = vmatmul.mubr.msk.f32.vlgmr.msra.gmra.mrb[38].mxu1 %vm654_vm3, %v3956_v3  ;;  %v17544_v3 = vld [vmem:[#allocation45_spill] sm:$0xff] }
0x32ce   :  { %13794 = vmatpush3.bf16.msra.mxu1 %v15935_v21  ;;  %12161 = vmatprep.mubr.msk.f32.mxu1 %vm15289_vm2, %v17535_v60 }
0x32cf   :  { %13795 = vmatprep.subr.bf16.mxu1 %v17529_v33 }
0x32d2   :  { %13797 = vmatpush3.bf16.msra.mxu1 %v15938_v30 }
0x32d3   :  { %13798 = vmatprep.subr.bf16.mxu1 %v17529_v33 }
0x32d6   :  { %13800 = vmatpush3.bf16.msra.mxu1 %v15942_v37 }
0x32d7   :  { %13801 = vmatprep.subr.bf16.mxu1 %v17529_v33 }
0x32da   :  { %13803 = vmatpush3.bf16.msra.mxu1 %v15953_v4 }
0x32db   :  { %13816 = vmatprep.subr.bf16.mxu1 %v17529_v33 }
0x33a0   :  { %v4026_v11 = vpop.f32.mrb[38].mxu1 }
0x33a1   :  { %v4027_v62 = vadd.f32 %v4026_v11, %v15947_v41  ;;  %v12125_v23 = vpop.f32.mrb[39].mxu1  ;;  %v17540_v41 = vld [vmem:[#allocation42_spill] sm:$0xff]  ;;  %v17545_v11 = vld [vmem:[#allocation47_spill] sm:$0xff] }
0x33a2   :  { %v17546_v23 = vld [vmem:[#allocation46_spill] sm:$0xff] }
0x33a3   :  { %v4030_v19 = vmax.f32 %v4027_v62, 0.0 }
0x33a5   :  { %12143 = vmatmul.mubr.msk.f32.vlgmr.msra.gmra.mrb[40].mxu0 %vm654_vm3, %v4030_v19 }
0x33a6   :  { %13806 = vmatpush3.bf16.msra.mxu0 %v15957_v18  ;;  %12180 = vmatprep.mubr.msk.f32.mxu0 %vm15289_vm2, %v17535_v60 }
0x33a7   :  { %13807 = vmatprep.subr.bf16.mxu0 %v17529_v33 }
0x33aa   :  { %13809 = vmatpush3.bf16.msra.mxu0 %v17538_v22 }
0x33ab   :  { %13810 = vmatprep.subr.bf16.mxu0 %v17529_v33 }
0x33ae   :  { %13812 = vmatpush3.bf16.msra.mxu0 %v17539_v49 }
0x33af   :  { %13813 = vmatprep.subr.bf16.mxu0 %v17529_v33 }
0x33b2   :  { %13815 = vmatpush3.bf16.msra.mxu0 %v17540_v41 }
0x33b3   :  { %13828 = vmatprep.subr.bf16.mxu0 %v17529_v33 }
0x3478   :  { %v4100_v46 = vpop.f32.mrb[40].mxu0 }
0x3479   :  { %v4101_v40 = vadd.f32 %v4100_v46, %v17541_v32  ;;  %v12144_v56 = vpop.f32.mrb[41].mxu0 }
0x347a   :  { %v17548_v56 = vld [vmem:[#allocation49_spill] sm:$0xff] }
0x347b   :  { %v4104_v57 = vmax.f32 %v4101_v40, 0.0  ;;  %v17547_v40 = vld [vmem:[#allocation48_spill] sm:$0xff] }
0x347d   :  { %12162 = vmatmul.mubr.msk.f32.vlgmr.msra.gmra.mrb[40].mxu1 %vm654_vm3, %v4104_v57  ;;  %v17549_v57 = vld [vmem:[#allocation50_spill] sm:$0xff] }
0x347e   :  { %13818 = vmatpush3.bf16.msra.mxu1 %v17542_v1  ;;  %12199 = vmatprep.mubr.msk.f32.mxu1 %vm15289_vm2, %v17535_v60  ;;  %v17554_v1 = vld [vmem:[#allocation60_spill] sm:$0xff] }
0x347f   :  { %13819 = vmatprep.subr.bf16.mxu1 %v17529_v33 }
0x3482   :  { %13821 = vmatpush3.bf16.msra.mxu1 %v17543_v28 }
0x3483   :  { %13822 = vmatprep.subr.bf16.mxu1 %v17529_v33 }
0x3486   :  { %13824 = vmatpush3.bf16.msra.mxu1 %v17544_v3 }
0x3487   :  { %13825 = vmatprep.subr.bf16.mxu1 %v17529_v33 }
0x348a   :  { %13827 = vmatpush3.bf16.msra.mxu1 %v17545_v11  ;;  %v17552_v11 = vld [vmem:[#allocation53_spill] sm:$0xff] }
0x348b   :  { %13840 = vmatprep.subr.bf16.mxu1 %v17529_v33 }
0x3550   :  { %v4174_v62 = vpop.f32.mrb[40].mxu1 }
0x3551   :  { %v4175_v19 = vadd.f32 %v4174_v62, %v17546_v23  ;;  %v12163_v46 = vpop.f32.mrb[41].mxu1  ;;  %v17550_v62 = vld [vmem:[#allocation52_spill] sm:$0xff] }
0x3553   :  { %v4178_v32 = vmax.f32 %v4175_v19, 0.0  ;;  %v17551_v19 = vld [vmem:[#allocation51_spill] sm:$0xff] }
0x3555   :  { %12181 = vmatmul.mubr.msk.f32.vlgmr.msra.gmra.mrb[42].mxu0 %vm654_vm3, %v4178_v32 }
0x3556   :  { %13830 = vmatpush3.bf16.msra.mxu0 %v17547_v40  ;;  %12218 = vmatprep.mubr.msk.f32.mxu0 %vm15289_vm2, %v17535_v60 }
0x3557   :  { %13831 = vmatprep.subr.bf16.mxu0 %v17529_v33 }
0x355a   :  { %13833 = vmatpush3.bf16.msra.mxu0 %v17548_v56  ;;  %v17553_v56 = vld [vmem:[#allocation54_spill] sm:$0xff] }
0x355b   :  { %13834 = vmatprep.subr.bf16.mxu0 %v17529_v33 }
0x355e   :  { %13836 = vmatpush3.bf16.msra.mxu0 %v17549_v57 }
0x355f   :  { %13837 = vmatprep.subr.bf16.mxu0 %v17529_v33 }
0x3562   :  { %13839 = vmatpush3.bf16.msra.mxu0 %v17550_v62 }
0x3563   :  { %13855 = vmatprep.subr.bf16.mxu0 %v17529_v33 }
0x3628   :  { %v4248_v23 = vpop.f32.mrb[42].mxu0 }
0x3629   :  { %v4249_v46 = vadd.f32 %v4248_v23, %v17551_v19  ;;  %v12182_v32 = vpop.f32.mrb[43].mxu0  ;;  %v17556_v23 = vld [vmem:[#allocation62_spill] sm:$0xff]  ;;  %v17559_v19 = vld [vmem:[#allocation57_spill] sm:$0xff] }
0x362a   :  { %v17561_v32 = vld [vmem:[#allocation59_spill] sm:$0xff] }
0x362b   :  { %v4252_v40 = vmax.f32 %v4249_v46, 0.0  ;;  %v17560_v46 = vld [vmem:[#allocation58_spill] sm:$0xff] }
0x362d   :  { %12200 = vmatmul.mubr.msk.f32.vlgmr.msra.gmra.mrb[42].mxu1 %vm654_vm3, %v4252_v40  ;;  %v17555_v40 = vld [vmem:[#allocation61_spill] sm:$0xff] }
0x362e   :  { %13842 = vmatpush3.bf16.msra.mxu1 %v17552_v11  ;;  %12225 = vmatprep.mubr.msk.f32.mxu1 %vm15289_vm2, %v17535_v60 }
0x362f   :  { %13843 = vmatprep.subr.bf16.mxu1 %v17529_v33 }
0x3700   :  { %v4322_v57 = vpop.f32.mrb[42].mxu1 }
0x3701   :  { %v4323_v3 = vadd.f32 %v4322_v57, %v17553_v56  ;;  %v12201_v62 = vpop.f32.mrb[43].mxu1 }
0x3702   :  { %v17558_v62 = vld [vmem:[#allocation56_spill] sm:$0xff] }
0x3703   :  { %v4326_v28 = vmax.f32 %v4323_v3, 0.0  ;;  %v17557_v3 = vld [vmem:[#allocation55_spill] sm:$0xff] }
0x3705   :  { %12219 = vmatmul.mubr.msk.f32.vlgmr.msra.gmra.mrb[44].mxu0 %vm654_vm3, %v4326_v28 }
0x3706   :  { %13857 = vmatpush3.bf16.msra.mxu0 %v17554_v1  ;;  %12263 = vmatprep.mubr.msk.f32.mxu0 %vm15289_vm2, %v17535_v60 }
0x3707   :  { %13858 = vmatprep.subr.bf16.mxu0 %v17529_v33 }
0x370a   :  { %13860 = vmatpush3.bf16.msra.mxu0 %v17555_v40 }
0x370b   :  { %13861 = vmatprep.subr.bf16.mxu0 %v17529_v33 }
0x370e   :  { %13863 = vmatpush3.bf16.msra.mxu0 %v17556_v23 }
0x370f   :  { %13864 = vmatprep.subr.bf16.mxu0 %v17529_v33 }
0x3712   :  { %13866 = vmatpush3.bf16.msra.mxu0 %v16074_v25 }
0x3713   :  { %13880 = vmatprep.subr.bf16.mxu0 %v15729_v36 }
0x37d8   :  { %v4396_v28 = vpop.f32.mrb[44].mxu0 }
0x37d9   :  { %v4397_v56 = vadd.f32 %v4396_v28, %v17557_v3  ;;  %v12220_v57 = vpop.f32.mrb[45].mxu0 }
0x37db   :  { %10570 = vst.msk [vmem:[#allocation7 + $0x2] sm:$0x3] %vm10568_vm7, %v4397_v56  ;;  %12226 = vmatmul.mubr.msk.f32.vlgmr.msra.gmra.mrb[44].mxu1 %vm2466_vm5, %v4397_v56 }
0x37dc   :  { %13845 = vmatpush3.bf16.msra.mxu1 %v17558_v62  ;;  %12244 = vmatprep.mubr.msk.f32.mxu1 %vm15289_vm2, %v17535_v60 }
0x37dd   :  { %13846 = vmatprep.subr.bf16.mxu1 %v17529_v33 }
0x37e0   :  { %13848 = vmatpush3.bf16.msra.mxu1 %v17559_v19 }
0x37e1   :  { %13849 = vmatprep.subr.bf16.mxu1 %v17529_v33 }
0x37e4   :  { %13851 = vmatpush3.bf16.msra.mxu1 %v17560_v46 }
0x37e5   :  { %13852 = vmatprep.subr.bf16.mxu1 %v17529_v33 }
0x37e8   :  { %13854 = vmatpush3.bf16.msra.mxu1 %v17561_v32 }
0x37e9   :  { %13867 = vmatprep.subr.bf16.mxu1 %v17529_v33 }
0x38ae   :  { %v4469_v28 = vpop.f32.mrb[44].mxu1 }
0x38af   :  { %v4470_v3 = vadd.f32 %v4469_v28, %v16068_v61  ;;  %v12227_v56 = vpop.f32.mrb[45].mxu1 }
0x38b1   :  { %v4473_v57 = vmax.f32 %v4470_v3, 0.0 }
0x38b3   :  { %12245 = vmatmul.mubr.msk.f32.vlgmr.msra.gmra.mrb[46].mxu1 %vm654_vm3, %v4473_v57 }
0x38b4   :  { %13869 = vmatpush3.bf16.msra.mxu1 %v16078_v13  ;;  %12282 = vmatprep.mubr.msk.f32.mxu1 %vm15289_vm2, %v17535_v60 }
0x38b5   :  { %13870 = vmatprep.subr.bf16.mxu1 %v17529_v33 }
0x38b8   :  { %13872 = vmatpush3.bf16.msra.mxu1 %v16081_v50 }
0x38b9   :  { %13873 = vmatprep.subr.bf16.mxu1 %v17529_v33 }
0x38bc   :  { %13875 = vmatpush3.bf16.msra.mxu1 %v16085_v15 }
0x38bd   :  { %13876 = vmatprep.subr.bf16.mxu1 %v17529_v33 }
0x38c0   :  { %13878 = vmatpush3.bf16.msra.mxu1 %v16105_v45  ;;  %v17563_v45 = vld [vmem:[#allocation17_spill] sm:$0xff] }
0x38c1   :  { %13900 = vmatprep.subr.bf16.mxu1 %v15800_v39  ;;  %v17562_v39 = vld [vmem:[#allocation16_spill] sm:$0xff] }
0x3986   :  { %v4543_v28 = vpop.f32.mrb[46].mxu1 }
0x3987   :  { %v4544_v3 = vadd.f32 %v4543_v28, %v16090_v51  ;;  %v12246_v56 = vpop.f32.mrb[47].mxu1 }
0x3989   :  { %v4547_v57 = vmax.f32 %v4544_v3, 0.0 }
0x398b   :  { %12264 = vmatmul.mubr.msk.f32.vlgmr.msra.gmra.mrb[46].mxu0 %vm654_vm3, %v4547_v57 }
0x398c   :  { %13882 = vmatpush1.bf16.msra.mxu0 %v15731_v42  ;;  %4768 = vmatprep.mubr.f32.mxu0 %v17535_v60 }
0x398d   :  { %13884 = vmatprep.subr.bf16.mxu0 %v15733_v43 }
0x3990   :  { %13886 = vmatpush1.bf16.msra.mxu0 %v15738_v53 }
0x3991   :  { %13888 = vmatprep.subr.bf16.mxu0 %v15742_v55 }
0x3994   :  { %13890 = vmatpush1.bf16.msra.mxu0 %v15749_v63 }
0x3995   :  { %13892 = vmatprep.subr.bf16.mxu0 %v17562_v39 }
0x3998   :  { %13894 = vmatpush1.bf16.msra.mxu0 %v17563_v45 }
0x3999   :  { %13896 = vmatprep.subr.bf16.mxu0 %v15760_v7 }
0x399c   :  { %13898 = vmatpush1.bf16.msra.mxu0 %v15763_v10 }
0x399d   :  { %13931 = vmatprep.subr.bf16.mxu0 %v17529_v33 }
0x3a5e   :  { %v4617_v28 = vpop.f32.mrb[46].mxu0 }
0x3a5f   :  { %v4618_v3 = vadd.f32 %v4617_v28, %v16109_v27  ;;  %v12265_v56 = vpop.f32.mrb[47].mxu0  ;;  %v17564_v28 = vld [vmem:[#allocation32_spill] sm:$0xff] }
0x3a60   :  { %v17566_v56 = vld [vmem:[#allocation35_spill] sm:$0xff] }
0x3a61   :  { %v4621_v57 = vmax.f32 %v4618_v3, 0.0  ;;  %v17565_v3 = vld [vmem:[#allocation34_spill] sm:$0xff] }
0x3a63   :  { %12283 = vmatmul.mubr.msk.f32.vlgmr.msra.gmra.mrb[48].mxu1 %vm654_vm3, %v4621_v57  ;;  %v17567_v57 = vld [vmem:[#allocation36_spill] sm:$0xff] }
0x3a64   :  { %13902 = vmatpush1.bf16.msra.mxu1 %v15802_v47  ;;  %4873 = vmatprep.mubr.f32.mxu1 %v17535_v60 }
0x3a65   :  { %13904 = vmatprep.subr.bf16.mxu1 %v15804_v38 }
0x3a68   :  { %13906 = vmatpush1.bf16.msra.mxu1 %v15808_v58 }
0x3a69   :  { %13908 = vmatprep.subr.bf16.mxu1 %v15811_v59 }
0x3a6c   :  { %13910 = vmatpush1.bf16.msra.mxu1 %v15814_v2 }
0x3a6d   :  { %13912 = vmatprep.subr.bf16.mxu1 %v15817_v24 }
0x3a70   :  { %13914 = vmatpush1.bf16.msra.mxu1 %v15820_v9  ;;  %v17568_v9 = vld [vmem:[#allocation64_spill] sm:$0xff] }
0x3a71   :  { %13916 = vmatprep.subr.bf16.mxu1 %v15823_v5 }
0x3a74   :  { %13918 = vmatpush1.bf16.msra.mxu1 %v15826_v44  ;;  %v4698_v44 = vpop.permute.xlu0 %4697 }
0x3a75   :  { %13920 = vmatprep.subr.bf16.mxu1 %v15829_v16 }
0x3a78   :  { %13922 = vmatpush1.bf16.msra.mxu1 %v17564_v28  ;;  %v17569_v28 = vld [vmem:[#allocation37_spill] sm:$0xff] }
0x3a79   :  { %13924 = vmatprep.subr.bf16.mxu1 %v15835_v29 }
0x3a7c   :  { %13926 = vmatpush1.bf16.msra.mxu1 %v17565_v3 }
0x3a7d   :  { %13928 = vmatprep.subr.bf16.mxu1 %v17566_v56 }
0x3a80   :  { %13930 = vmatpush1.bf16.msra.mxu1 %v17567_v57  ;;  %v17570_v57 = vld [vmem:[#allocation38_spill] sm:$0xff] }
0x3a81   :  { %13949 = vmatprep.subr.bf16.mxu1 %v17529_v33 }
0x3b36   :  { %v4691_v24 = vpop.f32.mrb[48].mxu1 }
0x3b37   :  { %v4692_v2 = vadd.f32 %v4691_v24, %v17568_v9  ;;  %v12284_v5 = vpop.f32.mrb[49].mxu1 }
0x3b38   :  { %v17571_v5 = vld [vmem:[#allocation20_spill] sm:$0xff] }
0x3b39   :  { %v4695_v59 = vmax.f32 %v4692_v2, 0.0 }
0x3b3b   :  { %v4700_v16 = vsel %vm2466_vm5, %v4695_v59, %v4698_v44 }
0x3b3c   :  { %10670 = vmatmul.mubr.msk.f32.vlgmr.msra.gmra.mrb[48].mxu0 %vm2501_vm6, %v4700_v16 }
0x3b3d   :  { %13933 = vmatpush3.bf16.msra.mxu0 %v17569_v28  ;;  %12293 = vmatprep.mubr.msk.f32.mxu0 %vm15289_vm2, %v17535_v60 }
0x3b3e   :  { %13934 = vmatprep.subr.bf16.mxu0 %v17529_v33 }
0x3b41   :  { %13936 = vmatpush3.bf16.msra.mxu0 %v17570_v57 }
0x3b42   :  { %13937 = vmatprep.subr.bf16.mxu0 %v17529_v33 }
0x3c0f   :  { %v4770_v56 = vpop.f32.mrb[48].mxu0 }
0x3c10   :  { %v4772_v24 = vpop.f32.mrb[49].mxu0  ;;  %v4771_v59 = vadd.f32 %v4770_v56, %v15793_v26 }
0x3c11   :  { %v4773_v2 = vadd.f32 %v4772_v24, %v17571_v5 }
0x3c12   :  { %v10671_v44 = vmul.f32 -1.442695, %v4771_v59 }
0x3c13   :  { %15046 = vtanh.f32 %v4773_v2  ;;  %v10672_v56 = vmul.f32 -1.442695, %v4773_v2 }
0x3c14   :  { %15048 = vpow2.f32 %v10671_v44 }
0x3c1d   :  { %v15047_v9 = vpop.eup %15046 }
0x3c1e   :  { %4790 = vrot.lane.b32.xlu1 %v15047_v9, %s15293_s2  ;;  %v15049_v16 = vpop.eup %15048 }
0x3c1f   :  { %v4781_v28 = vadd.f32 1.0, %v15049_v16 }
0x3c21   :  { %15050 = vrcp.f32 %v4781_v28 }
0x3c2b   :  { %v15051_v3 = vpop.eup %15050 }
0x3c2c   :  { %v4788_v24 = vmul.f32 %v15051_v3, %v16148_v34 }
0x3c90   :  { %v4791_v29 = vpop.permute.xlu1 %4790 }
0x3c91   :  { %v4793_v57 = vmul.f32 %v15051_v3, %v4791_v29 }
0x3c93   :  { %4795 = vrot.lane.b32.xlu0 %v4793_v57, %s15293_s2 }
0x3c97   :  { %4805 = vrot.lane.b32.xlu0 %v16173_v35, %s15293_s2 }
0x3d05   :  { %v4796_v5 = vpop.permute.xlu0 %4795 }
0x3d06   :  { %v16328_v58 = vadd.f32 %v4796_v5, %v4788_v24 }
0x3d08   :  { %15052 = vtanh.f32 %v16328_v58 }
0x3d09   :  { %15054 = vpow2.f32 %v10672_v56  ;;  %v4806_v16 = vpop.permute.xlu0 %4805 }
0x3d12   :  { %v15053_v9 = vpop.eup %15052 }
0x3d13   :  { %4801 = vrot.lane.b32.xlu1 %v15053_v9, %s15293_s2  ;;  %v15055_v28 = vpop.eup %15054 }
0x3d14   :  { %v4782_v59 = vadd.f32 1.0, %v15055_v28 }
0x3d16   :  { %15056 = vrcp.f32 %v4782_v59 }
0x3d20   :  { %v15057_v29 = vpop.eup %15056 }
0x3d85   :  { %v4802_v57 = vpop.permute.xlu1 %4801 }
0x3d86   :  { %v4804_v44 = vmul.f32 %v15057_v29, %v4802_v57 }
0x3d88   :  { %v4808_v35 = vsel %vm654_vm3, %v4804_v44, %v4806_v16 }
0x3d89   :  { %4874 = vmatmul.mubr.f32.vlgmr.msra.gmra.mrb[50].mxu1 %v4808_v35 }
0x3d8a   :  { %13951 = vmatpush3.bf16.msra.mxu1 %v15911_v6  ;;  %12331 = vmatprep.mubr.msk.f32.mxu1 %vm15289_vm2, %v17535_v60 }
0x3d8b   :  { %13952 = vmatprep.subr.bf16.mxu1 %v17529_v33 }
0x3d8e   :  { %13954 = vmatpush3.bf16.msra.mxu1 %v15914_v0 }
0x3d8f   :  { %13955 = vmatprep.subr.bf16.mxu1 %v17529_v33 }
0x3d92   :  { %13957 = vmatpush3.bf16.msra.mxu1 %v15918_v54 }
0x3d93   :  { %13958 = vmatprep.subr.bf16.mxu1 %v17529_v33 }
0x3d96   :  { %13960 = vmatpush3.bf16.msra.mxu1 %v15931_v12 }
0x3d97   :  { %13973 = vmatprep.subr.bf16.mxu1 %v17529_v33 }
0x3e5c   :  { %v4875_v34 = vpop.f32.mrb[50].mxu1 }
0x3e5d   :  { %v4877_v3 = vpop.f32.mrb[51].mxu1  ;;  %v4876_v24 = vadd.f32 %v4875_v34, %v15872_v48 }
0x3e5e   :  { %v4878_v5 = vadd.f32 %v4877_v3, %v15866_v8 }
0x3e5f   :  { %v10673_v9 = vmul.f32 -1.442695, %v4876_v24 }
0x3e60   :  { %15058 = vtanh.f32 %v4878_v5 }
0x3e61   :  { %15060 = vpow2.f32 %v10673_v9 }
0x3e6a   :  { %v15059_v2 = vpop.eup %15058 }
0x3e6b   :  { %4895 = vrot.lane.b32.xlu1 %v15059_v2, %s15293_s2  ;;  %v15061_v56 = vpop.eup %15060  ;;  %v10674_v2 = vmul.f32 -1.442695, %v4878_v5 }
0x3e6c   :  { %v4886_v28 = vadd.f32 1.0, %v15061_v56 }
0x3e6e   :  { %15062 = vrcp.f32 %v4886_v28 }
0x3e78   :  { %v15063_v59 = vpop.eup %15062 }
0x3e79   :  { %v4893_v16 = vmul.f32 %v15063_v59, %v16169_v52 }
0x3edd   :  { %v4896_v29 = vpop.permute.xlu1 %4895 }
0x3ede   :  { %v4898_v57 = vmul.f32 %v15063_v59, %v4896_v29 }
0x3ee0   :  { %4900 = vrot.lane.b32.xlu0 %v4898_v57, %s15293_s2 }
0x3ee4   :  { %5725 = vrot.lane.b32.xlu0 %v4804_v44, %s15287_s7  ;;  %v16367_v44 = vld [vmem:[#allocation5 + $0x6c0] ss:$0 sm:$0xff] }
0x3f52   :  { %v4901_v35 = vpop.permute.xlu0 %4900 }
0x3f53   :  { %v16349_v3 = vadd.f32 %v4901_v35, %v4893_v16 }
0x3f55   :  { %15064 = vtanh.f32 %v16349_v3 }
0x3f56   :  { %15066 = vpow2.f32 %v10674_v2 }
0x3f5f   :  { %v15065_v34 = vpop.eup %15064 }
0x3f60   :  { %4906 = vrot.lane.b32.xlu1 %v15065_v34, %s15293_s2  ;;  %v15067_v24 = vpop.eup %15066  ;;  %v16383_v34 = vld [vmem:[#allocation5 + $0x750] ss:$0 sm:$0xff] }
0x3f61   :  { %v4887_v9 = vadd.f32 1.0, %v15067_v24 }
0x3f63   :  { %15068 = vrcp.f32 %v4887_v9 }
0x3f6d   :  { %v15069_v56 = vpop.eup %15068 }
0x3fd2   :  { %v4907_v28 = vpop.permute.xlu1 %4906 }
0x3fd3   :  { %v16353_v29 = vmul.f32 %v15069_v56, %v4907_v28  ;;  %v16397_v28 = vld [vmem:[#allocation5 + $0x7e0] ss:$0 sm:$0xff] }
0x3fd5   :  { %12294 = vmatmul.mubr.msk.f32.vlgmr.msra.gmra.mrb[50].mxu0 %vm134_vm1, %v16353_v29 }
0x3fd6   :  { %13939 = vmatpush3.bf16.msra.mxu0 %v15889_v31  ;;  %12312 = vmatprep.mubr.msk.f32.mxu0 %vm15289_vm2, %v17535_v60 }
0x3fd7   :  { %13940 = vmatprep.subr.bf16.mxu0 %v17529_v33 }
0x3fda   :  { %13942 = vmatpush3.bf16.msra.mxu0 %v15896_v14 }
0x3fdb   :  { %13943 = vmatprep.subr.bf16.mxu0 %v17529_v33 }
0x3fde   :  { %13945 = vmatpush3.bf16.msra.mxu0 %v15902_v20 }
0x3fdf   :  { %13946 = vmatprep.subr.bf16.mxu0 %v17529_v33 }
0x3fe2   :  { %13948 = vmatpush3.bf16.msra.mxu0 %v15907_v17 }
0x3fe3   :  { %13961 = vmatprep.subr.bf16.mxu0 %v17529_v33 }
0x40a8   :  { %v4979_v52 = vpop.f32.mrb[50].mxu0 }
0x40a9   :  { %v4980_v5 = vadd.f32 %v16367_v44, %v4979_v52  ;;  %v12295_v59 = vpop.f32.mrb[51].mxu0 }
0x40ab   :  { %v4983_v57 = vmax.f32 %v4980_v5, 0.0 }
0x40ad   :  { %v4984_v16 = vsel %vm134_vm1, %v4983_v57, %v16353_v29  ;;  %v17572_v57 = vld [vmem:[#allocation43_spill] sm:$0xff] }
0x40ae   :  { %12313 = vmatmul.mubr.msk.f32.vlgmr.msra.gmra.mrb[52].mxu0 %vm654_vm3, %v4984_v16  ;;  %v17573_v16 = vld [vmem:[#allocation44_spill] sm:$0xff] }
0x40af   :  { %13963 = vmatpush3.bf16.msra.mxu0 %v15935_v21  ;;  %12350 = vmatprep.mubr.msk.f32.mxu0 %vm15289_vm2, %v17535_v60 }
0x40b0   :  { %13964 = vmatprep.subr.bf16.mxu0 %v17529_v33 }
0x40b3   :  { %13966 = vmatpush3.bf16.msra.mxu0 %v15938_v30 }
0x40b4   :  { %13967 = vmatprep.subr.bf16.mxu0 %v17529_v33 }
0x40b7   :  { %13969 = vmatpush3.bf16.msra.mxu0 %v15942_v37 }
0x40b8   :  { %13970 = vmatprep.subr.bf16.mxu0 %v17529_v33 }
0x40bb   :  { %13972 = vmatpush3.bf16.msra.mxu0 %v15953_v4 }
0x40bc   :  { %13985 = vmatprep.subr.bf16.mxu0 %v17529_v33 }
0x4181   :  { %v5054_v35 = vpop.f32.mrb[52].mxu0 }
0x4182   :  { %v5055_v2 = vadd.f32 %v16383_v34, %v5054_v35  ;;  %v12314_v24 = vpop.f32.mrb[53].mxu0  ;;  %v17574_v35 = vld [vmem:[#allocation45_spill] sm:$0xff] }
0x4184   :  { %v5058_v9 = vmax.f32 %v5055_v2, 0.0  ;;  %v17575_v2 = vld [vmem:[#allocation47_spill] sm:$0xff] }
0x4186   :  { %12332 = vmatmul.mubr.msk.f32.vlgmr.msra.gmra.mrb[52].mxu1 %vm654_vm3, %v5058_v9  ;;  %v16411_v9 = vld [vmem:[#allocation5 + $0x870] ss:$0 sm:$0xff] }
0x4187   :  { %13975 = vmatpush3.bf16.msra.mxu1 %v15957_v18  ;;  %12369 = vmatprep.mubr.msk.f32.mxu1 %vm15289_vm2, %v17535_v60  ;;  %17576 = vst [vmem:[#allocation39_spill] sm:$0xff] %v16411_v9 }
0x4188   :  { %13976 = vmatprep.subr.bf16.mxu1 %v17529_v33 }
0x418b   :  { %13978 = vmatpush3.bf16.msra.mxu1 %v17538_v22 }
0x418c   :  { %13979 = vmatprep.subr.bf16.mxu1 %v17529_v33 }
0x418f   :  { %13981 = vmatpush3.bf16.msra.mxu1 %v17539_v49 }
0x4190   :  { %13982 = vmatprep.subr.bf16.mxu1 %v17529_v33 }
0x4193   :  { %13984 = vmatpush3.bf16.msra.mxu1 %v17540_v41 }
0x4194   :  { %13997 = vmatprep.subr.bf16.mxu1 %v17529_v33 }
0x4259   :  { %v5128_v56 = vpop.f32.mrb[52].mxu1 }
0x425a   :  { %v5129_v52 = vadd.f32 %v16397_v28, %v5128_v56  ;;  %v12333_v5 = vpop.f32.mrb[53].mxu1 }
0x425c   :  { %v5132_v59 = vmax.f32 %v5129_v52, 0.0 }
0x425e   :  { %12351 = vmatmul.mubr.msk.f32.vlgmr.msra.gmra.mrb[54].mxu0 %vm654_vm3, %v5132_v59  ;;  %v17577_v59 = vld [vmem:[#allocation48_spill] sm:$0xff] }
0x425f   :  { %13987 = vmatpush3.bf16.msra.mxu0 %v17572_v57  ;;  %12388 = vmatprep.mubr.msk.f32.mxu0 %vm15289_vm2, %v17535_v60 }
0x4260   :  { %13988 = vmatprep.subr.bf16.mxu0 %v17529_v33 }
0x4263   :  { %13990 = vmatpush3.bf16.msra.mxu0 %v17573_v16 }
0x4264   :  { %13991 = vmatprep.subr.bf16.mxu0 %v17529_v33 }
0x4267   :  { %13993 = vmatpush3.bf16.msra.mxu0 %v17574_v35  ;;  %v17578_v35 = vld [vmem:[#allocation49_spill] sm:$0xff] }
0x4268   :  { %13994 = vmatprep.subr.bf16.mxu0 %v17529_v33 }
0x426b   :  { %13996 = vmatpush3.bf16.msra.mxu0 %v17575_v2  ;;  %v17579_v2 = vld [vmem:[#allocation50_spill] sm:$0xff] }
0x426c   :  { %14009 = vmatprep.subr.bf16.mxu0 %v17529_v33 }
0x4331   :  { %v5202_v24 = vpop.f32.mrb[54].mxu0 }
0x4332   :  { %v5203_v56 = vadd.f32 %v16411_v9, %v5202_v24  ;;  %v12352_v52 = vpop.f32.mrb[55].mxu0  ;;  %v17580_v24 = vld [vmem:[#allocation52_spill] sm:$0xff] }
0x4333   :  { %v16425_v52 = vld [vmem:[#allocation5 + $0x900] ss:$0 sm:$0xff] }
0x4334   :  { %v5206_v5 = vmax.f32 %v5203_v56, 0.0 }
0x4336   :  { %12370 = vmatmul.mubr.msk.f32.vlgmr.msra.gmra.mrb[54].mxu1 %vm654_vm3, %v5206_v5 }
0x4337   :  { %13999 = vmatpush3.bf16.msra.mxu1 %v17577_v59  ;;  %12407 = vmatprep.mubr.msk.f32.mxu1 %vm15289_vm2, %v17535_v60 }
0x4338   :  { %14000 = vmatprep.subr.bf16.mxu1 %v17529_v33 }
0x433b   :  { %14002 = vmatpush3.bf16.msra.mxu1 %v17578_v35 }
0x433c   :  { %14003 = vmatprep.subr.bf16.mxu1 %v17529_v33 }
0x433f   :  { %14005 = vmatpush3.bf16.msra.mxu1 %v17579_v2 }
0x4340   :  { %14006 = vmatprep.subr.bf16.mxu1 %v17529_v33 }
0x4343   :  { %14008 = vmatpush3.bf16.msra.mxu1 %v17580_v24  ;;  %v16433_v24 = vld [vmem:[#allocation5 + $0x990] ss:$0 sm:$0xff] }
0x4344   :  { %14024 = vmatprep.subr.bf16.mxu1 %v17529_v33 }
0x4409   :  { %v5276_v56 = vpop.f32.mrb[54].mxu1 }
0x440a   :  { %v5277_v5 = vadd.f32 %v16425_v52, %v5276_v56  ;;  %v12371_v59 = vpop.f32.mrb[55].mxu1 }
0x440c   :  { %v5280_v9 = vmax.f32 %v5277_v5, 0.0 }
0x440e   :  { %12389 = vmatmul.mubr.msk.f32.vlgmr.msra.gmra.mrb[56].mxu0 %vm654_vm3, %v5280_v9 }
0x440f   :  { %14011 = vmatpush3.bf16.msra.mxu0 %v17552_v11  ;;  %12414 = vmatprep.mubr.msk.f32.mxu0 %vm15289_vm2, %v17535_v60 }
0x4410   :  { %14012 = vmatprep.subr.bf16.mxu0 %v17529_v33 }
0x44e1   :  { %v5350_v2 = vpop.f32.mrb[56].mxu0 }
0x44e2   :  { %v5351_v35 = vadd.f32 %v16433_v24, %v5350_v2  ;;  %v12390_v16 = vpop.f32.mrb[57].mxu0 }
0x44e3   :  { %v16447_v16 = vld [vmem:[#allocation5 + $0xa20] ss:$0 sm:$0xff] }
0x44e4   :  { %v5354_v57 = vmax.f32 %v5351_v35, 0.0 }
0x44e6   :  { %12408 = vmatmul.mubr.msk.f32.vlgmr.msra.gmra.mrb[56].mxu1 %vm654_vm3, %v5354_v57 }
0x44e7   :  { %14026 = vmatpush3.bf16.msra.mxu1 %v17554_v1  ;;  %12452 = vmatprep.mubr.msk.f32.mxu1 %vm15289_vm2, %v17535_v60 }
0x44e8   :  { %14027 = vmatprep.subr.bf16.mxu1 %v17529_v33 }
0x44eb   :  { %14029 = vmatpush3.bf16.msra.mxu1 %v17555_v40 }
0x44ec   :  { %14030 = vmatprep.subr.bf16.mxu1 %v17529_v33 }
0x44ef   :  { %14032 = vmatpush3.bf16.msra.mxu1 %v17556_v23 }
0x44f0   :  { %14033 = vmatprep.subr.bf16.mxu1 %v17529_v33 }
0x44f3   :  { %14035 = vmatpush3.bf16.msra.mxu1 %v16074_v25 }
0x44f4   :  { %14049 = vmatprep.subr.bf16.mxu1 %v15729_v36 }
0x45b9   :  { %v5424_v57 = vpop.f32.mrb[56].mxu1 }
0x45ba   :  { %v5425_v35 = vadd.f32 %v16447_v16, %v5424_v57  ;;  %v12409_v2 = vpop.f32.mrb[57].mxu1  ;;  %v17582_v57 = vld [vmem:[#allocation21_spill] sm:$0xff] }
0x45bc   :  { %10571 = vst.msk [vmem:[#allocation7 + $0x4] sm:$0x3] %vm10568_vm7, %v5425_v35  ;;  %12415 = vmatmul.mubr.msk.f32.vlgmr.msra.gmra.mrb[58].mxu0 %vm2466_vm5, %v5425_v35 }
0x45bd   :  { %14014 = vmatpush3.bf16.msra.mxu0 %v17558_v62  ;;  %12433 = vmatprep.mubr.msk.f32.mxu0 %vm15289_vm2, %v17535_v60 }
0x45be   :  { %14015 = vmatprep.subr.bf16.mxu0 %v17529_v33 }
0x45c1   :  { %14017 = vmatpush3.bf16.msra.mxu0 %v17559_v19 }
0x45c2   :  { %14018 = vmatprep.subr.bf16.mxu0 %v17529_v33 }
0x45c5   :  { %14020 = vmatpush3.bf16.msra.mxu0 %v17560_v46 }
0x45c6   :  { %14021 = vmatprep.subr.bf16.mxu0 %v17529_v33 }
0x45c9   :  { %14023 = vmatpush3.bf16.msra.mxu0 %v17561_v32 }
0x45ca   :  { %14036 = vmatprep.subr.bf16.mxu0 %v17529_v33 }
0x468f   :  { %v5497_v9 = vpop.f32.mrb[58].mxu0 }
0x4690   :  { %v5498_v59 = vadd.f32 %v5497_v9, %v16068_v61  ;;  %v12416_v56 = vpop.f32.mrb[59].mxu0  ;;  %v17581_v61 = vld [vmem:[#allocation63_spill] sm:$0xff] }
0x4692   :  { %v5501_v5 = vmax.f32 %v5498_v59, 0.0 }
0x4694   :  { %12434 = vmatmul.mubr.msk.f32.vlgmr.msra.gmra.mrb[60].mxu0 %vm654_vm3, %v5501_v5 }
0x4695   :  { %14038 = vmatpush3.bf16.msra.mxu0 %v16078_v13  ;;  %12471 = vmatprep.mubr.msk.f32.mxu0 %vm15289_vm2, %v17535_v60 }
0x4696   :  { %14039 = vmatprep.subr.bf16.mxu0 %v17529_v33 }
0x4699   :  { %14041 = vmatpush3.bf16.msra.mxu0 %v16081_v50 }
0x469a   :  { %14042 = vmatprep.subr.bf16.mxu0 %v17529_v33 }
0x469d   :  { %14044 = vmatpush3.bf16.msra.mxu0 %v16085_v15 }
0x469e   :  { %14045 = vmatprep.subr.bf16.mxu0 %v17529_v33 }
0x46a1   :  { %14047 = vmatpush3.bf16.msra.mxu0 %v17581_v61 }
0x46a2   :  { %14069 = vmatprep.subr.bf16.mxu0 %v17582_v57 }
0x4767   :  { %v5571_v35 = vpop.f32.mrb[60].mxu0 }
0x4768   :  { %v5572_v2 = vadd.f32 %v5571_v35, %v16090_v51  ;;  %v12435_v9 = vpop.f32.mrb[61].mxu0 }
0x4769   :  { %v17584_v9 = vld [vmem:[#allocation25_spill] sm:$0xff] }
0x476a   :  { %v5575_v59 = vmax.f32 %v5572_v2, 0.0  ;;  %v17583_v2 = vld [vmem:[#allocation24_spill] sm:$0xff] }
0x476c   :  { %12453 = vmatmul.mubr.msk.f32.vlgmr.msra.gmra.mrb[58].mxu1 %vm654_vm3, %v5575_v59  ;;  %v17585_v59 = vld [vmem:[#allocation26_spill] sm:$0xff] }
0x476d   :  { %14051 = vmatpush1.bf16.msra.mxu1 %v15731_v42  ;;  %5796 = vmatprep.mubr.f32.mxu1 %v17535_v60 }
0x476e   :  { %14053 = vmatprep.subr.bf16.mxu1 %v15733_v43 }
0x4771   :  { %14055 = vmatpush1.bf16.msra.mxu1 %v15738_v53 }
0x4772   :  { %14057 = vmatprep.subr.bf16.mxu1 %v15742_v55 }
0x4775   :  { %14059 = vmatpush1.bf16.msra.mxu1 %v15749_v63 }
0x4776   :  { %14061 = vmatprep.subr.bf16.mxu1 %v17562_v39 }
0x4779   :  { %14063 = vmatpush1.bf16.msra.mxu1 %v17563_v45 }
0x477a   :  { %14065 = vmatprep.subr.bf16.mxu1 %v15760_v7  ;;  %v17587_v7 = vld [vmem:[#allocation28_spill] sm:$0xff] }
0x477d   :  { %14067 = vmatpush1.bf16.msra.mxu1 %v15763_v10  ;;  %v17586_v10 = vld [vmem:[#allocation27_spill] sm:$0xff] }
0x477e   :  { %14100 = vmatprep.subr.bf16.mxu1 %v17529_v33 }
0x483f   :  { %v5645_v51 = vpop.f32.mrb[58].mxu1 }
0x4840   :  { %v5646_v56 = vadd.f32 %v5645_v51, %v16109_v27  ;;  %v12454_v5 = vpop.f32.mrb[59].mxu1  ;;  %v17588_v27 = vld [vmem:[#allocation29_spill] sm:$0xff]  ;;  %v17589_v51 = vld [vmem:[#allocation30_spill] sm:$0xff] }
0x4841   :  { %v17591_v5 = vld [vmem:[#allocation32_spill] sm:$0xff] }
0x4842   :  { %v5649_v35 = vmax.f32 %v5646_v56, 0.0  ;;  %v17590_v56 = vld [vmem:[#allocation31_spill] sm:$0xff] }
0x4844   :  { %12472 = vmatmul.mubr.msk.f32.vlgmr.msra.gmra.mrb[62].mxu0 %vm654_vm3, %v5649_v35  ;;  %v17592_v35 = vld [vmem:[#allocation33_spill] sm:$0xff] }
0x4845   :  { %14071 = vmatpush1.bf16.msra.mxu0 %v15802_v47  ;;  %5901 = vmatprep.mubr.f32.mxu0 %v17535_v60 }
0x4846   :  { %14073 = vmatprep.subr.bf16.mxu0 %v15804_v38  ;;  %v17593_v38 = vld [vmem:[#allocation34_spill] sm:$0xff] }
0x4849   :  { %14075 = vmatpush1.bf16.msra.mxu0 %v17583_v2  ;;  %v17594_v2 = vld [vmem:[#allocation35_spill] sm:$0xff] }
0x484a   :  { %14077 = vmatprep.subr.bf16.mxu0 %v17584_v9  ;;  %v17595_v9 = vld [vmem:[#allocation36_spill] sm:$0xff] }
0x484d   :  { %14079 = vmatpush1.bf16.msra.mxu0 %v17585_v59 }
0x484e   :  { %14081 = vmatprep.subr.bf16.mxu0 %v17586_v10 }
0x4851   :  { %14083 = vmatpush1.bf16.msra.mxu0 %v17587_v7  ;;  %v17596_v7 = vld [vmem:[#allocation64_spill] sm:$0xff] }
0x4852   :  { %14085 = vmatprep.subr.bf16.mxu0 %v17588_v27 }
0x4855   :  { %14087 = vmatpush1.bf16.msra.mxu0 %v17589_v51  ;;  %v5726_v51 = vpop.permute.xlu0 %5725 }
0x4856   :  { %14089 = vmatprep.subr.bf16.mxu0 %v17590_v56 }
0x4859   :  { %14091 = vmatpush1.bf16.msra.mxu0 %v17591_v5  ;;  %v17597_v5 = vld [vmem:[#allocation37_spill] sm:$0xff] }
0x485a   :  { %14093 = vmatprep.subr.bf16.mxu0 %v17592_v35 }
0x485d   :  { %14095 = vmatpush1.bf16.msra.mxu0 %v17593_v38 }
0x485e   :  { %14097 = vmatprep.subr.bf16.mxu0 %v17594_v2 }
0x4861   :  { %14099 = vmatpush1.bf16.msra.mxu0 %v17595_v9  ;;  %v17598_v9 = vld [vmem:[#allocation38_spill] sm:$0xff] }
0x4862   :  { %14118 = vmatprep.subr.bf16.mxu0 %v17529_v33 }
0x4917   :  { %v5719_v10 = vpop.f32.mrb[62].mxu0 }
0x4918   :  { %v5720_v59 = vadd.f32 %v5719_v10, %v17596_v7  ;;  %v12473_v27 = vpop.f32.mrb[63].mxu0  ;;  %v17599_v10 = vld [vmem:[#allocation20_spill] sm:$0xff] }
0x491a   :  { %v5723_v47 = vmax.f32 %v5720_v59, 0.0 }
0x491c   :  { %v5728_v56 = vsel %vm2466_vm5, %v5723_v47, %v5726_v51 }
0x491d   :  { %10686 = vmatmul.mubr.msk.f32.vlgmr.msra.gmra.mrb[60].mxu1 %vm2501_vm6, %v5728_v56 }
0x491e   :  { %14102 = vmatpush3.bf16.msra.mxu1 %v17597_v5  ;;  %12482 = vmatprep.mubr.msk.f32.mxu1 %vm15289_vm2, %v17535_v60 }
0x491f   :  { %14103 = vmatprep.subr.bf16.mxu1 %v17529_v33 }
0x4922   :  { %14105 = vmatpush3.bf16.msra.mxu1 %v17598_v9 }
0x4923   :  { %14106 = vmatprep.subr.bf16.mxu1 %v17529_v33 }
0x49f0   :  { %v5798_v2 = vpop.f32.mrb[60].mxu1 }
0x49f1   :  { %v5800_v7 = vpop.f32.mrb[61].mxu1  ;;  %v5799_v47 = vadd.f32 %v5798_v2, %v15793_v26 }
0x49f2   :  { %v5801_v59 = vadd.f32 %v5800_v7, %v17599_v10 }
0x49f3   :  { %v10687_v51 = vmul.f32 -1.442695, %v5799_v47 }
0x49f4   :  { %15070 = vtanh.f32 %v5801_v59 }
0x49f5   :  { %15072 = vpow2.f32 %v10687_v51 }
0x49fe   :  { %v15071_v27 = vpop.eup %15070 }
0x49ff   :  { %5818 = vrot.lane.b32.xlu1 %v15071_v27, %s15293_s2  ;;  %v15073_v56 = vpop.eup %15072  ;;  %v10688_v27 = vmul.f32 -1.442695, %v5801_v59 }
0x4a00   :  { %v5809_v5 = vadd.f32 1.0, %v15073_v56 }
0x4a02   :  { %15074 = vrcp.f32 %v5809_v5 }
0x4a0c   :  { %v15075_v38 = vpop.eup %15074 }
0x4a0d   :  { %v5816_v7 = vmul.f32 %v15075_v38, %v16328_v58 }
0x4a71   :  { %v5819_v35 = vpop.permute.xlu1 %5818 }
0x4a72   :  { %v5821_v9 = vmul.f32 %v15075_v38, %v5819_v35 }
0x4a74   :  { %5823 = vrot.lane.b32.xlu0 %v5821_v9, %s15293_s2 }
0x4a78   :  { %5833 = vrot.lane.b32.xlu0 %v16353_v29, %s15293_s2 }
0x4ae6   :  { %v5824_v10 = vpop.permute.xlu0 %5823 }
0x4ae7   :  { %v16522_v45 = vadd.f32 %v5824_v10, %v5816_v7 }
0x4ae9   :  { %15076 = vtanh.f32 %v16522_v45 }
0x4aea   :  { %15078 = vpow2.f32 %v10688_v27  ;;  %v5834_v56 = vpop.permute.xlu0 %5833 }
0x4af3   :  { %v15077_v2 = vpop.eup %15076 }
0x4af4   :  { %5829 = vrot.lane.b32.xlu1 %v15077_v2, %s15293_s2  ;;  %v15079_v5 = vpop.eup %15078 }
0x4af5   :  { %v5810_v47 = vadd.f32 1.0, %v15079_v5 }
0x4af7   :  { %15080 = vrcp.f32 %v5810_v47 }
0x4b01   :  { %v15081_v35 = vpop.eup %15080 }
0x4b66   :  { %v5830_v9 = vpop.permute.xlu1 %5829 }
0x4b67   :  { %v5832_v51 = vmul.f32 %v15081_v35, %v5830_v9 }
0x4b69   :  { %v5836_v29 = vsel %vm654_vm3, %v5832_v51, %v5834_v56 }
0x4b6a   :  { %5902 = vmatmul.mubr.f32.vlgmr.msra.gmra.mrb[64].mxu0 %v5836_v29 }
0x4b6b   :  { %14120 = vmatpush3.bf16.msra.mxu0 %v15911_v6  ;;  %12520 = vmatprep.mubr.msk.f32.mxu0 %vm15289_vm2, %v17535_v60 }
0x4b6c   :  { %14121 = vmatprep.subr.bf16.mxu0 %v17529_v33 }
0x4b6f   :  { %14123 = vmatpush3.bf16.msra.mxu0 %v15914_v0 }
0x4b70   :  { %14124 = vmatprep.subr.bf16.mxu0 %v17529_v33 }
0x4b73   :  { %14126 = vmatpush3.bf16.msra.mxu0 %v15918_v54 }
0x4b74   :  { %14127 = vmatprep.subr.bf16.mxu0 %v17529_v33 }
0x4b77   :  { %14129 = vmatpush3.bf16.msra.mxu0 %v15931_v12 }
0x4b78   :  { %14142 = vmatprep.subr.bf16.mxu0 %v17529_v33 }
0x4c3d   :  { %v5903_v38 = vpop.f32.mrb[64].mxu0 }
0x4c3e   :  { %v5905_v58 = vpop.f32.mrb[65].mxu0  ;;  %v5904_v7 = vadd.f32 %v5903_v38, %v15872_v48 }
0x4c3f   :  { %v5906_v10 = vadd.f32 %v5905_v58, %v15866_v8 }
0x4c40   :  { %v10689_v2 = vmul.f32 -1.442695, %v5904_v7 }
0x4c41   :  { %15082 = vtanh.f32 %v5906_v10 }
0x4c42   :  { %15084 = vpow2.f32 %v10689_v2 }
0x4c4b   :  { %v15083_v59 = vpop.eup %15082 }
0x4c4c   :  { %5923 = vrot.lane.b32.xlu1 %v15083_v59, %s15293_s2  ;;  %v15085_v27 = vpop.eup %15084  ;;  %v10690_v59 = vmul.f32 -1.442695, %v5906_v10 }
0x4c4d   :  { %v5914_v5 = vadd.f32 1.0, %v15085_v27 }
0x4c4f   :  { %15086 = vrcp.f32 %v5914_v5 }
0x4c59   :  { %v15087_v47 = vpop.eup %15086 }
0x4c5a   :  { %v5921_v56 = vmul.f32 %v15087_v47, %v16349_v3 }
0x4cbe   :  { %v5924_v35 = vpop.permute.xlu1 %5923 }
0x4cbf   :  { %v5926_v9 = vmul.f32 %v15087_v47, %v5924_v35 }
0x4cc1   :  { %5928 = vrot.lane.b32.xlu0 %v5926_v9, %s15293_s2 }
0x4cc5   :  { %6753 = vrot.lane.b32.xlu0 %v5832_v51, %s15287_s7 }
0x4d33   :  { %v5929_v29 = vpop.permute.xlu0 %5928 }
0x4d34   :  { %v16543_v58 = vadd.f32 %v5929_v29, %v5921_v56 }
0x4d36   :  { %15088 = vtanh.f32 %v16543_v58 }
0x4d37   :  { %15090 = vpow2.f32 %v10690_v59 }
0x4d40   :  { %v15089_v38 = vpop.eup %15088 }
0x4d41   :  { %5934 = vrot.lane.b32.xlu1 %v15089_v38, %s15293_s2  ;;  %v15091_v7 = vpop.eup %15090 }
0x4d42   :  { %v5915_v2 = vadd.f32 1.0, %v15091_v7 }
0x4d44   :  { %15092 = vrcp.f32 %v5915_v2 }
0x4d4e   :  { %v15093_v27 = vpop.eup %15092 }
0x4db3   :  { %v5935_v5 = vpop.permute.xlu1 %5934 }
0x4db4   :  { %v16547_v35 = vmul.f32 %v15093_v27, %v5935_v5 }
0x4db6   :  { %12483 = vmatmul.mubr.msk.f32.vlgmr.msra.gmra.mrb[62].mxu1 %vm134_vm1, %v16547_v35 }
0x4db7   :  { %14108 = vmatpush3.bf16.msra.mxu1 %v15889_v31  ;;  %12501 = vmatprep.mubr.msk.f32.mxu1 %vm15289_vm2, %v17535_v60 }
0x4db8   :  { %14109 = vmatprep.subr.bf16.mxu1 %v17529_v33 }
0x4dbb   :  { %14111 = vmatpush3.bf16.msra.mxu1 %v15896_v14 }
0x4dbc   :  { %14112 = vmatprep.subr.bf16.mxu1 %v17529_v33 }
0x4dbf   :  { %14114 = vmatpush3.bf16.msra.mxu1 %v15902_v20 }
0x4dc0   :  { %14115 = vmatprep.subr.bf16.mxu1 %v17529_v33 }
0x4dc3   :  { %14117 = vmatpush3.bf16.msra.mxu1 %v15907_v17 }
0x4dc4   :  { %14130 = vmatprep.subr.bf16.mxu1 %v17529_v33 }
0x4e89   :  { %v6007_v3 = vpop.f32.mrb[62].mxu1 }
0x4e8a   :  { %v6008_v51 = vadd.f32 %v16367_v44, %v6007_v3  ;;  %v12484_v10 = vpop.f32.mrb[63].mxu1  ;;  %v17600_v3 = vld [vmem:[#allocation43_spill] sm:$0xff] }
0x4e8b   :  { %v17602_v10 = vld [vmem:[#allocation45_spill] sm:$0xff] }
0x4e8c   :  { %v6011_v47 = vmax.f32 %v6008_v51, 0.0  ;;  %v17601_v51 = vld [vmem:[#allocation44_spill] sm:$0xff] }
0x4e8e   :  { %v6012_v9 = vsel %vm134_vm1, %v6011_v47, %v16547_v35  ;;  %v17603_v47 = vld [vmem:[#allocation47_spill] sm:$0xff] }
0x4e8f   :  { %12502 = vmatmul.mubr.msk.f32.vlgmr.msra.gmra.mrb[64].mxu1 %vm654_vm3, %v6012_v9 }
0x4e90   :  { %14132 = vmatpush3.bf16.msra.mxu1 %v15935_v21  ;;  %12539 = vmatprep.mubr.msk.f32.mxu1 %vm15289_vm2, %v17535_v60 }
0x4e91   :  { %14133 = vmatprep.subr.bf16.mxu1 %v17529_v33 }
0x4e94   :  { %14135 = vmatpush3.bf16.msra.mxu1 %v15938_v30 }
0x4e95   :  { %14136 = vmatprep.subr.bf16.mxu1 %v17529_v33 }
0x4e98   :  { %14138 = vmatpush3.bf16.msra.mxu1 %v15942_v37 }
0x4e99   :  { %14139 = vmatprep.subr.bf16.mxu1 %v17529_v33 }
0x4e9c   :  { %14141 = vmatpush3.bf16.msra.mxu1 %v15953_v4 }
0x4e9d   :  { %14154 = vmatprep.subr.bf16.mxu1 %v17529_v33 }
0x4f62   :  { %v6082_v56 = vpop.f32.mrb[64].mxu1 }
0x4f63   :  { %v6083_v29 = vadd.f32 %v16383_v34, %v6082_v56  ;;  %v12503_v38 = vpop.f32.mrb[65].mxu1  ;;  %v17604_v56 = vld [vmem:[#allocation39_spill] sm:$0xff] }
0x4f65   :  { %v6086_v59 = vmax.f32 %v6083_v29, 0.0 }
0x4f67   :  { %12521 = vmatmul.mubr.msk.f32.vlgmr.msra.gmra.mrb[66].mxu0 %vm654_vm3, %v6086_v59 }
0x4f68   :  { %14144 = vmatpush3.bf16.msra.mxu0 %v15957_v18  ;;  %12558 = vmatprep.mubr.msk.f32.mxu0 %vm15289_vm2, %v17535_v60 }
0x4f69   :  { %14145 = vmatprep.subr.bf16.mxu0 %v17529_v33 }
0x4f6c   :  { %14147 = vmatpush3.bf16.msra.mxu0 %v17538_v22 }
0x4f6d   :  { %14148 = vmatprep.subr.bf16.mxu0 %v17529_v33 }
0x4f70   :  { %14150 = vmatpush3.bf16.msra.mxu0 %v17539_v49 }
0x4f71   :  { %14151 = vmatprep.subr.bf16.mxu0 %v17529_v33 }
0x4f74   :  { %14153 = vmatpush3.bf16.msra.mxu0 %v17540_v41 }
0x4f75   :  { %14166 = vmatprep.subr.bf16.mxu0 %v17529_v33 }
0x503a   :  { %v6156_v7 = vpop.f32.mrb[66].mxu0 }
0x503b   :  { %v6157_v2 = vadd.f32 %v16397_v28, %v6156_v7  ;;  %v12522_v27 = vpop.f32.mrb[67].mxu0  ;;  %v17605_v7 = vld [vmem:[#allocation48_spill] sm:$0xff] }
0x503c   :  { %v17607_v27 = vld [vmem:[#allocation50_spill] sm:$0xff] }
0x503d   :  { %v6160_v5 = vmax.f32 %v6157_v2, 0.0  ;;  %v17606_v2 = vld [vmem:[#allocation49_spill] sm:$0xff] }
0x503f   :  { %12540 = vmatmul.mubr.msk.f32.vlgmr.msra.gmra.mrb[66].mxu1 %vm654_vm3, %v6160_v5  ;;  %v17608_v5 = vld [vmem:[#allocation52_spill] sm:$0xff] }
0x5040   :  { %14156 = vmatpush3.bf16.msra.mxu1 %v17600_v3  ;;  %12577 = vmatprep.mubr.msk.f32.mxu1 %vm15289_vm2, %v17535_v60 }
0x5041   :  { %14157 = vmatprep.subr.bf16.mxu1 %v17529_v33 }
0x5044   :  { %14159 = vmatpush3.bf16.msra.mxu1 %v17601_v51 }
0x5045   :  { %14160 = vmatprep.subr.bf16.mxu1 %v17529_v33 }
0x5048   :  { %14162 = vmatpush3.bf16.msra.mxu1 %v17602_v10 }
0x5049   :  { %14163 = vmatprep.subr.bf16.mxu1 %v17529_v33 }
0x504c   :  { %14165 = vmatpush3.bf16.msra.mxu1 %v17603_v47 }
0x504d   :  { %14178 = vmatprep.subr.bf16.mxu1 %v17529_v33 }
0x5112   :  { %v6230_v9 = vpop.f32.mrb[66].mxu1 }
0x5113   :  { %v6231_v29 = vadd.f32 %v17604_v56, %v6230_v9  ;;  %v12541_v38 = vpop.f32.mrb[67].mxu1 }
0x5115   :  { %v6234_v59 = vmax.f32 %v6231_v29, 0.0 }
0x5117   :  { %12559 = vmatmul.mubr.msk.f32.vlgmr.msra.gmra.mrb[68].mxu0 %vm654_vm3, %v6234_v59 }
0x5118   :  { %14168 = vmatpush3.bf16.msra.mxu0 %v17605_v7  ;;  %12596 = vmatprep.mubr.msk.f32.mxu0 %vm15289_vm2, %v17535_v60 }
0x5119   :  { %14169 = vmatprep.subr.bf16.mxu0 %v17529_v33 }
0x511c   :  { %14171 = vmatpush3.bf16.msra.mxu0 %v17606_v2 }
0x511d   :  { %14172 = vmatprep.subr.bf16.mxu0 %v17529_v33 }
0x5120   :  { %14174 = vmatpush3.bf16.msra.mxu0 %v17607_v27 }
0x5121   :  { %14175 = vmatprep.subr.bf16.mxu0 %v17529_v33 }
0x5124   :  { %14177 = vmatpush3.bf16.msra.mxu0 %v17608_v5 }
0x5125   :  { %14193 = vmatprep.subr.bf16.mxu0 %v17529_v33 }
0x51ea   :  { %v6304_v9 = vpop.f32.mrb[68].mxu0 }
0x51eb   :  { %v6305_v29 = vadd.f32 %v16425_v52, %v6304_v9  ;;  %v12560_v38 = vpop.f32.mrb[69].mxu0  ;;  %v16642_v9 = vld [vmem:[#allocation5 + $0x130] ss:$0 sm:$0xff] }
0x51ed   :  { %v6308_v59 = vmax.f32 %v6305_v29, 0.0 }
0x51ef   :  { %12578 = vmatmul.mubr.msk.f32.vlgmr.msra.gmra.mrb[68].mxu1 %vm654_vm3, %v6308_v59 }
0x51f0   :  { %14180 = vmatpush3.bf16.msra.mxu1 %v17552_v11  ;;  %12603 = vmatprep.mubr.msk.f32.mxu1 %vm15289_vm2, %v17535_v60 }
0x51f1   :  { %14181 = vmatprep.subr.bf16.mxu1 %v17529_v33 }
0x52c2   :  { %v6378_v27 = vpop.f32.mrb[68].mxu1 }
0x52c3   :  { %v6379_v2 = vadd.f32 %v16433_v24, %v6378_v27  ;;  %v12579_v5 = vpop.f32.mrb[69].mxu1 }
0x52c5   :  { %v6382_v7 = vmax.f32 %v6379_v2, 0.0 }
0x52c7   :  { %12597 = vmatmul.mubr.msk.f32.vlgmr.msra.gmra.mrb[70].mxu0 %vm654_vm3, %v6382_v7 }
0x52c8   :  { %14195 = vmatpush3.bf16.msra.mxu0 %v17554_v1  ;;  %12641 = vmatprep.mubr.msk.f32.mxu0 %vm15289_vm2, %v17535_v60 }
0x52c9   :  { %14196 = vmatprep.subr.bf16.mxu0 %v17529_v33 }
0x52cc   :  { %14198 = vmatpush3.bf16.msra.mxu0 %v17555_v40 }
0x52cd   :  { %14199 = vmatprep.subr.bf16.mxu0 %v17529_v33 }
0x52d0   :  { %14201 = vmatpush3.bf16.msra.mxu0 %v17556_v23 }
0x52d1   :  { %14202 = vmatprep.subr.bf16.mxu0 %v17529_v33 }
0x52d4   :  { %14204 = vmatpush3.bf16.msra.mxu0 %v16074_v25 }
0x52d5   :  { %14218 = vmatprep.subr.bf16.mxu0 %v15729_v36 }
0x539a   :  { %v6452_v7 = vpop.f32.mrb[70].mxu0 }
0x539b   :  { %v6453_v2 = vadd.f32 %v16447_v16, %v6452_v7  ;;  %v12598_v27 = vpop.f32.mrb[71].mxu0 }
0x539d   :  { %10572 = vst.msk [vmem:[#allocation7 + $0x6] sm:$0x3] %vm10568_vm7, %v6453_v2  ;;  %12604 = vmatmul.mubr.msk.f32.vlgmr.msra.gmra.mrb[70].mxu1 %vm2466_vm5, %v6453_v2  ;;  %v16656_v2 = vld [vmem:[#allocation5 + $0x1c0] ss:$0 sm:$0xff] }
0x539e   :  { %14183 = vmatpush3.bf16.msra.mxu1 %v17558_v62  ;;  %12622 = vmatprep.mubr.msk.f32.mxu1 %vm15289_vm2, %v17535_v60  ;;  %17609 = vst [vmem:[#allocation40_spill] sm:$0xff] %v16656_v2 }
0x539f   :  { %14184 = vmatprep.subr.bf16.mxu1 %v17529_v33 }
0x53a2   :  { %14186 = vmatpush3.bf16.msra.mxu1 %v17559_v19 }
0x53a3   :  { %14187 = vmatprep.subr.bf16.mxu1 %v17529_v33 }
0x53a6   :  { %14189 = vmatpush3.bf16.msra.mxu1 %v17560_v46 }
0x53a7   :  { %14190 = vmatprep.subr.bf16.mxu1 %v17529_v33 }
0x53aa   :  { %14192 = vmatpush3.bf16.msra.mxu1 %v17561_v32 }
0x53ab   :  { %14205 = vmatprep.subr.bf16.mxu1 %v17529_v33 }
0x5470   :  { %v6525_v5 = vpop.f32.mrb[70].mxu1 }
0x5471   :  { %v6526_v29 = vadd.f32 %v16642_v9, %v6525_v5  ;;  %v12605_v38 = vpop.f32.mrb[71].mxu1 }
0x5472   :  { %v17610_v38 = vld [vmem:[#allocation17_spill] sm:$0xff] }
0x5473   :  { %v6529_v59 = vmax.f32 %v6526_v29, 0.0 }
0x5475   :  { %12623 = vmatmul.mubr.msk.f32.vlgmr.msra.gmra.mrb[72].mxu1 %vm654_vm3, %v6529_v59  ;;  %v17611_v59 = vld [vmem:[#allocation18_spill] sm:$0xff] }
0x5476   :  { %14207 = vmatpush3.bf16.msra.mxu1 %v16078_v13  ;;  %12660 = vmatprep.mubr.msk.f32.mxu1 %vm15289_vm2, %v17535_v60 }
0x5477   :  { %14208 = vmatprep.subr.bf16.mxu1 %v17529_v33 }
0x547a   :  { %14210 = vmatpush3.bf16.msra.mxu1 %v16081_v50 }
0x547b   :  { %14211 = vmatprep.subr.bf16.mxu1 %v17529_v33 }
0x547e   :  { %14213 = vmatpush3.bf16.msra.mxu1 %v16085_v15 }
0x547f   :  { %14214 = vmatprep.subr.bf16.mxu1 %v17529_v33 }
0x5482   :  { %14216 = vmatpush3.bf16.msra.mxu1 %v17581_v61 }
0x5483   :  { %14238 = vmatprep.subr.bf16.mxu1 %v17582_v57 }
0x5548   :  { %v6599_v7 = vpop.f32.mrb[72].mxu1 }
0x5549   :  { %v6600_v27 = vadd.f32 %v16656_v2, %v6599_v7  ;;  %v12624_v5 = vpop.f32.mrb[73].mxu1  ;;  %v17612_v7 = vld [vmem:[#allocation19_spill] sm:$0xff] }
0x554a   :  { %v16671_v5 = vld [vmem:[#allocation5 + $0x250] ss:$0 sm:$0xff] }
0x554b   :  { %v6603_v29 = vmax.f32 %v6600_v27, 0.0  ;;  %17613 = vst [vmem:[#allocation42_spill] sm:$0xff] %v16671_v5 }
0x554d   :  { %12642 = vmatmul.mubr.msk.f32.vlgmr.msra.gmra.mrb[72].mxu0 %vm654_vm3, %v6603_v29 }
0x554e   :  { %14220 = vmatpush1.bf16.msra.mxu0 %v15731_v42  ;;  %6824 = vmatprep.mubr.f32.mxu0 %v17535_v60  ;;  %v17620_v42 = vld [vmem:[#allocation28_spill] sm:$0xff] }
0x554f   :  { %14222 = vmatprep.subr.bf16.mxu0 %v15733_v43 }
0x5552   :  { %14224 = vmatpush1.bf16.msra.mxu0 %v15738_v53 }
0x5553   :  { %14226 = vmatprep.subr.bf16.mxu0 %v15742_v55  ;;  %v17619_v55 = vld [vmem:[#allocation27_spill] sm:$0xff] }
0x5556   :  { %14228 = vmatpush1.bf16.msra.mxu0 %v15749_v63  ;;  %v17614_v63 = vld [vmem:[#allocation22_spill] sm:$0xff] }
0x5557   :  { %14230 = vmatprep.subr.bf16.mxu0 %v17562_v39  ;;  %v17618_v39 = vld [vmem:[#allocation26_spill] sm:$0xff] }
0x555a   :  { %14232 = vmatpush1.bf16.msra.mxu0 %v17610_v38  ;;  %v17615_v38 = vld [vmem:[#allocation23_spill] sm:$0xff] }
0x555b   :  { %14234 = vmatprep.subr.bf16.mxu0 %v17611_v59  ;;  %v17616_v59 = vld [vmem:[#allocation24_spill] sm:$0xff] }
0x555e   :  { %14236 = vmatpush1.bf16.msra.mxu0 %v17612_v7  ;;  %v17617_v7 = vld [vmem:[#allocation25_spill] sm:$0xff] }
0x555f   :  { %14269 = vmatprep.subr.bf16.mxu0 %v17529_v33 }
0x5620   :  { %v6673_v27 = vpop.f32.mrb[72].mxu0 }
0x5621   :  { %v6674_v29 = vadd.f32 %v16671_v5, %v6673_v27  ;;  %v12643_v53 = vpop.f32.mrb[73].mxu0  ;;  %v17622_v27 = vld [vmem:[#allocation30_spill] sm:$0xff] }
0x5622   :  { %v17621_v53 = vld [vmem:[#allocation29_spill] sm:$0xff] }
0x5623   :  { %v6677_v43 = vmax.f32 %v6674_v29, 0.0  ;;  %v17624_v29 = vld [vmem:[#allocation32_spill] sm:$0xff] }
0x5625   :  { %12661 = vmatmul.mubr.msk.f32.vlgmr.msra.gmra.mrb[74].mxu1 %vm654_vm3, %v6677_v43  ;;  %v17623_v43 = vld [vmem:[#allocation31_spill] sm:$0xff] }
0x5626   :  { %14240 = vmatpush1.bf16.msra.mxu1 %v17614_v63  ;;  %6929 = vmatprep.mubr.f32.mxu1 %v17535_v60  ;;  %v17625_v63 = vld [vmem:[#allocation33_spill] sm:$0xff] }
0x5627   :  { %14242 = vmatprep.subr.bf16.mxu1 %v17615_v38  ;;  %v17626_v38 = vld [vmem:[#allocation34_spill] sm:$0xff] }
0x562a   :  { %14244 = vmatpush1.bf16.msra.mxu1 %v17616_v59  ;;  %v17627_v59 = vld [vmem:[#allocation35_spill] sm:$0xff] }
0x562b   :  { %14246 = vmatprep.subr.bf16.mxu1 %v17617_v7  ;;  %v17628_v7 = vld [vmem:[#allocation36_spill] sm:$0xff] }
0x562e   :  { %14248 = vmatpush1.bf16.msra.mxu1 %v17618_v39 }
0x562f   :  { %14250 = vmatprep.subr.bf16.mxu1 %v17619_v55 }
0x5632   :  { %14252 = vmatpush1.bf16.msra.mxu1 %v17620_v42  ;;  %v16692_v42 = vld [vmem:[#allocation5 + $0x2e0] ss:$0 sm:$0xff] }
0x5633   :  { %14254 = vmatprep.subr.bf16.mxu1 %v17621_v53  ;;  %17629 = vst [vmem:[#allocation41_spill] sm:$0xff] %v16692_v42 }
0x5636   :  { %14256 = vmatpush1.bf16.msra.mxu1 %v17622_v27 }
0x5637   :  { %14258 = vmatprep.subr.bf16.mxu1 %v17623_v43  ;;  %v6754_v43 = vpop.permute.xlu0 %6753 }
0x563a   :  { %14260 = vmatpush1.bf16.msra.mxu1 %v17624_v29 }
0x563b   :  { %14262 = vmatprep.subr.bf16.mxu1 %v17625_v63  ;;  %v17630_v63 = vld [vmem:[#allocation37_spill] sm:$0xff] }
0x563e   :  { %14264 = vmatpush1.bf16.msra.mxu1 %v17626_v38 }
0x563f   :  { %14266 = vmatprep.subr.bf16.mxu1 %v17627_v59 }
0x5642   :  { %14268 = vmatpush1.bf16.msra.mxu1 %v17628_v7  ;;  %v17631_v7 = vld [vmem:[#allocation38_spill] sm:$0xff] }
0x5643   :  { %14287 = vmatprep.subr.bf16.mxu1 %v17529_v33 }
0x56f8   :  { %v6747_v55 = vpop.f32.mrb[74].mxu1 }
0x56f9   :  { %v6748_v53 = vadd.f32 %v16692_v42, %v6747_v55  ;;  %v12662_v27 = vpop.f32.mrb[75].mxu1 }
0x56fa   :  { %v17632_v27 = vld [vmem:[#allocation20_spill] sm:$0xff] }
0x56fb   :  { %v6751_v39 = vmax.f32 %v6748_v53, 0.0 }
0x56fd   :  { %v6756_v29 = vsel %vm2466_vm5, %v6751_v39, %v6754_v43 }
0x56fe   :  { %10702 = vmatmul.mubr.msk.f32.vlgmr.msra.gmra.mrb[74].mxu0 %vm2501_vm6, %v6756_v29 }
0x56ff   :  { %14271 = vmatpush3.bf16.msra.mxu0 %v17630_v63  ;;  %12671 = vmatprep.mubr.msk.f32.mxu0 %vm15289_vm2, %v17535_v60 }
0x5700   :  { %14272 = vmatprep.subr.bf16.mxu0 %v17529_v33 }
0x5703   :  { %14274 = vmatpush3.bf16.msra.mxu0 %v17631_v7 }
0x5704   :  { %14275 = vmatprep.subr.bf16.mxu0 %v17529_v33 }
0x57d1   :  { %v6826_v59 = vpop.f32.mrb[74].mxu0 }
0x57d2   :  { %v6828_v55 = vpop.f32.mrb[75].mxu0  ;;  %v6827_v39 = vadd.f32 %v6826_v59, %v15793_v26 }
0x57d3   :  { %v6829_v53 = vadd.f32 %v6828_v55, %v17632_v27 }
0x57d4   :  { %v10703_v43 = vmul.f32 -1.442695, %v6827_v39 }
0x57d5   :  { %15094 = vtanh.f32 %v6829_v53  ;;  %v10704_v59 = vmul.f32 -1.442695, %v6829_v53 }
0x57d6   :  { %15096 = vpow2.f32 %v10703_v43 }
0x57df   :  { %v15095_v42 = vpop.eup %15094 }
0x57e0   :  { %6846 = vrot.lane.b32.xlu1 %v15095_v42, %s15293_s2  ;;  %v15097_v29 = vpop.eup %15096 }
0x57e1   :  { %v6837_v63 = vadd.f32 1.0, %v15097_v29 }
0x57e3   :  { %15098 = vrcp.f32 %v6837_v63 }
0x57ed   :  { %v15099_v38 = vpop.eup %15098 }
0x57ee   :  { %v6844_v55 = vmul.f32 %v15099_v38, %v16522_v45 }
0x5852   :  { %v6847_v5 = vpop.permute.xlu1 %6846 }
0x5853   :  { %v6849_v7 = vmul.f32 %v15099_v38, %v6847_v5 }
0x5855   :  { %6851 = vrot.lane.b32.xlu0 %v6849_v7, %s15293_s2 }
0x5859   :  { %6861 = vrot.lane.b32.xlu0 %v16547_v35, %s15293_s2 }
0x58c7   :  { %v6852_v27 = vpop.permute.xlu0 %6851 }
0x58c8   :  { %v16710_v2 = vadd.f32 %v6852_v27, %v6844_v55 }
0x58ca   :  { %15100 = vtanh.f32 %v16710_v2 }
0x58cb   :  { %15102 = vpow2.f32 %v10704_v59  ;;  %v6862_v29 = vpop.permute.xlu0 %6861 }
0x58d4   :  { %v15101_v42 = vpop.eup %15100 }
0x58d5   :  { %6857 = vrot.lane.b32.xlu1 %v15101_v42, %s15293_s2  ;;  %v15103_v63 = vpop.eup %15102 }
0x58d6   :  { %v6838_v39 = vadd.f32 1.0, %v15103_v63 }
0x58d8   :  { %15104 = vrcp.f32 %v6838_v39 }
0x58e2   :  { %v15105_v5 = vpop.eup %15104 }
0x5947   :  { %v6858_v7 = vpop.permute.xlu1 %6857 }
0x5948   :  { %v6860_v43 = vmul.f32 %v15105_v5, %v6858_v7 }
0x594a   :  { %v6864_v35 = vsel %vm654_vm3, %v6860_v43, %v6862_v29 }
0x594b   :  { %6930 = vmatmul.mubr.f32.vlgmr.msra.gmra.mrb[76].mxu1 %v6864_v35 }
0x594c   :  { %14289 = vmatpush3.bf16.msra.mxu1 %v15911_v6  ;;  %12709 = vmatprep.mubr.msk.f32.mxu1 %vm15289_vm2, %v17535_v60 }
0x594d   :  { %14290 = vmatprep.subr.bf16.mxu1 %v17529_v33 }
0x5950   :  { %14292 = vmatpush3.bf16.msra.mxu1 %v15914_v0 }
0x5951   :  { %14293 = vmatprep.subr.bf16.mxu1 %v17529_v33 }
0x5954   :  { %14295 = vmatpush3.bf16.msra.mxu1 %v15918_v54 }
0x5955   :  { %14296 = vmatprep.subr.bf16.mxu1 %v17529_v33 }
0x5958   :  { %14298 = vmatpush3.bf16.msra.mxu1 %v15931_v12 }
0x5959   :  { %14311 = vmatprep.subr.bf16.mxu1 %v17529_v33 }
0x5a1e   :  { %v6931_v45 = vpop.f32.mrb[76].mxu1 }
0x5a1f   :  { %v6933_v38 = vpop.f32.mrb[77].mxu1  ;;  %v6932_v55 = vadd.f32 %v6931_v45, %v15872_v48 }
0x5a20   :  { %v6934_v27 = vadd.f32 %v6933_v38, %v15866_v8 }
0x5a21   :  { %v10705_v42 = vmul.f32 -1.442695, %v6932_v55 }
0x5a22   :  { %15106 = vtanh.f32 %v6934_v27 }
0x5a23   :  { %15108 = vpow2.f32 %v10705_v42 }
0x5a2c   :  { %v15107_v53 = vpop.eup %15106 }
0x5a2d   :  { %6951 = vrot.lane.b32.xlu1 %v15107_v53, %s15293_s2  ;;  %v15109_v59 = vpop.eup %15108  ;;  %v10706_v53 = vmul.f32 -1.442695, %v6934_v27 }
0x5a2e   :  { %v6942_v63 = vadd.f32 1.0, %v15109_v59 }
0x5a30   :  { %15110 = vrcp.f32 %v6942_v63 }
0x5a3a   :  { %v15111_v39 = vpop.eup %15110 }
0x5a3b   :  { %v6949_v29 = vmul.f32 %v15111_v39, %v16543_v58 }
0x5a9f   :  { %v6952_v5 = vpop.permute.xlu1 %6951 }
0x5aa0   :  { %v6954_v7 = vmul.f32 %v15111_v39, %v6952_v5 }
0x5aa2   :  { %6956 = vrot.lane.b32.xlu0 %v6954_v7, %s15293_s2 }
0x5aa6   :  { %7781 = vrot.lane.b32.xlu0 %v6860_v43, %s15287_s7 }
0x5b14   :  { %v6957_v35 = vpop.permute.xlu0 %6956 }
0x5b15   :  { %v16731_v38 = vadd.f32 %v6957_v35, %v6949_v29 }
0x5b17   :  { %15112 = vtanh.f32 %v16731_v38 }
0x5b18   :  { %15114 = vpow2.f32 %v10706_v53 }
0x5b21   :  { %v15113_v45 = vpop.eup %15112 }
0x5b22   :  { %6962 = vrot.lane.b32.xlu1 %v15113_v45, %s15293_s2  ;;  %v15115_v55 = vpop.eup %15114 }
0x5b23   :  { %v6943_v42 = vadd.f32 1.0, %v15115_v55 }
0x5b25   :  { %15116 = vrcp.f32 %v6943_v42 }
0x5b2f   :  { %v15117_v59 = vpop.eup %15116 }
0x5b94   :  { %v6963_v63 = vpop.permute.xlu1 %6962 }
0x5b95   :  { %v16735_v5 = vmul.f32 %v15117_v59, %v6963_v63 }
0x5b97   :  { %12672 = vmatmul.mubr.msk.f32.vlgmr.msra.gmra.mrb[76].mxu0 %vm134_vm1, %v16735_v5 }
0x5b98   :  { %14277 = vmatpush3.bf16.msra.mxu0 %v15889_v31  ;;  %12690 = vmatprep.mubr.msk.f32.mxu0 %vm15289_vm2, %v17535_v60 }
0x5b99   :  { %14278 = vmatprep.subr.bf16.mxu0 %v17529_v33 }
0x5b9c   :  { %14280 = vmatpush3.bf16.msra.mxu0 %v15896_v14 }
0x5b9d   :  { %14281 = vmatprep.subr.bf16.mxu0 %v17529_v33 }
0x5ba0   :  { %14283 = vmatpush3.bf16.msra.mxu0 %v15902_v20 }
0x5ba1   :  { %14284 = vmatprep.subr.bf16.mxu0 %v17529_v33 }
0x5ba4   :  { %14286 = vmatpush3.bf16.msra.mxu0 %v15907_v17 }
0x5ba5   :  { %14299 = vmatprep.subr.bf16.mxu0 %v17529_v33 }
0x5c6a   :  { %v7035_v58 = vpop.f32.mrb[76].mxu0 }
0x5c6b   :  { %v7036_v43 = vadd.f32 %v16367_v44, %v7035_v58  ;;  %v12673_v27 = vpop.f32.mrb[77].mxu0 }
0x5c6c   :  { %v17634_v27 = vld [vmem:[#allocation49_spill] sm:$0xff] }
0x5c6d   :  { %v7039_v39 = vmax.f32 %v7036_v43, 0.0  ;;  %v17633_v43 = vld [vmem:[#allocation48_spill] sm:$0xff] }
0x5c6f   :  { %v7040_v7 = vsel %vm134_vm1, %v7039_v39, %v16735_v5  ;;  %v17635_v39 = vld [vmem:[#allocation50_spill] sm:$0xff] }
0x5c70   :  { %12691 = vmatmul.mubr.msk.f32.vlgmr.msra.gmra.mrb[78].mxu0 %vm654_vm3, %v7040_v7 }
0x5c71   :  { %14301 = vmatpush3.bf16.msra.mxu0 %v15935_v21  ;;  %12728 = vmatprep.mubr.msk.f32.mxu0 %vm15289_vm2, %v17535_v60 }
0x5c72   :  { %14302 = vmatprep.subr.bf16.mxu0 %v17529_v33 }
0x5c75   :  { %14304 = vmatpush3.bf16.msra.mxu0 %v15938_v30 }
0x5c76   :  { %14305 = vmatprep.subr.bf16.mxu0 %v17529_v33 }
0x5c79   :  { %14307 = vmatpush3.bf16.msra.mxu0 %v15942_v37 }
0x5c7a   :  { %14308 = vmatprep.subr.bf16.mxu0 %v17529_v33 }
0x5c7d   :  { %14310 = vmatpush3.bf16.msra.mxu0 %v15953_v4 }
0x5c7e   :  { %14323 = vmatprep.subr.bf16.mxu0 %v17529_v33 }
0x5d43   :  { %v7110_v44 = vpop.f32.mrb[78].mxu0 }
0x5d44   :  { %v7111_v29 = vadd.f32 %v16383_v34, %v7110_v44  ;;  %v12692_v35 = vpop.f32.mrb[79].mxu0 }
0x5d46   :  { %v7114_v45 = vmax.f32 %v7111_v29, 0.0 }
0x5d48   :  { %12710 = vmatmul.mubr.msk.f32.vlgmr.msra.gmra.mrb[78].mxu1 %vm654_vm3, %v7114_v45 }
0x5d49   :  { %14313 = vmatpush3.bf16.msra.mxu1 %v15957_v18  ;;  %12747 = vmatprep.mubr.msk.f32.mxu1 %vm15289_vm2, %v17535_v60 }
0x5d4a   :  { %14314 = vmatprep.subr.bf16.mxu1 %v17529_v33 }
0x5d4d   :  { %14316 = vmatpush3.bf16.msra.mxu1 %v17538_v22 }
0x5d4e   :  { %14317 = vmatprep.subr.bf16.mxu1 %v17529_v33 }
0x5d51   :  { %14319 = vmatpush3.bf16.msra.mxu1 %v17539_v49 }
0x5d52   :  { %14320 = vmatprep.subr.bf16.mxu1 %v17529_v33 }
0x5d55   :  { %14322 = vmatpush3.bf16.msra.mxu1 %v17540_v41 }
0x5d56   :  { %14335 = vmatprep.subr.bf16.mxu1 %v17529_v33 }
0x5e1b   :  { %v7184_v34 = vpop.f32.mrb[78].mxu1 }
0x5e1c   :  { %v7185_v53 = vadd.f32 %v16397_v28, %v7184_v34  ;;  %v12711_v55 = vpop.f32.mrb[79].mxu1 }
0x5e1e   :  { %v7188_v42 = vmax.f32 %v7185_v53, 0.0 }
0x5e20   :  { %12729 = vmatmul.mubr.msk.f32.vlgmr.msra.gmra.mrb[80].mxu0 %vm654_vm3, %v7188_v42 }
0x5e21   :  { %14325 = vmatpush3.bf16.msra.mxu0 %v17600_v3  ;;  %12766 = vmatprep.mubr.msk.f32.mxu0 %vm15289_vm2, %v17535_v60 }
0x5e22   :  { %14326 = vmatprep.subr.bf16.mxu0 %v17529_v33 }
0x5e25   :  { %14328 = vmatpush3.bf16.msra.mxu0 %v17601_v51 }
0x5e26   :  { %14329 = vmatprep.subr.bf16.mxu0 %v17529_v33 }
0x5e29   :  { %14331 = vmatpush3.bf16.msra.mxu0 %v17602_v10 }
0x5e2a   :  { %14332 = vmatprep.subr.bf16.mxu0 %v17529_v33 }
0x5e2d   :  { %14334 = vmatpush3.bf16.msra.mxu0 %v17603_v47 }
0x5e2e   :  { %14347 = vmatprep.subr.bf16.mxu0 %v17529_v33 }
0x5ef3   :  { %v7258_v28 = vpop.f32.mrb[80].mxu0 }
0x5ef4   :  { %v7259_v59 = vadd.f32 %v17604_v56, %v7258_v28  ;;  %v12730_v63 = vpop.f32.mrb[81].mxu0  ;;  %v17636_v56 = vld [vmem:[#allocation52_spill] sm:$0xff] }
0x5ef6   :  { %v7262_v58 = vmax.f32 %v7259_v59, 0.0 }
0x5ef8   :  { %12748 = vmatmul.mubr.msk.f32.vlgmr.msra.gmra.mrb[80].mxu1 %vm654_vm3, %v7262_v58 }
0x5ef9   :  { %14337 = vmatpush3.bf16.msra.mxu1 %v17633_v43  ;;  %12785 = vmatprep.mubr.msk.f32.mxu1 %vm15289_vm2, %v17535_v60 }
0x5efa   :  { %14338 = vmatprep.subr.bf16.mxu1 %v17529_v33 }
0x5efd   :  { %14340 = vmatpush3.bf16.msra.mxu1 %v17634_v27 }
0x5efe   :  { %14341 = vmatprep.subr.bf16.mxu1 %v17529_v33 }
0x5f01   :  { %14343 = vmatpush3.bf16.msra.mxu1 %v17635_v39 }
0x5f02   :  { %14344 = vmatprep.subr.bf16.mxu1 %v17529_v33 }
0x5f05   :  { %14346 = vmatpush3.bf16.msra.mxu1 %v17636_v56 }
0x5f06   :  { %14362 = vmatprep.subr.bf16.mxu1 %v17529_v33 }
0x5fcb   :  { %v7332_v7 = vpop.f32.mrb[80].mxu1 }
0x5fcc   :  { %v7333_v44 = vadd.f32 %v16425_v52, %v7332_v7  ;;  %v12749_v29 = vpop.f32.mrb[81].mxu1  ;;  %v17637_v7 = vld [vmem:[#allocation40_spill] sm:$0xff] }
0x5fce   :  { %v7336_v35 = vmax.f32 %v7333_v44, 0.0 }
0x5fd0   :  { %12767 = vmatmul.mubr.msk.f32.vlgmr.msra.gmra.mrb[82].mxu0 %vm654_vm3, %v7336_v35 }
0x5fd1   :  { %14349 = vmatpush3.bf16.msra.mxu0 %v17552_v11  ;;  %12792 = vmatprep.mubr.msk.f32.mxu0 %vm15289_vm2, %v17535_v60 }
0x5fd2   :  { %14350 = vmatprep.subr.bf16.mxu0 %v17529_v33 }
0x60a3   :  { %v7406_v45 = vpop.f32.mrb[82].mxu0 }
0x60a4   :  { %v7407_v34 = vadd.f32 %v16433_v24, %v7406_v45  ;;  %v12768_v53 = vpop.f32.mrb[83].mxu0  ;;  %v17638_v45 = vld [vmem:[#allocation11_spill] sm:$0xff] }
0x60a5   :  { %v17640_v53 = vld [vmem:[#allocation13_spill] sm:$0xff] }
0x60a6   :  { %v7410_v55 = vmax.f32 %v7407_v34, 0.0  ;;  %v17639_v34 = vld [vmem:[#allocation12_spill] sm:$0xff] }
0x60a8   :  { %12786 = vmatmul.mubr.msk.f32.vlgmr.msra.gmra.mrb[82].mxu1 %vm654_vm3, %v7410_v55  ;;  %v17641_v55 = vld [vmem:[#allocation14_spill] sm:$0xff] }
0x60a9   :  { %14364 = vmatpush3.bf16.msra.mxu1 %v17554_v1  ;;  %12830 = vmatprep.mubr.msk.f32.mxu1 %vm15289_vm2, %v17535_v60 }
0x60aa   :  { %14365 = vmatprep.subr.bf16.mxu1 %v17529_v33 }
0x60ad   :  { %14367 = vmatpush3.bf16.msra.mxu1 %v17555_v40 }
0x60ae   :  { %14368 = vmatprep.subr.bf16.mxu1 %v17529_v33 }
0x60b1   :  { %14370 = vmatpush3.bf16.msra.mxu1 %v17556_v23 }
0x60b2   :  { %14371 = vmatprep.subr.bf16.mxu1 %v17529_v33 }
0x60b5   :  { %14373 = vmatpush3.bf16.msra.mxu1 %v16074_v25 }
0x60b6   :  { %14387 = vmatprep.subr.bf16.mxu1 %v15729_v36 }
0x617b   :  { %v7480_v24 = vpop.f32.mrb[82].mxu1 }
0x617c   :  { %v7481_v52 = vadd.f32 %v16447_v16, %v7480_v24  ;;  %v12787_v42 = vpop.f32.mrb[83].mxu1  ;;  %v17642_v24 = vld [vmem:[#allocation15_spill] sm:$0xff] }
0x617d   :  { %v17644_v42 = vld [vmem:[#allocation17_spill] sm:$0xff] }
0x617e   :  { %10573 = vst.msk [vmem:[#allocation7 + $0x8] sm:$0x3] %vm10568_vm7, %v7481_v52  ;;  %12793 = vmatmul.mubr.msk.f32.vlgmr.msra.gmra.mrb[84].mxu0 %vm2466_vm5, %v7481_v52  ;;  %v17643_v52 = vld [vmem:[#allocation16_spill] sm:$0xff] }
0x617f   :  { %14352 = vmatpush3.bf16.msra.mxu0 %v17558_v62  ;;  %12811 = vmatprep.mubr.msk.f32.mxu0 %vm15289_vm2, %v17535_v60 }
0x6180   :  { %14353 = vmatprep.subr.bf16.mxu0 %v17529_v33 }
0x6183   :  { %14355 = vmatpush3.bf16.msra.mxu0 %v17559_v19 }
0x6184   :  { %14356 = vmatprep.subr.bf16.mxu0 %v17529_v33 }
0x6187   :  { %14358 = vmatpush3.bf16.msra.mxu0 %v17560_v46 }
0x6188   :  { %14359 = vmatprep.subr.bf16.mxu0 %v17529_v33 }
0x618b   :  { %14361 = vmatpush3.bf16.msra.mxu0 %v17561_v32 }
0x618c   :  { %14374 = vmatprep.subr.bf16.mxu0 %v17529_v33 }
0x6251   :  { %v7553_v16 = vpop.f32.mrb[84].mxu0 }
0x6252   :  { %v7554_v28 = vadd.f32 %v16642_v9, %v7553_v16  ;;  %v12794_v59 = vpop.f32.mrb[85].mxu0  ;;  %v17645_v16 = vld [vmem:[#allocation18_spill] sm:$0xff] }
0x6254   :  { %v7557_v63 = vmax.f32 %v7554_v28, 0.0  ;;  %v17646_v28 = vld [vmem:[#allocation19_spill] sm:$0xff] }
0x6256   :  { %12812 = vmatmul.mubr.msk.f32.vlgmr.msra.gmra.mrb[86].mxu0 %vm654_vm3, %v7557_v63  ;;  %v17647_v63 = vld [vmem:[#allocation42_spill] sm:$0xff] }
0x6257   :  { %14376 = vmatpush3.bf16.msra.mxu0 %v16078_v13  ;;  %12849 = vmatprep.mubr.msk.f32.mxu0 %vm15289_vm2, %v17535_v60 }
0x6258   :  { %14377 = vmatprep.subr.bf16.mxu0 %v17529_v33 }
0x625b   :  { %14379 = vmatpush3.bf16.msra.mxu0 %v16081_v50 }
0x625c   :  { %14380 = vmatprep.subr.bf16.mxu0 %v17529_v33 }
0x625f   :  { %14382 = vmatpush3.bf16.msra.mxu0 %v16085_v15 }
0x6260   :  { %14383 = vmatprep.subr.bf16.mxu0 %v17529_v33 }
0x6263   :  { %14385 = vmatpush3.bf16.msra.mxu0 %v17581_v61 }
0x6264   :  { %14407 = vmatprep.subr.bf16.mxu0 %v17582_v57 }
0x6329   :  { %v7627_v58 = vpop.f32.mrb[86].mxu0 }
0x632a   :  { %v7628_v44 = vadd.f32 %v17637_v7, %v7627_v58  ;;  %v12813_v29 = vpop.f32.mrb[87].mxu0 }
0x632c   :  { %v7631_v35 = vmax.f32 %v7628_v44, 0.0 }
0x632e   :  { %12831 = vmatmul.mubr.msk.f32.vlgmr.msra.gmra.mrb[84].mxu1 %vm654_vm3, %v7631_v35  ;;  %v17648_v35 = vld [vmem:[#allocation22_spill] sm:$0xff] }
0x632f   :  { %14389 = vmatpush1.bf16.msra.mxu1 %v17638_v45  ;;  %7852 = vmatprep.mubr.f32.mxu1 %v17535_v60 }
0x6330   :  { %14391 = vmatprep.subr.bf16.mxu1 %v17639_v34 }
0x6333   :  { %14393 = vmatpush1.bf16.msra.mxu1 %v17640_v53 }
0x6334   :  { %14395 = vmatprep.subr.bf16.mxu1 %v17641_v55  ;;  %v17654_v55 = vld [vmem:[#allocation28_spill] sm:$0xff] }
0x6337   :  { %14397 = vmatpush1.bf16.msra.mxu1 %v17642_v24  ;;  %v17653_v24 = vld [vmem:[#allocation27_spill] sm:$0xff] }
0x6338   :  { %14399 = vmatprep.subr.bf16.mxu1 %v17643_v52  ;;  %v17649_v52 = vld [vmem:[#allocation23_spill] sm:$0xff] }
0x633b   :  { %14401 = vmatpush1.bf16.msra.mxu1 %v17644_v42  ;;  %v17650_v42 = vld [vmem:[#allocation24_spill] sm:$0xff] }
0x633c   :  { %14403 = vmatprep.subr.bf16.mxu1 %v17645_v16  ;;  %v17651_v16 = vld [vmem:[#allocation25_spill] sm:$0xff] }
0x633f   :  { %14405 = vmatpush1.bf16.msra.mxu1 %v17646_v28  ;;  %v17652_v28 = vld [vmem:[#allocation26_spill] sm:$0xff] }
0x6340   :  { %14438 = vmatprep.subr.bf16.mxu1 %v17529_v33 }
0x6401   :  { %v7701_v59 = vpop.f32.mrb[84].mxu1 }
0x6402   :  { %v7702_v58 = vadd.f32 %v17647_v63, %v7701_v59  ;;  %v12832_v44 = vpop.f32.mrb[85].mxu1  ;;  %v17655_v59 = vld [vmem:[#allocation29_spill] sm:$0xff] }
0x6403   :  { %v17657_v44 = vld [vmem:[#allocation31_spill] sm:$0xff] }
0x6404   :  { %v7705_v29 = vmax.f32 %v7702_v58, 0.0  ;;  %v17656_v58 = vld [vmem:[#allocation30_spill] sm:$0xff] }
0x6406   :  { %12850 = vmatmul.mubr.msk.f32.vlgmr.msra.gmra.mrb[88].mxu0 %vm654_vm3, %v7705_v29  ;;  %v17658_v29 = vld [vmem:[#allocation32_spill] sm:$0xff] }
0x6407   :  { %14409 = vmatpush1.bf16.msra.mxu0 %v17648_v35  ;;  %7957 = vmatprep.mubr.f32.mxu0 %v17535_v60  ;;  %v17659_v35 = vld [vmem:[#allocation33_spill] sm:$0xff] }
0x6408   :  { %14411 = vmatprep.subr.bf16.mxu0 %v17649_v52  ;;  %v17660_v52 = vld [vmem:[#allocation34_spill] sm:$0xff] }
0x640b   :  { %14413 = vmatpush1.bf16.msra.mxu0 %v17650_v42  ;;  %v17661_v42 = vld [vmem:[#allocation35_spill] sm:$0xff] }
0x640c   :  { %14415 = vmatprep.subr.bf16.mxu0 %v17651_v16  ;;  %v17662_v16 = vld [vmem:[#allocation36_spill] sm:$0xff] }
0x640f   :  { %14417 = vmatpush1.bf16.msra.mxu0 %v17652_v28 }
0x6410   :  { %14419 = vmatprep.subr.bf16.mxu0 %v17653_v24 }
0x6413   :  { %14421 = vmatpush1.bf16.msra.mxu0 %v17654_v55  ;;  %v17663_v55 = vld [vmem:[#allocation41_spill] sm:$0xff] }
0x6414   :  { %14423 = vmatprep.subr.bf16.mxu0 %v17655_v59 }
0x6417   :  { %14425 = vmatpush1.bf16.msra.mxu0 %v17656_v58  ;;  %v7782_v58 = vpop.permute.xlu0 %7781 }
0x6418   :  { %14427 = vmatprep.subr.bf16.mxu0 %v17657_v44 }
0x641b   :  { %14429 = vmatpush1.bf16.msra.mxu0 %v17658_v29  ;;  %v17664_v29 = vld [vmem:[#allocation37_spill] sm:$0xff] }
0x641c   :  { %14431 = vmatprep.subr.bf16.mxu0 %v17659_v35 }
0x641f   :  { %14433 = vmatpush1.bf16.msra.mxu0 %v17660_v52 }
0x6420   :  { %14435 = vmatprep.subr.bf16.mxu0 %v17661_v42 }
0x6423   :  { %14437 = vmatpush1.bf16.msra.mxu0 %v17662_v16  ;;  %v17665_v16 = vld [vmem:[#allocation38_spill] sm:$0xff] }
0x6424   :  { %14456 = vmatprep.subr.bf16.mxu0 %v17529_v33 }
0x64d9   :  { %v7775_v24 = vpop.f32.mrb[88].mxu0 }
0x64da   :  { %v7776_v28 = vadd.f32 %v17663_v55, %v7775_v24  ;;  %v12851_v59 = vpop.f32.mrb[89].mxu0 }
0x64db   :  { %v17666_v59 = vld [vmem:[#allocation20_spill] sm:$0xff] }
0x64dc   :  { %v7779_v63 = vmax.f32 %v7776_v28, 0.0 }
0x64de   :  { %v7784_v44 = vsel %vm2466_vm5, %v7779_v63, %v7782_v58 }
0x64df   :  { %10718 = vmatmul.mubr.msk.f32.vlgmr.msra.gmra.mrb[86].mxu1 %vm2501_vm6, %v7784_v44 }
0x64e0   :  { %14440 = vmatpush3.bf16.msra.mxu1 %v17664_v29  ;;  %12860 = vmatprep.mubr.msk.f32.mxu1 %vm15289_vm2, %v17535_v60 }
0x64e1   :  { %14441 = vmatprep.subr.bf16.mxu1 %v17529_v33 }
0x64e4   :  { %14443 = vmatpush3.bf16.msra.mxu1 %v17665_v16 }
0x64e5   :  { %14444 = vmatprep.subr.bf16.mxu1 %v17529_v33 }
0x65b2   :  { %v7854_v42 = vpop.f32.mrb[86].mxu1 }
0x65b3   :  { %v7856_v24 = vpop.f32.mrb[87].mxu1  ;;  %v7855_v63 = vadd.f32 %v7854_v42, %v15793_v26 }
0x65b4   :  { %v7857_v28 = vadd.f32 %v7856_v24, %v17666_v59 }
0x65b5   :  { %v10719_v58 = vmul.f32 -1.442695, %v7855_v63 }
0x65b6   :  { %15118 = vtanh.f32 %v7857_v28  ;;  %v10720_v42 = vmul.f32 -1.442695, %v7857_v28 }
0x65b7   :  { %15120 = vpow2.f32 %v10719_v58 }
0x65c0   :  { %v15119_v55 = vpop.eup %15118 }
0x65c1   :  { %7874 = vrot.lane.b32.xlu1 %v15119_v55, %s15293_s2  ;;  %v15121_v44 = vpop.eup %15120 }
0x65c2   :  { %v7865_v29 = vadd.f32 1.0, %v15121_v44 }
0x65c4   :  { %15122 = vrcp.f32 %v7865_v29 }
0x65ce   :  { %v15123_v52 = vpop.eup %15122 }
0x65cf   :  { %v7872_v24 = vmul.f32 %v15123_v52, %v16710_v2 }
0x6633   :  { %v7875_v35 = vpop.permute.xlu1 %7874 }
0x6634   :  { %v7877_v16 = vmul.f32 %v15123_v52, %v7875_v35 }
0x6636   :  { %7879 = vrot.lane.b32.xlu0 %v7877_v16, %s15293_s2 }
0x663a   :  { %7889 = vrot.lane.b32.xlu0 %v16735_v5, %s15293_s2 }
0x66a8   :  { %v7880_v59 = vpop.permute.xlu0 %7879 }
0x66a9   :  { %v16890_v53 = vadd.f32 %v7880_v59, %v7872_v24 }
0x66ab   :  { %15124 = vtanh.f32 %v16890_v53 }
0x66ac   :  { %15126 = vpow2.f32 %v10720_v42  ;;  %v7890_v44 = vpop.permute.xlu0 %7889 }
0x66b5   :  { %v15125_v55 = vpop.eup %15124 }
0x66b6   :  { %7885 = vrot.lane.b32.xlu1 %v15125_v55, %s15293_s2  ;;  %v15127_v29 = vpop.eup %15126 }
0x66b7   :  { %v7866_v63 = vadd.f32 1.0, %v15127_v29 }
0x66b9   :  { %15128 = vrcp.f32 %v7866_v63 }
0x66c3   :  { %v15129_v35 = vpop.eup %15128 }
0x6728   :  { %v7886_v16 = vpop.permute.xlu1 %7885 }
0x6729   :  { %v7888_v58 = vmul.f32 %v15129_v35, %v7886_v16 }
0x672b   :  { %v7892_v5 = vsel %vm654_vm3, %v7888_v58, %v7890_v44 }
0x672c   :  { %7958 = vmatmul.mubr.f32.vlgmr.msra.gmra.mrb[90].mxu0 %v7892_v5 }
0x672d   :  { %14458 = vmatpush3.bf16.msra.mxu0 %v15911_v6  ;;  %12898 = vmatprep.mubr.msk.f32.mxu0 %vm15289_vm2, %v17535_v60 }
0x672e   :  { %14459 = vmatprep.subr.bf16.mxu0 %v17529_v33 }
0x6731   :  { %14461 = vmatpush3.bf16.msra.mxu0 %v15914_v0 }
0x6732   :  { %14462 = vmatprep.subr.bf16.mxu0 %v17529_v33 }
0x6735   :  { %14464 = vmatpush3.bf16.msra.mxu0 %v15918_v54 }
0x6736   :  { %14465 = vmatprep.subr.bf16.mxu0 %v17529_v33 }
0x6739   :  { %14467 = vmatpush3.bf16.msra.mxu0 %v15931_v12 }
0x673a   :  { %14480 = vmatprep.subr.bf16.mxu0 %v17529_v33 }
0x67ff   :  { %v7959_v2 = vpop.f32.mrb[90].mxu0 }
0x6800   :  { %v7961_v52 = vpop.f32.mrb[91].mxu0  ;;  %v7960_v24 = vadd.f32 %v7959_v2, %v15872_v48 }
0x6801   :  { %v7962_v59 = vadd.f32 %v7961_v52, %v15866_v8 }
0x6802   :  { %v10721_v55 = vmul.f32 -1.442695, %v7960_v24 }
0x6803   :  { %15130 = vtanh.f32 %v7962_v59 }
0x6804   :  { %15132 = vpow2.f32 %v10721_v55 }
0x680d   :  { %v15131_v28 = vpop.eup %15130 }
0x680e   :  { %7979 = vrot.lane.b32.xlu1 %v15131_v28, %s15293_s2  ;;  %v15133_v42 = vpop.eup %15132  ;;  %v10722_v28 = vmul.f32 -1.442695, %v7962_v59 }
0x680f   :  { %v7970_v29 = vadd.f32 1.0, %v15133_v42 }
0x6811   :  { %15134 = vrcp.f32 %v7970_v29 }
0x681b   :  { %v15135_v63 = vpop.eup %15134 }
0x681c   :  { %v7977_v44 = vmul.f32 %v15135_v63, %v16731_v38 }
0x6880   :  { %v7980_v35 = vpop.permute.xlu1 %7979 }
0x6881   :  { %v7982_v16 = vmul.f32 %v15135_v63, %v7980_v35 }
0x6883   :  { %7984 = vrot.lane.b32.xlu0 %v7982_v16, %s15293_s2 }
0x6887   :  { %8809 = vrot.lane.b32.xlu0 %v7888_v58, %s15287_s7  ;;  %v16929_v58 = vld [vmem:[#allocation5 + $0x6c0] ss:$0 sm:$0xff] }
0x68f5   :  { %v7985_v5 = vpop.permute.xlu0 %7984 }
0x68f6   :  { %v16911_v52 = vadd.f32 %v7985_v5, %v7977_v44 }
0x68f8   :  { %15136 = vtanh.f32 %v16911_v52 }
0x68f9   :  { %15138 = vpow2.f32 %v10722_v28 }
0x6902   :  { %v15137_v2 = vpop.eup %15136 }
0x6903   :  { %7990 = vrot.lane.b32.xlu1 %v15137_v2, %s15293_s2  ;;  %v15139_v24 = vpop.eup %15138  ;;  %v16945_v2 = vld [vmem:[#allocation5 + $0x750] ss:$0 sm:$0xff] }
0x6904   :  { %v7971_v55 = vadd.f32 1.0, %v15139_v24 }
0x6906   :  { %15140 = vrcp.f32 %v7971_v55 }
0x6910   :  { %v15141_v42 = vpop.eup %15140 }
0x6975   :  { %v7991_v29 = vpop.permute.xlu1 %7990 }
0x6976   :  { %v16915_v35 = vmul.f32 %v15141_v42, %v7991_v29  ;;  %v16959_v29 = vld [vmem:[#allocation5 + $0x7e0] ss:$0 sm:$0xff] }
0x6978   :  { %12861 = vmatmul.mubr.msk.f32.vlgmr.msra.gmra.mrb[88].mxu1 %vm134_vm1, %v16915_v35 }
0x6979   :  { %14446 = vmatpush3.bf16.msra.mxu1 %v15889_v31  ;;  %12879 = vmatprep.mubr.msk.f32.mxu1 %vm15289_vm2, %v17535_v60 }
0x697a   :  { %14447 = vmatprep.subr.bf16.mxu1 %v17529_v33 }
0x697d   :  { %14449 = vmatpush3.bf16.msra.mxu1 %v15896_v14 }
0x697e   :  { %14450 = vmatprep.subr.bf16.mxu1 %v17529_v33 }
0x6981   :  { %14452 = vmatpush3.bf16.msra.mxu1 %v15902_v20 }
0x6982   :  { %14453 = vmatprep.subr.bf16.mxu1 %v17529_v33 }
0x6985   :  { %14455 = vmatpush3.bf16.msra.mxu1 %v15907_v17 }
0x6986   :  { %14468 = vmatprep.subr.bf16.mxu1 %v17529_v33 }
0x6a4b   :  { %v8063_v38 = vpop.f32.mrb[88].mxu1 }
0x6a4c   :  { %v8064_v59 = vadd.f32 %v16929_v58, %v8063_v38  ;;  %v12862_v63 = vpop.f32.mrb[89].mxu1 }
0x6a4e   :  { %v8067_v16 = vmax.f32 %v8064_v59, 0.0 }
0x6a50   :  { %v8068_v44 = vsel %vm134_vm1, %v8067_v16, %v16915_v35 }
0x6a51   :  { %12880 = vmatmul.mubr.msk.f32.vlgmr.msra.gmra.mrb[90].mxu1 %vm654_vm3, %v8068_v44  ;;  %v16973_v44 = vld [vmem:[#allocation5 + $0x870] ss:$0 sm:$0xff] }
0x6a52   :  { %14470 = vmatpush3.bf16.msra.mxu1 %v15935_v21  ;;  %12917 = vmatprep.mubr.msk.f32.mxu1 %vm15289_vm2, %v17535_v60 }
0x6a53   :  { %14471 = vmatprep.subr.bf16.mxu1 %v17529_v33 }
0x6a56   :  { %14473 = vmatpush3.bf16.msra.mxu1 %v15938_v30 }
0x6a57   :  { %14474 = vmatprep.subr.bf16.mxu1 %v17529_v33 }
0x6a5a   :  { %14476 = vmatpush3.bf16.msra.mxu1 %v15942_v37 }
0x6a5b   :  { %14477 = vmatprep.subr.bf16.mxu1 %v17529_v33 }
0x6a5e   :  { %14479 = vmatpush3.bf16.msra.mxu1 %v15953_v4 }
0x6a5f   :  { %14492 = vmatprep.subr.bf16.mxu1 %v17529_v33 }
0x6b24   :  { %v8138_v5 = vpop.f32.mrb[90].mxu1 }
0x6b25   :  { %v8139_v28 = vadd.f32 %v16945_v2, %v8138_v5  ;;  %v12881_v24 = vpop.f32.mrb[91].mxu1 }
0x6b27   :  { %v8142_v55 = vmax.f32 %v8139_v28, 0.0 }
0x6b29   :  { %12899 = vmatmul.mubr.msk.f32.vlgmr.msra.gmra.mrb[92].mxu0 %vm654_vm3, %v8142_v55 }
0x6b2a   :  { %14482 = vmatpush3.bf16.msra.mxu0 %v15957_v18  ;;  %12936 = vmatprep.mubr.msk.f32.mxu0 %vm15289_vm2, %v17535_v60 }
0x6b2b   :  { %14483 = vmatprep.subr.bf16.mxu0 %v17529_v33 }
0x6b2e   :  { %14485 = vmatpush3.bf16.msra.mxu0 %v17538_v22 }
0x6b2f   :  { %14486 = vmatprep.subr.bf16.mxu0 %v17529_v33 }
0x6b32   :  { %14488 = vmatpush3.bf16.msra.mxu0 %v17539_v49 }
0x6b33   :  { %14489 = vmatprep.subr.bf16.mxu0 %v17529_v33 }
0x6b36   :  { %14491 = vmatpush3.bf16.msra.mxu0 %v17540_v41 }
0x6b37   :  { %14504 = vmatprep.subr.bf16.mxu0 %v17529_v33 }
0x6bfc   :  { %v8212_v42 = vpop.f32.mrb[92].mxu0 }
0x6bfd   :  { %v8213_v38 = vadd.f32 %v16959_v29, %v8212_v42  ;;  %v12900_v59 = vpop.f32.mrb[93].mxu0  ;;  %v16987_v42 = vld [vmem:[#allocation5 + $0x900] ss:$0 sm:$0xff] }
0x6bff   :  { %v8216_v63 = vmax.f32 %v8213_v38, 0.0 }
0x6c01   :  { %12918 = vmatmul.mubr.msk.f32.vlgmr.msra.gmra.mrb[92].mxu1 %vm654_vm3, %v8216_v63 }
0x6c02   :  { %14494 = vmatpush3.bf16.msra.mxu1 %v17600_v3  ;;  %12955 = vmatprep.mubr.msk.f32.mxu1 %vm15289_vm2, %v17535_v60 }
0x6c03   :  { %14495 = vmatprep.subr.bf16.mxu1 %v17529_v33 }
0x6c06   :  { %14497 = vmatpush3.bf16.msra.mxu1 %v17601_v51 }
0x6c07   :  { %14498 = vmatprep.subr.bf16.mxu1 %v17529_v33 }
0x6c0a   :  { %14500 = vmatpush3.bf16.msra.mxu1 %v17602_v10 }
0x6c0b   :  { %14501 = vmatprep.subr.bf16.mxu1 %v17529_v33 }
0x6c0e   :  { %14503 = vmatpush3.bf16.msra.mxu1 %v17603_v47 }
0x6c0f   :  { %14516 = vmatprep.subr.bf16.mxu1 %v17529_v33 }
0x6cd4   :  { %v8286_v16 = vpop.f32.mrb[92].mxu1 }
0x6cd5   :  { %v8287_v5 = vadd.f32 %v16973_v44, %v8286_v16  ;;  %v12919_v28 = vpop.f32.mrb[93].mxu1 }
0x6cd7   :  { %v8290_v24 = vmax.f32 %v8287_v5, 0.0  ;;  %v16995_v5 = vld [vmem:[#allocation5 + $0x990] ss:$0 sm:$0xff] }
0x6cd9   :  { %12937 = vmatmul.mubr.msk.f32.vlgmr.msra.gmra.mrb[94].mxu0 %vm654_vm3, %v8290_v24 }
0x6cda   :  { %14506 = vmatpush3.bf16.msra.mxu0 %v17633_v43  ;;  %12974 = vmatprep.mubr.msk.f32.mxu0 %vm15289_vm2, %v17535_v60 }
0x6cdb   :  { %14507 = vmatprep.subr.bf16.mxu0 %v17529_v33 }
0x6cde   :  { %14509 = vmatpush3.bf16.msra.mxu0 %v17634_v27 }
0x6cdf   :  { %14510 = vmatprep.subr.bf16.mxu0 %v17529_v33 }
0x6ce2   :  { %14512 = vmatpush3.bf16.msra.mxu0 %v17635_v39 }
0x6ce3   :  { %14513 = vmatprep.subr.bf16.mxu0 %v17529_v33 }
0x6ce6   :  { %14515 = vmatpush3.bf16.msra.mxu0 %v17636_v56 }
0x6ce7   :  { %14531 = vmatprep.subr.bf16.mxu0 %v17529_v33 }
0x6dac   :  { %v8360_v55 = vpop.f32.mrb[94].mxu0 }
0x6dad   :  { %v8361_v38 = vadd.f32 %v16987_v42, %v8360_v55  ;;  %v12938_v59 = vpop.f32.mrb[95].mxu0  ;;  %v17009_v55 = vld [vmem:[#allocation5 + $0xa20] ss:$0 sm:$0xff] }
0x6daf   :  { %v8364_v63 = vmax.f32 %v8361_v38, 0.0 }
0x6db1   :  { %12956 = vmatmul.mubr.msk.f32.vlgmr.msra.gmra.mrb[94].mxu1 %vm654_vm3, %v8364_v63 }
0x6db2   :  { %14518 = vmatpush3.bf16.msra.mxu1 %v17552_v11  ;;  %12981 = vmatprep.mubr.msk.f32.mxu1 %vm15289_vm2, %v17535_v60 }
0x6db3   :  { %14519 = vmatprep.subr.bf16.mxu1 %v17529_v33 }
0x6e84   :  { %v8434_v16 = vpop.f32.mrb[94].mxu1 }
0x6e85   :  { %v8435_v28 = vadd.f32 %v16995_v5, %v8434_v16  ;;  %v12957_v24 = vpop.f32.mrb[95].mxu1 }
0x6e87   :  { %v8438_v56 = vmax.f32 %v8435_v28, 0.0 }
0x6e89   :  { %12975 = vmatmul.mubr.msk.f32.vlgmr.msra.gmra.mrb[96].mxu0 %vm654_vm3, %v8438_v56 }
0x6e8a   :  { %14533 = vmatpush3.bf16.msra.mxu0 %v17554_v1  ;;  %13019 = vmatprep.mubr.msk.f32.mxu0 %vm15289_vm2, %v17535_v60 }
0x6e8b   :  { %14534 = vmatprep.subr.bf16.mxu0 %v17529_v33 }
0x6e8e   :  { %14536 = vmatpush3.bf16.msra.mxu0 %v17555_v40 }
0x6e8f   :  { %14537 = vmatprep.subr.bf16.mxu0 %v17529_v33 }
0x6e92   :  { %14539 = vmatpush3.bf16.msra.mxu0 %v17556_v23 }
0x6e93   :  { %14540 = vmatprep.subr.bf16.mxu0 %v17529_v33 }
0x6e96   :  { %14542 = vmatpush3.bf16.msra.mxu0 %v16074_v25 }
0x6e97   :  { %14556 = vmatprep.subr.bf16.mxu0 %v15729_v36 }
0x6f5c   :  { %v8508_v56 = vpop.f32.mrb[96].mxu0 }
0x6f5d   :  { %v8509_v38 = vadd.f32 %v17009_v55, %v8508_v56  ;;  %v12976_v59 = vpop.f32.mrb[97].mxu0 }
0x6f5f   :  { %10574 = vst.msk [vmem:[#allocation7 + $0xa] sm:$0x3] %vm10568_vm7, %v8509_v38  ;;  %12982 = vmatmul.mubr.msk.f32.vlgmr.msra.gmra.mrb[96].mxu1 %vm2466_vm5, %v8509_v38 }
0x6f60   :  { %14521 = vmatpush3.bf16.msra.mxu1 %v17558_v62  ;;  %13000 = vmatprep.mubr.msk.f32.mxu1 %vm15289_vm2, %v17535_v60 }
0x6f61   :  { %14522 = vmatprep.subr.bf16.mxu1 %v17529_v33 }
0x6f64   :  { %14524 = vmatpush3.bf16.msra.mxu1 %v17559_v19 }
0x6f65   :  { %14525 = vmatprep.subr.bf16.mxu1 %v17529_v33 }
0x6f68   :  { %14527 = vmatpush3.bf16.msra.mxu1 %v17560_v46 }
0x6f69   :  { %14528 = vmatprep.subr.bf16.mxu1 %v17529_v33 }
0x6f6c   :  { %14530 = vmatpush3.bf16.msra.mxu1 %v17561_v32 }
0x6f6d   :  { %14543 = vmatprep.subr.bf16.mxu1 %v17529_v33 }
0x7032   :  { %v8581_v63 = vpop.f32.mrb[96].mxu1 }
0x7033   :  { %v8582_v16 = vadd.f32 %v16642_v9, %v8581_v63  ;;  %v12983_v28 = vpop.f32.mrb[97].mxu1  ;;  %v17667_v63 = vld [vmem:[#allocation13_spill] sm:$0xff] }
0x7034   :  { %v17669_v28 = vld [vmem:[#allocation15_spill] sm:$0xff] }
0x7035   :  { %v8585_v24 = vmax.f32 %v8582_v16, 0.0  ;;  %v17668_v16 = vld [vmem:[#allocation14_spill] sm:$0xff] }
0x7037   :  { %13001 = vmatmul.mubr.msk.f32.vlgmr.msra.gmra.mrb[98].mxu1 %vm654_vm3, %v8585_v24  ;;  %v17670_v24 = vld [vmem:[#allocation16_spill] sm:$0xff] }
0x7038   :  { %14545 = vmatpush3.bf16.msra.mxu1 %v16078_v13  ;;  %13038 = vmatprep.mubr.msk.f32.mxu1 %vm15289_vm2, %v17535_v60 }
0x7039   :  { %14546 = vmatprep.subr.bf16.mxu1 %v17529_v33 }
0x703c   :  { %14548 = vmatpush3.bf16.msra.mxu1 %v16081_v50 }
0x703d   :  { %14549 = vmatprep.subr.bf16.mxu1 %v17529_v33 }
0x7040   :  { %14551 = vmatpush3.bf16.msra.mxu1 %v16085_v15 }
0x7041   :  { %14552 = vmatprep.subr.bf16.mxu1 %v17529_v33 }
0x7044   :  { %14554 = vmatpush3.bf16.msra.mxu1 %v17581_v61 }
0x7045   :  { %14576 = vmatprep.subr.bf16.mxu1 %v17582_v57  ;;  %v17671_v57 = vld [vmem:[#allocation17_spill] sm:$0xff] }
0x710a   :  { %v8655_v9 = vpop.f32.mrb[98].mxu1 }
0x710b   :  { %v8656_v56 = vadd.f32 %v17637_v7, %v8655_v9  ;;  %v13002_v38 = vpop.f32.mrb[99].mxu1  ;;  %v17672_v7 = vld [vmem:[#allocation18_spill] sm:$0xff]  ;;  %v17673_v9 = vld [vmem:[#allocation19_spill] sm:$0xff] }
0x710c   :  { %v17674_v38 = vld [vmem:[#allocation42_spill] sm:$0xff] }
0x710d   :  { %v8659_v59 = vmax.f32 %v8656_v56, 0.0 }
0x710f   :  { %13020 = vmatmul.mubr.msk.f32.vlgmr.msra.gmra.mrb[98].mxu0 %vm654_vm3, %v8659_v59 }
0x7110   :  { %14558 = vmatpush1.bf16.msra.mxu0 %v17638_v45  ;;  %8880 = vmatprep.mubr.f32.mxu0 %v17535_v60 }
0x7111   :  { %14560 = vmatprep.subr.bf16.mxu0 %v17639_v34 }
0x7114   :  { %14562 = vmatpush1.bf16.msra.mxu0 %v17667_v63  ;;  %v17681_v63 = vld [vmem:[#allocation28_spill] sm:$0xff] }
0x7115   :  { %14564 = vmatprep.subr.bf16.mxu0 %v17668_v16  ;;  %v17675_v16 = vld [vmem:[#allocation22_spill] sm:$0xff] }
0x7118   :  { %14566 = vmatpush1.bf16.msra.mxu0 %v17669_v28  ;;  %v17680_v28 = vld [vmem:[#allocation27_spill] sm:$0xff] }
0x7119   :  { %14568 = vmatprep.subr.bf16.mxu0 %v17670_v24  ;;  %v17676_v24 = vld [vmem:[#allocation23_spill] sm:$0xff] }
0x711c   :  { %14570 = vmatpush1.bf16.msra.mxu0 %v17671_v57  ;;  %v17677_v57 = vld [vmem:[#allocation24_spill] sm:$0xff] }
0x711d   :  { %14572 = vmatprep.subr.bf16.mxu0 %v17672_v7  ;;  %v17678_v7 = vld [vmem:[#allocation25_spill] sm:$0xff] }
0x7120   :  { %14574 = vmatpush1.bf16.msra.mxu0 %v17673_v9  ;;  %v17679_v9 = vld [vmem:[#allocation26_spill] sm:$0xff] }
0x7121   :  { %14607 = vmatprep.subr.bf16.mxu0 %v17529_v33 }
0x71e2   :  { %v8729_v56 = vpop.f32.mrb[98].mxu0 }
0x71e3   :  { %v8730_v59 = vadd.f32 %v17674_v38, %v8729_v56  ;;  %v13021_v34 = vpop.f32.mrb[99].mxu0  ;;  %v17683_v56 = vld [vmem:[#allocation30_spill] sm:$0xff]  ;;  %v17685_v38 = vld [vmem:[#allocation32_spill] sm:$0xff] }
0x71e4   :  { %v17682_v34 = vld [vmem:[#allocation29_spill] sm:$0xff] }
0x71e5   :  { %v8733_v45 = vmax.f32 %v8730_v59, 0.0  ;;  %v17686_v59 = vld [vmem:[#allocation33_spill] sm:$0xff] }
0x71e7   :  { %13039 = vmatmul.mubr.msk.f32.vlgmr.msra.gmra.mrb[100].mxu1 %vm654_vm3, %v8733_v45  ;;  %v17684_v45 = vld [vmem:[#allocation31_spill] sm:$0xff] }
0x71e8   :  { %14578 = vmatpush1.bf16.msra.mxu1 %v17675_v16  ;;  %8985 = vmatprep.mubr.f32.mxu1 %v17535_v60 }
0x71e9   :  { %14580 = vmatprep.subr.bf16.mxu1 %v17676_v24  ;;  %v17687_v24 = vld [vmem:[#allocation34_spill] sm:$0xff] }
0x71ec   :  { %14582 = vmatpush1.bf16.msra.mxu1 %v17677_v57  ;;  %v17688_v57 = vld [vmem:[#allocation35_spill] sm:$0xff] }
0x71ed   :  { %14584 = vmatprep.subr.bf16.mxu1 %v17678_v7  ;;  %v17689_v7 = vld [vmem:[#allocation36_spill] sm:$0xff] }
0x71f0   :  { %14586 = vmatpush1.bf16.msra.mxu1 %v17679_v9 }
0x71f1   :  { %14588 = vmatprep.subr.bf16.mxu1 %v17680_v28 }
0x71f4   :  { %14590 = vmatpush1.bf16.msra.mxu1 %v17681_v63  ;;  %v17690_v63 = vld [vmem:[#allocation41_spill] sm:$0xff] }
0x71f5   :  { %14592 = vmatprep.subr.bf16.mxu1 %v17682_v34 }
0x71f8   :  { %14594 = vmatpush1.bf16.msra.mxu1 %v17683_v56  ;;  %v8810_v56 = vpop.permute.xlu0 %8809 }
0x71f9   :  { %14596 = vmatprep.subr.bf16.mxu1 %v17684_v45 }
0x71fc   :  { %14598 = vmatpush1.bf16.msra.mxu1 %v17685_v38  ;;  %v17691_v38 = vld [vmem:[#allocation37_spill] sm:$0xff] }
0x71fd   :  { %14600 = vmatprep.subr.bf16.mxu1 %v17686_v59 }
0x7200   :  { %14602 = vmatpush1.bf16.msra.mxu1 %v17687_v24 }
0x7201   :  { %14604 = vmatprep.subr.bf16.mxu1 %v17688_v57 }
0x7204   :  { %14606 = vmatpush1.bf16.msra.mxu1 %v17689_v7  ;;  %v17692_v7 = vld [vmem:[#allocation38_spill] sm:$0xff] }
0x7205   :  { %14625 = vmatprep.subr.bf16.mxu1 %v17529_v33 }
0x72ba   :  { %v8803_v28 = vpop.f32.mrb[100].mxu1 }
0x72bb   :  { %v8804_v9 = vadd.f32 %v17690_v63, %v8803_v28  ;;  %v13040_v34 = vpop.f32.mrb[101].mxu1  ;;  %v17693_v28 = vld [vmem:[#allocation20_spill] sm:$0xff] }
0x72bd   :  { %v8807_v16 = vmax.f32 %v8804_v9, 0.0 }
0x72bf   :  { %v8812_v45 = vsel %vm2466_vm5, %v8807_v16, %v8810_v56 }
0x72c0   :  { %10734 = vmatmul.mubr.msk.f32.vlgmr.msra.gmra.mrb[100].mxu0 %vm2501_vm6, %v8812_v45 }
0x72c1   :  { %14609 = vmatpush3.bf16.msra.mxu0 %v17691_v38  ;;  %13049 = vmatprep.mubr.msk.f32.mxu0 %vm15289_vm2, %v17535_v60 }
0x72c2   :  { %14610 = vmatprep.subr.bf16.mxu0 %v17529_v33 }
0x72c5   :  { %14612 = vmatpush3.bf16.msra.mxu0 %v17692_v7 }
0x72c6   :  { %14613 = vmatprep.subr.bf16.mxu0 %v17529_v33 }
0x7393   :  { %v8882_v57 = vpop.f32.mrb[100].mxu0 }
0x7394   :  { %v8884_v63 = vpop.f32.mrb[101].mxu0  ;;  %v8883_v16 = vadd.f32 %v8882_v57, %v15793_v26 }
0x7395   :  { %v8885_v9 = vadd.f32 %v8884_v63, %v17693_v28 }
0x7396   :  { %v10735_v56 = vmul.f32 -1.442695, %v8883_v16 }
0x7397   :  { %15142 = vtanh.f32 %v8885_v9 }
0x7398   :  { %15144 = vpow2.f32 %v10735_v56 }
0x73a1   :  { %v15143_v34 = vpop.eup %15142 }
0x73a2   :  { %8902 = vrot.lane.b32.xlu1 %v15143_v34, %s15293_s2  ;;  %v15145_v45 = vpop.eup %15144  ;;  %v10736_v34 = vmul.f32 -1.442695, %v8885_v9 }
0x73a3   :  { %v8893_v38 = vadd.f32 1.0, %v15145_v45 }
0x73a5   :  { %15146 = vrcp.f32 %v8893_v38 }
0x73af   :  { %v15147_v24 = vpop.eup %15146 }
0x73b0   :  { %v8900_v63 = vmul.f32 %v15147_v24, %v16890_v53 }
0x7414   :  { %v8903_v59 = vpop.permute.xlu1 %8902 }
0x7415   :  { %v8905_v7 = vmul.f32 %v15147_v24, %v8903_v59 }
0x7417   :  { %8907 = vrot.lane.b32.xlu0 %v8905_v7, %s15293_s2 }
0x741b   :  { %8917 = vrot.lane.b32.xlu0 %v16915_v35, %s15293_s2 }
0x7489   :  { %v8908_v28 = vpop.permute.xlu0 %8907 }
0x748a   :  { %v17084_v61 = vadd.f32 %v8908_v28, %v8900_v63 }
0x748c   :  { %15148 = vtanh.f32 %v17084_v61 }
0x748d   :  { %15150 = vpow2.f32 %v10736_v34  ;;  %v8918_v45 = vpop.permute.xlu0 %8917 }
0x7496   :  { %v15149_v57 = vpop.eup %15148 }
0x7497   :  { %8913 = vrot.lane.b32.xlu1 %v15149_v57, %s15293_s2  ;;  %v15151_v38 = vpop.eup %15150 }
0x7498   :  { %v8894_v16 = vadd.f32 1.0, %v15151_v38 }
0x749a   :  { %15152 = vrcp.f32 %v8894_v16 }
0x74a4   :  { %v15153_v59 = vpop.eup %15152 }
0x7509   :  { %v8914_v7 = vpop.permute.xlu1 %8913 }
0x750a   :  { %v8916_v56 = vmul.f32 %v15153_v59, %v8914_v7 }
0x750c   :  { %v8920_v35 = vsel %vm654_vm3, %v8916_v56, %v8918_v45 }
0x750d   :  { %8986 = vmatmul.mubr.f32.vlgmr.msra.gmra.mrb[102].mxu1 %v8920_v35 }
0x750e   :  { %14627 = vmatpush3.bf16.msra.mxu1 %v15911_v6  ;;  %13087 = vmatprep.mubr.msk.f32.mxu1 %vm15289_vm2, %v17535_v60 }
0x750f   :  { %14628 = vmatprep.subr.bf16.mxu1 %v17529_v33 }
0x7512   :  { %14630 = vmatpush3.bf16.msra.mxu1 %v15914_v0 }
0x7513   :  { %14631 = vmatprep.subr.bf16.mxu1 %v17529_v33 }
0x7516   :  { %14633 = vmatpush3.bf16.msra.mxu1 %v15918_v54 }
0x7517   :  { %14634 = vmatprep.subr.bf16.mxu1 %v17529_v33 }
0x751a   :  { %14636 = vmatpush3.bf16.msra.mxu1 %v15931_v12 }
0x751b   :  { %14649 = vmatprep.subr.bf16.mxu1 %v17529_v33 }
0x75e0   :  { %v8987_v53 = vpop.f32.mrb[102].mxu1 }
0x75e1   :  { %v8989_v24 = vpop.f32.mrb[103].mxu1  ;;  %v8988_v63 = vadd.f32 %v8987_v53, %v15872_v48 }
0x75e2   :  { %v8990_v28 = vadd.f32 %v8989_v24, %v15866_v8 }
0x75e3   :  { %v10737_v57 = vmul.f32 -1.442695, %v8988_v63 }
0x75e4   :  { %15154 = vtanh.f32 %v8990_v28 }
0x75e5   :  { %15156 = vpow2.f32 %v10737_v57 }
0x75ee   :  { %v15155_v9 = vpop.eup %15154 }
0x75ef   :  { %9007 = vrot.lane.b32.xlu1 %v15155_v9, %s15293_s2  ;;  %v15157_v34 = vpop.eup %15156  ;;  %v10738_v9 = vmul.f32 -1.442695, %v8990_v28 }
0x75f0   :  { %v8998_v38 = vadd.f32 1.0, %v15157_v34 }
0x75f2   :  { %15158 = vrcp.f32 %v8998_v38 }
0x75fc   :  { %v15159_v16 = vpop.eup %15158 }
0x75fd   :  { %v9005_v45 = vmul.f32 %v15159_v16, %v16911_v52 }
0x7661   :  { %v9008_v59 = vpop.permute.xlu1 %9007 }
0x7662   :  { %v9010_v7 = vmul.f32 %v15159_v16, %v9008_v59 }
0x7664   :  { %9012 = vrot.lane.b32.xlu0 %v9010_v7, %s15293_s2 }
0x7668   :  { %9837 = vrot.lane.b32.xlu0 %v8916_v56, %s15287_s7 }
0x76d6   :  { %v9013_v35 = vpop.permute.xlu0 %9012 }
0x76d7   :  { %v17105_v24 = vadd.f32 %v9013_v35, %v9005_v45 }
0x76d9   :  { %15160 = vtanh.f32 %v17105_v24 }
0x76da   :  { %15162 = vpow2.f32 %v10738_v9 }
0x76e3   :  { %v15161_v53 = vpop.eup %15160 }
0x76e4   :  { %9018 = vrot.lane.b32.xlu1 %v15161_v53, %s15293_s2  ;;  %v15163_v63 = vpop.eup %15162 }
0x76e5   :  { %v8999_v57 = vadd.f32 1.0, %v15163_v63 }
0x76e7   :  { %15164 = vrcp.f32 %v8999_v57 }
0x76f1   :  { %v15165_v34 = vpop.eup %15164 }
0x7756   :  { %v9019_v38 = vpop.permute.xlu1 %9018 }
0x7757   :  { %v17109_v59 = vmul.f32 %v15165_v34, %v9019_v38 }
0x7759   :  { %13050 = vmatmul.mubr.msk.f32.vlgmr.msra.gmra.mrb[102].mxu0 %vm134_vm1, %v17109_v59 }
0x775a   :  { %14615 = vmatpush3.bf16.msra.mxu0 %v15889_v31  ;;  %13068 = vmatprep.mubr.msk.f32.mxu0 %vm15289_vm2, %v17535_v60 }
0x775b   :  { %14616 = vmatprep.subr.bf16.mxu0 %v17529_v33 }
0x775e   :  { %14618 = vmatpush3.bf16.msra.mxu0 %v15896_v14 }
0x775f   :  { %14619 = vmatprep.subr.bf16.mxu0 %v17529_v33 }
0x7762   :  { %14621 = vmatpush3.bf16.msra.mxu0 %v15902_v20 }
0x7763   :  { %14622 = vmatprep.subr.bf16.mxu0 %v17529_v33 }
0x7766   :  { %14624 = vmatpush3.bf16.msra.mxu0 %v15907_v17 }
0x7767   :  { %14637 = vmatprep.subr.bf16.mxu0 %v17529_v33 }
0x782c   :  { %v9091_v52 = vpop.f32.mrb[102].mxu0 }
0x782d   :  { %v9092_v56 = vadd.f32 %v16929_v58, %v9091_v52  ;;  %v13051_v28 = vpop.f32.mrb[103].mxu0 }
0x782f   :  { %v9095_v16 = vmax.f32 %v9092_v56, 0.0 }
0x7831   :  { %v9096_v7 = vsel %vm134_vm1, %v9095_v16, %v17109_v59 }
0x7832   :  { %13069 = vmatmul.mubr.msk.f32.vlgmr.msra.gmra.mrb[104].mxu0 %vm654_vm3, %v9096_v7  ;;  %v17694_v7 = vld [vmem:[#allocation52_spill] sm:$0xff] }
0x7833   :  { %14639 = vmatpush3.bf16.msra.mxu0 %v15935_v21  ;;  %13106 = vmatprep.mubr.msk.f32.mxu0 %vm15289_vm2, %v17535_v60 }
0x7834   :  { %14640 = vmatprep.subr.bf16.mxu0 %v17529_v33 }
0x7837   :  { %14642 = vmatpush3.bf16.msra.mxu0 %v15938_v30 }
0x7838   :  { %14643 = vmatprep.subr.bf16.mxu0 %v17529_v33 }
0x783b   :  { %14645 = vmatpush3.bf16.msra.mxu0 %v15942_v37 }
0x783c   :  { %14646 = vmatprep.subr.bf16.mxu0 %v17529_v33 }
0x783f   :  { %14648 = vmatpush3.bf16.msra.mxu0 %v15953_v4 }
0x7840   :  { %14661 = vmatprep.subr.bf16.mxu0 %v17529_v33 }
0x7905   :  { %v9166_v45 = vpop.f32.mrb[104].mxu0 }
0x7906   :  { %v9167_v35 = vadd.f32 %v16945_v2, %v9166_v45  ;;  %v13070_v53 = vpop.f32.mrb[105].mxu0 }
0x7908   :  { %v9170_v9 = vmax.f32 %v9167_v35, 0.0 }
0x790a   :  { %13088 = vmatmul.mubr.msk.f32.vlgmr.msra.gmra.mrb[104].mxu1 %vm654_vm3, %v9170_v9 }
0x790b   :  { %14651 = vmatpush3.bf16.msra.mxu1 %v15957_v18  ;;  %13125 = vmatprep.mubr.msk.f32.mxu1 %vm15289_vm2, %v17535_v60 }
0x790c   :  { %14652 = vmatprep.subr.bf16.mxu1 %v17529_v33 }
0x790f   :  { %14654 = vmatpush3.bf16.msra.mxu1 %v17538_v22 }
0x7910   :  { %14655 = vmatprep.subr.bf16.mxu1 %v17529_v33 }
0x7913   :  { %14657 = vmatpush3.bf16.msra.mxu1 %v17539_v49 }
0x7914   :  { %14658 = vmatprep.subr.bf16.mxu1 %v17529_v33 }
0x7917   :  { %14660 = vmatpush3.bf16.msra.mxu1 %v17540_v41 }
0x7918   :  { %14673 = vmatprep.subr.bf16.mxu1 %v17529_v33 }
0x79dd   :  { %v9240_v63 = vpop.f32.mrb[104].mxu1 }
0x79de   :  { %v9241_v57 = vadd.f32 %v16959_v29, %v9240_v63  ;;  %v13089_v34 = vpop.f32.mrb[105].mxu1 }
0x79e0   :  { %v9244_v38 = vmax.f32 %v9241_v57, 0.0 }
0x79e2   :  { %13107 = vmatmul.mubr.msk.f32.vlgmr.msra.gmra.mrb[106].mxu0 %vm654_vm3, %v9244_v38 }
0x79e3   :  { %14663 = vmatpush3.bf16.msra.mxu0 %v17600_v3  ;;  %13144 = vmatprep.mubr.msk.f32.mxu0 %vm15289_vm2, %v17535_v60 }
0x79e4   :  { %14664 = vmatprep.subr.bf16.mxu0 %v17529_v33 }
0x79e7   :  { %14666 = vmatpush3.bf16.msra.mxu0 %v17601_v51 }
0x79e8   :  { %14667 = vmatprep.subr.bf16.mxu0 %v17529_v33 }
0x79eb   :  { %14669 = vmatpush3.bf16.msra.mxu0 %v17602_v10 }
0x79ec   :  { %14670 = vmatprep.subr.bf16.mxu0 %v17529_v33 }
0x79ef   :  { %14672 = vmatpush3.bf16.msra.mxu0 %v17603_v47 }
0x79f0   :  { %14685 = vmatprep.subr.bf16.mxu0 %v17529_v33 }
0x7ab5   :  { %v9314_v52 = vpop.f32.mrb[106].mxu0 }
0x7ab6   :  { %v9315_v56 = vadd.f32 %v16973_v44, %v9314_v52  ;;  %v13108_v28 = vpop.f32.mrb[107].mxu0 }
0x7ab8   :  { %v9318_v16 = vmax.f32 %v9315_v56, 0.0  ;;  %v15209_v56 = vld [vmem:[#allocation5 + $0x1c0] ss:$0 sm:$0xff] }
0x7aba   :  { %13126 = vmatmul.mubr.msk.f32.vlgmr.msra.gmra.mrb[106].mxu1 %vm654_vm3, %v9318_v16 }
0x7abb   :  { %14675 = vmatpush3.bf16.msra.mxu1 %v17633_v43  ;;  %13163 = vmatprep.mubr.msk.f32.mxu1 %vm15289_vm2, %v17535_v60 }
0x7abc   :  { %14676 = vmatprep.subr.bf16.mxu1 %v17529_v33 }
0x7abf   :  { %14678 = vmatpush3.bf16.msra.mxu1 %v17634_v27 }
0x7ac0   :  { %14679 = vmatprep.subr.bf16.mxu1 %v17529_v33 }
0x7ac3   :  { %14681 = vmatpush3.bf16.msra.mxu1 %v17635_v39 }
0x7ac4   :  { %14682 = vmatprep.subr.bf16.mxu1 %v17529_v33 }
0x7ac7   :  { %14684 = vmatpush3.bf16.msra.mxu1 %v17694_v7 }
0x7ac8   :  { %14700 = vmatprep.subr.bf16.mxu1 %v17529_v33 }
0x7b8d   :  { %v9388_v45 = vpop.f32.mrb[106].mxu1 }
0x7b8e   :  { %v9389_v35 = vadd.f32 %v16987_v42, %v9388_v45  ;;  %v13127_v53 = vpop.f32.mrb[107].mxu1  ;;  %v17697_v45 = vld [vmem:[#allocation11_spill] sm:$0xff] }
0x7b8f   :  { %v17701_v53 = vld [vmem:[#allocation15_spill] sm:$0xff] }
0x7b90   :  { %v9392_v9 = vmax.f32 %v9389_v35, 0.0  ;;  %v17700_v35 = vld [vmem:[#allocation14_spill] sm:$0xff] }
0x7b92   :  { %13145 = vmatmul.mubr.msk.f32.vlgmr.msra.gmra.mrb[108].mxu0 %vm654_vm3, %v9392_v9  ;;  %v17702_v9 = vld [vmem:[#allocation16_spill] sm:$0xff] }
0x7b93   :  { %14687 = vmatpush3.bf16.msra.mxu0 %v17552_v11  ;;  %13170 = vmatprep.mubr.msk.f32.mxu0 %vm15289_vm2, %v17535_v60 }
0x7b94   :  { %14688 = vmatprep.subr.bf16.mxu0 %v17529_v33 }
0x7c65   :  { %v9462_v63 = vpop.f32.mrb[108].mxu0 }
0x7c66   :  { %v9463_v57 = vadd.f32 %v16995_v5, %v9462_v63  ;;  %v13146_v34 = vpop.f32.mrb[109].mxu0  ;;  %v17703_v63 = vld [vmem:[#allocation17_spill] sm:$0xff] }
0x7c67   :  { %v17705_v34 = vld [vmem:[#allocation19_spill] sm:$0xff] }
0x7c68   :  { %v9466_v38 = vmax.f32 %v9463_v57, 0.0  ;;  %v17704_v57 = vld [vmem:[#allocation18_spill] sm:$0xff] }
0x7c6a   :  { %13164 = vmatmul.mubr.msk.f32.vlgmr.msra.gmra.mrb[108].mxu1 %vm654_vm3, %v9466_v38 }
0x7c6b   :  { %14702 = vmatpush3.bf16.msra.mxu1 %v17554_v1  ;;  %13208 = vmatprep.mubr.msk.f32.mxu1 %vm15289_vm2, %v17535_v60 }
0x7c6c   :  { %14703 = vmatprep.subr.bf16.mxu1 %v17529_v33 }
0x7c6f   :  { %14705 = vmatpush3.bf16.msra.mxu1 %v17555_v40 }
0x7c70   :  { %14706 = vmatprep.subr.bf16.mxu1 %v17529_v33 }
0x7c73   :  { %14708 = vmatpush3.bf16.msra.mxu1 %v17556_v23 }
0x7c74   :  { %14709 = vmatprep.subr.bf16.mxu1 %v17529_v33 }
0x7c77   :  { %14711 = vmatpush3.bf16.msra.mxu1 %v16074_v25  ;;  %v15208_v25 = vld [vmem:[#allocation5 + $0x130] ss:$0 sm:$0xff] }
0x7c78   :  { %14725 = vmatprep.subr.bf16.mxu1 %v15729_v36 }
0x7d3d   :  { %v9536_v11 = vpop.f32.mrb[108].mxu1 }
0x7d3e   :  { %v9537_v1 = vadd.f32 %v17009_v55, %v9536_v11  ;;  %v13165_v52 = vpop.f32.mrb[109].mxu1  ;;  %v15210_v11 = vld [vmem:[#allocation5 + $0x250] ss:$0 sm:$0xff] }
0x7d40   :  { %10575 = vst.msk [vmem:[#allocation7 + $0xc] sm:$0x3] %vm10568_vm7, %v9537_v1  ;;  %13171 = vmatmul.mubr.msk.f32.vlgmr.msra.gmra.mrb[110].mxu0 %vm2466_vm5, %v9537_v1 }
0x7d41   :  { %14690 = vmatpush3.bf16.msra.mxu0 %v17558_v62  ;;  %13189 = vmatprep.mubr.msk.f32.mxu0 %vm15289_vm2, %v17535_v60 }
0x7d42   :  { %14691 = vmatprep.subr.bf16.mxu0 %v17529_v33 }
0x7d45   :  { %14693 = vmatpush3.bf16.msra.mxu0 %v17559_v19  ;;  %v17695_v19 = vld [vmem:[#allocation63_spill] sm:$0xff] }
0x7d46   :  { %14694 = vmatprep.subr.bf16.mxu0 %v17529_v33 }
0x7d49   :  { %14696 = vmatpush3.bf16.msra.mxu0 %v17560_v46  ;;  %v17696_v46 = vld [vmem:[#allocation21_spill] sm:$0xff] }
0x7d4a   :  { %14697 = vmatprep.subr.bf16.mxu0 %v17529_v33 }
0x7d4d   :  { %14699 = vmatpush3.bf16.msra.mxu0 %v17561_v32 }
0x7d4e   :  { %14712 = vmatprep.subr.bf16.mxu0 %v17529_v33 }
0x7e13   :  { %v9609_v36 = vpop.f32.mrb[110].mxu0 }
0x7e14   :  { %v9610_v40 = vadd.f32 %v15208_v25, %v9609_v36  ;;  %v13172_v23 = vpop.f32.mrb[111].mxu0  ;;  %v17706_v25 = vld [vmem:[#allocation22_spill] sm:$0xff] }
0x7e15   :  { %v17708_v23 = vld [vmem:[#allocation24_spill] sm:$0xff] }
0x7e16   :  { %v9613_v62 = vmax.f32 %v9610_v40, 0.0  ;;  %v17707_v40 = vld [vmem:[#allocation23_spill] sm:$0xff] }
0x7e18   :  { %13190 = vmatmul.mubr.msk.f32.vlgmr.msra.gmra.mrb[112].mxu0 %vm654_vm3, %v9613_v62  ;;  %v17709_v62 = vld [vmem:[#allocation25_spill] sm:$0xff] }
0x7e19   :  { %14714 = vmatpush3.bf16.msra.mxu0 %v16078_v13  ;;  %13227 = vmatprep.mubr.msk.f32.mxu0 %vm15289_vm2, %v17535_v60 }
0x7e1a   :  { %14715 = vmatprep.subr.bf16.mxu0 %v17529_v33 }
0x7e1d   :  { %14717 = vmatpush3.bf16.msra.mxu0 %v16081_v50  ;;  %v17698_v50 = vld [vmem:[#allocation12_spill] sm:$0xff] }
0x7e1e   :  { %14718 = vmatprep.subr.bf16.mxu0 %v17529_v33 }
0x7e21   :  { %14720 = vmatpush3.bf16.msra.mxu0 %v16085_v15  ;;  %v17699_v15 = vld [vmem:[#allocation13_spill] sm:$0xff] }
0x7e22   :  { %14721 = vmatprep.subr.bf16.mxu0 %v17529_v33 }
0x7e25   :  { %14723 = vmatpush3.bf16.msra.mxu0 %v17695_v19  ;;  %v17710_v19 = vld [vmem:[#allocation26_spill] sm:$0xff] }
0x7e26   :  { %14745 = vmatprep.subr.bf16.mxu0 %v17696_v46  ;;  %v17711_v46 = vld [vmem:[#allocation27_spill] sm:$0xff] }
0x7eeb   :  { %v9683_v32 = vpop.f32.mrb[112].mxu0 }
0x7eec   :  { %v9684_v13 = vadd.f32 %v15209_v56, %v9683_v32  ;;  %v13191_v28 = vpop.f32.mrb[113].mxu0  ;;  %v17712_v32 = vld [vmem:[#allocation28_spill] sm:$0xff]  ;;  %v17713_v56 = vld [vmem:[#allocation29_spill] sm:$0xff] }
0x7eed   :  { %v17715_v28 = vld [vmem:[#allocation31_spill] sm:$0xff] }
0x7eee   :  { %v9687_v16 = vmax.f32 %v9684_v13, 0.0  ;;  %v17714_v13 = vld [vmem:[#allocation30_spill] sm:$0xff] }
0x7ef0   :  { %13209 = vmatmul.mubr.msk.f32.vlgmr.msra.gmra.mrb[110].mxu1 %vm654_vm3, %v9687_v16  ;;  %v17716_v16 = vld [vmem:[#allocation32_spill] sm:$0xff] }
0x7ef1   :  { %14727 = vmatpush1.bf16.msra.mxu1 %v17697_v45  ;;  %9908 = vmatprep.mubr.f32.mxu1 %v17535_v60  ;;  %v17717_v45 = vld [vmem:[#allocation33_spill] sm:$0xff] }
0x7ef2   :  { %14729 = vmatprep.subr.bf16.mxu1 %v17698_v50  ;;  %v17718_v50 = vld [vmem:[#allocation34_spill] sm:$0xff] }
0x7ef5   :  { %14731 = vmatpush1.bf16.msra.mxu1 %v17699_v15  ;;  %v17719_v15 = vld [vmem:[#allocation35_spill] sm:$0xff] }
0x7ef6   :  { %14733 = vmatprep.subr.bf16.mxu1 %v17700_v35  ;;  %v17720_v35 = vld [vmem:[#allocation36_spill] sm:$0xff] }
0x7ef9   :  { %14735 = vmatpush1.bf16.msra.mxu1 %v17701_v53 }
0x7efa   :  { %14737 = vmatprep.subr.bf16.mxu1 %v17702_v9  ;;  %v15211_v9 = vld [vmem:[#allocation5 + $0x2e0] ss:$0 sm:$0xff] }
0x7efd   :  { %14739 = vmatpush1.bf16.msra.mxu1 %v17703_v63 }
0x7efe   :  { %14741 = vmatprep.subr.bf16.mxu1 %v17704_v57 }
0x7f01   :  { %14743 = vmatpush1.bf16.msra.mxu1 %v17705_v34 }
0x7f02   :  { %14776 = vmatprep.subr.bf16.mxu1 %v17529_v33 }
0x7fc3   :  { %v9757_v38 = vpop.f32.mrb[110].mxu1 }
0x7fc4   :  { %v9758_v1 = vadd.f32 %v15210_v11, %v9757_v38  ;;  %v13210_v52 = vpop.f32.mrb[111].mxu1  ;;  %v9838_v38 = vpop.permute.xlu0 %9837 }
0x7fc5   :  { %v17722_v52 = vld [vmem:[#allocation38_spill] sm:$0xff] }
0x7fc6   :  { %v9761_v36 = vmax.f32 %v9758_v1, 0.0  ;;  %v17721_v1 = vld [vmem:[#allocation37_spill] sm:$0xff] }
0x7fc8   :  { %13228 = vmatmul.mubr.msk.f32.vlgmr.msra.gmra.mrb[114].mxu0 %vm654_vm3, %v9761_v36 }
0x7fc9   :  { %14747 = vmatpush1.bf16.msra.mxu0 %v17706_v25  ;;  %10013 = vmatprep.mubr.f32.mxu0 %v17535_v60 }
0x7fca   :  { %14749 = vmatprep.subr.bf16.mxu0 %v17707_v40  ;;  %v17723_v40 = vld [vmem:[#allocation20_spill] sm:$0xff] }
0x7fcd   :  { %14751 = vmatpush1.bf16.msra.mxu0 %v17708_v23 }
0x7fce   :  { %14753 = vmatprep.subr.bf16.mxu0 %v17709_v62 }
0x7fd1   :  { %14755 = vmatpush1.bf16.msra.mxu0 %v17710_v19 }
0x7fd2   :  { %14757 = vmatprep.subr.bf16.mxu0 %v17711_v46 }
0x7fd5   :  { %14759 = vmatpush1.bf16.msra.mxu0 %v17712_v32 }
0x7fd6   :  { %14761 = vmatprep.subr.bf16.mxu0 %v17713_v56 }
0x7fd9   :  { %14763 = vmatpush1.bf16.msra.mxu0 %v17714_v13 }
0x7fda   :  { %14765 = vmatprep.subr.bf16.mxu0 %v17715_v28 }
0x7fdd   :  { %14767 = vmatpush1.bf16.msra.mxu0 %v17716_v16 }
0x7fde   :  { %14769 = vmatprep.subr.bf16.mxu0 %v17717_v45 }
0x7fe1   :  { %14771 = vmatpush1.bf16.msra.mxu0 %v17718_v50 }
0x7fe2   :  { %14773 = vmatprep.subr.bf16.mxu0 %v17719_v15 }
0x7fe5   :  { %14775 = vmatpush1.bf16.msra.mxu0 %v17720_v35 }
0x7fe6   :  { %14794 = vmatprep.subr.bf16.mxu0 %v17529_v33 }
0x809b   :  { %v9831_v53 = vpop.f32.mrb[114].mxu0 }
0x809c   :  { %v9832_v63 = vadd.f32 %v15211_v9, %v9831_v53  ;;  %v13229_v57 = vpop.f32.mrb[115].mxu0 }
0x809e   :  { %v9835_v34 = vmax.f32 %v9832_v63, 0.0 }
0x80a0   :  { %v9840_v11 = vsel %vm2466_vm5, %v9835_v34, %v9838_v38 }
0x80a1   :  { %10750 = vmatmul.mubr.msk.f32.vlgmr.msra.gmra.mrb[112].mxu1 %vm2501_vm6, %v9840_v11 }
0x80a2   :  { %14778 = vmatpush3.bf16.msra.mxu1 %v17721_v1  ;;  %13238 = vmatprep.mubr.msk.f32.mxu1 %vm15289_vm2, %v17535_v60 }
0x80a3   :  { %14779 = vmatprep.subr.bf16.mxu1 %v17529_v33 }
0x80a6   :  { %14781 = vmatpush3.bf16.msra.mxu1 %v17722_v52 }
0x80a7   :  { %14782 = vmatprep.subr.bf16.mxu1 %v17529_v33 }
0x8174   :  { %v9910_v36 = vpop.f32.mrb[112].mxu1 }
0x8175   :  { %v9912_v25 = vpop.f32.mrb[113].mxu1  ;;  %v9911_v19 = vadd.f32 %v9910_v36, %v15793_v26 }
0x8176   :  { %v9913_v23 = vadd.f32 %v9912_v25, %v17723_v40 }
0x8177   :  { %v10751_v46 = vmul.f32 -1.442695, %v9911_v19 }
0x8178   :  { %15166 = vtanh.f32 %v9913_v23  ;;  %v10752_v26 = vmul.f32 -1.442695, %v9913_v23 }
0x8179   :  { %15168 = vpow2.f32 %v10751_v46 }
0x8182   :  { %v15167_v62 = vpop.eup %15166 }
0x8183   :  { %9930 = vrot.lane.b32.xlu1 %v15167_v62, %s15293_s2  ;;  %v15169_v32 = vpop.eup %15168 }
0x8184   :  { %v9921_v56 = vadd.f32 1.0, %v15169_v32 }
0x8186   :  { %15170 = vrcp.f32 %v9921_v56 }
0x8190   :  { %v15171_v13 = vpop.eup %15170 }
0x8191   :  { %v9928_v45 = vmul.f32 %v15171_v13, %v17084_v61 }
0x81f5   :  { %v9931_v28 = vpop.permute.xlu1 %9930 }
0x81f6   :  { %v9933_v16 = vmul.f32 %v15171_v13, %v9931_v28 }
0x81f8   :  { %9935 = vrot.lane.b32.xlu0 %v9933_v16, %s15293_s2 }
0x81fc   :  { %9945 = vrot.lane.b32.xlu0 %v17109_v59, %s15293_s2 }
0x826a   :  { %v9936_v50 = vpop.permute.xlu0 %9935 }
0x826b   :  { %v9938_v15 = vadd.f32 %v9936_v50, %v9928_v45 }
0x826d   :  { %15172 = vtanh.f32 %v9938_v15 }
0x826e   :  { %15174 = vpow2.f32 %v10752_v26  ;;  %v9946_v38 = vpop.permute.xlu0 %9945 }
0x8277   :  { %v15173_v35 = vpop.eup %15172 }
0x8278   :  { %9941 = vrot.lane.b32.xlu1 %v15173_v35, %s15293_s2  ;;  %v15175_v53 = vpop.eup %15174 }
0x8279   :  { %v9922_v9 = vadd.f32 1.0, %v15175_v53 }
0x827b   :  { %15176 = vrcp.f32 %v9922_v9 }
0x8285   :  { %v15177_v63 = vpop.eup %15176 }
0x82ea   :  { %v9942_v57 = vpop.permute.xlu1 %9941 }
0x82eb   :  { %v9944_v34 = vmul.f32 %v15177_v63, %v9942_v57 }
0x82ed   :  { %v9948_v11 = vsel %vm654_vm3, %v9944_v34, %v9946_v38 }
0x82ee   :  { %10014 = vmatmul.mubr.f32.vlgmr.msra.gmra.mrb[116].mxu0 %v9948_v11 }
0x82ef   :  { %14796 = vmatpush3.bf16.msra.mxu0 %v15911_v6  ;;  %13276 = vmatprep.mubr.msk.f32.mxu0 %vm15289_vm2, %v17535_v60 }
0x82f0   :  { %14797 = vmatprep.subr.bf16.mxu0 %v17529_v33 }
0x82f3   :  { %14799 = vmatpush3.bf16.msra.mxu0 %v15914_v0 }
0x82f4   :  { %14800 = vmatprep.subr.bf16.mxu0 %v17529_v33 }
0x82f7   :  { %14802 = vmatpush3.bf16.msra.mxu0 %v15918_v54 }
0x82f8   :  { %14803 = vmatprep.subr.bf16.mxu0 %v17529_v33 }
0x82fb   :  { %14805 = vmatpush3.bf16.msra.mxu0 %v15931_v12 }
0x82fc   :  { %14818 = vmatprep.subr.bf16.mxu0 %v17529_v33 }
0x83c1   :  { %v10015_v61 = vpop.f32.mrb[116].mxu0 }
0x83c2   :  { %v10017_v59 = vpop.f32.mrb[117].mxu0  ;;  %v10016_v0 = vadd.f32 %v10015_v61, %v15872_v48 }
0x83c3   :  { %v10018_v6 = vadd.f32 %v10017_v59, %v15866_v8 }
0x83c4   :  { %v10753_v52 = vmul.f32 -1.442695, %v10016_v0 }
0x83c5   :  { %15178 = vtanh.f32 %v10018_v6  ;;  %v10754_v46 = vmul.f32 -1.442695, %v10018_v6 }
0x83c6   :  { %15180 = vpow2.f32 %v10753_v52 }
0x83cf   :  { %v15179_v1 = vpop.eup %15178 }
0x83d0   :  { %10035 = vrot.lane.b32.xlu1 %v15179_v1, %s15293_s2  ;;  %v15181_v36 = vpop.eup %15180 }
0x83d1   :  { %v10026_v54 = vadd.f32 1.0, %v15181_v36 }
0x83d3   :  { %15182 = vrcp.f32 %v10026_v54 }
0x83dd   :  { %v15183_v25 = vpop.eup %15182 }
0x83de   :  { %v10033_v23 = vmul.f32 %v15183_v25, %v17105_v24 }
0x8442   :  { %v10036_v40 = vpop.permute.xlu1 %10035 }
0x8443   :  { %v10038_v12 = vmul.f32 %v15183_v25, %v10036_v40 }
0x8445   :  { %10040 = vrot.lane.b32.xlu0 %v10038_v12, %s15293_s2 }
0x84b7   :  { %v10041_v62 = vpop.permute.xlu0 %10040 }
0x84b8   :  { %v10043_v8 = vadd.f32 %v10041_v62, %v10033_v23 }
0x84ba   :  { %15184 = vtanh.f32 %v10043_v8 }
0x84bb   :  { %15186 = vpow2.f32 %v10754_v46 }
0x84c4   :  { %v15185_v19 = vpop.eup %15184 }
0x84c5   :  { %10046 = vrot.lane.b32.xlu1 %v15185_v19, %s15293_s2  ;;  %v15187_v48 = vpop.eup %15186 }
0x84c6   :  { %v10027_v32 = vadd.f32 1.0, %v15187_v48 }
0x84c8   :  { %15188 = vrcp.f32 %v10027_v32 }
0x84d2   :  { %v15189_v56 = vpop.eup %15188 }
0x8537   :  { %v10047_v13 = vpop.permute.xlu1 %10046 }
0x8538   :  { %v10049_v28 = vmul.f32 %v15189_v56, %v10047_v13 }
0x853a   :  { %13239 = vmatmul.mubr.msk.f32.vlgmr.msra.gmra.mrb[114].mxu1 %vm134_vm1, %v10049_v28 }
0x853b   :  { %14784 = vmatpush3.bf16.msra.mxu1 %v15889_v31  ;;  %13257 = vmatprep.mubr.msk.f32.mxu1 %vm15289_vm2, %v17535_v60 }
0x853c   :  { %14785 = vmatprep.subr.bf16.mxu1 %v17529_v33 }
0x853f   :  { %14787 = vmatpush3.bf16.msra.mxu1 %v15896_v14 }
0x8540   :  { %14788 = vmatprep.subr.bf16.mxu1 %v17529_v33 }
0x8543   :  { %14790 = vmatpush3.bf16.msra.mxu1 %v15902_v20 }
0x8544   :  { %14791 = vmatprep.subr.bf16.mxu1 %v17529_v33 }
0x8547   :  { %14793 = vmatpush3.bf16.msra.mxu1 %v15907_v17 }
0x8548   :  { %14806 = vmatprep.subr.bf16.mxu1 %v17529_v33 }
0x860d   :  { %v10119_v24 = vpop.f32.mrb[114].mxu1 }
0x860e   :  { %v10120_v31 = vadd.f32 %v16929_v58, %v10119_v24  ;;  %v13240_v16 = vpop.f32.mrb[115].mxu1 }
0x8610   :  { %v10123_v45 = vmax.f32 %v10120_v31, 0.0 }
0x8612   :  { %v10124_v50 = vsel %vm134_vm1, %v10123_v45, %v10049_v28 }
0x8613   :  { %13258 = vmatmul.mubr.msk.f32.vlgmr.msra.gmra.mrb[116].mxu1 %vm654_vm3, %v10124_v50 }
0x8614   :  { %14808 = vmatpush3.bf16.msra.mxu1 %v15935_v21  ;;  %13295 = vmatprep.mubr.msk.f32.mxu1 %vm15289_vm2, %v17535_v60 }
0x8615   :  { %14809 = vmatprep.subr.bf16.mxu1 %v17529_v33 }
0x8618   :  { %14811 = vmatpush3.bf16.msra.mxu1 %v15938_v30 }
0x8619   :  { %14812 = vmatprep.subr.bf16.mxu1 %v17529_v33 }
0x861c   :  { %14814 = vmatpush3.bf16.msra.mxu1 %v15942_v37 }
0x861d   :  { %14815 = vmatprep.subr.bf16.mxu1 %v17529_v33 }
0x8620   :  { %14817 = vmatpush3.bf16.msra.mxu1 %v15953_v4 }
0x8621   :  { %14830 = vmatprep.subr.bf16.mxu1 %v17529_v33 }
0x86e6   :  { %v10194_v14 = vpop.f32.mrb[116].mxu1 }
0x86e7   :  { %v10195_v20 = vadd.f32 %v16945_v2, %v10194_v14  ;;  %v13259_v17 = vpop.f32.mrb[117].mxu1 }
0x86e9   :  { %v10198_v21 = vmax.f32 %v10195_v20, 0.0 }
0x86eb   :  { %13277 = vmatmul.mubr.msk.f32.vlgmr.msra.gmra.mrb[118].mxu0 %vm654_vm3, %v10198_v21 }
0x86ec   :  { %14820 = vmatpush3.bf16.msra.mxu0 %v15957_v18  ;;  %13314 = vmatprep.mubr.msk.f32.mxu0 %vm15289_vm2, %v17535_v60 }
0x86ed   :  { %14821 = vmatprep.subr.bf16.mxu0 %v17529_v33 }
0x86f0   :  { %14823 = vmatpush3.bf16.msra.mxu0 %v17538_v22 }
0x86f1   :  { %14824 = vmatprep.subr.bf16.mxu0 %v17529_v33 }
0x86f4   :  { %14826 = vmatpush3.bf16.msra.mxu0 %v17539_v49 }
0x86f5   :  { %14827 = vmatprep.subr.bf16.mxu0 %v17529_v33 }
0x86f8   :  { %14829 = vmatpush3.bf16.msra.mxu0 %v17540_v41 }
0x86f9   :  { %14842 = vmatprep.subr.bf16.mxu0 %v17529_v33 }
0x87be   :  { %v10268_v30 = vpop.f32.mrb[118].mxu0 }
0x87bf   :  { %v10269_v37 = vadd.f32 %v16959_v29, %v10268_v30  ;;  %v13278_v4 = vpop.f32.mrb[119].mxu0 }
0x87c1   :  { %v10272_v18 = vmax.f32 %v10269_v37, 0.0 }
0x87c3   :  { %13296 = vmatmul.mubr.msk.f32.vlgmr.msra.gmra.mrb[118].mxu1 %vm654_vm3, %v10272_v18 }
0x87c4   :  { %14832 = vmatpush3.bf16.msra.mxu1 %v17600_v3  ;;  %13333 = vmatprep.mubr.msk.f32.mxu1 %vm15289_vm2, %v17535_v60 }
0x87c5   :  { %14833 = vmatprep.subr.bf16.mxu1 %v17529_v33 }
0x87c8   :  { %14835 = vmatpush3.bf16.msra.mxu1 %v17601_v51 }
0x87c9   :  { %14836 = vmatprep.subr.bf16.mxu1 %v17529_v33 }
0x87cc   :  { %14838 = vmatpush3.bf16.msra.mxu1 %v17602_v10 }
0x87cd   :  { %14839 = vmatprep.subr.bf16.mxu1 %v17529_v33 }
0x87d0   :  { %14841 = vmatpush3.bf16.msra.mxu1 %v17603_v47 }
0x8896   :  { %v10342_v22 = vpop.f32.mrb[118].mxu1 }
0x8897   :  { %v10343_v49 = vadd.f32 %v16973_v44, %v10342_v22  ;;  %v13297_v41 = vpop.f32.mrb[119].mxu1 }
0x8899   :  { %v10346_v3 = vmax.f32 %v10343_v49, 0.0 }
0x889b   :  { %13315 = vmatmul.mubr.msk.f32.vlgmr.msra.gmra.mrb[120].mxu0 %vm654_vm3, %v10346_v3 }
0x889c   :  { %14844 = vmatpush3.bf16.msra.mxu0 %v17633_v43  ;;  %13352 = vmatprep.mubr.msk.f32.mxu0 %vm15289_vm2, %v17535_v60 }
0x889d   :  { %14845 = vmatprep.subr.bf16.mxu0 %v17529_v33 }
0x88a0   :  { %14847 = vmatpush3.bf16.msra.mxu0 %v17634_v27 }
0x88a1   :  { %14848 = vmatprep.subr.bf16.mxu0 %v17529_v33 }
0x88a4   :  { %14850 = vmatpush3.bf16.msra.mxu0 %v17635_v39 }
0x88a5   :  { %14851 = vmatprep.subr.bf16.mxu0 %v17529_v33 }
0x88a8   :  { %14853 = vmatpush3.bf16.msra.mxu0 %v17694_v7 }
0x896e   :  { %v10416_v51 = vpop.f32.mrb[120].mxu0 }
0x896f   :  { %v10417_v10 = vadd.f32 %v16987_v42, %v10416_v51  ;;  %v13316_v47 = vpop.f32.mrb[121].mxu0 }
0x8971   :  { %v10420_v43 = vmax.f32 %v10417_v10, 0.0 }
0x8973   :  { %13334 = vmatmul.mubr.msk.f32.vlgmr.msra.gmra.mrb[120].mxu1 %vm654_vm3, %v10420_v43 }
0x8a46   :  { %v10490_v60 = vpop.f32.mrb[120].mxu1 }
0x8a47   :  { %v10491_v58 = vadd.f32 %v16995_v5, %v10490_v60  ;;  %v13335_v2 = vpop.f32.mrb[121].mxu1 }
0x8a49   :  { %v10494_v27 = vmax.f32 %v10491_v58, 0.0 }
0x8a4b   :  { %13353 = vmatmul.mubr.msk.f32.vlgmr.msra.gmra.mrb[122].mxu0 %vm654_vm3, %v10494_v27 }
0x8b1e   :  { %v10564_v39 = vpop.f32.mrb[122].mxu0 }
0x8b1f   :  { %v10565_v33 = vadd.f32 %v17009_v55, %v10564_v39  ;;  %v13354_v29 = vpop.f32.mrb[123].mxu0 }
0x8b21   :  { %10576 = vst.msk [vmem:[#allocation7 + $0xe] sm:$0x3] %vm10568_vm7, %v10565_v33 }
0x8b22   :  { %15267 = shalt.err (!%p15264_p6)
}
0x8b23   :  { %s15268_s21 = scalar_lea.hbm %s17359_s3, 256 }
0x8b24   :  { %p15269_p7 = scmp.ne.s32.totalorder %s17359_s3, %s15268_s21  ;;  %p15272_p8 = scmp.lt.u32.totalorder %s15268_s21, %s17359_s3 }
0x8b26   :  { %p15274_p9 = pnand %p15272_p8, %p15269_p7 }
0x8b28   :  { %15277 = shalt.err (!%p15274_p9)
}
0x8b29   :  { %s15297_s26 = smov 2  }
0x8b2a   :  { %10588 = dma.vmem_to_hbm [thread:$0]  %s10583_s17, 256, %s17359_s3, [#allocation4], %s15292_s0, %s15292_s0, %s15297_s26  }
0x8b2b   :  { %15282 = dma.done.wait [#allocation4], 256  }
0x8b2c   :  { %15283 = vsyncadd [#allocation4], 4294967040 }
0x8b2d   :  { %10592 = vsyncpa [#allocation3], 1 }
0x8b2e   :  { %10593 = vsyncpa [#allocation6], 1 }
0x8b2f   :  { %10594 = vsyncpa [#allocation4], 1 }

</bundles_post_ra>
